<compile_context>
chip_gen: v7x
topology: tpu7x:2x2x1
jax: 0.10.0
libtpu: 0.0.40
codegen_flags: <defaults>
</compile_context>

<pallas_src>
import functools

import jax
import jax.numpy as jnp
from jax.experimental import pallas as pl
from jax.experimental.pallas import tpu as pltpu

EPS = 1e-12  # BERT LayerNorm eps


# ----------------------------- config helpers --------------------------------

def _vmem_config():
    """Returns (vmem_limit_bytes, big_tiles) with headroom under physical VMEM."""
    cap = 64 * 1024 * 1024                       # conservative fallback (v7x)
    try:
        info = pltpu.get_tpu_info()
        cap = int(getattr(info, "vmem_capacity_bytes", cap)) or cap
    except Exception:
        pass
    limit = min(cap - 16 * 1024 * 1024, 100 * 1024 * 1024)
    limit = max(limit, 32 * 1024 * 1024)
    return limit, limit >= 96 * 1024 * 1024


def _pick_tile(n, candidates):
    for c in candidates:
        if n % c == 0:
            return c
    if n <= max(candidates):
        return n
    raise ValueError(f"no tile from {candidates} divides {n}")


def _cparams(sem, vmem_limit):
    return pltpu.CompilerParams(dimension_semantics=sem,
                                vmem_limit_bytes=vmem_limit)


def _layer_norm(x, g, b):
    mu = jnp.mean(x, axis=-1, keepdims=True)
    var = jnp.mean(jnp.square(x - mu), axis=-1, keepdims=True)
    return (x - mu) * jax.lax.rsqrt(var + EPS) * g + b


# ----------------------------- kernels ---------------------------------------

def _embed_ln_kernel(emb_ref, g_ref, b_ref, out_ref):
    out_ref[...] = _layer_norm(emb_ref[...], g_ref[...], b_ref[...]
                               ).astype(out_ref.dtype)


def _qkv_kernel(x_ref, w_ref, b_ref, out_ref):
    # x: [tr, H] bf16, w: [H, 3H] bf16, b: [1, 3H] f32; f32 accumulate.
    r = jnp.dot(x_ref[...], w_ref[...],
                preferred_element_type=jnp.float32) + b_ref[...]
    out_ref[...] = r.astype(out_ref.dtype)


def _flash_attn_kernel(kvb_ref, q_ref, k_ref, v_ref, mb_ref, o_ref,
                       m_sc, l_sc, acc_sc, *, nh, hd):
    """Online-softmax flash attention over KV tiles, all heads per q tile."""
    b = pl.program_id(0)
    ki = pl.program_id(2)

    @pl.when(ki == 0)
    def _():
        m_sc[...] = jnp.full(m_sc.shape, -jnp.inf, m_sc.dtype)
        l_sc[...] = jnp.zeros(l_sc.shape, l_sc.dtype)
        acc_sc[...] = jnp.zeros(acc_sc.shape, acc_sc.dtype)

    # Skip KV tiles that contain only padding (bias would be -1e4 everywhere).
    @pl.when(ki < kvb_ref[b])
    def _():
        q = q_ref[0]          # [tq, H] bf16 (1/sqrt(hd) folded into weights)
        k = k_ref[0]          # [tk, H] bf16
        v = v_ref[0]          # [tk, H] bf16
        mb = mb_ref[0]        # [1, tk] f32 additive mask bias

        for h in range(nh):   # static unroll over heads, lane slices of width hd
            sl = slice(h * hd, (h + 1) * hd)
            s = jax.lax.dot_general(q[:, sl], k[:, sl],
                                    (((1,), (1,)), ((), ())),
                                    preferred_element_type=jnp.float32)
            s = s + mb                                            # [tq, tk]
            m_prev = m_sc[h]                                      # [tq, 1]
            m_new = jnp.maximum(m_prev, jnp.max(s, axis=-1, keepdims=True))
            alpha = jnp.exp(m_prev - m_new)
            p = jnp.exp(s - m_new)
            l_sc[h] = alpha * l_sc[h] + jnp.sum(p, axis=-1, keepdims=True)
            acc_sc[:, sl] = alpha * acc_sc[:, sl] + jnp.dot(
                p.astype(jnp.bfloat16), v[:, sl],
                preferred_element_type=jnp.float32)
            m_sc[h] = m_new

    @pl.when(ki == pl.num_programs(2) - 1)
    def _():
        for h in range(nh):
            sl = slice(h * hd, (h + 1) * hd)
            inv_l = pl.reciprocal(l_sc[h], approx=True)
            o_ref[0, :, sl] = (acc_sc[:, sl] * inv_l).astype(o_ref.dtype)


def _post_attn_ffn_kernel(ctx_ref, x_ref, wo_ref, bo_ref, g1_ref, b1ln_ref,
                          w1_ref, b1_ref, w2_ref, b2_ref, g2_ref, b2ln_ref,
                          out_ref, h1_ref, acc_ref):
    """Attention out-proj + residual + LN1, then GELU FFN + residual + LN2."""
    f = pl.program_id(1)

    @pl.when(f == 0)
    def _():
        a = jnp.dot(ctx_ref[...], wo_ref[...],
                    preferred_element_type=jnp.float32) + bo_ref[...]
        h1_ref[...] = _layer_norm(x_ref[...].astype(jnp.float32) + a,
                                  g1_ref[...], b1ln_ref[...])
        acc_ref[...] = jnp.zeros(acc_ref.shape, acc_ref.dtype)

    inter = jnp.dot(h1_ref[...].astype(jnp.bfloat16), w1_ref[...],
                    preferred_element_type=jnp.float32) + b1_ref[...]
    # TODO(synk): HF BERT uses exact erf-GELU; tanh approximation used here.
    inter = jax.nn.gelu(inter, approximate=True)
    acc_ref[...] += jnp.dot(inter.astype(jnp.bfloat16), w2_ref[...],
                            preferred_element_type=jnp.float32)

    @pl.when(f == pl.num_programs(1) - 1)
    def _():
        y = _layer_norm(h1_ref[...] + acc_ref[...] + b2_ref[...],
                        g2_ref[...], b2ln_ref[...])
        out_ref[...] = y.astype(out_ref.dtype)


# ----------------------------- wrappers ---------------------------------------

def embed_layer_norm(emb, g, b, tr, vmem_limit):
    T, H = emb.shape
    return pl.pallas_call(
        _embed_ln_kernel,
        out_shape=jax.ShapeDtypeStruct((T, H), jnp.bfloat16),
        grid=(T // tr,),
        in_specs=[pl.BlockSpec((tr, H), lambda i: (i, 0)),
                  pl.BlockSpec((1, H), lambda i: (0, 0)),
                  pl.BlockSpec((1, H), lambda i: (0, 0))],
        out_specs=pl.BlockSpec((tr, H), lambda i: (i, 0)),
        compiler_params=_cparams(("parallel",), vmem_limit),
    )(emb, g, b)


def qkv_proj(x, wqkv, bqkv, tr, vmem_limit):
    T, H = x.shape
    threeH = wqkv.shape[1]
    return pl.pallas_call(
        _qkv_kernel,
        out_shape=jax.ShapeDtypeStruct((T, threeH), jnp.bfloat16),
        grid=(T // tr,),
        in_specs=[pl.BlockSpec((tr, H), lambda i: (i, 0)),
                  pl.BlockSpec((H, threeH), lambda i: (0, 0)),
                  pl.BlockSpec((1, threeH), lambda i: (0, 0))],
        out_specs=pl.BlockSpec((tr, threeH), lambda i: (i, 0)),
        compiler_params=_cparams(("parallel",), vmem_limit),
    )(x, wqkv, bqkv)


def flash_attention(qkv3, maskb, kvb, nh, hd, tq, tk, vmem_limit):
    """qkv3: [B, s_pad, 3H] bf16 -> ctx [B, s_pad, H] bf16 (lane-dense)."""
    B, s_pad, threeH = qkv3.shape
    H = threeH // 3
    kernel = functools.partial(_flash_attn_kernel, nh=nh, hd=hd)
    grid_spec = pltpu.PrefetchScalarGridSpec(
        num_scalar_prefetch=1,
        grid=(B, s_pad // tq, s_pad // tk),
        in_specs=[
            # Q / K / V tiles read straight out of the fused [B, s_pad, 3H].
            pl.BlockSpec((1, tq, H), lambda b, qi, ki, kvb: (b, qi, 0)),
            pl.BlockSpec((1, tk, H),
                         lambda b, qi, ki, kvb: (b, jnp.minimum(ki, kvb[b] - 1), 1)),
            pl.BlockSpec((1, tk, H),
                         lambda b, qi, ki, kvb: (b, jnp.minimum(ki, kvb[b] - 1), 2)),
            pl.BlockSpec((1, 1, tk),
                         lambda b, qi, ki, kvb: (b, 0, jnp.minimum(ki, kvb[b] - 1))),
        ],
        out_specs=pl.BlockSpec((1, tq, H), lambda b, qi, ki, kvb: (b, qi, 0)),
        scratch_shapes=[pltpu.VMEM((nh, tq, 1), jnp.float32),
                        pltpu.VMEM((nh, tq, 1), jnp.float32),
                        pltpu.VMEM((tq, H), jnp.float32)],
    )
    return pl.pallas_call(
        kernel,
        out_shape=jax.ShapeDtypeStruct((B, s_pad, H), jnp.bfloat16),
        grid_spec=grid_spec,
        compiler_params=_cparams(("parallel", "parallel", "arbitrary"),
                                 vmem_limit),
    )(kvb, qkv3, qkv3, qkv3, maskb)


def post_attention(ctx, x, lp, tr, tf, vmem_limit):
    T, H = x.shape
    F = lp['w1'].shape[1]
    return pl.pallas_call(
        _post_attn_ffn_kernel,
        out_shape=jax.ShapeDtypeStruct((T, H), jnp.bfloat16),
        grid=(T // tr, F // tf),
        in_specs=[pl.BlockSpec((tr, H), lambda i, f: (i, 0)),    # ctx
                  pl.BlockSpec((tr, H), lambda i, f: (i, 0)),    # residual x
                  pl.BlockSpec((H, H), lambda i, f: (0, 0)),     # wo
                  pl.BlockSpec((1, H), lambda i, f: (0, 0)),     # bo
                  pl.BlockSpec((1, H), lambda i, f: (0, 0)),     # ln1 gamma
                  pl.BlockSpec((1, H), lambda i, f: (0, 0)),     # ln1 beta
                  pl.BlockSpec((H, tf), lambda i, f: (0, f)),    # w1 tile
                  pl.BlockSpec((1, tf), lambda i, f: (0, f)),    # b1 tile
                  pl.BlockSpec((tf, H), lambda i, f: (f, 0)),    # w2 tile
                  pl.BlockSpec((1, H), lambda i, f: (0, 0)),     # b2
                  pl.BlockSpec((1, H), lambda i, f: (0, 0)),     # ln2 gamma
                  pl.BlockSpec((1, H), lambda i, f: (0, 0))],    # ln2 beta
        out_specs=pl.BlockSpec((tr, H), lambda i, f: (i, 0)),
        scratch_shapes=[pltpu.VMEM((tr, H), jnp.float32),        # h1 (post-LN1)
                        pltpu.VMEM((tr, H), jnp.float32)],       # FFN accumulator
        compiler_params=_cparams(("parallel", "arbitrary"), vmem_limit),
    )(ctx, x, lp['wo'], lp['bo'], lp['ln1_g'], lp['ln1_b'],
      lp['w1'], lp['b1'], lp['w2'], lp['b2'], lp['ln2_g'], lp['ln2_b'])


# ----------------------------- forward ----------------------------------------

def bert_forward(params, x_ids, segs, mask, num_heads):
    """Equivalent of Bert.forward(x, segs, mask) -> top_vec [B, S, H]."""
    B, S = x_ids.shape
    H = params['word_emb'].shape[1]
    nh = num_heads
    hd = H // nh
    assert H % 128 == 0, "hidden size must be lane-dense (multiple of 128)"

    vmem_limit, big = _vmem_config()

    # Pad sequence so attention/score tiles are lane-dense (multiple of 128).
    s_pad = ((S + 127) // 128) * 128
    pad = s_pad - S
    T = B * s_pad
    row_cands = (1024, 512, 256, 128) if big else (512, 256, 128)
    tr = _pick_tile(T, row_cands)              # row tile (B*S tokens)
    tq = _pick_tile(s_pad, (256, 128))         # attention q tile
    tk = 128                                   # kv tile (s_pad % 128 == 0)

    # Embedding gathers stay in plain JAX (no Pallas gather needed here).
    pos_ids = jnp.arange(S)[None, :]
    emb = (params['word_emb'][x_ids]
           + params['pos_emb'][pos_ids]
           + params['type_emb'][segs])                       # [B, S, H] f32
    emb = jnp.pad(emb, ((0, 0), (0, pad), (0, 0))).reshape(T, H)

    h = embed_layer_norm(emb, params['emb_ln_g'], params['emb_ln_b'],
                         tr, vmem_limit)                     # [T, H] bf16

    # HF-style extended attention mask: (1 - mask) * -10000, padding masked.
    mask_p = jnp.pad(mask.astype(jnp.float32), ((0, 0), (0, pad)))
    maskb = ((1.0 - mask_p) * -10000.0)[:, None, :]          # [B, 1, s_pad]
    # Per-batch count of KV tiles containing at least one real key.
    last_idx = jnp.max(jnp.where(mask_p > 0,
                                 jnp.arange(s_pad, dtype=jnp.int32)[None, :],
                                 -1), axis=-1)
    kvb = jnp.maximum(1, (last_idx + tk) // tk).astype(jnp.int32)   # [B]

    for lp in params['layers']:
        # Fused QKV projection (scale pre-folded into wq/bq at prepare time).
        qkv = qkv_proj(h, lp['wqkv'], lp['bqkv'], tr, vmem_limit)    # [T,3H] bf16
        qkv3 = qkv.reshape(B, s_pad, 3 * H)                          # free reshape

        ctx = flash_attention(qkv3, maskb, kvb, nh, hd, tq, tk,
                              vmem_limit)                            # [B,s_pad,H]
        ctx = ctx.reshape(T, H)                                      # free reshape

        tf_ = _pick_tile(lp['w1'].shape[1],
                         (1024, 512, 256, 128) if big else (512, 256, 128))
        h = post_attention(ctx, h, lp, tr, tf_, vmem_limit)          # [T,H] bf16

    top_vec = h.reshape(B, s_pad, H)[:, :S, :].astype(jnp.float32)
    return top_vec   # last hidden states; dropout is identity in eval mode


# ----------------------------- params -----------------------------------------

def init_params(key, *, vocab, max_pos, type_vocab, H, nh, F, layers):
    def nrm(k, shape, std=0.02):
        return std * jax.random.normal(k, shape, jnp.float32)

    keys = jax.random.split(key, 4 + layers)
    params = {
        'word_emb': nrm(keys[0], (vocab, H)),
        'pos_emb': nrm(keys[1], (max_pos, H)),
        'type_emb': nrm(keys[2], (type_vocab, H)),
        'emb_ln_g': jnp.ones((1, H), jnp.float32),
        'emb_ln_b': jnp.zeros((1, H), jnp.float32),
        'layers': [],
    }
    for l in range(layers):
        ks = jax.random.split(keys[4 + l], 6)
        params['layers'].append({
            'wq': nrm(ks[0], (H, H)), 'bq': jnp.zeros((1, H), jnp.float32),
            'wk': nrm(ks[1], (H, H)), 'bk': jnp.zeros((1, H), jnp.float32),
            'wv': nrm(ks[2], (H, H)), 'bv': jnp.zeros((1, H), jnp.float32),
            'wo': nrm(ks[3], (H, H)), 'bo': jnp.zeros((1, H), jnp.float32),
            'ln1_g': jnp.ones((1, H), jnp.float32),
            'ln1_b': jnp.zeros((1, H), jnp.float32),
            'w1': nrm(ks[4], (H, F)), 'b1': jnp.zeros((1, F), jnp.float32),
            'w2': nrm(ks[5], (F, H)), 'b2': jnp.zeros((1, H), jnp.float32),
            'ln2_g': jnp.ones((1, H), jnp.float32),
            'ln2_b': jnp.zeros((1, H), jnp.float32),
        })
    return params


def prepare_params(params, num_heads):
    """One-time weight prep: fuse QKV, fold 1/sqrt(hd), cast matmul weights bf16."""
    H = params['word_emb'].shape[1]
    hd = H // num_heads
    scale = 1.0 / (hd ** 0.5)
    prep = {k: params[k] for k in ('word_emb', 'pos_emb', 'type_emb',
                                   'emb_ln_g', 'emb_ln_b')}
    prep['layers'] = []
    for lp in params['layers']:
        prep['layers'].append({
            'wqkv': jnp.concatenate([lp['wq'] * scale, lp['wk'], lp['wv']],
                                    axis=1).astype(jnp.bfloat16),    # [H, 3H]
            'bqkv': jnp.concatenate([lp['bq'] * scale, lp['bk'], lp['bv']],
                                    axis=1),                         # [1, 3H] f32
            'wo': lp['wo'].astype(jnp.bfloat16), 'bo': lp['bo'],
            'ln1_g': lp['ln1_g'], 'ln1_b': lp['ln1_b'],
            'w1': lp['w1'].astype(jnp.bfloat16), 'b1': lp['b1'],
            'w2': lp['w2'].astype(jnp.bfloat16), 'b2': lp['b2'],
            'ln2_g': lp['ln2_g'], 'ln2_b': lp['ln2_b'],
        })
    return prep


# ----------------------------- main --------------------------------------------

if __name__ == "__main__":
    # Small synthetic KoBERT-like config (H kept lane-dense at 128).
    B, S = 2, 8
    VOCAB, MAX_POS, TYPE_VOCAB = 64, 64, 2
    H, NH, FFN_DIM, LAYERS = 128, 4, 256, 2

    root = jax.random.PRNGKey(0)
    kp, kx, ks_, km = jax.random.split(root, 4)

    raw_params = init_params(kp, vocab=VOCAB, max_pos=MAX_POS,
                             type_vocab=TYPE_VOCAB, H=H, nh=NH, F=FFN_DIM,
                             layers=LAYERS)
    params = prepare_params(raw_params, NH)   # fused/scaled/bf16 weights, once

    x_ids = jax.random.randint(kx, (B, S), 0, VOCAB, dtype=jnp.int32)
    segs = jax.random.randint(ks_, (B, S), 0, TYPE_VOCAB, dtype=jnp.int32)
    # mask: 1 = attend, 0 = padding (mask out last 2 tokens of batch 1).
    mask = jnp.ones((B, S), jnp.float32).at[1, S - 2:].set(0.0)

    fwd = jax.jit(functools.partial(bert_forward, num_heads=NH))
    top_vec = fwd(params, x_ids, segs, mask)
    jax.block_until_ready(top_vec)

    assert top_vec.shape == (B, S, H)
    assert bool(jnp.all(jnp.isfinite(top_vec)))
    print("KERNEL_OK")
</pallas_src>

<mosaic_0001>
module attributes {stable_mosaic.version = 11 : i64} {
  func.func @_embed_ln_kernel(%arg0: i32, %arg1: memref<256x128xf32, #tpu.memory_space<vmem>>, %arg2: memref<1x128xf32, #tpu.memory_space<vmem>>, %arg3: memref<1x128xf32, #tpu.memory_space<vmem>>, %arg4: memref<256x128xbf16, #tpu.memory_space<vmem>>) attributes {dimension_semantics = [#tpu.dimension_semantics<parallel>], iteration_bounds = array<i64: 1>, scalar_prefetch = 0 : i64, scratch_operands = 0 : i64, tpu.core_type = #tpu.core_type<tc>, window_params = [{transform_indices = @transform_0, window_bounds = array<i64: 256, 128>}, {pipeline_mode = #tpu.pipeline_mode<synchronous>, transform_indices = @transform_1, window_bounds = array<i64: 1, 128>}, {pipeline_mode = #tpu.pipeline_mode<synchronous>, transform_indices = @transform_2, window_bounds = array<i64: 1, 128>}, {transform_indices = @transform_3, window_bounds = array<i64: 256, 128>}]} {
    %c0 = arith.constant 0 : index
    %c0_0 = arith.constant 0 : index
    %0 = vector.load %arg1[%c0, %c0_0] : memref<256x128xf32, #tpu.memory_space<vmem>>, vector<256x128xf32>
    %c0_1 = arith.constant 0 : index
    %c0_2 = arith.constant 0 : index
    %1 = vector.load %arg2[%c0_1, %c0_2] : memref<1x128xf32, #tpu.memory_space<vmem>>, vector<1x128xf32>
    %c0_3 = arith.constant 0 : index
    %c0_4 = arith.constant 0 : index
    %2 = vector.load %arg3[%c0_3, %c0_4] : memref<1x128xf32, #tpu.memory_space<vmem>>, vector<1x128xf32>
    %cst = arith.constant dense<0.000000e+00> : vector<256xf32>
    %3 = vector.multi_reduction <add>, %0, %cst [1] : vector<256x128xf32> to vector<256xf32>
    %4 = vector.shape_cast %3 : vector<256xf32> to vector<256x1xf32>
    %cst_5 = arith.constant 1.280000e+02 : f32
    %5 = vector.broadcast %cst_5 : f32 to vector<256x1xf32>
    %6 = arith.divf %4, %5 : vector<256x1xf32>
    %7 = vector.broadcast %6 : vector<256x1xf32> to vector<256x128xf32>
    %8 = arith.subf %0, %7 : vector<256x128xf32>
    %9 = arith.mulf %8, %8 : vector<256x128xf32>
    %cst_6 = arith.constant dense<0.000000e+00> : vector<256xf32>
    %10 = vector.multi_reduction <add>, %9, %cst_6 [1] : vector<256x128xf32> to vector<256xf32>
    %11 = vector.shape_cast %10 : vector<256xf32> to vector<256x1xf32>
    %cst_7 = arith.constant 1.280000e+02 : f32
    %12 = vector.broadcast %cst_7 : f32 to vector<256x1xf32>
    %13 = arith.divf %11, %12 : vector<256x1xf32>
    %14 = vector.broadcast %6 : vector<256x1xf32> to vector<256x128xf32>
    %15 = arith.subf %0, %14 : vector<256x128xf32>
    %cst_8 = arith.constant 9.99999996E-13 : f32
    %16 = vector.broadcast %cst_8 : f32 to vector<256x1xf32>
    %17 = arith.addf %13, %16 : vector<256x1xf32>
    %18 = math.rsqrt %17 : vector<256x1xf32>
    %19 = vector.broadcast %18 : vector<256x1xf32> to vector<256x128xf32>
    %20 = arith.mulf %15, %19 : vector<256x128xf32>
    %21 = vector.broadcast %1 : vector<1x128xf32> to vector<256x128xf32>
    %22 = arith.mulf %20, %21 : vector<256x128xf32>
    %23 = vector.broadcast %2 : vector<1x128xf32> to vector<256x128xf32>
    %24 = arith.addf %22, %23 : vector<256x128xf32>
    %25 = arith.truncf %24 : vector<256x128xf32> to vector<256x128xbf16>
    %c0_9 = arith.constant 0 : index
    %c0_10 = arith.constant 0 : index
    %26 = vector.load %arg4[%c0_9, %c0_10] : memref<256x128xbf16, #tpu.memory_space<vmem>>, vector<256x128xbf16>
    tpu.vector_store %arg4[%c0_9, %c0_10], %25 {strides = array<i32>} : memref<256x128xbf16, #tpu.memory_space<vmem>>, vector<256x128xbf16>,
    return
  }
  func.func @transform_0(%arg0: i32) -> (i32, i32) {
    %c0_i32 = arith.constant 0 : i32
    %c0_i32_0 = arith.constant 0 : i32
    return %arg0, %c0_i32 : i32, i32
  }
  func.func @transform_1(%arg0: i32) -> (i32, i32) {
    %c0_i32 = arith.constant 0 : i32
    %c0_i32_0 = arith.constant 0 : i32
    %c0_i32_1 = arith.constant 0 : i32
    return %c0_i32, %c0_i32_0 : i32, i32
  }
  func.func @transform_2(%arg0: i32) -> (i32, i32) {
    %c0_i32 = arith.constant 0 : i32
    %c0_i32_0 = arith.constant 0 : i32
    %c0_i32_1 = arith.constant 0 : i32
    return %c0_i32, %c0_i32_0 : i32, i32
  }
  func.func @transform_3(%arg0: i32) -> (i32, i32) {
    %c0_i32 = arith.constant 0 : i32
    %c0_i32_0 = arith.constant 0 : i32
    return %arg0, %c0_i32 : i32, i32
  }
}

module attributes {stable_mosaic.version = 11 : i64} {
  func.func @_qkv_kernel(%arg0: i32, %arg1: memref<256x128xbf16, #tpu.memory_space<vmem>>, %arg2: memref<128x384xbf16, #tpu.memory_space<vmem>>, %arg3: memref<1x384xf32, #tpu.memory_space<vmem>>, %arg4: memref<256x384xbf16, #tpu.memory_space<vmem>>) attributes {dimension_semantics = [#tpu.dimension_semantics<parallel>], iteration_bounds = array<i64: 1>, scalar_prefetch = 0 : i64, scratch_operands = 0 : i64, tpu.core_type = #tpu.core_type<tc>, window_params = [{transform_indices = @transform_0, window_bounds = array<i64: 256, 128>}, {pipeline_mode = #tpu.pipeline_mode<synchronous>, transform_indices = @transform_1, window_bounds = array<i64: 128, 384>}, {pipeline_mode = #tpu.pipeline_mode<synchronous>, transform_indices = @transform_2, window_bounds = array<i64: 1, 384>}, {transform_indices = @transform_3, window_bounds = array<i64: 256, 384>}]} {
    %c0 = arith.constant 0 : index
    %c0_0 = arith.constant 0 : index
    %0 = vector.load %arg1[%c0, %c0_0] : memref<256x128xbf16, #tpu.memory_space<vmem>>, vector<256x128xbf16>
    %c0_1 = arith.constant 0 : index
    %c0_2 = arith.constant 0 : index
    %1 = vector.load %arg2[%c0_1, %c0_2] : memref<128x384xbf16, #tpu.memory_space<vmem>>, vector<128x384xbf16>
    %cst = arith.constant dense<0.000000e+00> : vector<256x384xf32>
    %2 = tpu.matmul %0, %1, %cst {dimension_numbers = #tpu.dot_dimension_numbers<[1], [0], [0], [1], [0, 0, 1, 1], [], []>} : vector<256x128xbf16>, vector<128x384xbf16>, vector<256x384xf32> -> vector<256x384xf32>
    %c0_3 = arith.constant 0 : index
    %c0_4 = arith.constant 0 : index
    %3 = vector.load %arg3[%c0_3, %c0_4] : memref<1x384xf32, #tpu.memory_space<vmem>>, vector<1x384xf32>
    %4 = vector.broadcast %3 : vector<1x384xf32> to vector<256x384xf32>
    %5 = arith.addf %2, %4 : vector<256x384xf32>
    %6 = arith.truncf %5 : vector<256x384xf32> to vector<256x384xbf16>
    %c0_5 = arith.constant 0 : index
    %c0_6 = arith.constant 0 : index
    %7 = vector.load %arg4[%c0_5, %c0_6] : memref<256x384xbf16, #tpu.memory_space<vmem>>, vector<256x384xbf16>
    tpu.vector_store %arg4[%c0_5, %c0_6], %6 {strides = array<i32>} : memref<256x384xbf16, #tpu.memory_space<vmem>>, vector<256x384xbf16>,
    return
  }
  func.func @transform_0(%arg0: i32) -> (i32, i32) {
    %c0_i32 = arith.constant 0 : i32
    %c0_i32_0 = arith.constant 0 : i32
    return %arg0, %c0_i32 : i32, i32
  }
  func.func @transform_1(%arg0: i32) -> (i32, i32) {
    %c0_i32 = arith.constant 0 : i32
    %c0_i32_0 = arith.constant 0 : i32
    %c0_i32_1 = arith.constant 0 : i32
    return %c0_i32, %c0_i32_0 : i32, i32
  }
  func.func @transform_2(%arg0: i32) -> (i32, i32) {
    %c0_i32 = arith.constant 0 : i32
    %c0_i32_0 = arith.constant 0 : i32
    %c0_i32_1 = arith.constant 0 : i32
    return %c0_i32, %c0_i32_0 : i32, i32
  }
  func.func @transform_3(%arg0: i32) -> (i32, i32) {
    %c0_i32 = arith.constant 0 : i32
    %c0_i32_0 = arith.constant 0 : i32
    return %arg0, %c0_i32 : i32, i32
  }
}

module attributes {stable_mosaic.version = 11 : i64} {
  func.func @_flash_attn_kernel(%arg0: i32, %arg1: i32, %arg2: i32, %arg3: memref<2xi32, #tpu.memory_space<smem>>, %arg4: memref<1x128x128xbf16, #tpu.memory_space<vmem>>, %arg5: memref<1x128x128xbf16, #tpu.memory_space<vmem>>, %arg6: memref<1x128x128xbf16, #tpu.memory_space<vmem>>, %arg7: memref<1x1x128xf32, #tpu.memory_space<vmem>>, %arg8: memref<1x128x128xbf16, #tpu.memory_space<vmem>>, %arg9: memref<4x128x1xf32, #tpu.memory_space<vmem>>, %arg10: memref<4x128x1xf32, #tpu.memory_space<vmem>>, %arg11: memref<128x128xf32, #tpu.memory_space<vmem>>) attributes {dimension_semantics = [#tpu.dimension_semantics<parallel>, #tpu.dimension_semantics<parallel>, #tpu.dimension_semantics<arbitrary>], iteration_bounds = array<i64: 2, 1, 1>, scalar_prefetch = 1 : i64, scratch_operands = 3 : i64, tpu.core_type = #tpu.core_type<tc>, window_params = [{transform_indices = @transform_0, window_bounds = array<i64: 1, 128, 128>}, {transform_indices = @transform_1, window_bounds = array<i64: 1, 128, 128>}, {transform_indices = @transform_2, window_bounds = array<i64: 1, 128, 128>}, {transform_indices = @transform_3, window_bounds = array<i64: 1, 1, 128>}, {transform_indices = @transform_4, window_bounds = array<i64: 1, 128, 128>}]} {
    %c0_i32 = arith.constant 0 : i32
    %0 = arith.cmpi eq, %arg2, %c0_i32 : i32
    %1 = arith.extui %0 : i1 to i32
    %c0_i32_0 = arith.constant 0 : i32
    %2 = arith.cmpi ne, %1, %c0_i32_0 : i32
    scf.if %2 {
      %cst = arith.constant 0xFF800000 : f32
      %11 = vector.broadcast %cst : f32 to vector<4x128x1xf32>
      %c0 = arith.constant 0 : index
      %c0_4 = arith.constant 0 : index
      %c0_5 = arith.constant 0 : index
      %12 = vector.load %arg9[%c0, %c0_4, %c0_5] : memref<4x128x1xf32, #tpu.memory_space<vmem>>, vector<4x128x1xf32>
      tpu.vector_store %arg9[%c0, %c0_4, %c0_5], %11 {strides = array<i32>} : memref<4x128x1xf32, #tpu.memory_space<vmem>>, vector<4x128x1xf32>,
      %cst_6 = arith.constant 0.000000e+00 : f32
      %13 = vector.broadcast %cst_6 : f32 to vector<4x128x1xf32>
      %c0_7 = arith.constant 0 : index
      %c0_8 = arith.constant 0 : index
      %c0_9 = arith.constant 0 : index
      %14 = vector.load %arg10[%c0_7, %c0_8, %c0_9] : memref<4x128x1xf32, #tpu.memory_space<vmem>>, vector<4x128x1xf32>
      tpu.vector_store %arg10[%c0_7, %c0_8, %c0_9], %13 {strides = array<i32>} : memref<4x128x1xf32, #tpu.memory_space<vmem>>, vector<4x128x1xf32>,
      %cst_10 = arith.constant 0.000000e+00 : f32
      %15 = vector.broadcast %cst_10 : f32 to vector<128x128xf32>
      %c0_11 = arith.constant 0 : index
      %c0_12 = arith.constant 0 : index
      %16 = vector.load %arg11[%c0_11, %c0_12] : memref<128x128xf32, #tpu.memory_space<vmem>>, vector<128x128xf32>
      tpu.vector_store %arg11[%c0_11, %c0_12], %15 {strides = array<i32>} : memref<128x128xf32, #tpu.memory_space<vmem>>, vector<128x128xf32>,
    } else {
    }
    %3 = arith.index_cast %arg0 : i32 to index
    %4 = memref.load %arg3[%3] : memref<2xi32, #tpu.memory_space<smem>>
    %5 = arith.cmpi slt, %arg2, %4 : i32
    %6 = arith.extui %5 : i1 to i32
    %c0_i32_1 = arith.constant 0 : i32
    %7 = arith.cmpi ne, %6, %c0_i32_1 : i32
    scf.if %7 {
      %c0 = arith.constant 0 : index
      %c0_4 = arith.constant 0 : index
      %c0_5 = arith.constant 0 : index
      %11 = vector.load %arg4[%c0, %c0_4, %c0_5] : memref<1x128x128xbf16, #tpu.memory_space<vmem>>, vector<1x128x128xbf16>
      %12 = vector.shape_cast %11 : vector<1x128x128xbf16> to vector<128x128xbf16>
      %c0_6 = arith.constant 0 : index
      %c0_7 = arith.constant 0 : index
      %c0_8 = arith.constant 0 : index
      %13 = vector.load %arg5[%c0_6, %c0_7, %c0_8] : memref<1x128x128xbf16, #tpu.memory_space<vmem>>, vector<1x128x128xbf16>
      %14 = vector.shape_cast %13 : vector<1x128x128xbf16> to vector<128x128xbf16>
      %c0_9 = arith.constant 0 : index
      %c0_10 = arith.constant 0 : index
      %c0_11 = arith.constant 0 : index
      %15 = vector.load %arg6[%c0_9, %c0_10, %c0_11] : memref<1x128x128xbf16, #tpu.memory_space<vmem>>, vector<1x128x128xbf16>
      %16 = vector.shape_cast %15 : vector<1x128x128xbf16> to vector<128x128xbf16>
      %c0_12 = arith.constant 0 : index
      %c0_13 = arith.constant 0 : index
      %c0_14 = arith.constant 0 : index
      %17 = vector.load %arg7[%c0_12, %c0_13, %c0_14] : memref<1x1x128xf32, #tpu.memory_space<vmem>>, vector<1x1x128xf32>
      %18 = vector.shape_cast %17 : vector<1x1x128xf32> to vector<1x128xf32>
      %19 = vector.extract_strided_slice %12 {offsets = [0, 0], sizes = [128, 32], strides = [1, 1]} : vector<128x128xbf16> to vector<128x32xbf16>
      %20 = vector.extract_strided_slice %14 {offsets = [0, 0], sizes = [128, 32], strides = [1, 1]} : vector<128x128xbf16> to vector<128x32xbf16>
      %cst = arith.constant dense<0.000000e+00> : vector<128x128xf32>
      %21 = tpu.matmul %19, %20, %cst {dimension_numbers = #tpu.dot_dimension_numbers<[1], [1], [0], [0], [0, 0, 1, 0], [], []>} : vector<128x32xbf16>, vector<128x32xbf16>, vector<128x128xf32> -> vector<128x128xf32>
      %22 = vector.broadcast %18 : vector<1x128xf32> to vector<128x128xf32>
      %23 = arith.addf %21, %22 : vector<128x128xf32>
      %c0_15 = arith.constant 0 : index
      %c0_16 = arith.constant 0 : index
      %c0_17 = arith.constant 0 : index
      %24 = vector.load %arg9[%c0_15, %c0_16, %c0_17] : memref<4x128x1xf32, #tpu.memory_space<vmem>>, vector<1x128x1xf32>
      %25 = vector.shape_cast %24 : vector<1x128x1xf32> to vector<128x1xf32>
      %cst_18 = arith.constant dense<0xFF800000> : vector<128xf32>
      %26 = vector.multi_reduction <maximumf>, %23, %cst_18 [1] : vector<128x128xf32> to vector<128xf32>
      %27 = vector.shape_cast %26 : vector<128xf32> to vector<128x1xf32>
      %28 = arith.maximumf %25, %27 : vector<128x1xf32>
      %29 = arith.subf %25, %28 : vector<128x1xf32>
      %30 = math.exp %29 : vector<128x1xf32>
      %31 = vector.broadcast %28 : vector<128x1xf32> to vector<128x128xf32>
      %32 = arith.subf %23, %31 : vector<128x128xf32>
      %33 = math.exp %32 : vector<128x128xf32>
      %c0_19 = arith.constant 0 : index
      %c0_20 = arith.constant 0 : index
      %c0_21 = arith.constant 0 : index
      %34 = vector.load %arg10[%c0_19, %c0_20, %c0_21] : memref<4x128x1xf32, #tpu.memory_space<vmem>>, vector<1x128x1xf32>
      %35 = vector.shape_cast %34 : vector<1x128x1xf32> to vector<128x1xf32>
      %36 = arith.mulf %30, %35 : vector<128x1xf32>
      %cst_22 = arith.constant dense<0.000000e+00> : vector<128xf32>
      %37 = vector.multi_reduction <add>, %33, %cst_22 [1] : vector<128x128xf32> to vector<128xf32>
      %38 = vector.shape_cast %37 : vector<128xf32> to vector<128x1xf32>
      %39 = arith.addf %36, %38 : vector<128x1xf32>
      %c0_23 = arith.constant 0 : index
      %c0_24 = arith.constant 0 : index
      %c0_25 = arith.constant 0 : index
      %40 = vector.load %arg10[%c0_23, %c0_24, %c0_25] : memref<4x128x1xf32, #tpu.memory_space<vmem>>, vector<1x128x1xf32>
      %41 = vector.shape_cast %40 : vector<1x128x1xf32> to vector<128x1xf32>
      %42 = vector.shape_cast %39 : vector<128x1xf32> to vector<1x128x1xf32>
      tpu.vector_store %arg10[%c0_23, %c0_24, %c0_25], %42 {strides = array<i32>} : memref<4x128x1xf32, #tpu.memory_space<vmem>>, vector<1x128x1xf32>,
      %c0_26 = arith.constant 0 : index
      %c0_27 = arith.constant 0 : index
      %43 = vector.load %arg11[%c0_26, %c0_27] : memref<128x128xf32, #tpu.memory_space<vmem>>, vector<128x32xf32>
      %44 = vector.broadcast %30 : vector<128x1xf32> to vector<128x32xf32>
      %45 = arith.mulf %44, %43 : vector<128x32xf32>
      %46 = arith.truncf %33 : vector<128x128xf32> to vector<128x128xbf16>
      %47 = vector.extract_strided_slice %16 {offsets = [0, 0], sizes = [128, 32], strides = [1, 1]} : vector<128x128xbf16> to vector<128x32xbf16>
      %cst_28 = arith.constant dense<0.000000e+00> : vector<128x32xf32>
      %48 = tpu.matmul %46, %47, %cst_28 {dimension_numbers = #tpu.dot_dimension_numbers<[1], [0], [0], [1], [0, 0, 1, 1], [], []>} : vector<128x128xbf16>, vector<128x32xbf16>, vector<128x32xf32> -> vector<128x32xf32>
      %49 = arith.addf %45, %48 : vector<128x32xf32>
      %c0_29 = arith.constant 0 : index
      %c0_30 = arith.constant 0 : index
      %50 = vector.load %arg11[%c0_29, %c0_30] : memref<128x128xf32, #tpu.memory_space<vmem>>, vector<128x32xf32>
      tpu.vector_store %arg11[%c0_29, %c0_30], %49 {strides = array<i32>} : memref<128x128xf32, #tpu.memory_space<vmem>>, vector<128x32xf32>,
      %c0_31 = arith.constant 0 : index
      %c0_32 = arith.constant 0 : index
      %c0_33 = arith.constant 0 : index
      %51 = vector.load %arg9[%c0_31, %c0_32, %c0_33] : memref<4x128x1xf32, #tpu.memory_space<vmem>>, vector<1x128x1xf32>
      %52 = vector.shape_cast %51 : vector<1x128x1xf32> to vector<128x1xf32>
      %53 = vector.shape_cast %28 : vector<128x1xf32> to vector<1x128x1xf32>
      tpu.vector_store %arg9[%c0_31, %c0_32, %c0_33], %53 {strides = array<i32>} : memref<4x128x1xf32, #tpu.memory_space<vmem>>, vector<1x128x1xf32>,
      %54 = vector.extract_strided_slice %12 {offsets = [0, 32], sizes = [128, 32], strides = [1, 1]} : vector<128x128xbf16> to vector<128x32xbf16>
      %55 = vector.extract_strided_slice %14 {offsets = [0, 32], sizes = [128, 32], strides = [1, 1]} : vector<128x128xbf16> to vector<128x32xbf16>
      %cst_34 = arith.constant dense<0.000000e+00> : vector<128x128xf32>
      %56 = tpu.matmul %54, %55, %cst_34 {dimension_numbers = #tpu.dot_dimension_numbers<[1], [1], [0], [0], [0, 0, 1, 0], [], []>} : vector<128x32xbf16>, vector<128x32xbf16>, vector<128x128xf32> -> vector<128x128xf32>
      %57 = vector.broadcast %18 : vector<1x128xf32> to vector<128x128xf32>
      %58 = arith.addf %56, %57 : vector<128x128xf32>
      %c1 = arith.constant 1 : index
      %c0_35 = arith.constant 0 : index
      %c0_36 = arith.constant 0 : index
      %59 = vector.load %arg9[%c1, %c0_35, %c0_36] : memref<4x128x1xf32, #tpu.memory_space<vmem>>, vector<1x128x1xf32>
      %60 = vector.shape_cast %59 : vector<1x128x1xf32> to vector<128x1xf32>
      %cst_37 = arith.constant dense<0xFF800000> : vector<128xf32>
      %61 = vector.multi_reduction <maximumf>, %58, %cst_37 [1] : vector<128x128xf32> to vector<128xf32>
      %62 = vector.shape_cast %61 : vector<128xf32> to vector<128x1xf32>
      %63 = arith.maximumf %60, %62 : vector<128x1xf32>
      %64 = arith.subf %60, %63 : vector<128x1xf32>
      %65 = math.exp %64 : vector<128x1xf32>
      %66 = vector.broadcast %63 : vector<128x1xf32> to vector<128x128xf32>
      %67 = arith.subf %58, %66 : vector<128x128xf32>
      %68 = math.exp %67 : vector<128x128xf32>
      %c1_38 = arith.constant 1 : index
      %c0_39 = arith.constant 0 : index
      %c0_40 = arith.constant 0 : index
      %69 = vector.load %arg10[%c1_38, %c0_39, %c0_40] : memref<4x128x1xf32, #tpu.memory_space<vmem>>, vector<1x128x1xf32>
      %70 = vector.shape_cast %69 : vector<1x128x1xf32> to vector<128x1xf32>
      %71 = arith.mulf %65, %70 : vector<128x1xf32>
      %cst_41 = arith.constant dense<0.000000e+00> : vector<128xf32>
      %72 = vector.multi_reduction <add>, %68, %cst_41 [1] : vector<128x128xf32> to vector<128xf32>
      %73 = vector.shape_cast %72 : vector<128xf32> to vector<128x1xf32>
      %74 = arith.addf %71, %73 : vector<128x1xf32>
      %c1_42 = arith.constant 1 : index
      %c0_43 = arith.constant 0 : index
      %c0_44 = arith.constant 0 : index
      %75 = vector.load %arg10[%c1_42, %c0_43, %c0_44] : memref<4x128x1xf32, #tpu.memory_space<vmem>>, vector<1x128x1xf32>
      %76 = vector.shape_cast %75 : vector<1x128x1xf32> to vector<128x1xf32>
      %77 = vector.shape_cast %74 : vector<128x1xf32> to vector<1x128x1xf32>
      tpu.vector_store %arg10[%c1_42, %c0_43, %c0_44], %77 {strides = array<i32>} : memref<4x128x1xf32, #tpu.memory_space<vmem>>, vector<1x128x1xf32>,
      %c0_45 = arith.constant 0 : index
      %c32 = arith.constant 32 : index
      %78 = vector.load %arg11[%c0_45, %c32] : memref<128x128xf32, #tpu.memory_space<vmem>>, vector<128x32xf32>
      %79 = vector.broadcast %65 : vector<128x1xf32> to vector<128x32xf32>
      %80 = arith.mulf %79, %78 : vector<128x32xf32>
      %81 = arith.truncf %68 : vector<128x128xf32> to vector<128x128xbf16>
      %82 = vector.extract_strided_slice %16 {offsets = [0, 32], sizes = [128, 32], strides = [1, 1]} : vector<128x128xbf16> to vector<128x32xbf16>
      %cst_46 = arith.constant dense<0.000000e+00> : vector<128x32xf32>
      %83 = tpu.matmul %81, %82, %cst_46 {dimension_numbers = #tpu.dot_dimension_numbers<[1], [0], [0], [1], [0, 0, 1, 1], [], []>} : vector<128x128xbf16>, vector<128x32xbf16>, vector<128x32xf32> -> vector<128x32xf32>
      %84 = arith.addf %80, %83 : vector<128x32xf32>
      %c0_47 = arith.constant 0 : index
      %c32_48 = arith.constant 32 : index
      %85 = vector.load %arg11[%c0_47, %c32_48] : memref<128x128xf32, #tpu.memory_space<vmem>>, vector<128x32xf32>
      tpu.vector_store %arg11[%c0_47, %c32_48], %84 {strides = array<i32>} : memref<128x128xf32, #tpu.memory_space<vmem>>, vector<128x32xf32>,
      %c1_49 = arith.constant 1 : index
      %c0_50 = arith.constant 0 : index
      %c0_51 = arith.constant 0 : index
      %86 = vector.load %arg9[%c1_49, %c0_50, %c0_51] : memref<4x128x1xf32, #tpu.memory_space<vmem>>, vector<1x128x1xf32>
      %87 = vector.shape_cast %86 : vector<1x128x1xf32> to vector<128x1xf32>
      %88 = vector.shape_cast %63 : vector<128x1xf32> to vector<1x128x1xf32>
      tpu.vector_store %arg9[%c1_49, %c0_50, %c0_51], %88 {strides = array<i32>} : memref<4x128x1xf32, #tpu.memory_space<vmem>>, vector<1x128x1xf32>,
      %89 = vector.extract_strided_slice %12 {offsets = [0, 64], sizes = [128, 32], strides = [1, 1]} : vector<128x128xbf16> to vector<128x32xbf16>
      %90 = vector.extract_strided_slice %14 {offsets = [0, 64], sizes = [128, 32], strides = [1, 1]} : vector<128x128xbf16> to vector<128x32xbf16>
      %cst_52 = arith.constant dense<0.000000e+00> : vector<128x128xf32>
      %91 = tpu.matmul %89, %90, %cst_52 {dimension_numbers = #tpu.dot_dimension_numbers<[1], [1], [0], [0], [0, 0, 1, 0], [], []>} : vector<128x32xbf16>, vector<128x32xbf16>, vector<128x128xf32> -> vector<128x128xf32>
      %92 = vector.broadcast %18 : vector<1x128xf32> to vector<128x128xf32>
      %93 = arith.addf %91, %92 : vector<128x128xf32>
      %c2 = arith.constant 2 : index
      %c0_53 = arith.constant 0 : index
      %c0_54 = arith.constant 0 : index
      %94 = vector.load %arg9[%c2, %c0_53, %c0_54] : memref<4x128x1xf32, #tpu.memory_space<vmem>>, vector<1x128x1xf32>
      %95 = vector.shape_cast %94 : vector<1x128x1xf32> to vector<128x1xf32>
      %cst_55 = arith.constant dense<0xFF800000> : vector<128xf32>
      %96 = vector.multi_reduction <maximumf>, %93, %cst_55 [1] : vector<128x128xf32> to vector<128xf32>
      %97 = vector.shape_cast %96 : vector<128xf32> to vector<128x1xf32>
      %98 = arith.maximumf %95, %97 : vector<128x1xf32>
      %99 = arith.subf %95, %98 : vector<128x1xf32>
      %100 = math.exp %99 : vector<128x1xf32>
      %101 = vector.broadcast %98 : vector<128x1xf32> to vector<128x128xf32>
      %102 = arith.subf %93, %101 : vector<128x128xf32>
      %103 = math.exp %102 : vector<128x128xf32>
      %c2_56 = arith.constant 2 : index
      %c0_57 = arith.constant 0 : index
      %c0_58 = arith.constant 0 : index
      %104 = vector.load %arg10[%c2_56, %c0_57, %c0_58] : memref<4x128x1xf32, #tpu.memory_space<vmem>>, vector<1x128x1xf32>
      %105 = vector.shape_cast %104 : vector<1x128x1xf32> to vector<128x1xf32>
      %106 = arith.mulf %100, %105 : vector<128x1xf32>
      %cst_59 = arith.constant dense<0.000000e+00> : vector<128xf32>
      %107 = vector.multi_reduction <add>, %103, %cst_59 [1] : vector<128x128xf32> to vector<128xf32>
      %108 = vector.shape_cast %107 : vector<128xf32> to vector<128x1xf32>
      %109 = arith.addf %106, %108 : vector<128x1xf32>
      %c2_60 = arith.constant 2 : index
      %c0_61 = arith.constant 0 : index
      %c0_62 = arith.constant 0 : index
      %110 = vector.load %arg10[%c2_60, %c0_61, %c0_62] : memref<4x128x1xf32, #tpu.memory_space<vmem>>, vector<1x128x1xf32>
      %111 = vector.shape_cast %110 : vector<1x128x1xf32> to vector<128x1xf32>
      %112 = vector.shape_cast %109 : vector<128x1xf32> to vector<1x128x1xf32>
      tpu.vector_store %arg10[%c2_60, %c0_61, %c0_62], %112 {strides = array<i32>} : memref<4x128x1xf32, #tpu.memory_space<vmem>>, vector<1x128x1xf32>,
      %c0_63 = arith.constant 0 : index
      %c64 = arith.constant 64 : index
      %113 = vector.load %arg11[%c0_63, %c64] : memref<128x128xf32, #tpu.memory_space<vmem>>, vector<128x32xf32>
      %114 = vector.broadcast %100 : vector<128x1xf32> to vector<128x32xf32>
      %115 = arith.mulf %114, %113 : vector<128x32xf32>
      %116 = arith.truncf %103 : vector<128x128xf32> to vector<128x128xbf16>
      %117 = vector.extract_strided_slice %16 {offsets = [0, 64], sizes = [128, 32], strides = [1, 1]} : vector<128x128xbf16> to vector<128x32xbf16>
      %cst_64 = arith.constant dense<0.000000e+00> : vector<128x32xf32>
      %118 = tpu.matmul %116, %117, %cst_64 {dimension_numbers = #tpu.dot_dimension_numbers<[1], [0], [0], [1], [0, 0, 1, 1], [], []>} : vector<128x128xbf16>, vector<128x32xbf16>, vector<128x32xf32> -> vector<128x32xf32>
      %119 = arith.addf %115, %118 : vector<128x32xf32>
      %c0_65 = arith.constant 0 : index
      %c64_66 = arith.constant 64 : index
      %120 = vector.load %arg11[%c0_65, %c64_66] : memref<128x128xf32, #tpu.memory_space<vmem>>, vector<128x32xf32>
      tpu.vector_store %arg11[%c0_65, %c64_66], %119 {strides = array<i32>} : memref<128x128xf32, #tpu.memory_space<vmem>>, vector<128x32xf32>,
      %c2_67 = arith.constant 2 : index
      %c0_68 = arith.constant 0 : index
      %c0_69 = arith.constant 0 : index
      %121 = vector.load %arg9[%c2_67, %c0_68, %c0_69] : memref<4x128x1xf32, #tpu.memory_space<vmem>>, vector<1x128x1xf32>
      %122 = vector.shape_cast %121 : vector<1x128x1xf32> to vector<128x1xf32>
      %123 = vector.shape_cast %98 : vector<128x1xf32> to vector<1x128x1xf32>
      tpu.vector_store %arg9[%c2_67, %c0_68, %c0_69], %123 {strides = array<i32>} : memref<4x128x1xf32, #tpu.memory_space<vmem>>, vector<1x128x1xf32>,
      %124 = vector.extract_strided_slice %12 {offsets = [0, 96], sizes = [128, 32], strides = [1, 1]} : vector<128x128xbf16> to vector<128x32xbf16>
      %125 = vector.extract_strided_slice %14 {offsets = [0, 96], sizes = [128, 32], strides = [1, 1]} : vector<128x128xbf16> to vector<128x32xbf16>
      %cst_70 = arith.constant dense<0.000000e+00> : vector<128x128xf32>
      %126 = tpu.matmul %124, %125, %cst_70 {dimension_numbers = #tpu.dot_dimension_numbers<[1], [1], [0], [0], [0, 0, 1, 0], [], []>} : vector<128x32xbf16>, vector<128x32xbf16>, vector<128x128xf32> -> vector<128x128xf32>
      %127 = vector.broadcast %18 : vector<1x128xf32> to vector<128x128xf32>
      %128 = arith.addf %126, %127 : vector<128x128xf32>
      %c3 = arith.constant 3 : index
      %c0_71 = arith.constant 0 : index
      %c0_72 = arith.constant 0 : index
      %129 = vector.load %arg9[%c3, %c0_71, %c0_72] : memref<4x128x1xf32, #tpu.memory_space<vmem>>, vector<1x128x1xf32>
      %130 = vector.shape_cast %129 : vector<1x128x1xf32> to vector<128x1xf32>
      %cst_73 = arith.constant dense<0xFF800000> : vector<128xf32>
      %131 = vector.multi_reduction <maximumf>, %128, %cst_73 [1] : vector<128x128xf32> to vector<128xf32>
      %132 = vector.shape_cast %131 : vector<128xf32> to vector<128x1xf32>
      %133 = arith.maximumf %130, %132 : vector<128x1xf32>
      %134 = arith.subf %130, %133 : vector<128x1xf32>
      %135 = math.exp %134 : vector<128x1xf32>
      %136 = vector.broadcast %133 : vector<128x1xf32> to vector<128x128xf32>
      %137 = arith.subf %128, %136 : vector<128x128xf32>
      %138 = math.exp %137 : vector<128x128xf32>
      %c3_74 = arith.constant 3 : index
      %c0_75 = arith.constant 0 : index
      %c0_76 = arith.constant 0 : index
      %139 = vector.load %arg10[%c3_74, %c0_75, %c0_76] : memref<4x128x1xf32, #tpu.memory_space<vmem>>, vector<1x128x1xf32>
      %140 = vector.shape_cast %139 : vector<1x128x1xf32> to vector<128x1xf32>
      %141 = arith.mulf %135, %140 : vector<128x1xf32>
      %cst_77 = arith.constant dense<0.000000e+00> : vector<128xf32>
      %142 = vector.multi_reduction <add>, %138, %cst_77 [1] : vector<128x128xf32> to vector<128xf32>
      %143 = vector.shape_cast %142 : vector<128xf32> to vector<128x1xf32>
      %144 = arith.addf %141, %143 : vector<128x1xf32>
      %c3_78 = arith.constant 3 : index
      %c0_79 = arith.constant 0 : index
      %c0_80 = arith.constant 0 : index
      %145 = vector.load %arg10[%c3_78, %c0_79, %c0_80] : memref<4x128x1xf32, #tpu.memory_space<vmem>>, vector<1x128x1xf32>
      %146 = vector.shape_cast %145 : vector<1x128x1xf32> to vector<128x1xf32>
      %147 = vector.shape_cast %144 : vector<128x1xf32> to vector<1x128x1xf32>
      tpu.vector_store %arg10[%c3_78, %c0_79, %c0_80], %147 {strides = array<i32>} : memref<4x128x1xf32, #tpu.memory_space<vmem>>, vector<1x128x1xf32>,
      %c0_81 = arith.constant 0 : index
      %c96 = arith.constant 96 : index
      %148 = vector.load %arg11[%c0_81, %c96] : memref<128x128xf32, #tpu.memory_space<vmem>>, vector<128x32xf32>
      %149 = vector.broadcast %135 : vector<128x1xf32> to vector<128x32xf32>
      %150 = arith.mulf %149, %148 : vector<128x32xf32>
      %151 = arith.truncf %138 : vector<128x128xf32> to vector<128x128xbf16>
      %152 = vector.extract_strided_slice %16 {offsets = [0, 96], sizes = [128, 32], strides = [1, 1]} : vector<128x128xbf16> to vector<128x32xbf16>
      %cst_82 = arith.constant dense<0.000000e+00> : vector<128x32xf32>
      %153 = tpu.matmul %151, %152, %cst_82 {dimension_numbers = #tpu.dot_dimension_numbers<[1], [0], [0], [1], [0, 0, 1, 1], [], []>} : vector<128x128xbf16>, vector<128x32xbf16>, vector<128x32xf32> -> vector<128x32xf32>
      %154 = arith.addf %150, %153 : vector<128x32xf32>
      %c0_83 = arith.constant 0 : index
      %c96_84 = arith.constant 96 : index
      %155 = vector.load %arg11[%c0_83, %c96_84] : memref<128x128xf32, #tpu.memory_space<vmem>>, vector<128x32xf32>
      tpu.vector_store %arg11[%c0_83, %c96_84], %154 {strides = array<i32>} : memref<128x128xf32, #tpu.memory_space<vmem>>, vector<128x32xf32>,
      %c3_85 = arith.constant 3 : index
      %c0_86 = arith.constant 0 : index
      %c0_87 = arith.constant 0 : index
      %156 = vector.load %arg9[%c3_85, %c0_86, %c0_87] : memref<4x128x1xf32, #tpu.memory_space<vmem>>, vector<1x128x1xf32>
      %157 = vector.shape_cast %156 : vector<1x128x1xf32> to vector<128x1xf32>
      %158 = vector.shape_cast %133 : vector<128x1xf32> to vector<1x128x1xf32>
      tpu.vector_store %arg9[%c3_85, %c0_86, %c0_87], %158 {strides = array<i32>} : memref<4x128x1xf32, #tpu.memory_space<vmem>>, vector<1x128x1xf32>,
    } else {
    }
    %c0_i32_2 = arith.constant 0 : i32
    %8 = arith.cmpi eq, %arg2, %c0_i32_2 : i32
    %9 = arith.extui %8 : i1 to i32
    %c0_i32_3 = arith.constant 0 : i32
    %10 = arith.cmpi ne, %9, %c0_i32_3 : i32
    scf.if %10 {
      %c0 = arith.constant 0 : index
      %c0_4 = arith.constant 0 : index
      %c0_5 = arith.constant 0 : index
      %11 = vector.load %arg10[%c0, %c0_4, %c0_5] : memref<4x128x1xf32, #tpu.memory_space<vmem>>, vector<1x128x1xf32>
      %12 = vector.shape_cast %11 : vector<1x128x1xf32> to vector<128x1xf32>
      %13 = tpu.reciprocal %12 {approx = true} : vector<128x1xf32> -> vector<128x1xf32>
      %c0_6 = arith.constant 0 : index
      %c0_7 = arith.constant 0 : index
      %14 = vector.load %arg11[%c0_6, %c0_7] : memref<128x128xf32, #tpu.memory_space<vmem>>, vector<128x32xf32>
      %15 = vector.broadcast %13 : vector<128x1xf32> to vector<128x32xf32>
      %16 = arith.mulf %14, %15 : vector<128x32xf32>
      %17 = arith.truncf %16 : vector<128x32xf32> to vector<128x32xbf16>
      %c0_8 = arith.constant 0 : index
      %c0_9 = arith.constant 0 : index
      %c0_10 = arith.constant 0 : index
      %18 = vector.load %arg8[%c0_8, %c0_9, %c0_10] : memref<1x128x128xbf16, #tpu.memory_space<vmem>>, vector<1x128x32xbf16>
      %19 = vector.shape_cast %18 : vector<1x128x32xbf16> to vector<128x32xbf16>
      %20 = vector.shape_cast %17 : vector<128x32xbf16> to vector<1x128x32xbf16>
      tpu.vector_store %arg8[%c0_8, %c0_9, %c0_10], %20 {strides = array<i32>} : memref<1x128x128xbf16, #tpu.memory_space<vmem>>, vector<1x128x32xbf16>,
      %c1 = arith.constant 1 : index
      %c0_11 = arith.constant 0 : index
      %c0_12 = arith.constant 0 : index
      %21 = vector.load %arg10[%c1, %c0_11, %c0_12] : memref<4x128x1xf32, #tpu.memory_space<vmem>>, vector<1x128x1xf32>
      %22 = vector.shape_cast %21 : vector<1x128x1xf32> to vector<128x1xf32>
      %23 = tpu.reciprocal %22 {approx = true} : vector<128x1xf32> -> vector<128x1xf32>
      %c0_13 = arith.constant 0 : index
      %c32 = arith.constant 32 : index
      %24 = vector.load %arg11[%c0_13, %c32] : memref<128x128xf32, #tpu.memory_space<vmem>>, vector<128x32xf32>
      %25 = vector.broadcast %23 : vector<128x1xf32> to vector<128x32xf32>
      %26 = arith.mulf %24, %25 : vector<128x32xf32>
      %27 = arith.truncf %26 : vector<128x32xf32> to vector<128x32xbf16>
      %c0_14 = arith.constant 0 : index
      %c0_15 = arith.constant 0 : index
      %c32_16 = arith.constant 32 : index
      %28 = vector.load %arg8[%c0_14, %c0_15, %c32_16] : memref<1x128x128xbf16, #tpu.memory_space<vmem>>, vector<1x128x32xbf16>
      %29 = vector.shape_cast %28 : vector<1x128x32xbf16> to vector<128x32xbf16>
      %30 = vector.shape_cast %27 : vector<128x32xbf16> to vector<1x128x32xbf16>
      tpu.vector_store %arg8[%c0_14, %c0_15, %c32_16], %30 {strides = array<i32>} : memref<1x128x128xbf16, #tpu.memory_space<vmem>>, vector<1x128x32xbf16>,
      %c2 = arith.constant 2 : index
      %c0_17 = arith.constant 0 : index
      %c0_18 = arith.constant 0 : index
      %31 = vector.load %arg10[%c2, %c0_17, %c0_18] : memref<4x128x1xf32, #tpu.memory_space<vmem>>, vector<1x128x1xf32>
      %32 = vector.shape_cast %31 : vector<1x128x1xf32> to vector<128x1xf32>
      %33 = tpu.reciprocal %32 {approx = true} : vector<128x1xf32> -> vector<128x1xf32>
      %c0_19 = arith.constant 0 : index
      %c64 = arith.constant 64 : index
      %34 = vector.load %arg11[%c0_19, %c64] : memref<128x128xf32, #tpu.memory_space<vmem>>, vector<128x32xf32>
      %35 = vector.broadcast %33 : vector<128x1xf32> to vector<128x32xf32>
      %36 = arith.mulf %34, %35 : vector<128x32xf32>
      %37 = arith.truncf %36 : vector<128x32xf32> to vector<128x32xbf16>
      %c0_20 = arith.constant 0 : index
      %c0_21 = arith.constant 0 : index
      %c64_22 = arith.constant 64 : index
      %38 = vector.load %arg8[%c0_20, %c0_21, %c64_22] : memref<1x128x128xbf16, #tpu.memory_space<vmem>>, vector<1x128x32xbf16>
      %39 = vector.shape_cast %38 : vector<1x128x32xbf16> to vector<128x32xbf16>
      %40 = vector.shape_cast %37 : vector<128x32xbf16> to vector<1x128x32xbf16>
      tpu.vector_store %arg8[%c0_20, %c0_21, %c64_22], %40 {strides = array<i32>} : memref<1x128x128xbf16, #tpu.memory_space<vmem>>, vector<1x128x32xbf16>,
      %c3 = arith.constant 3 : index
      %c0_23 = arith.constant 0 : index
      %c0_24 = arith.constant 0 : index
      %41 = vector.load %arg10[%c3, %c0_23, %c0_24] : memref<4x128x1xf32, #tpu.memory_space<vmem>>, vector<1x128x1xf32>
      %42 = vector.shape_cast %41 : vector<1x128x1xf32> to vector<128x1xf32>
      %43 = tpu.reciprocal %42 {approx = true} : vector<128x1xf32> -> vector<128x1xf32>
      %c0_25 = arith.constant 0 : index
      %c96 = arith.constant 96 : index
      %44 = vector.load %arg11[%c0_25, %c96] : memref<128x128xf32, #tpu.memory_space<vmem>>, vector<128x32xf32>
      %45 = vector.broadcast %43 : vector<128x1xf32> to vector<128x32xf32>
      %46 = arith.mulf %44, %45 : vector<128x32xf32>
      %47 = arith.truncf %46 : vector<128x32xf32> to vector<128x32xbf16>
      %c0_26 = arith.constant 0 : index
      %c0_27 = arith.constant 0 : index
      %c96_28 = arith.constant 96 : index
      %48 = vector.load %arg8[%c0_26, %c0_27, %c96_28] : memref<1x128x128xbf16, #tpu.memory_space<vmem>>, vector<1x128x32xbf16>
      %49 = vector.shape_cast %48 : vector<1x128x32xbf16> to vector<128x32xbf16>
      %50 = vector.shape_cast %47 : vector<128x32xbf16> to vector<1x128x32xbf16>
      tpu.vector_store %arg8[%c0_26, %c0_27, %c96_28], %50 {strides = array<i32>} : memref<1x128x128xbf16, #tpu.memory_space<vmem>>, vector<1x128x32xbf16>,
    } else {
    }
    return
  }
  func.func @transform_0(%arg0: i32, %arg1: i32, %arg2: i32, %arg3: memref<2xi32, #tpu.memory_space<smem>>) -> (i32, i32, i32) {
    %c0_i32 = arith.constant 0 : i32
    %c0_i32_0 = arith.constant 0 : i32
    return %arg0, %arg1, %c0_i32 : i32, i32, i32
  }
  func.func @transform_1(%arg0: i32, %arg1: i32, %arg2: i32, %arg3: memref<2xi32, #tpu.memory_space<smem>>) -> (i32, i32, i32) {
    %0 = arith.index_cast %arg0 : i32 to index
    %1 = memref.load %arg3[%0] : memref<2xi32, #tpu.memory_space<smem>>
    %c1_i32 = arith.constant 1 : i32
    %2 = arith.subi %1, %c1_i32 : i32
    %3 = arith.minsi %arg2, %2 : i32
    %c1_i32_0 = arith.constant 1 : i32
    %c0_i32 = arith.constant 0 : i32
    return %arg0, %3, %c1_i32_0 : i32, i32, i32
  }
  func.func @transform_2(%arg0: i32, %arg1: i32, %arg2: i32, %arg3: memref<2xi32, #tpu.memory_space<smem>>) -> (i32, i32, i32) {
    %0 = arith.index_cast %arg0 : i32 to index
    %1 = memref.load %arg3[%0] : memref<2xi32, #tpu.memory_space<smem>>
    %c1_i32 = arith.constant 1 : i32
    %2 = arith.subi %1, %c1_i32 : i32
    %3 = arith.minsi %arg2, %2 : i32
    %c2_i32 = arith.constant 2 : i32
    %c0_i32 = arith.constant 0 : i32
    return %arg0, %3, %c2_i32 : i32, i32, i32
  }
  func.func @transform_3(%arg0: i32, %arg1: i32, %arg2: i32, %arg3: memref<2xi32, #tpu.memory_space<smem>>) -> (i32, i32, i32) {
    %0 = arith.index_cast %arg0 : i32 to index
    %1 = memref.load %arg3[%0] : memref<2xi32, #tpu.memory_space<smem>>
    %c1_i32 = arith.constant 1 : i32
    %2 = arith.subi %1, %c1_i32 : i32
    %3 = arith.minsi %arg2, %2 : i32
    %c0_i32 = arith.constant 0 : i32
    %c0_i32_0 = arith.constant 0 : i32
    return %arg0, %c0_i32, %3 : i32, i32, i32
  }
  func.func @transform_4(%arg0: i32, %arg1: i32, %arg2: i32, %arg3: memref<2xi32, #tpu.memory_space<smem>>) -> (i32, i32, i32) {
    %c0_i32 = arith.constant 0 : i32
    %c0_i32_0 = arith.constant 0 : i32
    return %arg0, %arg1, %c0_i32 : i32, i32, i32
  }
}

module attributes {stable_mosaic.version = 11 : i64} {
  func.func @_post_attn_ffn_kernel(%arg0: i32, %arg1: i32, %arg2: memref<256x128xbf16, #tpu.memory_space<vmem>>, %arg3: memref<256x128xbf16, #tpu.memory_space<vmem>>, %arg4: memref<128x128xbf16, #tpu.memory_space<vmem>>, %arg5: memref<1x128xf32, #tpu.memory_space<vmem>>, %arg6: memref<1x128xf32, #tpu.memory_space<vmem>>, %arg7: memref<1x128xf32, #tpu.memory_space<vmem>>, %arg8: memref<128x256xbf16, #tpu.memory_space<vmem>>, %arg9: memref<1x256xf32, #tpu.memory_space<vmem>>, %arg10: memref<256x128xbf16, #tpu.memory_space<vmem>>, %arg11: memref<1x128xf32, #tpu.memory_space<vmem>>, %arg12: memref<1x128xf32, #tpu.memory_space<vmem>>, %arg13: memref<1x128xf32, #tpu.memory_space<vmem>>, %arg14: memref<256x128xbf16, #tpu.memory_space<vmem>>, %arg15: memref<256x128xf32, #tpu.memory_space<vmem>>, %arg16: memref<256x128xf32, #tpu.memory_space<vmem>>) attributes {dimension_semantics = [#tpu.dimension_semantics<parallel>, #tpu.dimension_semantics<arbitrary>], iteration_bounds = array<i64: 1, 1>, scalar_prefetch = 0 : i64, scratch_operands = 2 : i64, tpu.core_type = #tpu.core_type<tc>, window_params = [{transform_indices = @transform_0, window_bounds = array<i64: 256, 128>}, {transform_indices = @transform_1, window_bounds = array<i64: 256, 128>}, {pipeline_mode = #tpu.pipeline_mode<synchronous>, transform_indices = @transform_2, window_bounds = array<i64: 128, 128>}, {pipeline_mode = #tpu.pipeline_mode<synchronous>, transform_indices = @transform_3, window_bounds = array<i64: 1, 128>}, {pipeline_mode = #tpu.pipeline_mode<synchronous>, transform_indices = @transform_4, window_bounds = array<i64: 1, 128>}, {pipeline_mode = #tpu.pipeline_mode<synchronous>, transform_indices = @transform_5, window_bounds = array<i64: 1, 128>}, {transform_indices = @transform_6, window_bounds = array<i64: 128, 256>}, {transform_indices = @transform_7, window_bounds = array<i64: 1, 256>}, {transform_indices = @transform_8, window_bounds = array<i64: 256, 128>}, {pipeline_mode = #tpu.pipeline_mode<synchronous>, transform_indices = @transform_9, window_bounds = array<i64: 1, 128>}, {pipeline_mode = #tpu.pipeline_mode<synchronous>, transform_indices = @transform_10, window_bounds = array<i64: 1, 128>}, {pipeline_mode = #tpu.pipeline_mode<synchronous>, transform_indices = @transform_11, window_bounds = array<i64: 1, 128>}, {transform_indices = @transform_12, window_bounds = array<i64: 256, 128>}]} {
    %c0_i32 = arith.constant 0 : i32
    %0 = arith.cmpi eq, %arg1, %c0_i32 : i32
    %1 = arith.extui %0 : i1 to i32
    %c0_i32_0 = arith.constant 0 : i32
    %2 = arith.cmpi ne, %1, %c0_i32_0 : i32
    scf.if %2 {
      %c0_19 = arith.constant 0 : index
      %c0_20 = arith.constant 0 : index
      %32 = vector.load %arg2[%c0_19, %c0_20] : memref<256x128xbf16, #tpu.memory_space<vmem>>, vector<256x128xbf16>
      %c0_21 = arith.constant 0 : index
      %c0_22 = arith.constant 0 : index
      %33 = vector.load %arg4[%c0_21, %c0_22] : memref<128x128xbf16, #tpu.memory_space<vmem>>, vector<128x128xbf16>
      %cst_23 = arith.constant dense<0.000000e+00> : vector<256x128xf32>
      %34 = tpu.matmul %32, %33, %cst_23 {dimension_numbers = #tpu.dot_dimension_numbers<[1], [0], [0], [1], [0, 0, 1, 1], [], []>} : vector<256x128xbf16>, vector<128x128xbf16>, vector<256x128xf32> -> vector<256x128xf32>
      %c0_24 = arith.constant 0 : index
      %c0_25 = arith.constant 0 : index
      %35 = vector.load %arg5[%c0_24, %c0_25] : memref<1x128xf32, #tpu.memory_space<vmem>>, vector<1x128xf32>
      %36 = vector.broadcast %35 : vector<1x128xf32> to vector<256x128xf32>
      %37 = arith.addf %34, %36 : vector<256x128xf32>
      %c0_26 = arith.constant 0 : index
      %c0_27 = arith.constant 0 : index
      %38 = vector.load %arg3[%c0_26, %c0_27] : memref<256x128xbf16, #tpu.memory_space<vmem>>, vector<256x128xbf16>
      %39 = arith.extf %38 : vector<256x128xbf16> to vector<256x128xf32>
      %40 = arith.addf %39, %37 : vector<256x128xf32>
      %c0_28 = arith.constant 0 : index
      %c0_29 = arith.constant 0 : index
      %41 = vector.load %arg6[%c0_28, %c0_29] : memref<1x128xf32, #tpu.memory_space<vmem>>, vector<1x128xf32>
      %c0_30 = arith.constant 0 : index
      %c0_31 = arith.constant 0 : index
      %42 = vector.load %arg7[%c0_30, %c0_31] : memref<1x128xf32, #tpu.memory_space<vmem>>, vector<1x128xf32>
      %cst_32 = arith.constant dense<0.000000e+00> : vector<256xf32>
      %43 = vector.multi_reduction <add>, %40, %cst_32 [1] : vector<256x128xf32> to vector<256xf32>
      %44 = vector.shape_cast %43 : vector<256xf32> to vector<256x1xf32>
      %cst_33 = arith.constant 1.280000e+02 : f32
      %45 = vector.broadcast %cst_33 : f32 to vector<256x1xf32>
      %46 = arith.divf %44, %45 : vector<256x1xf32>
      %47 = vector.broadcast %46 : vector<256x1xf32> to vector<256x128xf32>
      %48 = arith.subf %40, %47 : vector<256x128xf32>
      %49 = arith.mulf %48, %48 : vector<256x128xf32>
      %cst_34 = arith.constant dense<0.000000e+00> : vector<256xf32>
      %50 = vector.multi_reduction <add>, %49, %cst_34 [1] : vector<256x128xf32> to vector<256xf32>
      %51 = vector.shape_cast %50 : vector<256xf32> to vector<256x1xf32>
      %cst_35 = arith.constant 1.280000e+02 : f32
      %52 = vector.broadcast %cst_35 : f32 to vector<256x1xf32>
      %53 = arith.divf %51, %52 : vector<256x1xf32>
      %54 = vector.broadcast %46 : vector<256x1xf32> to vector<256x128xf32>
      %55 = arith.subf %40, %54 : vector<256x128xf32>
      %cst_36 = arith.constant 9.99999996E-13 : f32
      %56 = vector.broadcast %cst_36 : f32 to vector<256x1xf32>
      %57 = arith.addf %53, %56 : vector<256x1xf32>
      %58 = math.rsqrt %57 : vector<256x1xf32>
      %59 = vector.broadcast %58 : vector<256x1xf32> to vector<256x128xf32>
      %60 = arith.mulf %55, %59 : vector<256x128xf32>
      %61 = vector.broadcast %41 : vector<1x128xf32> to vector<256x128xf32>
      %62 = arith.mulf %60, %61 : vector<256x128xf32>
      %63 = vector.broadcast %42 : vector<1x128xf32> to vector<256x128xf32>
      %64 = arith.addf %62, %63 : vector<256x128xf32>
      %c0_37 = arith.constant 0 : index
      %c0_38 = arith.constant 0 : index
      %65 = vector.load %arg15[%c0_37, %c0_38] : memref<256x128xf32, #tpu.memory_space<vmem>>, vector<256x128xf32>
      tpu.vector_store %arg15[%c0_37, %c0_38], %64 {strides = array<i32>} : memref<256x128xf32, #tpu.memory_space<vmem>>, vector<256x128xf32>,
      %cst_39 = arith.constant 0.000000e+00 : f32
      %66 = vector.broadcast %cst_39 : f32 to vector<256x128xf32>
      %c0_40 = arith.constant 0 : index
      %c0_41 = arith.constant 0 : index
      %67 = vector.load %arg16[%c0_40, %c0_41] : memref<256x128xf32, #tpu.memory_space<vmem>>, vector<256x128xf32>
      tpu.vector_store %arg16[%c0_40, %c0_41], %66 {strides = array<i32>} : memref<256x128xf32, #tpu.memory_space<vmem>>, vector<256x128xf32>,
    } else {
    }
    %c0 = arith.constant 0 : index
    %c0_1 = arith.constant 0 : index
    %3 = vector.load %arg15[%c0, %c0_1] : memref<256x128xf32, #tpu.memory_space<vmem>>, vector<256x128xf32>
    %4 = arith.truncf %3 : vector<256x128xf32> to vector<256x128xbf16>
    %c0_2 = arith.constant 0 : index
    %c0_3 = arith.constant 0 : index
    %5 = vector.load %arg8[%c0_2, %c0_3] : memref<128x256xbf16, #tpu.memory_space<vmem>>, vector<128x256xbf16>
    %cst = arith.constant dense<0.000000e+00> : vector<256x256xf32>
    %6 = tpu.matmul %4, %5, %cst {dimension_numbers = #tpu.dot_dimension_numbers<[1], [0], [0], [1], [0, 0, 1, 1], [], []>} : vector<256x128xbf16>, vector<128x256xbf16>, vector<256x256xf32> -> vector<256x256xf32>
    %c0_4 = arith.constant 0 : index
    %c0_5 = arith.constant 0 : index
    %7 = vector.load %arg9[%c0_4, %c0_5] : memref<1x256xf32, #tpu.memory_space<vmem>>, vector<1x256xf32>
    %8 = vector.broadcast %7 : vector<1x256xf32> to vector<256x256xf32>
    %9 = arith.addf %6, %8 : vector<256x256xf32>
    %10 = arith.mulf %9, %9 : vector<256x256xf32>
    %11 = arith.mulf %9, %10 : vector<256x256xf32>
    %cst_6 = arith.constant 4.471500e-02 : f32
    %12 = vector.broadcast %cst_6 : f32 to vector<256x256xf32>
    %13 = arith.mulf %12, %11 : vector<256x256xf32>
    %14 = arith.addf %9, %13 : vector<256x256xf32>
    %cst_7 = arith.constant 0.797884583 : f32
    %15 = vector.broadcast %cst_7 : f32 to vector<256x256xf32>
    %16 = arith.mulf %15, %14 : vector<256x256xf32>
    %17 = math.tanh %16 : vector<256x256xf32>
    %cst_8 = arith.constant 1.000000e+00 : f32
    %18 = vector.broadcast %cst_8 : f32 to vector<256x256xf32>
    %19 = arith.addf %18, %17 : vector<256x256xf32>
    %cst_9 = arith.constant 5.000000e-01 : f32
    %20 = vector.broadcast %cst_9 : f32 to vector<256x256xf32>
    %21 = arith.mulf %20, %19 : vector<256x256xf32>
    %22 = arith.mulf %9, %21 : vector<256x256xf32>
    %c0_10 = arith.constant 0 : index
    %c0_11 = arith.constant 0 : index
    %23 = vector.load %arg16[%c0_10, %c0_11] : memref<256x128xf32, #tpu.memory_space<vmem>>, vector<256x128xf32>
    %24 = arith.truncf %22 : vector<256x256xf32> to vector<256x256xbf16>
    %c0_12 = arith.constant 0 : index
    %c0_13 = arith.constant 0 : index
    %25 = vector.load %arg10[%c0_12, %c0_13] : memref<256x128xbf16, #tpu.memory_space<vmem>>, vector<256x128xbf16>
    %cst_14 = arith.constant dense<0.000000e+00> : vector<256x128xf32>
    %26 = tpu.matmul %24, %25, %cst_14 {dimension_numbers = #tpu.dot_dimension_numbers<[1], [0], [0], [1], [0, 0, 1, 1], [], []>} : vector<256x256xbf16>, vector<256x128xbf16>, vector<256x128xf32> -> vector<256x128xf32>
    %27 = arith.addf %23, %26 : vector<256x128xf32>
    %c0_15 = arith.constant 0 : index
    %c0_16 = arith.constant 0 : index
    %28 = vector.load %arg16[%c0_15, %c0_16] : memref<256x128xf32, #tpu.memory_space<vmem>>, vector<256x128xf32>
    tpu.vector_store %arg16[%c0_15, %c0_16], %27 {strides = array<i32>} : memref<256x128xf32, #tpu.memory_space<vmem>>, vector<256x128xf32>,
    %c0_i32_17 = arith.constant 0 : i32
    %29 = arith.cmpi eq, %arg1, %c0_i32_17 : i32
    %30 = arith.extui %29 : i1 to i32
    %c0_i32_18 = arith.constant 0 : i32
    %31 = arith.cmpi ne, %30, %c0_i32_18 : i32
    scf.if %31 {
      %c0_19 = arith.constant 0 : index
      %c0_20 = arith.constant 0 : index
      %32 = vector.load %arg15[%c0_19, %c0_20] : memref<256x128xf32, #tpu.memory_space<vmem>>, vector<256x128xf32>
      %c0_21 = arith.constant 0 : index
      %c0_22 = arith.constant 0 : index
      %33 = vector.load %arg16[%c0_21, %c0_22] : memref<256x128xf32, #tpu.memory_space<vmem>>, vector<256x128xf32>
      %34 = arith.addf %32, %33 : vector<256x128xf32>
      %c0_23 = arith.constant 0 : index
      %c0_24 = arith.constant 0 : index
      %35 = vector.load %arg11[%c0_23, %c0_24] : memref<1x128xf32, #tpu.memory_space<vmem>>, vector<1x128xf32>
      %36 = vector.broadcast %35 : vector<1x128xf32> to vector<256x128xf32>
      %37 = arith.addf %34, %36 : vector<256x128xf32>
      %c0_25 = arith.constant 0 : index
      %c0_26 = arith.constant 0 : index
      %38 = vector.load %arg12[%c0_25, %c0_26] : memref<1x128xf32, #tpu.memory_space<vmem>>, vector<1x128xf32>
      %c0_27 = arith.constant 0 : index
      %c0_28 = arith.constant 0 : index
      %39 = vector.load %arg13[%c0_27, %c0_28] : memref<1x128xf32, #tpu.memory_space<vmem>>, vector<1x128xf32>
      %cst_29 = arith.constant dense<0.000000e+00> : vector<256xf32>
      %40 = vector.multi_reduction <add>, %37, %cst_29 [1] : vector<256x128xf32> to vector<256xf32>
      %41 = vector.shape_cast %40 : vector<256xf32> to vector<256x1xf32>
      %cst_30 = arith.constant 1.280000e+02 : f32
      %42 = vector.broadcast %cst_30 : f32 to vector<256x1xf32>
      %43 = arith.divf %41, %42 : vector<256x1xf32>
      %44 = vector.broadcast %43 : vector<256x1xf32> to vector<256x128xf32>
      %45 = arith.subf %37, %44 : vector<256x128xf32>
      %46 = arith.mulf %45, %45 : vector<256x128xf32>
      %cst_31 = arith.constant dense<0.000000e+00> : vector<256xf32>
      %47 = vector.multi_reduction <add>, %46, %cst_31 [1] : vector<256x128xf32> to vector<256xf32>
      %48 = vector.shape_cast %47 : vector<256xf32> to vector<256x1xf32>
      %cst_32 = arith.constant 1.280000e+02 : f32
      %49 = vector.broadcast %cst_32 : f32 to vector<256x1xf32>
      %50 = arith.divf %48, %49 : vector<256x1xf32>
      %51 = vector.broadcast %43 : vector<256x1xf32> to vector<256x128xf32>
      %52 = arith.subf %37, %51 : vector<256x128xf32>
      %cst_33 = arith.constant 9.99999996E-13 : f32
      %53 = vector.broadcast %cst_33 : f32 to vector<256x1xf32>
      %54 = arith.addf %50, %53 : vector<256x1xf32>
      %55 = math.rsqrt %54 : vector<256x1xf32>
      %56 = vector.broadcast %55 : vector<256x1xf32> to vector<256x128xf32>
      %57 = arith.mulf %52, %56 : vector<256x128xf32>
      %58 = vector.broadcast %38 : vector<1x128xf32> to vector<256x128xf32>
      %59 = arith.mulf %57, %58 : vector<256x128xf32>
      %60 = vector.broadcast %39 : vector<1x128xf32> to vector<256x128xf32>
      %61 = arith.addf %59, %60 : vector<256x128xf32>
      %62 = arith.truncf %61 : vector<256x128xf32> to vector<256x128xbf16>
      %c0_34 = arith.constant 0 : index
      %c0_35 = arith.constant 0 : index
      %63 = vector.load %arg14[%c0_34, %c0_35] : memref<256x128xbf16, #tpu.memory_space<vmem>>, vector<256x128xbf16>
      tpu.vector_store %arg14[%c0_34, %c0_35], %62 {strides = array<i32>} : memref<256x128xbf16, #tpu.memory_space<vmem>>, vector<256x128xbf16>,
    } else {
    }
    return
  }
  func.func @transform_0(%arg0: i32, %arg1: i32) -> (i32, i32) {
    %c0_i32 = arith.constant 0 : i32
    %c0_i32_0 = arith.constant 0 : i32
    return %arg0, %c0_i32 : i32, i32
  }
  func.func @transform_1(%arg0: i32, %arg1: i32) -> (i32, i32) {
    %c0_i32 = arith.constant 0 : i32
    %c0_i32_0 = arith.constant 0 : i32
    return %arg0, %c0_i32 : i32, i32
  }
  func.func @transform_2(%arg0: i32, %arg1: i32) -> (i32, i32) {
    %c0_i32 = arith.constant 0 : i32
    %c0_i32_0 = arith.constant 0 : i32
    %c0_i32_1 = arith.constant 0 : i32
    return %c0_i32, %c0_i32_0 : i32, i32
  }
  func.func @transform_3(%arg0: i32, %arg1: i32) -> (i32, i32) {
    %c0_i32 = arith.constant 0 : i32
    %c0_i32_0 = arith.constant 0 : i32
    %c0_i32_1 = arith.constant 0 : i32
    return %c0_i32, %c0_i32_0 : i32, i32
  }
  func.func @transform_4(%arg0: i32, %arg1: i32) -> (i32, i32) {
    %c0_i32 = arith.constant 0 : i32
    %c0_i32_0 = arith.constant 0 : i32
    %c0_i32_1 = arith.constant 0 : i32
    return %c0_i32, %c0_i32_0 : i32, i32
  }
  func.func @transform_5(%arg0: i32, %arg1: i32) -> (i32, i32) {
    %c0_i32 = arith.constant 0 : i32
    %c0_i32_0 = arith.constant 0 : i32
    %c0_i32_1 = arith.constant 0 : i32
    return %c0_i32, %c0_i32_0 : i32, i32
  }
  func.func @transform_6(%arg0: i32, %arg1: i32) -> (i32, i32) {
    %c0_i32 = arith.constant 0 : i32
    %c0_i32_0 = arith.constant 0 : i32
    return %c0_i32, %arg1 : i32, i32
  }
  func.func @transform_7(%arg0: i32, %arg1: i32) -> (i32, i32) {
    %c0_i32 = arith.constant 0 : i32
    %c0_i32_0 = arith.constant 0 : i32
    return %c0_i32, %arg1 : i32, i32
  }
  func.func @transform_8(%arg0: i32, %arg1: i32) -> (i32, i32) {
    %c0_i32 = arith.constant 0 : i32
    %c0_i32_0 = arith.constant 0 : i32
    return %arg1, %c0_i32 : i32, i32
  }
  func.func @transform_9(%arg0: i32, %arg1: i32) -> (i32, i32) {
    %c0_i32 = arith.constant 0 : i32
    %c0_i32_0 = arith.constant 0 : i32
    %c0_i32_1 = arith.constant 0 : i32
    return %c0_i32, %c0_i32_0 : i32, i32
  }
  func.func @transform_10(%arg0: i32, %arg1: i32) -> (i32, i32) {
    %c0_i32 = arith.constant 0 : i32
    %c0_i32_0 = arith.constant 0 : i32
    %c0_i32_1 = arith.constant 0 : i32
    return %c0_i32, %c0_i32_0 : i32, i32
  }
  func.func @transform_11(%arg0: i32, %arg1: i32) -> (i32, i32) {
    %c0_i32 = arith.constant 0 : i32
    %c0_i32_0 = arith.constant 0 : i32
    %c0_i32_1 = arith.constant 0 : i32
    return %c0_i32, %c0_i32_0 : i32, i32
  }
  func.func @transform_12(%arg0: i32, %arg1: i32) -> (i32, i32) {
    %c0_i32 = arith.constant 0 : i32
    %c0_i32_0 = arith.constant 0 : i32
    return %arg0, %c0_i32 : i32, i32
  }
}

</mosaic_0001>

<bundles_post_ra>
// kernel: bert_forward.7
= control target key start
LH: loop header
LB: loop body
LE: loop exit
PB: predicated region body
PF: predicated region fallthrough
CT: control target
= control target key end

     0   :  { %s1392_s0 = inlined_call_operand.vmem [shape: f32[256,128], index: 0, kind: input, shape index: {}]   ;;  %s1393_s1 = inlined_call_operand.vmem [shape: f32[1,128], index: 1, kind: input, shape index: {}]   ;;  %s1394_s2 = inlined_call_operand.vmem [shape: f32[1,128], index: 2, kind: input, shape index: {}]   ;;  %s1395_s3 = inlined_call_operand.vmem [shape: bf16[256,128], index: 3, kind: output, shape index: {}]  }
   0x1   :  { %v889_v0 = vld [vmem:[%s1392_s0] sm:$0xff]  ;;  %v894_v1 = vld [vmem:[%s1392_s0 + $0x10] sm:$0xff]  ;;  %v901_v2 = vld [vmem:[%s1392_s0 + $0x8] sm:$0xff] }
   0x2   :  { %48 = vadd.xlane.f32.xlu0 %v889_v0  ;;  %52 = vadd.xlane.f32.xlu1 %v894_v1  ;;  %v906_v3 = vld [vmem:[%s1392_s0 + $0x18] sm:$0xff]  ;;  %v913_v4 = vld [vmem:[%s1392_s0 + $0x20] sm:$0xff]  ;;  %v918_v5 = vld [vmem:[%s1392_s0 + $0x28] sm:$0xff] }
   0x3   :  { %v925_v6 = vld [vmem:[%s1392_s0 + $0x30] sm:$0xff]  ;;  %v930_v7 = vld [vmem:[%s1392_s0 + $0x38] sm:$0xff]  ;;  %v937_v8 = vld [vmem:[%s1392_s0 + $0x40] sm:$0xff] }
   0x4   :  { %v942_v9 = vld [vmem:[%s1392_s0 + $0x48] sm:$0xff]  ;;  %v949_v10 = vld [vmem:[%s1392_s0 + $0x50] sm:$0xff]  ;;  %v954_v11 = vld [vmem:[%s1392_s0 + $0x58] sm:$0xff] }
   0x5   :  { %v961_v12 = vld [vmem:[%s1392_s0 + $0x60] sm:$0xff]  ;;  %v966_v13 = vld [vmem:[%s1392_s0 + $0x68] sm:$0xff]  ;;  %v973_v14 = vld [vmem:[%s1392_s0 + $0x70] sm:$0xff] }
   0x6   :  { %50 = vadd.xlane.f32.xlu0 %v901_v2  ;;  %54 = vadd.xlane.f32.xlu1 %v906_v3  ;;  %v978_v15 = vld [vmem:[%s1392_s0 + $0x78] sm:$0xff]  ;;  %v985_v16 = vld [vmem:[%s1392_s0 + $0x80] sm:$0xff]  ;;  %v990_v17 = vld [vmem:[%s1392_s0 + $0x88] sm:$0xff] }
   0x7   :  { %v997_v18 = vld [vmem:[%s1392_s0 + $0x90] sm:$0xff]  ;;  %v1002_v19 = vld [vmem:[%s1392_s0 + $0x98] sm:$0xff]  ;;  %v1009_v20 = vld [vmem:[%s1392_s0 + $0xa0] sm:$0xff] }
   0x8   :  { %v1014_v21 = vld [vmem:[%s1392_s0 + $0xa8] sm:$0xff]  ;;  %v1021_v22 = vld [vmem:[%s1392_s0 + $0xb0] sm:$0xff]  ;;  %v1026_v23 = vld [vmem:[%s1392_s0 + $0xb8] sm:$0xff] }
   0x9   :  { %v1033_v24 = vld [vmem:[%s1392_s0 + $0xc0] sm:$0xff]  ;;  %v1038_v25 = vld [vmem:[%s1392_s0 + $0xc8] sm:$0xff]  ;;  %v1045_v26 = vld [vmem:[%s1392_s0 + $0xd0] sm:$0xff] }
   0xa   :  { %56 = vadd.xlane.f32.xlu0 %v913_v4  ;;  %58 = vadd.xlane.f32.xlu1 %v918_v5  ;;  %v1050_v27 = vld [vmem:[%s1392_s0 + $0xd8] sm:$0xff]  ;;  %v1057_v28 = vld [vmem:[%s1392_s0 + $0xe0] sm:$0xff]  ;;  %v1062_v29 = vld [vmem:[%s1392_s0 + $0xe8] sm:$0xff] }
   0xb   :  { %v1069_v30 = vld [vmem:[%s1392_s0 + $0xf0] sm:$0xff]  ;;  %v1074_v31 = vld [vmem:[%s1392_s0 + $0xf8] sm:$0xff] }
   0xe   :  { %60 = vadd.xlane.f32.xlu0 %v925_v6  ;;  %62 = vadd.xlane.f32.xlu1 %v930_v7 }
  0x12   :  { %64 = vadd.xlane.f32.xlu0 %v937_v8  ;;  %66 = vadd.xlane.f32.xlu1 %v942_v9 }
  0x16   :  { %68 = vadd.xlane.f32.xlu0 %v949_v10  ;;  %70 = vadd.xlane.f32.xlu1 %v954_v11 }
  0x1a   :  { %72 = vadd.xlane.f32.xlu0 %v961_v12  ;;  %74 = vadd.xlane.f32.xlu1 %v966_v13 }
  0x1e   :  { %76 = vadd.xlane.f32.xlu0 %v973_v14  ;;  %78 = vadd.xlane.f32.xlu1 %v978_v15 }
  0x22   :  { %80 = vadd.xlane.f32.xlu0 %v985_v16  ;;  %82 = vadd.xlane.f32.xlu1 %v990_v17 }
  0x26   :  { %84 = vadd.xlane.f32.xlu0 %v997_v18  ;;  %86 = vadd.xlane.f32.xlu1 %v1002_v19 }
  0x2a   :  { %88 = vadd.xlane.f32.xlu0 %v1009_v20  ;;  %90 = vadd.xlane.f32.xlu1 %v1014_v21 }
  0x2e   :  { %92 = vadd.xlane.f32.xlu0 %v1021_v22  ;;  %94 = vadd.xlane.f32.xlu1 %v1026_v23 }
  0x32   :  { %96 = vadd.xlane.f32.xlu0 %v1033_v24  ;;  %98 = vadd.xlane.f32.xlu1 %v1038_v25 }
  0x36   :  { %100 = vadd.xlane.f32.xlu0 %v1045_v26  ;;  %102 = vadd.xlane.f32.xlu1 %v1050_v27 }
  0x3a   :  { %104 = vadd.xlane.f32.xlu0 %v1057_v28  ;;  %106 = vadd.xlane.f32.xlu1 %v1062_v29 }
  0x3e   :  { %108 = vadd.xlane.f32.xlu0 %v1069_v30  ;;  %110 = vadd.xlane.f32.xlu1 %v1074_v31 }
  0x8f   :  { %v49_v32 = vpop.xlane.xlu0 %48  ;;  %v53_v33 = vpop.xlane.xlu1 %52 }
  0x90   :  { %v113_v34 = vmul.f32 0.0078125, %v49_v32  ;;  %v115_v35 = vmul.f32 0.0078125, %v53_v33 }
  0x92   :  { %v1079_v36 = vsub.f32 %v889_v0, %v113_v34  ;;  %v1082_v37 = vsub.f32 %v894_v1, %v115_v35 }
  0x93   :  { %v51_v38 = vpop.xlane.xlu0 %50  ;;  %v55_v39 = vpop.xlane.xlu1 %54 }
  0x94   :  { %v114_v40 = vmul.f32 0.0078125, %v51_v38  ;;  %v177_v41 = vmul.f32 %v1079_v36, %v1079_v36  ;;  %v116_v42 = vmul.f32 0.0078125, %v55_v39  ;;  %v179_v45 = vmul.f32 %v1082_v37, %v1082_v37 }
  0x96   :  { %v1087_v43 = vsub.f32 %v901_v2, %v114_v40  ;;  %209 = vadd.xlane.f32.xlu0 %v177_v41  ;;  %v1090_v44 = vsub.f32 %v906_v3, %v116_v42 }
  0x97   :  { %v57_v46 = vpop.xlane.xlu0 %56  ;;  %v59_v47 = vpop.xlane.xlu1 %58 }
  0x98   :  { %v117_v48 = vmul.f32 0.0078125, %v57_v46  ;;  %v178_v49 = vmul.f32 %v1087_v43, %v1087_v43  ;;  %v118_v50 = vmul.f32 0.0078125, %v59_v47  ;;  %v180_v53 = vmul.f32 %v1090_v44, %v1090_v44 }
  0x9a   :  { %v1097_v51 = vsub.f32 %v913_v4, %v117_v48  ;;  %213 = vadd.xlane.f32.xlu0 %v179_v45  ;;  %211 = vadd.xlane.f32.xlu1 %v178_v49  ;;  %v1100_v52 = vsub.f32 %v918_v5, %v118_v50 }
  0x9b   :  { %v61_v54 = vpop.xlane.xlu0 %60  ;;  %v63_v55 = vpop.xlane.xlu1 %62 }
  0x9c   :  { %v119_v56 = vmul.f32 0.0078125, %v61_v54  ;;  %v181_v57 = vmul.f32 %v1097_v51, %v1097_v51  ;;  %v120_v58 = vmul.f32 0.0078125, %v63_v55  ;;  %v182_v61 = vmul.f32 %v1100_v52, %v1100_v52 }
  0x9e   :  { %v1107_v59 = vsub.f32 %v925_v6, %v119_v56  ;;  %215 = vadd.xlane.f32.xlu1 %v180_v53  ;;  %217 = vadd.xlane.f32.xlu0 %v181_v57  ;;  %v1110_v60 = vsub.f32 %v930_v7, %v120_v58 }
  0x9f   :  { %v65_v62 = vpop.xlane.xlu0 %64  ;;  %v67_v63 = vpop.xlane.xlu1 %66 }
  0xa0   :  { %v121_v0 = vmul.f32 0.0078125, %v65_v62  ;;  %v183_v1 = vmul.f32 %v1107_v59, %v1107_v59  ;;  %v122_v2 = vmul.f32 0.0078125, %v67_v63  ;;  %v184_v5 = vmul.f32 %v1110_v60, %v1110_v60 }
  0xa2   :  { %v1117_v3 = vsub.f32 %v937_v8, %v121_v0  ;;  %219 = vadd.xlane.f32.xlu1 %v182_v61  ;;  %221 = vadd.xlane.f32.xlu0 %v183_v1  ;;  %v1120_v4 = vsub.f32 %v942_v9, %v122_v2 }
  0xa3   :  { %v69_v6 = vpop.xlane.xlu0 %68  ;;  %v71_v7 = vpop.xlane.xlu1 %70 }
  0xa4   :  { %v123_v32 = vmul.f32 0.0078125, %v69_v6  ;;  %v185_v33 = vmul.f32 %v1117_v3, %v1117_v3  ;;  %v124_v34 = vmul.f32 0.0078125, %v71_v7  ;;  %v186_v9 = vmul.f32 %v1120_v4, %v1120_v4 }
  0xa6   :  { %v1127_v35 = vsub.f32 %v949_v10, %v123_v32  ;;  %223 = vadd.xlane.f32.xlu1 %v184_v5  ;;  %225 = vadd.xlane.f32.xlu0 %v185_v33  ;;  %v1130_v8 = vsub.f32 %v954_v11, %v124_v34 }
  0xa7   :  { %v73_v38 = vpop.xlane.xlu0 %72  ;;  %v75_v39 = vpop.xlane.xlu1 %74 }
  0xa8   :  { %v125_v40 = vmul.f32 0.0078125, %v73_v38  ;;  %v187_v41 = vmul.f32 %v1127_v35, %v1127_v35  ;;  %v126_v42 = vmul.f32 0.0078125, %v75_v39  ;;  %v188_v11 = vmul.f32 %v1130_v8, %v1130_v8 }
  0xaa   :  { %v1137_v45 = vsub.f32 %v961_v12, %v125_v40  ;;  %227 = vadd.xlane.f32.xlu1 %v186_v9  ;;  %229 = vadd.xlane.f32.xlu0 %v187_v41  ;;  %v1140_v10 = vsub.f32 %v966_v13, %v126_v42 }
  0xab   :  { %v77_v46 = vpop.xlane.xlu0 %76  ;;  %v79_v47 = vpop.xlane.xlu1 %78 }
  0xac   :  { %v127_v48 = vmul.f32 0.0078125, %v77_v46  ;;  %v189_v49 = vmul.f32 %v1137_v45, %v1137_v45  ;;  %v128_v50 = vmul.f32 0.0078125, %v79_v47  ;;  %v190_v13 = vmul.f32 %v1140_v10, %v1140_v10 }
  0xae   :  { %v1147_v53 = vsub.f32 %v973_v14, %v127_v48  ;;  %231 = vadd.xlane.f32.xlu1 %v188_v11  ;;  %233 = vadd.xlane.f32.xlu0 %v189_v49  ;;  %v1150_v12 = vsub.f32 %v978_v15, %v128_v50 }
  0xaf   :  { %v81_v54 = vpop.xlane.xlu0 %80  ;;  %v83_v55 = vpop.xlane.xlu1 %82 }
  0xb0   :  { %v129_v56 = vmul.f32 0.0078125, %v81_v54  ;;  %v191_v57 = vmul.f32 %v1147_v53, %v1147_v53  ;;  %v130_v58 = vmul.f32 0.0078125, %v83_v55  ;;  %v192_v15 = vmul.f32 %v1150_v12, %v1150_v12 }
  0xb2   :  { %v1157_v61 = vsub.f32 %v985_v16, %v129_v56  ;;  %235 = vadd.xlane.f32.xlu1 %v190_v13  ;;  %237 = vadd.xlane.f32.xlu0 %v191_v57  ;;  %v1160_v14 = vsub.f32 %v990_v17, %v130_v58 }
  0xb3   :  { %v85_v62 = vpop.xlane.xlu0 %84  ;;  %v87_v63 = vpop.xlane.xlu1 %86 }
  0xb4   :  { %v131_v0 = vmul.f32 0.0078125, %v85_v62  ;;  %v193_v1 = vmul.f32 %v1157_v61, %v1157_v61  ;;  %v132_v2 = vmul.f32 0.0078125, %v87_v63  ;;  %v194_v17 = vmul.f32 %v1160_v14, %v1160_v14 }
  0xb6   :  { %v1167_v5 = vsub.f32 %v997_v18, %v131_v0  ;;  %239 = vadd.xlane.f32.xlu1 %v192_v15  ;;  %241 = vadd.xlane.f32.xlu0 %v193_v1  ;;  %v1170_v16 = vsub.f32 %v1002_v19, %v132_v2 }
  0xb7   :  { %v89_v6 = vpop.xlane.xlu0 %88  ;;  %v91_v7 = vpop.xlane.xlu1 %90 }
  0xb8   :  { %v133_v32 = vmul.f32 0.0078125, %v89_v6  ;;  %v195_v33 = vmul.f32 %v1167_v5, %v1167_v5  ;;  %v134_v34 = vmul.f32 0.0078125, %v91_v7  ;;  %v196_v19 = vmul.f32 %v1170_v16, %v1170_v16 }
  0xba   :  { %v1177_v9 = vsub.f32 %v1009_v20, %v133_v32  ;;  %243 = vadd.xlane.f32.xlu1 %v194_v17  ;;  %245 = vadd.xlane.f32.xlu0 %v195_v33  ;;  %v1180_v18 = vsub.f32 %v1014_v21, %v134_v34 }
  0xbb   :  { %v93_v38 = vpop.xlane.xlu0 %92  ;;  %v95_v39 = vpop.xlane.xlu1 %94 }
  0xbc   :  { %v135_v40 = vmul.f32 0.0078125, %v93_v38  ;;  %v197_v41 = vmul.f32 %v1177_v9, %v1177_v9  ;;  %v136_v42 = vmul.f32 0.0078125, %v95_v39  ;;  %v198_v21 = vmul.f32 %v1180_v18, %v1180_v18 }
  0xbe   :  { %v1187_v11 = vsub.f32 %v1021_v22, %v135_v40  ;;  %247 = vadd.xlane.f32.xlu1 %v196_v19  ;;  %249 = vadd.xlane.f32.xlu0 %v197_v41  ;;  %v1190_v20 = vsub.f32 %v1026_v23, %v136_v42 }
  0xbf   :  { %v97_v46 = vpop.xlane.xlu0 %96  ;;  %v99_v47 = vpop.xlane.xlu1 %98 }
  0xc0   :  { %v137_v48 = vmul.f32 0.0078125, %v97_v46  ;;  %v199_v49 = vmul.f32 %v1187_v11, %v1187_v11  ;;  %v138_v50 = vmul.f32 0.0078125, %v99_v47  ;;  %v200_v23 = vmul.f32 %v1190_v20, %v1190_v20 }
  0xc2   :  { %v1197_v13 = vsub.f32 %v1033_v24, %v137_v48  ;;  %251 = vadd.xlane.f32.xlu1 %v198_v21  ;;  %253 = vadd.xlane.f32.xlu0 %v199_v49  ;;  %v1200_v22 = vsub.f32 %v1038_v25, %v138_v50 }
  0xc3   :  { %v101_v54 = vpop.xlane.xlu0 %100  ;;  %v103_v55 = vpop.xlane.xlu1 %102 }
  0xc4   :  { %v139_v56 = vmul.f32 0.0078125, %v101_v54  ;;  %v201_v57 = vmul.f32 %v1197_v13, %v1197_v13  ;;  %v140_v58 = vmul.f32 0.0078125, %v103_v55  ;;  %v202_v25 = vmul.f32 %v1200_v22, %v1200_v22 }
  0xc6   :  { %v1207_v15 = vsub.f32 %v1045_v26, %v139_v56  ;;  %255 = vadd.xlane.f32.xlu1 %v200_v23  ;;  %257 = vadd.xlane.f32.xlu0 %v201_v57  ;;  %v1210_v24 = vsub.f32 %v1050_v27, %v140_v58 }
  0xc7   :  { %v105_v62 = vpop.xlane.xlu0 %104  ;;  %v107_v63 = vpop.xlane.xlu1 %106 }
  0xc8   :  { %v141_v0 = vmul.f32 0.0078125, %v105_v62  ;;  %v203_v1 = vmul.f32 %v1207_v15, %v1207_v15  ;;  %v142_v2 = vmul.f32 0.0078125, %v107_v63  ;;  %v204_v27 = vmul.f32 %v1210_v24, %v1210_v24 }
  0xca   :  { %v1217_v17 = vsub.f32 %v1057_v28, %v141_v0  ;;  %259 = vadd.xlane.f32.xlu1 %v202_v25  ;;  %261 = vadd.xlane.f32.xlu0 %v203_v1  ;;  %v1220_v26 = vsub.f32 %v1062_v29, %v142_v2 }
  0xcb   :  { %v109_v6 = vpop.xlane.xlu0 %108  ;;  %v111_v7 = vpop.xlane.xlu1 %110 }
  0xcc   :  { %v143_v32 = vmul.f32 0.0078125, %v109_v6  ;;  %v205_v33 = vmul.f32 %v1217_v17, %v1217_v17  ;;  %v144_v34 = vmul.f32 0.0078125, %v111_v7  ;;  %v206_v29 = vmul.f32 %v1220_v26, %v1220_v26  ;;  %v1242_v7 = vld [vmem:[%s1393_s1] ss:$0 sm:$0xff] }
  0xce   :  { %v1227_v19 = vsub.f32 %v1069_v30, %v143_v32  ;;  %263 = vadd.xlane.f32.xlu1 %v204_v27  ;;  %265 = vadd.xlane.f32.xlu0 %v205_v33  ;;  %v1230_v28 = vsub.f32 %v1074_v31, %v144_v34 }
  0xd0   :  { %v207_v38 = vmul.f32 %v1227_v19, %v1227_v19  ;;  %v208_v39 = vmul.f32 %v1230_v28, %v1230_v28 }
  0xd2   :  { %267 = vadd.xlane.f32.xlu1 %v206_v29  ;;  %269 = vadd.xlane.f32.xlu0 %v207_v38 }
  0xd6   :  { %271 = vadd.xlane.f32.xlu1 %v208_v39 }
 0x123   :  { %v210_v40 = vpop.xlane.xlu0 %209 }
 0x124   :  { %v273_v30 = vmul.f32 0.0078125, %v210_v40 }
 0x126   :  { %v305_v41 = vadd.f32 1e-12, %v273_v30 }
 0x127   :  { %v212_v42 = vpop.xlane.xlu1 %211  ;;  %v214_v21 = vpop.xlane.xlu0 %213 }
 0x128   :  { %802 = vrsqrt.f32 %v305_v41  ;;  %v274_v31 = vmul.f32 0.0078125, %v212_v42  ;;  %v275_v46 = vmul.f32 0.0078125, %v214_v21  ;;  %v1249_v42 = vld [vmem:[%s1394_s2] ss:$0 sm:$0xff] }
 0x12a   :  { %v306_v47 = vadd.f32 1e-12, %v274_v31  ;;  %v307_v48 = vadd.f32 1e-12, %v275_v46 }
 0x12b   :  { %v216_v49 = vpop.xlane.xlu1 %215  ;;  %v218_v50 = vpop.xlane.xlu0 %217 }
 0x12c   :  { %804 = vrsqrt.f32 %v306_v47  ;;  %v276_v23 = vmul.f32 0.0078125, %v216_v49  ;;  %v277_v54 = vmul.f32 0.0078125, %v218_v50 }
 0x12d   :  { %806 = vrsqrt.f32 %v307_v48 }
 0x12e   :  { %v308_v55 = vadd.f32 1e-12, %v276_v23  ;;  %v309_v56 = vadd.f32 1e-12, %v277_v54 }
 0x12f   :  { %v220_v57 = vpop.xlane.xlu1 %219  ;;  %v222_v58 = vpop.xlane.xlu0 %221 }
 0x130   :  { %808 = vrsqrt.f32 %v308_v55  ;;  %v278_v25 = vmul.f32 0.0078125, %v220_v57  ;;  %v279_v62 = vmul.f32 0.0078125, %v222_v58 }
 0x131   :  { %810 = vrsqrt.f32 %v309_v56 }
 0x132   :  { %v803_v63 = vpop.eup %802  ;;  %v310_v0 = vadd.f32 1e-12, %v278_v25  ;;  %v311_v1 = vadd.f32 1e-12, %v279_v62 }
 0x133   :  { %v369_v2 = vmul.f32 %v803_v63, %v1079_v36  ;;  %v224_v27 = vpop.xlane.xlu1 %223  ;;  %v226_v6 = vpop.xlane.xlu0 %225 }
 0x134   :  { %812 = vrsqrt.f32 %v310_v0  ;;  %v280_v32 = vmul.f32 0.0078125, %v224_v27  ;;  %v281_v33 = vmul.f32 0.0078125, %v226_v6 }
 0x135   :  { %814 = vrsqrt.f32 %v311_v1  ;;  %v407_v40 = vmul.f32 %v1242_v7, %v369_v2 }
 0x136   :  { %v805_v34 = vpop.eup %804  ;;  %v312_v29 = vadd.f32 1e-12, %v280_v32  ;;  %v313_v38 = vadd.f32 1e-12, %v281_v33 }
 0x137   :  { %v807_v39 = vpop.eup %806  ;;  %v370_v30 = vmul.f32 %v805_v34, %v1087_v43  ;;  %v228_v36 = vpop.xlane.xlu1 %227  ;;  %v445_v43 = vadd.f32 %v1249_v42, %v407_v40 }
 0x138   :  { %v230_v41 = vpop.xlane.xlu0 %229  ;;  %v371_v21 = vmul.f32 %v807_v39, %v1082_v37  ;;  %816 = vrsqrt.f32 %v312_v29  ;;  %v282_v31 = vmul.f32 0.0078125, %v228_v36 }
 0x139   :  { %v283_v46 = vmul.f32 0.0078125, %v230_v41  ;;  %v408_v47 = vmul.f32 %v1242_v7, %v370_v30  ;;  %818 = vrsqrt.f32 %v313_v38 }
 0x13a   :  { %v809_v48 = vpop.eup %808  ;;  %v314_v49 = vadd.f32 1e-12, %v282_v31  ;;  %v409_v55 = vmul.f32 %v1242_v7, %v371_v21 }
 0x13b   :  { %v315_v50 = vadd.f32 1e-12, %v283_v46  ;;  %v811_v23 = vpop.eup %810  ;;  %v446_v54 = vadd.f32 %v1249_v42, %v408_v47  ;;  %v372_v56 = vmul.f32 %v809_v48, %v1090_v44  ;;  %v232_v57 = vpop.xlane.xlu1 %231 }
 0x13c   :  { %v234_v37 = vpop.xlane.xlu0 %233  ;;  %v373_v58 = vmul.f32 %v811_v23, %v1097_v51  ;;  %820 = vrsqrt.f32 %v314_v49  ;;  %v284_v25 = vmul.f32 0.0078125, %v232_v57  ;;  %v447_v44 = vadd.f32 %v1249_v42, %v409_v55 }
 0x13d   :  { %v710_v62 = vpack.c.bf16 %v446_v54, %v445_v43  ;;  %v410_v63 = vmul.f32 %v1242_v7, %v372_v56  ;;  %822 = vrsqrt.f32 %v315_v50  ;;  %v285_v0 = vmul.f32 0.0078125, %v234_v37 }
 0x13e   :  { %v813_v1 = vpop.eup %812  ;;  %v411_v2 = vmul.f32 %v1242_v7, %v373_v58  ;;  %v316_v27 = vadd.f32 1e-12, %v284_v25 }
 0x13f   :  { %v815_v6 = vpop.eup %814  ;;  %711 = vst [vmem:[%s1395_s3] sm:$0xff] %v710_v62   ;;  %v448_v51 = vadd.f32 %v1249_v42, %v410_v63  ;;  %v374_v32 = vmul.f32 %v813_v1, %v1100_v52  ;;  %v317_v33 = vadd.f32 1e-12, %v285_v0  ;;  %v236_v34 = vpop.xlane.xlu1 %235 }
 0x140   :  { %v238_v29 = vpop.xlane.xlu0 %237  ;;  %v375_v38 = vmul.f32 %v815_v6, %v1107_v59  ;;  %824 = vrsqrt.f32 %v316_v27  ;;  %v286_v39 = vmul.f32 0.0078125, %v236_v34  ;;  %v449_v21 = vadd.f32 %v1249_v42, %v411_v2 }
 0x141   :  { %v715_v40 = vpack.c.bf16 %v448_v51, %v447_v44  ;;  %v412_v30 = vmul.f32 %v1242_v7, %v374_v32  ;;  %826 = vrsqrt.f32 %v317_v33  ;;  %v287_v36 = vmul.f32 0.0078125, %v238_v29 }
 0x142   :  { %v817_v41 = vpop.eup %816  ;;  %v318_v31 = vadd.f32 1e-12, %v286_v39  ;;  %v413_v59 = vmul.f32 %v1242_v7, %v375_v38 }
 0x143   :  { %v819_v46 = vpop.eup %818  ;;  %787 = vst [vmem:[%s1395_s3 + $0x8] sm:$0xff] %v715_v40   ;;  %v450_v52 = vadd.f32 %v1249_v42, %v412_v30  ;;  %v376_v47 = vmul.f32 %v817_v41, %v1110_v60  ;;  %v319_v48 = vadd.f32 1e-12, %v287_v36  ;;  %v240_v49 = vpop.xlane.xlu1 %239 }
 0x144   :  { %v242_v50 = vpop.xlane.xlu0 %241  ;;  %v377_v23 = vmul.f32 %v819_v46, %v1117_v3  ;;  %828 = vrsqrt.f32 %v318_v31  ;;  %v288_v43 = vmul.f32 0.0078125, %v240_v49  ;;  %v451_v60 = vadd.f32 %v1249_v42, %v413_v59 }
 0x145   :  { %v720_v54 = vpack.c.bf16 %v450_v52, %v449_v21  ;;  %v414_v55 = vmul.f32 %v1242_v7, %v376_v47  ;;  %830 = vrsqrt.f32 %v319_v48  ;;  %v289_v56 = vmul.f32 0.0078125, %v242_v50 }
 0x146   :  { %v821_v57 = vpop.eup %820  ;;  %v415_v37 = vmul.f32 %v1242_v7, %v377_v23  ;;  %v320_v58 = vadd.f32 1e-12, %v288_v43 }
 0x147   :  { %v823_v25 = vpop.eup %822  ;;  %788 = vst [vmem:[%s1395_s3 + $0x10] sm:$0xff] %v720_v54   ;;  %v452_v3 = vadd.f32 %v1249_v42, %v414_v55  ;;  %v378_v62 = vmul.f32 %v821_v57, %v1120_v4  ;;  %v321_v63 = vadd.f32 1e-12, %v289_v56  ;;  %v244_v0 = vpop.xlane.xlu1 %243 }
 0x148   :  { %v246_v1 = vpop.xlane.xlu0 %245  ;;  %v379_v2 = vmul.f32 %v823_v25, %v1127_v35  ;;  %832 = vrsqrt.f32 %v320_v58  ;;  %v290_v27 = vmul.f32 0.0078125, %v244_v0  ;;  %v453_v33 = vadd.f32 %v1249_v42, %v415_v37 }
 0x149   :  { %v725_v6 = vpack.c.bf16 %v452_v3, %v451_v60  ;;  %v416_v44 = vmul.f32 %v1242_v7, %v378_v62  ;;  %834 = vrsqrt.f32 %v321_v63  ;;  %v291_v51 = vmul.f32 0.0078125, %v246_v1 }
 0x14a   :  { %v825_v32 = vpop.eup %824  ;;  %v322_v34 = vadd.f32 1e-12, %v290_v27  ;;  %v417_v35 = vmul.f32 %v1242_v7, %v379_v2 }
 0x14b   :  { %v827_v29 = vpop.eup %826  ;;  %789 = vst [vmem:[%s1395_s3 + $0x18] sm:$0xff] %v725_v6   ;;  %v454_v4 = vadd.f32 %v1249_v42, %v416_v44  ;;  %v380_v38 = vmul.f32 %v825_v32, %v1130_v8  ;;  %v323_v39 = vadd.f32 1e-12, %v291_v51  ;;  %v248_v40 = vpop.xlane.xlu1 %247 }
 0x14c   :  { %v250_v30 = vpop.xlane.xlu0 %249  ;;  %v381_v36 = vmul.f32 %v827_v29, %v1137_v45  ;;  %836 = vrsqrt.f32 %v322_v34  ;;  %v292_v41 = vmul.f32 0.0078125, %v248_v40  ;;  %v455_v8 = vadd.f32 %v1249_v42, %v417_v35 }
 0x14d   :  { %v730_v21 = vpack.c.bf16 %v454_v4, %v453_v33  ;;  %v418_v31 = vmul.f32 %v1242_v7, %v380_v38  ;;  %838 = vrsqrt.f32 %v323_v39  ;;  %v293_v46 = vmul.f32 0.0078125, %v250_v30 }
 0x14e   :  { %v829_v52 = vpop.eup %828  ;;  %v419_v59 = vmul.f32 %v1242_v7, %v381_v36  ;;  %v324_v47 = vadd.f32 1e-12, %v292_v41 }
 0x14f   :  { %v831_v48 = vpop.eup %830  ;;  %790 = vst [vmem:[%s1395_s3 + $0x20] sm:$0xff] %v730_v21   ;;  %v456_v45 = vadd.f32 %v1249_v42, %v418_v31  ;;  %v382_v49 = vmul.f32 %v829_v52, %v1140_v10  ;;  %v325_v50 = vadd.f32 1e-12, %v293_v46  ;;  %v252_v23 = vpop.xlane.xlu1 %251 }
 0x150   :  { %v254_v43 = vpop.xlane.xlu0 %253  ;;  %v383_v54 = vmul.f32 %v831_v48, %v1147_v53  ;;  %840 = vrsqrt.f32 %v324_v47  ;;  %v294_v55 = vmul.f32 0.0078125, %v252_v23  ;;  %v457_v25 = vadd.f32 %v1249_v42, %v419_v59 }
 0x151   :  { %v735_v56 = vpack.c.bf16 %v456_v45, %v455_v8  ;;  %v420_v57 = vmul.f32 %v1242_v7, %v382_v49  ;;  %842 = vrsqrt.f32 %v325_v50  ;;  %v295_v37 = vmul.f32 0.0078125, %v254_v43 }
 0x152   :  { %v833_v58 = vpop.eup %832  ;;  %v326_v60 = vadd.f32 1e-12, %v294_v55  ;;  %v421_v53 = vmul.f32 %v1242_v7, %v383_v54 }
 0x153   :  { %v835_v3 = vpop.eup %834  ;;  %791 = vst [vmem:[%s1395_s3 + $0x28] sm:$0xff] %v735_v56   ;;  %v458_v10 = vadd.f32 %v1249_v42, %v420_v57  ;;  %v384_v62 = vmul.f32 %v833_v58, %v1150_v12  ;;  %v327_v63 = vadd.f32 1e-12, %v295_v37  ;;  %v256_v0 = vpop.xlane.xlu1 %255 }
 0x154   :  { %v258_v1 = vpop.xlane.xlu0 %257  ;;  %v385_v2 = vmul.f32 %v835_v3, %v1157_v61  ;;  %844 = vrsqrt.f32 %v326_v60  ;;  %v296_v27 = vmul.f32 0.0078125, %v256_v0  ;;  %v459_v12 = vadd.f32 %v1249_v42, %v421_v53 }
 0x155   :  { %v740_v6 = vpack.c.bf16 %v458_v10, %v457_v25  ;;  %v422_v44 = vmul.f32 %v1242_v7, %v384_v62  ;;  %846 = vrsqrt.f32 %v327_v63  ;;  %v297_v51 = vmul.f32 0.0078125, %v258_v1 }
 0x156   :  { %v837_v32 = vpop.eup %836  ;;  %v423_v33 = vmul.f32 %v1242_v7, %v385_v2  ;;  %v328_v34 = vadd.f32 1e-12, %v296_v27 }
 0x157   :  { %v839_v29 = vpop.eup %838  ;;  %792 = vst [vmem:[%s1395_s3 + $0x30] sm:$0xff] %v740_v6   ;;  %v460_v61 = vadd.f32 %v1249_v42, %v422_v44  ;;  %v386_v4 = vmul.f32 %v837_v32, %v1160_v14  ;;  %v329_v35 = vadd.f32 1e-12, %v297_v51  ;;  %v260_v38 = vpop.xlane.xlu1 %259 }
 0x158   :  { %v262_v39 = vpop.xlane.xlu0 %261  ;;  %v387_v40 = vmul.f32 %v839_v29, %v1167_v5  ;;  %848 = vrsqrt.f32 %v328_v34  ;;  %v298_v30 = vmul.f32 0.0078125, %v260_v38  ;;  %v461_v46 = vadd.f32 %v1249_v42, %v423_v33 }
 0x159   :  { %v745_v36 = vpack.c.bf16 %v460_v61, %v459_v12  ;;  %v424_v41 = vmul.f32 %v1242_v7, %v386_v4  ;;  %850 = vrsqrt.f32 %v329_v35  ;;  %v299_v21 = vmul.f32 0.0078125, %v262_v39 }
 0x15a   :  { %v841_v31 = vpop.eup %840  ;;  %v330_v52 = vadd.f32 1e-12, %v298_v30  ;;  %v425_v5 = vmul.f32 %v1242_v7, %v387_v40 }
 0x15b   :  { %v843_v59 = vpop.eup %842  ;;  %793 = vst [vmem:[%s1395_s3 + $0x38] sm:$0xff] %v745_v36   ;;  %v462_v14 = vadd.f32 %v1249_v42, %v424_v41  ;;  %v388_v47 = vmul.f32 %v841_v31, %v1170_v16  ;;  %v331_v48 = vadd.f32 1e-12, %v299_v21  ;;  %v264_v8 = vpop.xlane.xlu1 %263 }
 0x15c   :  { %v266_v45 = vpop.xlane.xlu0 %265  ;;  %v389_v49 = vmul.f32 %v843_v59, %v1177_v9  ;;  %852 = vrsqrt.f32 %v330_v52  ;;  %v300_v50 = vmul.f32 0.0078125, %v264_v8  ;;  %v463_v16 = vadd.f32 %v1249_v42, %v425_v5 }
 0x15d   :  { %v750_v23 = vpack.c.bf16 %v462_v14, %v461_v46  ;;  %v426_v43 = vmul.f32 %v1242_v7, %v388_v47  ;;  %854 = vrsqrt.f32 %v331_v48  ;;  %v301_v54 = vmul.f32 0.0078125, %v266_v45 }
 0x15e   :  { %v845_v55 = vpop.eup %844  ;;  %v427_v56 = vmul.f32 %v1242_v7, %v389_v49  ;;  %v332_v57 = vadd.f32 1e-12, %v300_v50 }
 0x15f   :  { %v847_v37 = vpop.eup %846  ;;  %794 = vst [vmem:[%s1395_s3 + $0x40] sm:$0xff] %v750_v23   ;;  %v464_v9 = vadd.f32 %v1249_v42, %v426_v43  ;;  %v390_v58 = vmul.f32 %v845_v55, %v1180_v18  ;;  %v333_v25 = vadd.f32 1e-12, %v301_v54  ;;  %v268_v60 = vpop.xlane.xlu1 %267 }
 0x160   :  { %v270_v3 = vpop.xlane.xlu0 %269  ;;  %v391_v10 = vmul.f32 %v847_v37, %v1187_v11  ;;  %856 = vrsqrt.f32 %v332_v57  ;;  %v302_v53 = vmul.f32 0.0078125, %v268_v60  ;;  %v465_v2 = vadd.f32 %v1249_v42, %v427_v56 }
 0x161   :  { %v755_v62 = vpack.c.bf16 %v464_v9, %v463_v16  ;;  %v428_v63 = vmul.f32 %v1242_v7, %v390_v58  ;;  %858 = vrsqrt.f32 %v333_v25  ;;  %v303_v0 = vmul.f32 0.0078125, %v270_v3 }
 0x162   :  { %v849_v1 = vpop.eup %848  ;;  %v334_v27 = vadd.f32 1e-12, %v302_v53  ;;  %v429_v11 = vmul.f32 %v1242_v7, %v391_v10 }
 0x163   :  { %v851_v6 = vpop.eup %850  ;;  %795 = vst [vmem:[%s1395_s3 + $0x48] sm:$0xff] %v755_v62   ;;  %v466_v18 = vadd.f32 %v1249_v42, %v428_v63  ;;  %v392_v44 = vmul.f32 %v849_v1, %v1190_v20  ;;  %v335_v51 = vadd.f32 1e-12, %v303_v0  ;;  %v272_v32 = vpop.xlane.xlu1 %271 }
 0x164   :  { %v393_v33 = vmul.f32 %v851_v6, %v1197_v13  ;;  %860 = vrsqrt.f32 %v334_v27  ;;  %v304_v34 = vmul.f32 0.0078125, %v272_v32  ;;  %v467_v38 = vadd.f32 %v1249_v42, %v429_v11 }
 0x165   :  { %v760_v29 = vpack.c.bf16 %v466_v18, %v465_v2  ;;  %v430_v12 = vmul.f32 %v1242_v7, %v392_v44  ;;  %862 = vrsqrt.f32 %v335_v51 }
 0x166   :  { %v853_v61 = vpop.eup %852  ;;  %v336_v4 = vadd.f32 1e-12, %v304_v34  ;;  %v431_v39 = vmul.f32 %v1242_v7, %v393_v33 }
 0x167   :  { %v855_v35 = vpop.eup %854  ;;  %796 = vst [vmem:[%s1395_s3 + $0x50] sm:$0xff] %v760_v29   ;;  %v468_v20 = vadd.f32 %v1249_v42, %v430_v12  ;;  %v394_v13 = vmul.f32 %v853_v61, %v1200_v22 }
 0x168   :  { %v395_v40 = vmul.f32 %v855_v35, %v1207_v15  ;;  %864 = vrsqrt.f32 %v336_v4  ;;  %v469_v31 = vadd.f32 %v1249_v42, %v431_v39 }
 0x169   :  { %v765_v30 = vpack.c.bf16 %v468_v20, %v467_v38  ;;  %v432_v36 = vmul.f32 %v1242_v7, %v394_v13 }
 0x16a   :  { %v857_v41 = vpop.eup %856  ;;  %v433_v52 = vmul.f32 %v1242_v7, %v395_v40 }
 0x16b   :  { %v859_v21 = vpop.eup %858  ;;  %797 = vst [vmem:[%s1395_s3 + $0x58] sm:$0xff] %v765_v30   ;;  %v470_v46 = vadd.f32 %v1249_v42, %v432_v36  ;;  %v396_v22 = vmul.f32 %v857_v41, %v1210_v24 }
 0x16c   :  { %v397_v15 = vmul.f32 %v859_v21, %v1217_v17  ;;  %v471_v48 = vadd.f32 %v1249_v42, %v433_v52 }
 0x16d   :  { %v770_v59 = vpack.c.bf16 %v470_v46, %v469_v31  ;;  %v434_v14 = vmul.f32 %v1242_v7, %v396_v22 }
 0x16e   :  { %v861_v5 = vpop.eup %860  ;;  %v435_v45 = vmul.f32 %v1242_v7, %v397_v15 }
 0x16f   :  { %v863_v47 = vpop.eup %862  ;;  %798 = vst [vmem:[%s1395_s3 + $0x60] sm:$0xff] %v770_v59   ;;  %v472_v8 = vadd.f32 %v1249_v42, %v434_v14  ;;  %v398_v49 = vmul.f32 %v861_v5, %v1220_v26 }
 0x170   :  { %v399_v24 = vmul.f32 %v863_v47, %v1227_v19  ;;  %v473_v43 = vadd.f32 %v1249_v42, %v435_v45 }
 0x171   :  { %v775_v17 = vpack.c.bf16 %v472_v8, %v471_v48  ;;  %v436_v50 = vmul.f32 %v1242_v7, %v398_v49 }
 0x172   :  { %v865_v23 = vpop.eup %864  ;;  %v437_v55 = vmul.f32 %v1242_v7, %v399_v24 }
 0x173   :  { %799 = vst [vmem:[%s1395_s3 + $0x68] sm:$0xff] %v775_v17   ;;  %v474_v54 = vadd.f32 %v1249_v42, %v436_v50  ;;  %v400_v56 = vmul.f32 %v865_v23, %v1230_v28 }
 0x174   :  { %v475_v19 = vadd.f32 %v1249_v42, %v437_v55 }
 0x175   :  { %v780_v57 = vpack.c.bf16 %v474_v54, %v473_v43  ;;  %v438_v26 = vmul.f32 %v1242_v7, %v400_v56 }
 0x177   :  { %800 = vst [vmem:[%s1395_s3 + $0x70] sm:$0xff] %v780_v57   ;;  %v476_v37 = vadd.f32 %v1249_v42, %v438_v26 }
 0x179   :  { %v785_v16 = vpack.c.bf16 %v476_v37, %v475_v19 }
 0x17b   :  { %801 = vst [vmem:[%s1395_s3 + $0x78] sm:$0xff] %v785_v16  }

// kernel: bert_forward.8
= control target key start
LH: loop header
LB: loop body
LE: loop exit
PB: predicated region body
PF: predicated region fallthrough
CT: control target
= control target key end

     0   :  { %v1367_v1 = vmov 0   ;;  %v81_v41 = vlaneseq  ;;  %s1839_s1 = inlined_call_operand.vmem [shape: bf16[128,384], index: 1, kind: input, shape index: {}]   ;;  %s1840_s0 = inlined_call_operand.vmem [shape: bf16[256,128], index: 0, kind: input, shape index: {}]   ;;  %s1841_s2 = inlined_call_operand.vmem [shape: f32[1,384], index: 2, kind: input, shape index: {}]   ;;  %s1842_s3 = inlined_call_operand.vmem [shape: bf16[256,384], index: 3, kind: output, shape index: {}]  }
   0x1   :  { %v1319_v0 = vld [vmem:[%s1839_s1 + $0x4] ss:$12 sps:$4 sm:$0xff]   ;;  %352 = vmatprep.mubr.bf16.mxu0 %v1367_v1  ;;  %472 = vmatprep.mubr.bf16.mxu1 %v1367_v1  ;;  %v1321_v2 = vld [vmem:[%s1839_s1] ss:$12 sps:$4 sm:$0xff]   ;;  %v1322_v3 = vld [vmem:[%s1839_s1 + $0x1c] ss:$12 sps:$4 sm:$0xff]  }
   0x2   :  { %320 = vmatprep.subr.bf16.mxu0 %v1319_v0  ;;  %1302 = vmatprep.subr.bf16.mxu1 %v1319_v0  ;;  %v1324_v4 = vld [vmem:[%s1839_s1 + $0x18] ss:$12 sps:$4 sm:$0xff]   ;;  %v1325_v5 = vld [vmem:[%s1839_s1 + $0x34] ss:$12 sps:$4 sm:$0xff]   ;;  %v1327_v6 = vld [vmem:[%s1839_s1 + $0x30] ss:$12 sps:$4 sm:$0xff]  }
   0x3   :  { %321 = vmatpush1.bf16.msra.mxu0 %v1321_v2  ;;  %1310 = vmatpush1.bf16.msra.mxu1 %v1321_v2  ;;  %v1328_v7 = vld [vmem:[%s1839_s1 + $0x4c] ss:$12 sps:$4 sm:$0xff]   ;;  %v1330_v8 = vld [vmem:[%s1839_s1 + $0x48] ss:$12 sps:$4 sm:$0xff]   ;;  %v1331_v9 = vld [vmem:[%s1839_s1 + $0x64] ss:$12 sps:$4 sm:$0xff]  }
   0x4   :  { %322 = vmatprep.subr.bf16.mxu0 %v1322_v3  ;;  %1303 = vmatprep.subr.bf16.mxu1 %v1322_v3  ;;  %v1333_v10 = vld [vmem:[%s1839_s1 + $0x60] ss:$12 sps:$4 sm:$0xff]   ;;  %v1334_v11 = vld [vmem:[%s1839_s1 + $0x7c] ss:$12 sps:$4 sm:$0xff]   ;;  %v1336_v12 = vld [vmem:[%s1839_s1 + $0x78] ss:$12 sps:$4 sm:$0xff]  }
   0x5   :  { %v1337_v13 = vld [vmem:[%s1839_s1 + $0x94] ss:$12 sps:$4 sm:$0xff]   ;;  %v1339_v14 = vld [vmem:[%s1839_s1 + $0x90] ss:$12 sps:$4 sm:$0xff]   ;;  %v1340_v15 = vld [vmem:[%s1839_s1 + $0xac] ss:$12 sps:$4 sm:$0xff]  }
   0x6   :  { %v1342_v16 = vld [vmem:[%s1839_s1 + $0xa8] ss:$12 sps:$4 sm:$0xff]   ;;  %v1343_v18 = vld [vmem:[%s1840_s0] sm:$0xff]   ;;  %v1350_v24 = vld [vmem:[%s1839_s1 + $0x50] ss:$12 sps:$4 sm:$0xff]   ;;  %v1532_v42 = vshrl.u32 %v81_v41, 7 }
   0x7   :  { %323 = vmatpush1.bf16.msra.mxu0 %v1324_v4  ;;  %1311 = vmatpush1.bf16.msra.mxu1 %v1324_v4  ;;  %v1345_v17 = vld [vmem:[%s1839_s1 + $0x8] ss:$12 sps:$4 sm:$0xff]   ;;  %v1447_v19 = vld [vmem:[%s1840_s0 + $0x60] sm:$0xff]   ;;  %v1355_v30 = vld [vmem:[%s1840_s0 + $0x18] sm:$0xff]  }
   0x8   :  { %324 = vmatprep.subr.bf16.mxu0 %v1325_v5  ;;  %1304 = vmatprep.subr.bf16.mxu1 %v1325_v5  ;;  %v1346_v20 = vld [vmem:[%s1839_s1 + $0x20] ss:$12 sps:$4 sm:$0xff]   ;;  %v1349_v21 = vld [vmem:[%s1839_s1 + $0x38] ss:$12 sps:$4 sm:$0xff]   ;;  %v1353_v25 = vld [vmem:[%s1839_s1 + $0x68] ss:$12 sps:$4 sm:$0xff]  }
   0x9   :  { %v1347_v22 = vld [vmem:[%s1840_s0 + $0x8] sm:$0xff]   ;;  %v1351_v26 = vld [vmem:[%s1840_s0 + $0x10] sm:$0xff]   ;;  %v1357_v29 = vld [vmem:[%s1839_s1 + $0x98] ss:$12 sps:$4 sm:$0xff]   ;;  %v83_v43 = vsub.s32 0, %v1532_v42  ;;  %v87_v45 = vsub.s32 1, %v1532_v42 }
   0xa   :  { %v1464_v23 = vld [vmem:[%s1840_s0 + $0x68] sm:$0xff]   ;;  %v1352_v27 = vld [vmem:[%s1840_s0 + $0x70] sm:$0xff]   ;;  %v1356_v31 = vld [vmem:[%s1840_s0 + $0x78] sm:$0xff]  }
   0xb   :  { %325 = vmatpush1.bf16.msra.mxu0 %v1327_v6  ;;  %1312 = vmatpush1.bf16.msra.mxu1 %v1327_v6  ;;  %v1354_v28 = vld [vmem:[%s1839_s1 + $0x80] ss:$12 sps:$4 sm:$0xff]   ;;  %v1358_v32 = vld [vmem:[%s1839_s1 + $0xb0] ss:$12 sps:$4 sm:$0xff]  }
   0xc   :  { %326 = vmatprep.subr.bf16.mxu0 %v1328_v7  ;;  %1305 = vmatprep.subr.bf16.mxu1 %v1328_v7  ;;  %v1359_v33 = vld [vmem:[%s1840_s0 + $0x20] sm:$0xff]   ;;  %v1360_v34 = vld [vmem:[%s1840_s0 + $0x28] sm:$0xff]   ;;  %v1361_v35 = vld [vmem:[%s1840_s0 + $0x30] sm:$0xff]  }
   0xd   :  { %v1362_v36 = vld [vmem:[%s1840_s0 + $0x38] sm:$0xff]   ;;  %v1363_v37 = vld [vmem:[%s1840_s0 + $0x40] sm:$0xff]   ;;  %v1364_v38 = vld [vmem:[%s1840_s0 + $0x48] sm:$0xff]  }
   0xe   :  { %v1365_v39 = vld [vmem:[%s1840_s0 + $0x50] sm:$0xff]   ;;  %v1366_v40 = vld [vmem:[%s1840_s0 + $0x58] sm:$0xff]   ;;  %v1538_v44 = vld [vmem:[%s1841_s2] sm:$0x7] }
   0xf   :  { %327 = vmatpush1.bf16.msra.mxu0 %v1330_v8  ;;  %1313 = vmatpush1.bf16.msra.mxu1 %v1330_v8  ;;  %v1542_v46 = vrot.slane %v1538_v44, %v83_v43  ;;  %v1545_v47 = vrot.slane %v1538_v44, %v87_v45 }
  0x10   :  { %328 = vmatprep.subr.bf16.mxu0 %v1331_v9  ;;  %1306 = vmatprep.subr.bf16.mxu1 %v1331_v9 }
  0x13   :  { %329 = vmatpush1.bf16.msra.mxu0 %v1333_v10  ;;  %1314 = vmatpush1.bf16.msra.mxu1 %v1333_v10 }
  0x14   :  { %330 = vmatprep.subr.bf16.mxu0 %v1334_v11  ;;  %1307 = vmatprep.subr.bf16.mxu1 %v1334_v11 }
  0x17   :  { %331 = vmatpush1.bf16.msra.mxu0 %v1336_v12  ;;  %1315 = vmatpush1.bf16.msra.mxu1 %v1336_v12 }
  0x18   :  { %332 = vmatprep.subr.bf16.mxu0 %v1337_v13  ;;  %1308 = vmatprep.subr.bf16.mxu1 %v1337_v13 }
  0x1b   :  { %333 = vmatpush1.bf16.msra.mxu0 %v1339_v14  ;;  %1316 = vmatpush1.bf16.msra.mxu1 %v1339_v14 }
  0x1c   :  { %334 = vmatprep.subr.bf16.mxu0 %v1340_v15  ;;  %1309 = vmatprep.subr.bf16.mxu1 %v1340_v15 }
  0x1f   :  { %335 = vmatpush1.bf16.msra.mxu0 %v1342_v16  ;;  %1317 = vmatpush1.bf16.msra.mxu1 %v1342_v16 }
  0x20   :  { %1254 = vmatprep.subr.bf16.mxu1 %v1345_v17 }
  0x22   :  { %353 = vmatmul.mubr.bf16.vlgmr.msra.gmra.mrb[0].mxu0 %v1343_v18  ;;  %473 = vmatmul.mubr.bf16.vlgmr.msra.gmra.mrb[0].mxu1 %v1447_v19 }
  0x23   :  { %1255 = vmatpush3.bf16.msra.mxu1 %v1345_v17  ;;  %362 = vmatprep.mubr.bf16.mxu0 %v1367_v1 }
  0x24   :  { %1256 = vmatprep.subr.bf16.mxu1 %v1346_v20  ;;  %482 = vmatprep.mubr.bf16.mxu1 %v1367_v1 }
  0x27   :  { %1257 = vmatpush3.bf16.msra.mxu1 %v1346_v20 }
  0x28   :  { %1258 = vmatprep.subr.bf16.mxu1 %v1349_v21 }
  0x2a   :  { %363 = vmatmul.mubr.bf16.gmra.mrb[4].mxu0 %v1347_v22  ;;  %483 = vmatmul.mubr.bf16.gmra.mrb[4].mxu1 %v1464_v23 }
  0x2b   :  { %1259 = vmatpush3.bf16.msra.mxu1 %v1349_v21  ;;  %372 = vmatprep.mubr.bf16.mxu0 %v1367_v1 }
  0x2c   :  { %1260 = vmatprep.subr.bf16.mxu1 %v1350_v24  ;;  %492 = vmatprep.mubr.bf16.mxu1 %v1367_v1 }
  0x2f   :  { %1261 = vmatpush3.bf16.msra.mxu1 %v1350_v24 }
  0x30   :  { %1262 = vmatprep.subr.bf16.mxu1 %v1353_v25 }
  0x32   :  { %373 = vmatmul.mubr.bf16.gmra.mrb[8].mxu0 %v1351_v26  ;;  %493 = vmatmul.mubr.bf16.gmra.mrb[8].mxu1 %v1352_v27 }
  0x33   :  { %1263 = vmatpush3.bf16.msra.mxu1 %v1353_v25  ;;  %382 = vmatprep.mubr.bf16.mxu0 %v1367_v1 }
  0x34   :  { %1264 = vmatprep.subr.bf16.mxu1 %v1354_v28  ;;  %502 = vmatprep.mubr.bf16.mxu1 %v1367_v1 }
  0x37   :  { %1265 = vmatpush3.bf16.msra.mxu1 %v1354_v28 }
  0x38   :  { %1266 = vmatprep.subr.bf16.mxu1 %v1357_v29 }
  0x3a   :  { %383 = vmatmul.mubr.bf16.gmra.mrb[12].mxu0 %v1355_v30  ;;  %503 = vmatmul.mubr.bf16.gmra.mrb[12].mxu1 %v1356_v31 }
  0x3b   :  { %1267 = vmatpush3.bf16.msra.mxu1 %v1357_v29  ;;  %392 = vmatprep.mubr.bf16.mxu0 %v1367_v1 }
  0x3c   :  { %1268 = vmatprep.subr.bf16.mxu1 %v1358_v32  ;;  %1270 = vmatprep.mubr.bf16.mxu1 %v1343_v18 }
  0x3f   :  { %1269 = vmatpush3.bf16.msra.mxu1 %v1358_v32 }
  0x42   :  { %393 = vmatmul.mubr.bf16.gmra.mrb[16].mxu0 %v1359_v33  ;;  %1271 = vmatmul.mubr.bf16.vlgmr.msra.gmra.mrb[16].mxu1 %v1347_v22 }
  0x43   :  { %402 = vmatprep.mubr.bf16.mxu0 %v1367_v1  ;;  %1274 = vmatprep.mubr.bf16.mxu1 %v1351_v26 }
  0x4a   :  { %403 = vmatmul.mubr.bf16.gmra.mrb[20].mxu0 %v1360_v34  ;;  %1275 = vmatmul.mubr.bf16.gmra.mrb[20].mxu1 %v1355_v30 }
  0x4b   :  { %412 = vmatprep.mubr.bf16.mxu0 %v1367_v1  ;;  %1278 = vmatprep.mubr.bf16.mxu1 %v1359_v33 }
  0x52   :  { %413 = vmatmul.mubr.bf16.gmra.mrb[24].mxu0 %v1361_v35  ;;  %1279 = vmatmul.mubr.bf16.gmra.mrb[24].mxu1 %v1360_v34 }
  0x53   :  { %422 = vmatprep.mubr.bf16.mxu0 %v1367_v1  ;;  %1282 = vmatprep.mubr.bf16.mxu1 %v1361_v35 }
  0x5a   :  { %423 = vmatmul.mubr.bf16.gmra.mrb[28].mxu0 %v1362_v36  ;;  %1283 = vmatmul.mubr.bf16.gmra.mrb[28].mxu1 %v1362_v36 }
  0x5b   :  { %432 = vmatprep.mubr.bf16.mxu0 %v1367_v1  ;;  %1286 = vmatprep.mubr.bf16.mxu1 %v1363_v37 }
  0x62   :  { %433 = vmatmul.mubr.bf16.gmra.mrb[32].mxu0 %v1363_v37  ;;  %1287 = vmatmul.mubr.bf16.gmra.mrb[32].mxu1 %v1364_v38 }
  0x63   :  { %442 = vmatprep.mubr.bf16.mxu0 %v1367_v1  ;;  %1290 = vmatprep.mubr.bf16.mxu1 %v1365_v39 }
  0x6a   :  { %443 = vmatmul.mubr.bf16.gmra.mrb[36].mxu0 %v1364_v38  ;;  %1291 = vmatmul.mubr.bf16.gmra.mrb[36].mxu1 %v1366_v40 }
  0x6b   :  { %452 = vmatprep.mubr.bf16.mxu0 %v1367_v1  ;;  %1294 = vmatprep.mubr.bf16.mxu1 %v1447_v19 }
  0x72   :  { %453 = vmatmul.mubr.bf16.gmra.mrb[40].mxu0 %v1365_v39  ;;  %1295 = vmatmul.mubr.bf16.gmra.mrb[40].mxu1 %v1464_v23 }
  0x73   :  { %462 = vmatprep.mubr.bf16.mxu0 %v1367_v1  ;;  %1298 = vmatprep.mubr.bf16.mxu1 %v1352_v27 }
  0x7a   :  { %463 = vmatmul.mubr.bf16.gmra.mrb[44].mxu0 %v1366_v40  ;;  %1299 = vmatmul.mubr.bf16.gmra.mrb[44].mxu1 %v1356_v31 }
  0xf5   :  { %v354_v48 = vpop.f32.mrb[0].mxu0  ;;  %v474_v49 = vpop.f32.mrb[0].mxu1 }
  0xf6   :  { %v355_v50 = vadd.f32 %v354_v48, %v1542_v46  ;;  %v475_v51 = vadd.f32 %v474_v49, %v1542_v46  ;;  %v356_v52 = vpop.f32.mrb[1].mxu0  ;;  %v476_v53 = vpop.f32.mrb[1].mxu1 }
  0xf7   :  { %v357_v54 = vadd.f32 %v356_v52, %v1545_v47  ;;  %v477_v55 = vadd.f32 %v476_v53, %v1545_v47  ;;  %v358_v56 = vpop.f32.mrb[2].mxu0  ;;  %v478_v57 = vpop.f32.mrb[2].mxu1 }
  0xf8   :  { %v359_v58 = vadd.f32 %v358_v56, %v1542_v46  ;;  %v479_v59 = vadd.f32 %v478_v57, %v1542_v46  ;;  %v360_v60 = vpop.f32.mrb[3].mxu0  ;;  %v480_v61 = vpop.f32.mrb[3].mxu1 }
  0xf9   :  { %v1166_v62 = vpack.c.bf16 %v357_v54, %v355_v50  ;;  %v1214_v63 = vpack.c.bf16 %v477_v55, %v475_v51  ;;  %v361_v0 = vadd.f32 %v360_v60, %v1545_v47  ;;  %v481_v1 = vadd.f32 %v480_v61, %v1545_v47 }
  0xfa   :  { %v91_v54 = vsub.s32 2, %v1532_v42 }
  0xfb   :  { %994 = vst [vmem:[%s1842_s3] sm:$0xff] %v1166_v62  ;;  %1042 = vst [vmem:[%s1842_s3 + $0x120] sm:$0xff] %v1214_v63  ;;  %v1168_v2 = vpack.c.bf16 %v361_v0, %v359_v58  ;;  %v1216_v3 = vpack.c.bf16 %v481_v1, %v479_v59 }
  0xfc   :  { %v1617_v42 = vrot.slane %v1538_v44, %v91_v54 }
  0xfd   :  { %996 = vst [vmem:[%s1842_s3 + $0xc] sm:$0xff] %v1168_v2  ;;  %1044 = vst [vmem:[%s1842_s3 + $0x12c] sm:$0xff] %v1216_v3  ;;  %v364_v4 = vpop.f32.mrb[4].mxu0  ;;  %v484_v5 = vpop.f32.mrb[4].mxu1 }
  0xfe   :  { %v365_v6 = vadd.f32 %v364_v4, %v1542_v46  ;;  %v485_v7 = vadd.f32 %v484_v5, %v1542_v46  ;;  %v366_v8 = vpop.f32.mrb[5].mxu0  ;;  %v486_v9 = vpop.f32.mrb[5].mxu1 }
  0xff   :  { %v367_v10 = vadd.f32 %v366_v8, %v1545_v47  ;;  %v487_v11 = vadd.f32 %v486_v9, %v1545_v47  ;;  %v368_v12 = vpop.f32.mrb[6].mxu0  ;;  %v488_v13 = vpop.f32.mrb[6].mxu1 }
 0x100   :  { %v369_v14 = vadd.f32 %v368_v12, %v1542_v46  ;;  %v489_v15 = vadd.f32 %v488_v13, %v1542_v46  ;;  %v370_v16 = vpop.f32.mrb[7].mxu0  ;;  %v490_v17 = vpop.f32.mrb[7].mxu1 }
 0x101   :  { %v1170_v18 = vpack.c.bf16 %v367_v10, %v365_v6  ;;  %v1218_v19 = vpack.c.bf16 %v487_v11, %v485_v7  ;;  %v371_v20 = vadd.f32 %v370_v16, %v1545_v47  ;;  %v491_v21 = vadd.f32 %v490_v17, %v1545_v47 }
 0x103   :  { %998 = vst [vmem:[%s1842_s3 + $0x18] sm:$0xff] %v1170_v18  ;;  %1046 = vst [vmem:[%s1842_s3 + $0x138] sm:$0xff] %v1218_v19  ;;  %v1172_v22 = vpack.c.bf16 %v371_v20, %v369_v14  ;;  %v1220_v23 = vpack.c.bf16 %v491_v21, %v489_v15 }
 0x105   :  { %1000 = vst [vmem:[%s1842_s3 + $0x24] sm:$0xff] %v1172_v22  ;;  %1048 = vst [vmem:[%s1842_s3 + $0x144] sm:$0xff] %v1220_v23  ;;  %v374_v24 = vpop.f32.mrb[8].mxu0  ;;  %v494_v25 = vpop.f32.mrb[8].mxu1 }
 0x106   :  { %v375_v26 = vadd.f32 %v374_v24, %v1542_v46  ;;  %v495_v27 = vadd.f32 %v494_v25, %v1542_v46  ;;  %v376_v28 = vpop.f32.mrb[9].mxu0  ;;  %v496_v29 = vpop.f32.mrb[9].mxu1 }
 0x107   :  { %v377_v30 = vadd.f32 %v376_v28, %v1545_v47  ;;  %v497_v31 = vadd.f32 %v496_v29, %v1545_v47  ;;  %v378_v32 = vpop.f32.mrb[10].mxu0  ;;  %v498_v33 = vpop.f32.mrb[10].mxu1 }
 0x108   :  { %v379_v34 = vadd.f32 %v378_v32, %v1542_v46  ;;  %v499_v35 = vadd.f32 %v498_v33, %v1542_v46  ;;  %v380_v36 = vpop.f32.mrb[11].mxu0  ;;  %v500_v37 = vpop.f32.mrb[11].mxu1 }
 0x109   :  { %v1174_v38 = vpack.c.bf16 %v377_v30, %v375_v26  ;;  %v1222_v39 = vpack.c.bf16 %v497_v31, %v495_v27  ;;  %v381_v40 = vadd.f32 %v380_v36, %v1545_v47  ;;  %v501_v41 = vadd.f32 %v500_v37, %v1545_v47 }
 0x10b   :  { %1002 = vst [vmem:[%s1842_s3 + $0x30] sm:$0xff] %v1174_v38  ;;  %1050 = vst [vmem:[%s1842_s3 + $0x150] sm:$0xff] %v1222_v39  ;;  %v1176_v43 = vpack.c.bf16 %v381_v40, %v379_v34  ;;  %v1224_v45 = vpack.c.bf16 %v501_v41, %v499_v35 }
 0x10d   :  { %1004 = vst [vmem:[%s1842_s3 + $0x3c] sm:$0xff] %v1176_v43  ;;  %1052 = vst [vmem:[%s1842_s3 + $0x15c] sm:$0xff] %v1224_v45  ;;  %v384_v48 = vpop.f32.mrb[12].mxu0  ;;  %v504_v49 = vpop.f32.mrb[12].mxu1 }
 0x10e   :  { %v385_v50 = vadd.f32 %v384_v48, %v1542_v46  ;;  %v505_v51 = vadd.f32 %v504_v49, %v1542_v46  ;;  %v386_v52 = vpop.f32.mrb[13].mxu0  ;;  %v506_v53 = vpop.f32.mrb[13].mxu1 }
 0x10f   :  { %v387_v55 = vadd.f32 %v386_v52, %v1545_v47  ;;  %v507_v56 = vadd.f32 %v506_v53, %v1545_v47  ;;  %v388_v57 = vpop.f32.mrb[14].mxu0  ;;  %v508_v58 = vpop.f32.mrb[14].mxu1 }
 0x110   :  { %v389_v59 = vadd.f32 %v388_v57, %v1542_v46  ;;  %v509_v60 = vadd.f32 %v508_v58, %v1542_v46  ;;  %v390_v61 = vpop.f32.mrb[15].mxu0  ;;  %v510_v62 = vpop.f32.mrb[15].mxu1 }
 0x111   :  { %v1178_v63 = vpack.c.bf16 %v387_v55, %v385_v50  ;;  %v1226_v0 = vpack.c.bf16 %v507_v56, %v505_v51  ;;  %v391_v1 = vadd.f32 %v390_v61, %v1545_v47  ;;  %v511_v2 = vadd.f32 %v510_v62, %v1545_v47 }
 0x113   :  { %1006 = vst [vmem:[%s1842_s3 + $0x48] sm:$0xff] %v1178_v63  ;;  %1054 = vst [vmem:[%s1842_s3 + $0x168] sm:$0xff] %v1226_v0  ;;  %v1180_v3 = vpack.c.bf16 %v391_v1, %v389_v59  ;;  %v1228_v4 = vpack.c.bf16 %v511_v2, %v509_v60 }
 0x115   :  { %1008 = vst [vmem:[%s1842_s3 + $0x54] sm:$0xff] %v1180_v3  ;;  %1056 = vst [vmem:[%s1842_s3 + $0x174] sm:$0xff] %v1228_v4  ;;  %v394_v44 = vpop.f32.mrb[16].mxu0  ;;  %v1272_v5 = vpop.f32.mrb[16].mxu1 }
 0x116   :  { %v395_v6 = vadd.f32 %v394_v44, %v1542_v46  ;;  %v556_v7 = vadd.f32 %v1272_v5, %v1617_v42  ;;  %v396_v8 = vpop.f32.mrb[17].mxu0  ;;  %v547_v9 = vpop.f32.mrb[17].mxu1 }
 0x117   :  { %v397_v10 = vadd.f32 %v396_v8, %v1545_v47  ;;  %v548_v11 = vadd.f32 %v547_v9, %v1617_v42  ;;  %v398_v12 = vpop.f32.mrb[18].mxu0  ;;  %v1273_v13 = vpop.f32.mrb[18].mxu1 }
 0x118   :  { %v1171_v14 = vpack.c.bf16 %v556_v7, %v556_v7  ;;  %v399_v15 = vadd.f32 %v398_v12, %v1542_v46  ;;  %v559_v16 = vadd.f32 %v1273_v13, %v1617_v42  ;;  %v400_v17 = vpop.f32.mrb[19].mxu0  ;;  %v550_v18 = vpop.f32.mrb[19].mxu1 }
 0x119   :  { %v1182_v19 = vpack.c.bf16 %v397_v10, %v395_v6  ;;  %v1167_v20 = vpack.c.bf16 %v548_v11, %v548_v11  ;;  %v401_v21 = vadd.f32 %v400_v17, %v1545_v47  ;;  %v551_v22 = vadd.f32 %v550_v18, %v1617_v42 }
 0x11a   :  { %999 = vst [vmem:[%s1842_s3 + $0x20] sm:$0xf] %v1171_v14  ;;  %v1173_v23 = vpack.c.bf16 %v559_v16, %v559_v16 }
 0x11b   :  { %1010 = vst [vmem:[%s1842_s3 + $0x60] sm:$0xff] %v1182_v19  ;;  %995 = vst [vmem:[%s1842_s3 + $0x8] sm:$0xf] %v1167_v20  ;;  %v1184_v24 = vpack.c.bf16 %v401_v21, %v399_v15  ;;  %v1169_v25 = vpack.c.bf16 %v551_v22, %v551_v22 }
 0x11c   :  { %1001 = vst [vmem:[%s1842_s3 + $0x2c] sm:$0xf] %v1173_v23 }
 0x11d   :  { %1012 = vst [vmem:[%s1842_s3 + $0x6c] sm:$0xff] %v1184_v24  ;;  %997 = vst [vmem:[%s1842_s3 + $0x14] sm:$0xf] %v1169_v25  ;;  %v404_v26 = vpop.f32.mrb[20].mxu0  ;;  %v1276_v27 = vpop.f32.mrb[20].mxu1 }
 0x11e   :  { %v405_v28 = vadd.f32 %v404_v26, %v1542_v46  ;;  %v572_v29 = vadd.f32 %v1276_v27, %v1617_v42  ;;  %v406_v30 = vpop.f32.mrb[21].mxu0  ;;  %v563_v31 = vpop.f32.mrb[21].mxu1 }
 0x11f   :  { %v407_v32 = vadd.f32 %v406_v30, %v1545_v47  ;;  %v564_v33 = vadd.f32 %v563_v31, %v1617_v42  ;;  %v408_v34 = vpop.f32.mrb[22].mxu0  ;;  %v1277_v35 = vpop.f32.mrb[22].mxu1 }
 0x120   :  { %v1179_v36 = vpack.c.bf16 %v572_v29, %v572_v29  ;;  %v409_v37 = vadd.f32 %v408_v34, %v1542_v46  ;;  %v575_v38 = vadd.f32 %v1277_v35, %v1617_v42  ;;  %v410_v39 = vpop.f32.mrb[23].mxu0  ;;  %v566_v40 = vpop.f32.mrb[23].mxu1 }
 0x121   :  { %v1186_v41 = vpack.c.bf16 %v407_v32, %v405_v28  ;;  %v1175_v43 = vpack.c.bf16 %v564_v33, %v564_v33  ;;  %v411_v45 = vadd.f32 %v410_v39, %v1545_v47  ;;  %v567_v48 = vadd.f32 %v566_v40, %v1617_v42 }
 0x122   :  { %1007 = vst [vmem:[%s1842_s3 + $0x50] sm:$0xf] %v1179_v36  ;;  %v1181_v49 = vpack.c.bf16 %v575_v38, %v575_v38 }
 0x123   :  { %1014 = vst [vmem:[%s1842_s3 + $0x78] sm:$0xff] %v1186_v41  ;;  %1003 = vst [vmem:[%s1842_s3 + $0x38] sm:$0xf] %v1175_v43  ;;  %v1188_v50 = vpack.c.bf16 %v411_v45, %v409_v37  ;;  %v1177_v51 = vpack.c.bf16 %v567_v48, %v567_v48 }
 0x124   :  { %1009 = vst [vmem:[%s1842_s3 + $0x5c] sm:$0xf] %v1181_v49 }
 0x125   :  { %1016 = vst [vmem:[%s1842_s3 + $0x84] sm:$0xff] %v1188_v50  ;;  %1005 = vst [vmem:[%s1842_s3 + $0x44] sm:$0xf] %v1177_v51  ;;  %v414_v52 = vpop.f32.mrb[24].mxu0  ;;  %v1280_v53 = vpop.f32.mrb[24].mxu1 }
 0x126   :  { %v415_v54 = vadd.f32 %v414_v52, %v1542_v46  ;;  %v588_v55 = vadd.f32 %v1280_v53, %v1617_v42  ;;  %v416_v56 = vpop.f32.mrb[25].mxu0  ;;  %v579_v57 = vpop.f32.mrb[25].mxu1 }
 0x127   :  { %v417_v58 = vadd.f32 %v416_v56, %v1545_v47  ;;  %v580_v59 = vadd.f32 %v579_v57, %v1617_v42  ;;  %v418_v60 = vpop.f32.mrb[26].mxu0  ;;  %v1281_v61 = vpop.f32.mrb[26].mxu1 }
 0x128   :  { %v1187_v62 = vpack.c.bf16 %v588_v55, %v588_v55  ;;  %v419_v63 = vadd.f32 %v418_v60, %v1542_v46  ;;  %v591_v0 = vadd.f32 %v1281_v61, %v1617_v42  ;;  %v420_v1 = vpop.f32.mrb[27].mxu0  ;;  %v582_v2 = vpop.f32.mrb[27].mxu1 }
 0x129   :  { %v1190_v3 = vpack.c.bf16 %v417_v58, %v415_v54  ;;  %v1183_v4 = vpack.c.bf16 %v580_v59, %v580_v59  ;;  %v421_v44 = vadd.f32 %v420_v1, %v1545_v47  ;;  %v583_v5 = vadd.f32 %v582_v2, %v1617_v42 }
 0x12a   :  { %1015 = vst [vmem:[%s1842_s3 + $0x80] sm:$0xf] %v1187_v62  ;;  %v1189_v6 = vpack.c.bf16 %v591_v0, %v591_v0 }
 0x12b   :  { %1018 = vst [vmem:[%s1842_s3 + $0x90] sm:$0xff] %v1190_v3  ;;  %1011 = vst [vmem:[%s1842_s3 + $0x68] sm:$0xf] %v1183_v4  ;;  %v1192_v7 = vpack.c.bf16 %v421_v44, %v419_v63  ;;  %v1185_v8 = vpack.c.bf16 %v583_v5, %v583_v5 }
 0x12c   :  { %1017 = vst [vmem:[%s1842_s3 + $0x8c] sm:$0xf] %v1189_v6 }
 0x12d   :  { %1020 = vst [vmem:[%s1842_s3 + $0x9c] sm:$0xff] %v1192_v7  ;;  %1013 = vst [vmem:[%s1842_s3 + $0x74] sm:$0xf] %v1185_v8  ;;  %v424_v9 = vpop.f32.mrb[28].mxu0  ;;  %v1284_v10 = vpop.f32.mrb[28].mxu1 }
 0x12e   :  { %v425_v11 = vadd.f32 %v424_v9, %v1542_v46  ;;  %v604_v12 = vadd.f32 %v1284_v10, %v1617_v42  ;;  %v426_v13 = vpop.f32.mrb[29].mxu0  ;;  %v595_v14 = vpop.f32.mrb[29].mxu1 }
 0x12f   :  { %v427_v15 = vadd.f32 %v426_v13, %v1545_v47  ;;  %v596_v16 = vadd.f32 %v595_v14, %v1617_v42  ;;  %v428_v17 = vpop.f32.mrb[30].mxu0  ;;  %v1285_v18 = vpop.f32.mrb[30].mxu1 }
 0x130   :  { %v1195_v19 = vpack.c.bf16 %v604_v12, %v604_v12  ;;  %v429_v20 = vadd.f32 %v428_v17, %v1542_v46  ;;  %v607_v21 = vadd.f32 %v1285_v18, %v1617_v42  ;;  %v430_v22 = vpop.f32.mrb[31].mxu0  ;;  %v598_v23 = vpop.f32.mrb[31].mxu1 }
 0x131   :  { %v1194_v24 = vpack.c.bf16 %v427_v15, %v425_v11  ;;  %v1191_v25 = vpack.c.bf16 %v596_v16, %v596_v16  ;;  %v431_v26 = vadd.f32 %v430_v22, %v1545_v47  ;;  %v599_v27 = vadd.f32 %v598_v23, %v1617_v42 }
 0x132   :  { %1023 = vst [vmem:[%s1842_s3 + $0xb0] sm:$0xf] %v1195_v19  ;;  %v1197_v28 = vpack.c.bf16 %v607_v21, %v607_v21 }
 0x133   :  { %1022 = vst [vmem:[%s1842_s3 + $0xa8] sm:$0xff] %v1194_v24  ;;  %1019 = vst [vmem:[%s1842_s3 + $0x98] sm:$0xf] %v1191_v25  ;;  %v1196_v29 = vpack.c.bf16 %v431_v26, %v429_v20  ;;  %v1193_v30 = vpack.c.bf16 %v599_v27, %v599_v27 }
 0x134   :  { %1025 = vst [vmem:[%s1842_s3 + $0xbc] sm:$0xf] %v1197_v28 }
 0x135   :  { %1024 = vst [vmem:[%s1842_s3 + $0xb4] sm:$0xff] %v1196_v29  ;;  %1021 = vst [vmem:[%s1842_s3 + $0xa4] sm:$0xf] %v1193_v30  ;;  %v434_v31 = vpop.f32.mrb[32].mxu0  ;;  %v1288_v32 = vpop.f32.mrb[32].mxu1 }
 0x136   :  { %v435_v33 = vadd.f32 %v434_v31, %v1542_v46  ;;  %v620_v34 = vadd.f32 %v1288_v32, %v1617_v42  ;;  %v436_v35 = vpop.f32.mrb[33].mxu0  ;;  %v611_v36 = vpop.f32.mrb[33].mxu1 }
 0x137   :  { %v437_v37 = vadd.f32 %v436_v35, %v1545_v47  ;;  %v612_v38 = vadd.f32 %v611_v36, %v1617_v42  ;;  %v438_v39 = vpop.f32.mrb[34].mxu0  ;;  %v1289_v40 = vpop.f32.mrb[34].mxu1 }
 0x138   :  { %v1203_v41 = vpack.c.bf16 %v620_v34, %v620_v34  ;;  %v439_v43 = vadd.f32 %v438_v39, %v1542_v46  ;;  %v623_v45 = vadd.f32 %v1289_v40, %v1617_v42  ;;  %v440_v48 = vpop.f32.mrb[35].mxu0  ;;  %v614_v49 = vpop.f32.mrb[35].mxu1 }
 0x139   :  { %v1198_v50 = vpack.c.bf16 %v437_v37, %v435_v33  ;;  %v1199_v51 = vpack.c.bf16 %v612_v38, %v612_v38  ;;  %v441_v52 = vadd.f32 %v440_v48, %v1545_v47  ;;  %v615_v53 = vadd.f32 %v614_v49, %v1617_v42 }
 0x13a   :  { %1031 = vst [vmem:[%s1842_s3 + $0xe0] sm:$0xf] %v1203_v41  ;;  %v1205_v54 = vpack.c.bf16 %v623_v45, %v623_v45 }
 0x13b   :  { %1026 = vst [vmem:[%s1842_s3 + $0xc0] sm:$0xff] %v1198_v50  ;;  %1027 = vst [vmem:[%s1842_s3 + $0xc8] sm:$0xf] %v1199_v51  ;;  %v1200_v55 = vpack.c.bf16 %v441_v52, %v439_v43  ;;  %v1201_v56 = vpack.c.bf16 %v615_v53, %v615_v53 }
 0x13c   :  { %1033 = vst [vmem:[%s1842_s3 + $0xec] sm:$0xf] %v1205_v54 }
 0x13d   :  { %1028 = vst [vmem:[%s1842_s3 + $0xcc] sm:$0xff] %v1200_v55  ;;  %1029 = vst [vmem:[%s1842_s3 + $0xd4] sm:$0xf] %v1201_v56  ;;  %v444_v57 = vpop.f32.mrb[36].mxu0  ;;  %v1292_v58 = vpop.f32.mrb[36].mxu1 }
 0x13e   :  { %v445_v59 = vadd.f32 %v444_v57, %v1542_v46  ;;  %v636_v60 = vadd.f32 %v1292_v58, %v1617_v42  ;;  %v446_v61 = vpop.f32.mrb[37].mxu0  ;;  %v627_v62 = vpop.f32.mrb[37].mxu1 }
 0x13f   :  { %v447_v63 = vadd.f32 %v446_v61, %v1545_v47  ;;  %v628_v0 = vadd.f32 %v627_v62, %v1617_v42  ;;  %v448_v1 = vpop.f32.mrb[38].mxu0  ;;  %v1293_v2 = vpop.f32.mrb[38].mxu1 }
 0x140   :  { %v1211_v3 = vpack.c.bf16 %v636_v60, %v636_v60  ;;  %v449_v4 = vadd.f32 %v448_v1, %v1542_v46  ;;  %v639_v44 = vadd.f32 %v1293_v2, %v1617_v42  ;;  %v450_v5 = vpop.f32.mrb[39].mxu0  ;;  %v630_v6 = vpop.f32.mrb[39].mxu1 }
 0x141   :  { %v1202_v7 = vpack.c.bf16 %v447_v63, %v445_v59  ;;  %v1207_v8 = vpack.c.bf16 %v628_v0, %v628_v0  ;;  %v451_v9 = vadd.f32 %v450_v5, %v1545_v47  ;;  %v631_v10 = vadd.f32 %v630_v6, %v1617_v42 }
 0x142   :  { %1039 = vst [vmem:[%s1842_s3 + $0x110] sm:$0xf] %v1211_v3  ;;  %v1213_v11 = vpack.c.bf16 %v639_v44, %v639_v44 }
 0x143   :  { %1030 = vst [vmem:[%s1842_s3 + $0xd8] sm:$0xff] %v1202_v7  ;;  %1035 = vst [vmem:[%s1842_s3 + $0xf8] sm:$0xf] %v1207_v8  ;;  %v1204_v12 = vpack.c.bf16 %v451_v9, %v449_v4  ;;  %v1209_v13 = vpack.c.bf16 %v631_v10, %v631_v10 }
 0x144   :  { %1041 = vst [vmem:[%s1842_s3 + $0x11c] sm:$0xf] %v1213_v11 }
 0x145   :  { %1032 = vst [vmem:[%s1842_s3 + $0xe4] sm:$0xff] %v1204_v12  ;;  %1037 = vst [vmem:[%s1842_s3 + $0x104] sm:$0xf] %v1209_v13  ;;  %v454_v14 = vpop.f32.mrb[40].mxu0  ;;  %v1296_v15 = vpop.f32.mrb[40].mxu1 }
 0x146   :  { %v455_v16 = vadd.f32 %v454_v14, %v1542_v46  ;;  %v652_v17 = vadd.f32 %v1296_v15, %v1617_v42  ;;  %v456_v18 = vpop.f32.mrb[41].mxu0  ;;  %v643_v19 = vpop.f32.mrb[41].mxu1 }
 0x147   :  { %v457_v20 = vadd.f32 %v456_v18, %v1545_v47  ;;  %v644_v21 = vadd.f32 %v643_v19, %v1617_v42  ;;  %v458_v22 = vpop.f32.mrb[42].mxu0  ;;  %v1297_v23 = vpop.f32.mrb[42].mxu1 }
 0x148   :  { %v1219_v24 = vpack.c.bf16 %v652_v17, %v652_v17  ;;  %v459_v25 = vadd.f32 %v458_v22, %v1542_v46  ;;  %v655_v26 = vadd.f32 %v1297_v23, %v1617_v42  ;;  %v460_v27 = vpop.f32.mrb[43].mxu0  ;;  %v646_v28 = vpop.f32.mrb[43].mxu1 }
 0x149   :  { %v1206_v29 = vpack.c.bf16 %v457_v20, %v455_v16  ;;  %v1215_v30 = vpack.c.bf16 %v644_v21, %v644_v21  ;;  %v461_v31 = vadd.f32 %v460_v27, %v1545_v47  ;;  %v647_v32 = vadd.f32 %v646_v28, %v1617_v42 }
 0x14a   :  { %1047 = vst [vmem:[%s1842_s3 + $0x140] sm:$0xf] %v1219_v24  ;;  %v1221_v33 = vpack.c.bf16 %v655_v26, %v655_v26 }
 0x14b   :  { %1034 = vst [vmem:[%s1842_s3 + $0xf0] sm:$0xff] %v1206_v29  ;;  %1043 = vst [vmem:[%s1842_s3 + $0x128] sm:$0xf] %v1215_v30  ;;  %v1208_v34 = vpack.c.bf16 %v461_v31, %v459_v25  ;;  %v1217_v35 = vpack.c.bf16 %v647_v32, %v647_v32 }
 0x14c   :  { %1049 = vst [vmem:[%s1842_s3 + $0x14c] sm:$0xf] %v1221_v33 }
 0x14d   :  { %1036 = vst [vmem:[%s1842_s3 + $0xfc] sm:$0xff] %v1208_v34  ;;  %1045 = vst [vmem:[%s1842_s3 + $0x134] sm:$0xf] %v1217_v35  ;;  %v464_v36 = vpop.f32.mrb[44].mxu0  ;;  %v1300_v37 = vpop.f32.mrb[44].mxu1 }
 0x14e   :  { %v465_v38 = vadd.f32 %v464_v36, %v1542_v46  ;;  %v668_v39 = vadd.f32 %v1300_v37, %v1617_v42  ;;  %v466_v40 = vpop.f32.mrb[45].mxu0  ;;  %v659_v41 = vpop.f32.mrb[45].mxu1 }
 0x14f   :  { %v467_v43 = vadd.f32 %v466_v40, %v1545_v47  ;;  %v660_v45 = vadd.f32 %v659_v41, %v1617_v42  ;;  %v468_v48 = vpop.f32.mrb[46].mxu0  ;;  %v1301_v49 = vpop.f32.mrb[46].mxu1 }
 0x150   :  { %v1227_v50 = vpack.c.bf16 %v668_v39, %v668_v39  ;;  %v469_v51 = vadd.f32 %v468_v48, %v1542_v46  ;;  %v671_v52 = vadd.f32 %v1301_v49, %v1617_v42  ;;  %v470_v53 = vpop.f32.mrb[47].mxu0  ;;  %v662_v54 = vpop.f32.mrb[47].mxu1 }
 0x151   :  { %v1210_v55 = vpack.c.bf16 %v467_v43, %v465_v38  ;;  %v1223_v56 = vpack.c.bf16 %v660_v45, %v660_v45  ;;  %v471_v57 = vadd.f32 %v470_v53, %v1545_v47  ;;  %v663_v58 = vadd.f32 %v662_v54, %v1617_v42 }
 0x152   :  { %1055 = vst [vmem:[%s1842_s3 + $0x170] sm:$0xf] %v1227_v50  ;;  %v1229_v59 = vpack.c.bf16 %v671_v52, %v671_v52 }
 0x153   :  { %1038 = vst [vmem:[%s1842_s3 + $0x108] sm:$0xff] %v1210_v55  ;;  %1051 = vst [vmem:[%s1842_s3 + $0x158] sm:$0xf] %v1223_v56  ;;  %v1212_v46 = vpack.c.bf16 %v471_v57, %v469_v51  ;;  %v1225_v60 = vpack.c.bf16 %v663_v58, %v663_v58 }
 0x154   :  { %1057 = vst [vmem:[%s1842_s3 + $0x17c] sm:$0xf] %v1229_v59 }
 0x155   :  { %1040 = vst [vmem:[%s1842_s3 + $0x114] sm:$0xff] %v1212_v46  ;;  %1053 = vst [vmem:[%s1842_s3 + $0x164] sm:$0xf] %v1225_v60 }

// kernel: bert_forward.10
= control target key start
LH: loop header
LB: loop body
LE: loop exit
PB: predicated region body
PF: predicated region fallthrough
CT: control target
= control target key end

     0   :  { %s5852_s2 = inlined_call_operand.vmem [shape: bf16[128,128], index: 2, kind: input, shape index: {}]   ;;  %s5853_s0 = inlined_call_operand.vmem [shape: bf16[256,128], index: 0, kind: input, shape index: {}]   ;;  %s5854_s1 = inlined_call_operand.vmem [shape: bf16[256,128], index: 1, kind: input, shape index: {}]   ;;  %s5855_s3 = inlined_call_operand.vmem [shape: f32[1,128], index: 3, kind: input, shape index: {}]   ;;  %s5856_s6 = inlined_call_operand.vmem [shape: bf16[128,256], index: 6, kind: input, shape index: {}]   ;;  %s5857_s4 = inlined_call_operand.vmem [shape: f32[1,128], index: 4, kind: input, shape index: {}]   ;;  %s5858_s5 = inlined_call_operand.vmem [shape: f32[1,128], index: 5, kind: input, shape index: {}]   ;;  %s5859_s8 = inlined_call_operand.vmem [shape: bf16[256,128], index: 8, kind: input, shape index: {}]   ;;  %s5860_s7 = inlined_call_operand.vmem [shape: f32[1,256], index: 7, kind: input, shape index: {}]   ;;  %s5861_s9 = inlined_call_operand.vmem [shape: f32[1,128], index: 9, kind: input, shape index: {}]   ;;  %s5862_s10 = inlined_call_operand.vmem [shape: f32[1,128], index: 10, kind: input, shape index: {}]   ;;  %s5863_s11 = inlined_call_operand.vmem [shape: f32[1,128], index: 11, kind: input, shape index: {}]   ;;  %s5864_s12 = inlined_call_operand.vmem [shape: bf16[256,128], index: 12, kind: output, shape index: {}]  }
   0x1   :  { %v3573_v0 = vld [vmem:[%s5852_s2] sm:$0xff]   ;;  %v3574_v1 = vld [vmem:[%s5852_s2 + $0x8] sm:$0xff]   ;;  %v3575_v2 = vld [vmem:[%s5852_s2 + $0x10] sm:$0xff]  }
   0x2   :  { %3508 = vmatprep.subr.bf16.mxu0 %v3573_v0  ;;  %3556 = vmatprep.subr.bf16.mxu1 %v3573_v0  ;;  %v3576_v3 = vld [vmem:[%s5852_s2 + $0x18] sm:$0xff]   ;;  %v3581_v4 = vld [vmem:[%s5853_s0] sm:$0xff]   ;;  %v3578_v6 = vld [vmem:[%s5852_s2 + $0x28] sm:$0xff]  }
   0x3   :  { %3509 = vmatpush3.bf16.msra.mxu0 %v3573_v0  ;;  %3564 = vmatpush3.bf16.msra.mxu1 %v3573_v0  ;;  %v3577_v5 = vld [vmem:[%s5852_s2 + $0x20] sm:$0xff]   ;;  %v3579_v8 = vld [vmem:[%s5852_s2 + $0x30] sm:$0xff]   ;;  %v3580_v9 = vld [vmem:[%s5852_s2 + $0x38] sm:$0xff]  }
   0x4   :  { %3510 = vmatprep.subr.bf16.mxu0 %v3574_v1  ;;  %3557 = vmatprep.subr.bf16.mxu1 %v3574_v1  ;;  %v3589_v7 = vld [vmem:[%s5853_s0 + $0x40] sm:$0xff]   ;;  %v3582_v10 = vld [vmem:[%s5853_s0 + $0x8] sm:$0xff]   ;;  %v3583_v12 = vld [vmem:[%s5853_s0 + $0x10] sm:$0xff]  }
   0x5   :  { %3524 = vmatprep.mubr.bf16.mxu0 %v3581_v4  ;;  %3540 = vmatprep.mubr.bf16.mxu1 %v3589_v7  ;;  %v3590_v11 = vld [vmem:[%s5853_s0 + $0x48] sm:$0xff]   ;;  %v3591_v13 = vld [vmem:[%s5853_s0 + $0x50] sm:$0xff]   ;;  %v3584_v14 = vld [vmem:[%s5853_s0 + $0x18] sm:$0xff]  }
   0x6   :  { %v3592_v15 = vld [vmem:[%s5853_s0 + $0x58] sm:$0xff]   ;;  %v3585_v16 = vld [vmem:[%s5853_s0 + $0x20] sm:$0xff]   ;;  %v3586_v18 = vld [vmem:[%s5853_s0 + $0x28] sm:$0xff]  }
   0x7   :  { %3511 = vmatpush3.bf16.msra.mxu0 %v3574_v1  ;;  %3565 = vmatpush3.bf16.msra.mxu1 %v3574_v1  ;;  %v3593_v17 = vld [vmem:[%s5853_s0 + $0x60] sm:$0xff]   ;;  %v3594_v19 = vld [vmem:[%s5853_s0 + $0x68] sm:$0xff]   ;;  %v3587_v20 = vld [vmem:[%s5853_s0 + $0x30] sm:$0xff]  }
   0x8   :  { %3512 = vmatprep.subr.bf16.mxu0 %v3575_v2  ;;  %3558 = vmatprep.subr.bf16.mxu1 %v3575_v2  ;;  %v3595_v21 = vld [vmem:[%s5853_s0 + $0x70] sm:$0xff]   ;;  %v3588_v22 = vld [vmem:[%s5853_s0 + $0x38] sm:$0xff]   ;;  %v3342_v24 = vld [vmem:[%s5854_s1 + $0x8] sm:$0xff]  }
   0x9   :  { %v3596_v23 = vld [vmem:[%s5853_s0 + $0x78] sm:$0xff]   ;;  %v3199_v25 = vld [vmem:[%s5854_s1] sm:$0xff]   ;;  %v3204_v27 = vunpack.c.l.bf16 %v3342_v24  ;;  %v3205_v40 = vunpack.c.h.bf16 %v3342_v24  ;;  %v3343_v45 = vld [vmem:[%s5854_s1 + $0x10] sm:$0xff]  }
   0xa   :  { %v4040_v26 = vld [vmem:[%s5855_s3] ss:$0 sm:$0xff]  ;;  %v3200_v29 = vunpack.c.l.bf16 %v3199_v25  ;;  %v3201_v44 = vunpack.c.h.bf16 %v3199_v25  ;;  %v3344_v47 = vld [vmem:[%s5854_s1 + $0x18] sm:$0xff]   ;;  %v3208_v50 = vunpack.c.l.bf16 %v3343_v45  ;;  %v3209_v55 = vunpack.c.h.bf16 %v3343_v45  ;;  %v3346_v1 = vld [vmem:[%s5854_s1 + $0x28] sm:$0xff]  }
   0xb   :  { %3513 = vmatpush3.bf16.msra.mxu0 %v3575_v2  ;;  %3566 = vmatpush3.bf16.msra.mxu1 %v3575_v2  ;;  %v3212_v56 = vunpack.c.l.bf16 %v3344_v47  ;;  %v3213_v61 = vunpack.c.h.bf16 %v3344_v47  ;;  %v3345_v62 = vld [vmem:[%s5854_s1 + $0x20] sm:$0xff]  }
   0xc   :  { %3514 = vmatprep.subr.bf16.mxu0 %v3576_v3  ;;  %3559 = vmatprep.subr.bf16.mxu1 %v3576_v3  ;;  %v3216_v4 = vunpack.c.l.bf16 %v3345_v62 }
   0xf   :  { %3515 = vmatpush3.bf16.msra.mxu0 %v3576_v3  ;;  %3567 = vmatpush3.bf16.msra.mxu1 %v3576_v3 }
  0x10   :  { %3516 = vmatprep.subr.bf16.mxu0 %v3577_v5  ;;  %3560 = vmatprep.subr.bf16.mxu1 %v3577_v5 }
  0x13   :  { %3517 = vmatpush3.bf16.msra.mxu0 %v3577_v5  ;;  %3568 = vmatpush3.bf16.msra.mxu1 %v3577_v5 }
  0x14   :  { %3518 = vmatprep.subr.bf16.mxu0 %v3578_v6  ;;  %3561 = vmatprep.subr.bf16.mxu1 %v3578_v6 }
  0x17   :  { %3519 = vmatpush3.bf16.msra.mxu0 %v3578_v6  ;;  %3569 = vmatpush3.bf16.msra.mxu1 %v3578_v6 }
  0x18   :  { %3520 = vmatprep.subr.bf16.mxu0 %v3579_v8  ;;  %3562 = vmatprep.subr.bf16.mxu1 %v3579_v8 }
  0x1b   :  { %3521 = vmatpush3.bf16.msra.mxu0 %v3579_v8  ;;  %3570 = vmatpush3.bf16.msra.mxu1 %v3579_v8 }
  0x1c   :  { %3522 = vmatprep.subr.bf16.mxu0 %v3580_v9  ;;  %3563 = vmatprep.subr.bf16.mxu1 %v3580_v9 }
  0x1f   :  { %3523 = vmatpush3.bf16.msra.mxu0 %v3580_v9  ;;  %3571 = vmatpush3.bf16.msra.mxu1 %v3580_v9  ;;  %v3217_v9 = vunpack.c.h.bf16 %v3345_v62 }
  0x22   :  { %3525 = vmatmul.mubr.bf16.vlgmr.msra.gmra.mrb[0].mxu0 %v3582_v10  ;;  %3541 = vmatmul.mubr.bf16.vlgmr.msra.gmra.mrb[0].mxu1 %v3590_v11  ;;  %v3220_v10 = vunpack.c.l.bf16 %v3346_v1 }
  0x23   :  { %3528 = vmatprep.mubr.bf16.mxu0 %v3583_v12  ;;  %3544 = vmatprep.mubr.bf16.mxu1 %v3591_v13 }
  0x2a   :  { %3529 = vmatmul.mubr.bf16.gmra.mrb[4].mxu0 %v3584_v14  ;;  %3545 = vmatmul.mubr.bf16.gmra.mrb[4].mxu1 %v3592_v15  ;;  %v3221_v15 = vunpack.c.h.bf16 %v3346_v1 }
  0x2b   :  { %3532 = vmatprep.mubr.bf16.mxu0 %v3585_v16  ;;  %3548 = vmatprep.mubr.bf16.mxu1 %v3593_v17  ;;  %v3347_v16 = vld [vmem:[%s5854_s1 + $0x30] sm:$0xff]  }
  0x32   :  { %3533 = vmatmul.mubr.bf16.gmra.mrb[8].mxu0 %v3586_v18  ;;  %3549 = vmatmul.mubr.bf16.gmra.mrb[8].mxu1 %v3594_v19  ;;  %v3348_v19 = vld [vmem:[%s5854_s1 + $0x38] sm:$0xff]  }
  0x33   :  { %3536 = vmatprep.mubr.bf16.mxu0 %v3587_v20  ;;  %3552 = vmatprep.mubr.bf16.mxu1 %v3595_v21 }
  0x3a   :  { %3537 = vmatmul.mubr.bf16.gmra.mrb[12].mxu0 %v3588_v22  ;;  %3553 = vmatmul.mubr.bf16.gmra.mrb[12].mxu1 %v3596_v23  ;;  %v3224_v23 = vunpack.c.l.bf16 %v3347_v16 }
  0xf5   :  { %v3526_v28 = vpop.f32.mrb[0].mxu0  ;;  %v4042_v30 = vpop.f32.mrb[0].mxu1 }
  0xf6   :  { %v288_v31 = vadd.f32 %v3526_v28, %v4040_v26  ;;  %v279_v32 = vpop.f32.mrb[1].mxu0  ;;  %v4045_v33 = vpop.f32.mrb[1].mxu1  ;;  %v3225_v28 = vunpack.c.h.bf16 %v3347_v16 }
  0xf7   :  { %v280_v34 = vadd.f32 %v4040_v26, %v279_v32  ;;  %v3527_v35 = vpop.f32.mrb[2].mxu0  ;;  %v4048_v36 = vpop.f32.mrb[2].mxu1 }
  0xf8   :  { %v291_v37 = vadd.f32 %v3527_v35, %v4040_v26  ;;  %v282_v38 = vpop.f32.mrb[3].mxu0  ;;  %v4051_v39 = vadd.f32 %v3204_v27, %v288_v31  ;;  %v4053_v41 = vpop.f32.mrb[3].mxu1  ;;  %v355_v1 = vadd.f32 %v4048_v36, %v4040_v26 }
  0xf9   :  { %v283_v42 = vadd.f32 %v4040_v26, %v282_v38  ;;  %v4056_v43 = vadd.f32 %v3200_v29, %v280_v34 }
  0xfa   :  { %508 = vadd.xlane.f32.xlu1 %v4051_v39  ;;  %v4063_v46 = vadd.f32 %v3205_v40, %v291_v37  ;;  %v3228_v37 = vunpack.c.l.bf16 %v3348_v19 }
  0xfb   :  { %504 = vadd.xlane.f32.xlu0 %v4056_v43  ;;  %v4068_v49 = vadd.f32 %v3201_v44, %v283_v42  ;;  %v3349_v44 = vld [vmem:[%s5854_s1 + $0x40] sm:$0xff]  }
  0xfd   :  { %v3530_v48 = vpop.f32.mrb[4].mxu0  ;;  %v3546_v20 = vpop.f32.mrb[4].mxu1 }
  0xfe   :  { %510 = vadd.xlane.f32.xlu1 %v4063_v46  ;;  %v295_v51 = vpop.f32.mrb[5].mxu0  ;;  %v304_v52 = vadd.f32 %v3530_v48, %v4040_v26  ;;  %v4115_v24 = vadd.f32 %v3546_v20, %v4040_v26  ;;  %v359_v25 = vpop.f32.mrb[5].mxu1 }
  0xff   :  { %v296_v53 = vadd.f32 %v4040_v26, %v295_v51  ;;  %v3531_v54 = vpop.f32.mrb[6].mxu0  ;;  %506 = vadd.xlane.f32.xlu0 %v4068_v49  ;;  %v4118_v29 = vadd.f32 %v4040_v26, %v359_v25  ;;  %v3547_v31 = vpop.f32.mrb[6].mxu1  ;;  %v3229_v51 = vunpack.c.h.bf16 %v3348_v19  ;;  %v3597_v25 = vld [vmem:[%s5856_s6] ss:$8 sps:$4 sm:$0xff]  }
 0x100   :  { %v298_v57 = vpop.f32.mrb[7].mxu0  ;;  %v307_v58 = vadd.f32 %v3531_v54, %v4040_v26  ;;  %v4084_v0 = vadd.f32 %v3212_v56, %v304_v52  ;;  %v4124_v38 = vadd.f32 %v3547_v31, %v4040_v26  ;;  %v362_v40 = vpop.f32.mrb[7].mxu1  ;;  %v3350_v56 = vld [vmem:[%s5854_s1 + $0x48] sm:$0xff]   ;;  %v3602_v31 = vld [vmem:[%s5856_s6 + $0x14] ss:$8 sps:$4 sm:$0xff]  }
 0x101   :  { %v299_v59 = vadd.f32 %v4040_v26, %v298_v57  ;;  %v4076_v60 = vadd.f32 %v3208_v50, %v296_v53  ;;  %v4130_v45 = vadd.f32 %v4040_v26, %v362_v40  ;;  %v344_v53 = vadd.f32 %v4040_v26, %v4045_v33 }
 0x102   :  { %v4090_v3 = vadd.f32 %v3213_v61, %v307_v58  ;;  %v347_v57 = vadd.f32 %v4040_v26, %v4053_v41  ;;  %v352_v61 = vadd.f32 %v4042_v30, %v4040_v26  ;;  %v3236_v62 = vunpack.c.l.bf16 %v3350_v56 }
 0x103   :  { %512 = vadd.xlane.f32.xlu0 %v4076_v60  ;;  %v4082_v63 = vadd.f32 %v3209_v55, %v299_v59  ;;  %v3232_v55 = vunpack.c.l.bf16 %v3349_v44  ;;  %v3233_v59 = vunpack.c.h.bf16 %v3349_v44 }
 0x104   :  { %v4163_v41 = vadd.f32 %v3236_v62, %v352_v61  ;;  %v3352_v61 = vld [vmem:[%s5854_s1 + $0x58] sm:$0xff]  }
 0x105   :  { %v3534_v2 = vpop.f32.mrb[8].mxu0  ;;  %514 = vadd.xlane.f32.xlu1 %v4082_v63  ;;  %v4155_v33 = vadd.f32 %v3232_v55, %v344_v53 }
 0x106   :  { %v311_v5 = vpop.f32.mrb[9].mxu0  ;;  %v320_v6 = vadd.f32 %v3534_v2, %v4040_v26  ;;  %v4160_v2 = vadd.f32 %v3233_v59, %v347_v57 }
 0x107   :  { %v312_v7 = vadd.f32 %v4040_v26, %v311_v5  ;;  %v3535_v8 = vpop.f32.mrb[10].mxu0  ;;  %516 = vadd.xlane.f32.xlu0 %v4084_v0  ;;  %v3550_v5 = vpop.f32.mrb[8].mxu1 }
 0x108   :  { %v314_v11 = vpop.f32.mrb[11].mxu0  ;;  %v323_v12 = vadd.f32 %v3535_v8, %v4040_v26  ;;  %v4106_v18 = vadd.f32 %v3220_v10, %v320_v6  ;;  %v4166_v30 = vadd.f32 %v3550_v5, %v4040_v26 }
 0x109   :  { %v315_v13 = vadd.f32 %v4040_v26, %v314_v11  ;;  %518 = vadd.xlane.f32.xlu1 %v4090_v3  ;;  %v4098_v14 = vadd.f32 %v3216_v4, %v312_v7  ;;  %v3237_v4 = vunpack.c.h.bf16 %v3350_v56  ;;  %v375_v7 = vpop.f32.mrb[9].mxu1 }
 0x10a   :  { %v4112_v22 = vadd.f32 %v3221_v15, %v323_v12  ;;  %v4172_v36 = vadd.f32 %v4040_v26, %v375_v7  ;;  %v3551_v8 = vpop.f32.mrb[10].mxu1  ;;  %v3245_v7 = vunpack.c.h.bf16 %v3352_v61 }
 0x10b   :  { %520 = vadd.xlane.f32.xlu0 %v4098_v14  ;;  %v4104_v17 = vadd.f32 %v3217_v9, %v315_v13  ;;  %v4169_v6 = vadd.f32 %v3237_v4, %v355_v1  ;;  %v4176_v9 = vadd.f32 %v3551_v8, %v4040_v26  ;;  %v378_v10 = vpop.f32.mrb[11].mxu1  ;;  %v3353_v8 = vld [vmem:[%s5854_s1 + $0x60] sm:$0xff]  }
 0x10c   :  { %v4179_v11 = vadd.f32 %v4040_v26, %v378_v10 }
 0x10d   :  { %v3538_v21 = vpop.f32.mrb[12].mxu0  ;;  %522 = vadd.xlane.f32.xlu1 %v4104_v17  ;;  %v3554_v12 = vpop.f32.mrb[12].mxu1 }
 0x10e   :  { %v327_v27 = vpop.f32.mrb[13].mxu0  ;;  %v336_v32 = vadd.f32 %v3538_v21, %v4040_v26  ;;  %v4183_v13 = vadd.f32 %v3554_v12, %v4040_v26  ;;  %v391_v15 = vpop.f32.mrb[13].mxu1 }
 0x10f   :  { %v328_v34 = vadd.f32 %v4040_v26, %v327_v27  ;;  %v3539_v35 = vpop.f32.mrb[14].mxu0  ;;  %524 = vadd.xlane.f32.xlu0 %v4106_v18  ;;  %v4186_v16 = vadd.f32 %v4040_v26, %v391_v15  ;;  %v3555_v19 = vpop.f32.mrb[14].mxu1  ;;  %v3599_v27 = vld [vmem:[%s5856_s6 + $0x4] ss:$8 sps:$4 sm:$0xff]  }
 0x110   :  { %v330_v42 = vpop.f32.mrb[15].mxu0  ;;  %v339_v47 = vadd.f32 %v3539_v35, %v4040_v26  ;;  %v4142_v54 = vadd.f32 %v3228_v37, %v336_v32  ;;  %v4189_v20 = vadd.f32 %v3555_v19, %v4040_v26  ;;  %v394_v21 = vpop.f32.mrb[15].mxu1  ;;  %1153 = vmatprep.subr.bf16.mxu1 %v3599_v27  ;;  %v3248_v19 = vunpack.c.l.bf16 %v3353_v8 }
 0x111   :  { %v331_v48 = vadd.f32 %v4040_v26, %v330_v42  ;;  %526 = vadd.xlane.f32.xlu1 %v4112_v22  ;;  %v4135_v50 = vadd.f32 %v3224_v23, %v328_v34  ;;  %v4192_v23 = vadd.f32 %v4040_v26, %v394_v21  ;;  %1154 = vmatpush1.bf16.msra.mxu1 %v3597_v25  ;;  %v3351_v34 = vld [vmem:[%s5854_s1 + $0x50] sm:$0xff]  }
 0x112   :  { %v4150_v58 = vadd.f32 %v3229_v51, %v339_v47  ;;  %1155 = vmatprep.subr.bf16.mxu1 %v3602_v31  ;;  %v3240_v40 = vunpack.c.l.bf16 %v3351_v34  ;;  %v3241_v59 = vunpack.c.h.bf16 %v3351_v34  ;;  %v4251_v25 = vadd.f32 %v3245_v7, %v4124_v38  ;;  %v3603_v38 = vld [vmem:[%s5856_s6 + $0x20] ss:$8 sps:$4 sm:$0xff]   ;;  %v3614_v7 = vld [vmem:[%s5856_s6 + $0x54] ss:$8 sps:$4 sm:$0xff]  }
 0x113   :  { %528 = vadd.xlane.f32.xlu0 %v4135_v50  ;;  %v4138_v52 = vadd.f32 %v3225_v28, %v331_v48  ;;  %v3600_v28 = vld [vmem:[%s5856_s6 + $0x10] ss:$8 sps:$4 sm:$0xff]   ;;  %v4263_v31 = vadd.f32 %v3248_v19, %v4172_v36  ;;  %v3249_v34 = vunpack.c.h.bf16 %v3353_v8  ;;  %v3608_v36 = vld [vmem:[%s5856_s6 + $0x34] ss:$8 sps:$4 sm:$0xff]  }
 0x114   :  { %v4215_v53 = vadd.f32 %v3240_v40, %v4118_v29  ;;  %v3244_v29 = vunpack.c.l.bf16 %v3352_v61  ;;  %v4232_v4 = vadd.f32 %v3241_v59, %v4130_v45  ;;  %v3354_v40 = vld [vmem:[%s5854_s1 + $0x68] sm:$0xff]  }
 0x115   :  { %530 = vadd.xlane.f32.xlu1 %v4138_v52  ;;  %1156 = vmatpush1.bf16.msra.mxu1 %v3600_v28  ;;  %v3611_v59 = vld [vmem:[%s5856_s6 + $0x44] ss:$8 sps:$4 sm:$0xff]   ;;  %v3253_v61 = vunpack.c.h.bf16 %v3354_v40 }
 0x116   :  { %v4242_v12 = vadd.f32 %v3244_v29, %v4115_v24 }
 0x117   :  { %532 = vadd.xlane.f32.xlu0 %v4142_v54 }
 0x119   :  { %534 = vadd.xlane.f32.xlu1 %v4150_v58 }
 0x11b   :  { %536 = vadd.xlane.f32.xlu0 %v4155_v33 }
 0x11d   :  { %538 = vadd.xlane.f32.xlu1 %v4160_v2 }
 0x11f   :  { %540 = vadd.xlane.f32.xlu0 %v4163_v41 }
 0x121   :  { %542 = vadd.xlane.f32.xlu1 %v4169_v6 }
 0x187   :  { %v509_v26 = vpop.xlane.xlu1 %508 }
 0x188   :  { %v505_v32 = vpop.xlane.xlu0 %504  ;;  %v571_v44 = vmul.f32 0.0078125, %v509_v26 }
 0x189   :  { %v569_v35 = vmul.f32 0.0078125, %v505_v32 }
 0x18a   :  { %v4223_v57 = vsub.f32 %v4051_v39, %v571_v44 }
 0x18b   :  { %v4210_v37 = vsub.f32 %v4056_v43, %v569_v35  ;;  %v511_v51 = vpop.xlane.xlu1 %510 }
 0x18c   :  { %v507_v42 = vpop.xlane.xlu0 %506  ;;  %v572_v56 = vmul.f32 0.0078125, %v511_v51 }
 0x18d   :  { %v570_v47 = vmul.f32 0.0078125, %v507_v42  ;;  %v633_v48 = vmul.f32 %v4210_v37, %v4210_v37  ;;  %v3606_v42 = vld [vmem:[%s5856_s6 + $0x30] ss:$8 sps:$4 sm:$0xff]  }
 0x18e   :  { %v4235_v39 = vsub.f32 %v4063_v46, %v572_v56 }
 0x18f   :  { %665 = vadd.xlane.f32.xlu0 %v633_v48  ;;  %v4218_v55 = vsub.f32 %v4068_v49, %v570_v47  ;;  %v635_v49 = vmul.f32 %v4223_v57, %v4223_v57  ;;  %v3252_v47 = vunpack.c.l.bf16 %v3354_v40  ;;  %v4284_v48 = vadd.f32 %v3249_v34, %v4179_v11  ;;  %v3609_v11 = vld [vmem:[%s5856_s6 + $0x40] ss:$8 sps:$4 sm:$0xff]   ;;  %v3618_v34 = vld [vmem:[%s5856_s6 + $0x70] ss:$8 sps:$4 sm:$0xff]  }
 0x190   :  { %v513_v62 = vpop.xlane.xlu0 %512  ;;  %v636_v45 = vmul.f32 %v4235_v39, %v4235_v39 }
 0x191   :  { %v634_v43 = vmul.f32 %v4218_v55, %v4218_v55  ;;  %v573_v1 = vmul.f32 0.0078125, %v513_v62  ;;  %v3355_v62 = vld [vmem:[%s5854_s1 + $0x70] sm:$0xff]  }
 0x192   :  { %v515_v5 = vpop.xlane.xlu1 %514  ;;  %v3256_v8 = vunpack.c.l.bf16 %v3355_v62 }
 0x193   :  { %544 = vadd.xlane.f32.xlu0 %v4215_v53  ;;  %667 = vadd.xlane.f32.xlu1 %v634_v43  ;;  %v574_v10 = vmul.f32 0.0078125, %v515_v5  ;;  %v4247_v15 = vsub.f32 %v4076_v60, %v573_v1  ;;  %v3605_v60 = vld [vmem:[%s5856_s6 + $0x24] ss:$8 sps:$4 sm:$0xff]   ;;  %v4304_v1 = vadd.f32 %v3252_v47, %v4166_v30 }
 0x194   :  { %v517_v46 = vpop.xlane.xlu0 %516  ;;  %1157 = vmatprep.subr.bf16.mxu1 %v3605_v60 }
 0x195   :  { %v575_v21 = vmul.f32 0.0078125, %v517_v46  ;;  %v637_v27 = vmul.f32 %v4247_v15, %v4247_v15  ;;  %v4256_v24 = vsub.f32 %v4082_v63, %v574_v10  ;;  %1158 = vmatpush1.bf16.msra.mxu1 %v3603_v38  ;;  %v3612_v10 = vld [vmem:[%s5856_s6 + $0x50] ss:$8 sps:$4 sm:$0xff]   ;;  %v3257_v38 = vunpack.c.h.bf16 %v3355_v62 }
 0x196   :  { %v519_v28 = vpop.xlane.xlu1 %518  ;;  %1159 = vmatprep.subr.bf16.mxu1 %v3608_v36 }
 0x197   :  { %669 = vadd.xlane.f32.xlu0 %v635_v49  ;;  %546 = vadd.xlane.f32.xlu1 %v4232_v4  ;;  %v576_v32 = vmul.f32 0.0078125, %v519_v28  ;;  %v638_v63 = vmul.f32 %v4256_v24, %v4256_v24  ;;  %v4271_v35 = vsub.f32 %v4084_v0, %v575_v21  ;;  %v3617_v21 = vld [vmem:[%s5856_s6 + $0x64] ss:$8 sps:$4 sm:$0xff]   ;;  %v4350_v36 = vadd.f32 %v3257_v38, %v4192_v23 }
 0x198   :  { %v521_v26 = vpop.xlane.xlu0 %520 }
 0x199   :  { %v577_v0 = vmul.f32 0.0078125, %v521_v26  ;;  %v639_v51 = vmul.f32 %v4271_v35, %v4271_v35  ;;  %v4289_v56 = vsub.f32 %v4090_v3, %v576_v32  ;;  %1160 = vmatpush1.bf16.msra.mxu1 %v3606_v42  ;;  %v3356_v32 = vld [vmem:[%s5854_s1 + $0x78] sm:$0xff]  }
 0x19a   :  { %v523_v44 = vpop.xlane.xlu1 %522  ;;  %1161 = vmatprep.subr.bf16.mxu1 %v3611_v59  ;;  %v3260_v40 = vunpack.c.l.bf16 %v3356_v32  ;;  %v3893_v59 = vmov 0  }
 0x19b   :  { %548 = vadd.xlane.f32.xlu0 %v4242_v12  ;;  %671 = vadd.xlane.f32.xlu1 %v636_v45  ;;  %v578_v3 = vmul.f32 0.0078125, %v523_v44  ;;  %v640_v29 = vmul.f32 %v4289_v56, %v4289_v56  ;;  %v4307_v49 = vsub.f32 %v4098_v14, %v577_v0  ;;  %v4317_v14 = vadd.f32 %v3253_v61, %v4176_v9  ;;  %v3615_v9 = vld [vmem:[%s5856_s6 + $0x60] ss:$8 sps:$4 sm:$0xff]  }
 0x19c   :  { %v525_v43 = vpop.xlane.xlu0 %524  ;;  %1185 = vmatprep.mubr.bf16.mxu1 %v3893_v59  ;;  %v4362_v61 = vadd.f32 %v3260_v40, %v4183_v13 }
 0x19d   :  { %1162 = vmatpush1.bf16.msra.mxu1 %v3609_v11  ;;  %v579_v30 = vmul.f32 0.0078125, %v525_v43  ;;  %v641_v46 = vmul.f32 %v4307_v49, %v4307_v49  ;;  %v4322_v19 = vsub.f32 %v4104_v17, %v578_v3  ;;  %v3261_v43 = vunpack.c.h.bf16 %v3356_v32 }
 0x19e   :  { %v527_v5 = vpop.xlane.xlu1 %526  ;;  %1163 = vmatprep.subr.bf16.mxu1 %v3614_v7 }
 0x19f   :  { %550 = vadd.xlane.f32.xlu1 %v4251_v25  ;;  %673 = vadd.xlane.f32.xlu0 %v637_v27  ;;  %v4329_v27 = vadd.f32 %v3256_v8, %v4186_v16  ;;  %v580_v60 = vmul.f32 0.0078125, %v527_v5  ;;  %v642_v17 = vmul.f32 %v4322_v19, %v4322_v19  ;;  %v4337_v26 = vsub.f32 %v4106_v18, %v579_v30 }
 0x1a0   :  { %v529_v45 = vpop.xlane.xlu0 %528  ;;  %v4372_v7 = vadd.f32 %v3261_v43, %v4189_v20 }
 0x1a1   :  { %1164 = vmatpush1.bf16.msra.mxu1 %v3612_v10  ;;  %v581_v18 = vmul.f32 0.0078125, %v529_v45  ;;  %v643_v42 = vmul.f32 %v4337_v26, %v4337_v26  ;;  %v4355_v44 = vsub.f32 %v4112_v22, %v580_v60 }
 0x1a2   :  { %v531_v28 = vpop.xlane.xlu1 %530  ;;  %1165 = vmatprep.subr.bf16.mxu1 %v3617_v21 }
 0x1a3   :  { %675 = vadd.xlane.f32.xlu1 %v638_v63  ;;  %552 = vadd.xlane.f32.xlu0 %v4263_v31  ;;  %v3620_v63 = vld [vmem:[%s5856_s6 + $0x74] ss:$8 sps:$4 sm:$0xff]   ;;  %v582_v0 = vmul.f32 0.0078125, %v531_v28  ;;  %v644_v23 = vmul.f32 %v4355_v44, %v4355_v44  ;;  %v4365_v22 = vsub.f32 %v4135_v50, %v581_v18 }
 0x1a4   :  { %v533_v16 = vpop.xlane.xlu0 %532 }
 0x1a5   :  { %1166 = vmatpush1.bf16.msra.mxu1 %v3615_v9  ;;  %v583_v11 = vmul.f32 0.0078125, %v533_v16  ;;  %v645_v8 = vmul.f32 %v4365_v22, %v4365_v22 }
 0x1a6   :  { %1167 = vmatprep.subr.bf16.mxu1 %v3620_v63  ;;  %v535_v47 = vpop.xlane.xlu1 %534 }
 0x1a7   :  { %554 = vadd.xlane.f32.xlu1 %v4284_v48  ;;  %677 = vadd.xlane.f32.xlu0 %v639_v51  ;;  %v584_v62 = vmul.f32 0.0078125, %v535_v47  ;;  %v4377_v13 = vsub.f32 %v4142_v54, %v583_v11 }
 0x1a8   :  { %v537_v51 = vpop.xlane.xlu0 %536 }
 0x1a9   :  { %1168 = vmatpush1.bf16.msra.mxu1 %v3618_v34  ;;  %v585_v5 = vmul.f32 0.0078125, %v537_v51  ;;  %v647_v20 = vmul.f32 %v4377_v13, %v4377_v13 }
 0x1aa   :  { %v539_v3 = vpop.xlane.xlu1 %538 }
 0x1ab   :  { %679 = vadd.xlane.f32.xlu1 %v640_v29  ;;  %556 = vadd.xlane.f32.xlu0 %v4304_v1  ;;  %v4369_v29 = vsub.f32 %v4138_v52, %v582_v0  ;;  %v4383_v52 = vsub.f32 %v4150_v58, %v584_v62  ;;  %v586_v45 = vmul.f32 0.0078125, %v539_v3 }
 0x1ac   :  { %v541_v50 = vpop.xlane.xlu0 %540 }
 0x1ad   :  { %v646_v10 = vmul.f32 %v4369_v29, %v4369_v29  ;;  %v587_v30 = vmul.f32 0.0078125, %v541_v50  ;;  %v648_v21 = vmul.f32 %v4383_v52, %v4383_v52  ;;  %v4395_v58 = vsub.f32 %v4160_v2, %v586_v45 }
 0x1ae   :  { %v543_v54 = vpop.xlane.xlu1 %542 }
 0x1af   :  { %558 = vadd.xlane.f32.xlu1 %v4317_v14  ;;  %681 = vadd.xlane.f32.xlu0 %v641_v46  ;;  %v4388_v46 = vsub.f32 %v4155_v33, %v585_v5  ;;  %v588_v9 = vmul.f32 0.0078125, %v543_v54  ;;  %v4398_v60 = vsub.f32 %v4163_v41, %v587_v30  ;;  %v650_v33 = vmul.f32 %v4395_v58, %v4395_v58 }
 0x1b1   :  { %v649_v28 = vmul.f32 %v4388_v46, %v4388_v46  ;;  %v4405_v38 = vsub.f32 %v4169_v6, %v588_v9 }
 0x1b3   :  { %683 = vadd.xlane.f32.xlu1 %v642_v17  ;;  %560 = vadd.xlane.f32.xlu0 %v4329_v27  ;;  %v651_v17 = vmul.f32 %v4398_v60, %v4398_v60  ;;  %v652_v2 = vmul.f32 %v4405_v38, %v4405_v38 }
 0x1b7   :  { %562 = vadd.xlane.f32.xlu1 %v4350_v36  ;;  %685 = vadd.xlane.f32.xlu0 %v643_v42 }
 0x1bb   :  { %687 = vadd.xlane.f32.xlu1 %v644_v23  ;;  %564 = vadd.xlane.f32.xlu0 %v4362_v61 }
 0x1bf   :  { %566 = vadd.xlane.f32.xlu1 %v4372_v7  ;;  %689 = vadd.xlane.f32.xlu0 %v645_v8 }
 0x1c3   :  { %691 = vadd.xlane.f32.xlu1 %v646_v10  ;;  %693 = vadd.xlane.f32.xlu0 %v647_v20 }
 0x1c7   :  { %695 = vadd.xlane.f32.xlu1 %v648_v21  ;;  %697 = vadd.xlane.f32.xlu0 %v649_v28 }
 0x1cb   :  { %699 = vadd.xlane.f32.xlu1 %v650_v33  ;;  %701 = vadd.xlane.f32.xlu0 %v651_v17 }
 0x1cf   :  { %703 = vadd.xlane.f32.xlu1 %v652_v2 }
 0x21c   :  { %v666_v32 = vpop.xlane.xlu0 %665 }
 0x21d   :  { %v729_v41 = vmul.f32 0.0078125, %v666_v32 }
 0x21f   :  { %v761_v16 = vadd.f32 1e-12, %v729_v41 }
 0x220   :  { %v668_v63 = vpop.xlane.xlu1 %667  ;;  %v545_v34 = vpop.xlane.xlu0 %544 }
 0x221   :  { %3637 = vrsqrt.f32 %v761_v16  ;;  %v730_v40 = vmul.f32 0.0078125, %v668_v63  ;;  %v589_v18 = vmul.f32 0.0078125, %v545_v34 }
 0x223   :  { %v762_v42 = vadd.f32 1e-12, %v730_v40  ;;  %v4410_v47 = vsub.f32 %v4215_v53, %v589_v18  ;;  %v4440_v18 = vld [vmem:[%s5858_s5] ss:$0 sm:$0xff] }
 0x224   :  { %v547_v6 = vpop.xlane.xlu1 %546  ;;  %v670_v0 = vpop.xlane.xlu0 %669 }
 0x225   :  { %3639 = vrsqrt.f32 %v762_v42  ;;  %v590_v51 = vmul.f32 0.0078125, %v547_v6  ;;  %v731_v43 = vmul.f32 0.0078125, %v670_v0  ;;  %v653_v11 = vmul.f32 %v4410_v47, %v4410_v47 }
 0x227   :  { %v763_v23 = vadd.f32 1e-12, %v731_v43  ;;  %705 = vadd.xlane.f32.xlu0 %v653_v11  ;;  %v4415_v62 = vsub.f32 %v4232_v4, %v590_v51  ;;  %v4426_v4 = vld [vmem:[%s5857_s4] ss:$0 sm:$0xff] }
 0x228   :  { %v672_v3 = vpop.xlane.xlu1 %671  ;;  %v549_v5 = vpop.xlane.xlu0 %548 }
 0x229   :  { %3641 = vrsqrt.f32 %v763_v23  ;;  %v732_v8 = vmul.f32 0.0078125, %v672_v3  ;;  %v591_v50 = vmul.f32 0.0078125, %v549_v5  ;;  %v654_v53 = vmul.f32 %v4415_v62, %v4415_v62 }
 0x22b   :  { %v3638_v10 = vpop.eup %3637  ;;  %v764_v45 = vadd.f32 1e-12, %v732_v8  ;;  %707 = vadd.xlane.f32.xlu1 %v654_v53  ;;  %v4420_v30 = vsub.f32 %v4242_v12, %v591_v50 }
 0x22c   :  { %v825_v20 = vmul.f32 %v3638_v10, %v4210_v37  ;;  %v551_v54 = vpop.xlane.xlu1 %550  ;;  %v674_v21 = vpop.xlane.xlu0 %673 }
 0x22d   :  { %3643 = vrsqrt.f32 %v764_v45  ;;  %v592_v9 = vmul.f32 0.0078125, %v551_v54  ;;  %v733_v28 = vmul.f32 0.0078125, %v674_v21  ;;  %v655_v33 = vmul.f32 %v4420_v30, %v4420_v30 }
 0x22e   :  { %v863_v37 = vmul.f32 %v4426_v4, %v825_v20 }
 0x22f   :  { %v3640_v17 = vpop.eup %3639  ;;  %v765_v2 = vadd.f32 1e-12, %v733_v28  ;;  %709 = vadd.xlane.f32.xlu0 %v655_v33  ;;  %v4431_v12 = vsub.f32 %v4251_v25, %v592_v9 }
 0x230   :  { %v826_v32 = vmul.f32 %v3640_v17, %v4218_v55  ;;  %v676_v41 = vpop.xlane.xlu1 %675  ;;  %v553_v16 = vpop.xlane.xlu0 %552  ;;  %v4447_v43 = vadd.f32 %v4440_v18, %v863_v37 }
 0x231   :  { %3645 = vrsqrt.f32 %v765_v2  ;;  %v734_v63 = vmul.f32 0.0078125, %v676_v41  ;;  %v593_v34 = vmul.f32 0.0078125, %v553_v16  ;;  %v656_v40 = vmul.f32 %v4431_v12, %v4431_v12 }
 0x232   :  { %v864_v25 = vmul.f32 %v4426_v4, %v826_v32 }
 0x233   :  { %v3642_v42 = vpop.eup %3641  ;;  %v766_v6 = vadd.f32 1e-12, %v734_v63  ;;  %v4444_v0 = vsub.f32 %v4263_v31, %v593_v34  ;;  %711 = vadd.xlane.f32.xlu1 %v656_v40 }
 0x234   :  { %v555_v55 = vpop.xlane.xlu1 %554  ;;  %v678_v51 = vpop.xlane.xlu0 %677  ;;  %v4450_v11 = vadd.f32 %v4440_v18, %v864_v25  ;;  %v827_v23 = vmul.f32 %v3642_v42, %v4223_v57 }
 0x235   :  { %3647 = vrsqrt.f32 %v766_v6  ;;  %v594_v3 = vmul.f32 0.0078125, %v555_v55  ;;  %v735_v5 = vmul.f32 0.0078125, %v678_v51  ;;  %v657_v8 = vmul.f32 %v4444_v0, %v4444_v0 }
 0x236   :  { %v1029_v31 = vpack.c.bf16 %v4450_v11, %v4447_v43  ;;  %v865_v54 = vmul.f32 %v4426_v4, %v827_v23 }
 0x237   :  { %v3644_v50 = vpop.eup %3643  ;;  %v4458_v53 = vsub.f32 %v4284_v48, %v594_v3  ;;  %v767_v10 = vadd.f32 1e-12, %v735_v5  ;;  %713 = vadd.xlane.f32.xlu0 %v657_v8 }
 0x238   :  { %v680_v45 = vpop.xlane.xlu1 %679  ;;  %1186 = vmatmul.mubr.bf16.vlgmr.msra.gmra.mrb[16].mxu1 %v1029_v31  ;;  %v557_v20 = vpop.xlane.xlu0 %556  ;;  %v828_v57 = vmul.f32 %v3644_v50, %v4235_v39  ;;  %v4470_v32 = vadd.f32 %v4440_v18, %v865_v54 }
 0x239   :  { %3649 = vrsqrt.f32 %v767_v10  ;;  %v736_v21 = vmul.f32 0.0078125, %v680_v45  ;;  %v595_v9 = vmul.f32 0.0078125, %v557_v20  ;;  %v658_v28 = vmul.f32 %v4458_v53, %v4458_v53  ;;  %1195 = vmatprep.mubr.bf16.mxu1 %v3893_v59 }
 0x23a   :  { %v866_v48 = vmul.f32 %v4426_v4, %v828_v57 }
 0x23b   :  { %v3646_v33 = vpop.eup %3645  ;;  %v768_v17 = vadd.f32 1e-12, %v736_v21  ;;  %v4467_v2 = vsub.f32 %v4304_v1, %v595_v9  ;;  %715 = vadd.xlane.f32.xlu1 %v658_v28 }
 0x23c   :  { %v559_v37 = vpop.xlane.xlu1 %558  ;;  %v682_v39 = vpop.xlane.xlu0 %681  ;;  %v4473_v41 = vadd.f32 %v4440_v18, %v866_v48  ;;  %v829_v16 = vmul.f32 %v3646_v33, %v4247_v15 }
 0x23d   :  { %3651 = vrsqrt.f32 %v768_v17  ;;  %v596_v63 = vmul.f32 0.0078125, %v559_v37  ;;  %v737_v34 = vmul.f32 0.0078125, %v682_v39  ;;  %v659_v40 = vmul.f32 %v4467_v2, %v4467_v2 }
 0x23e   :  { %v1030_v1 = vpack.c.bf16 %v4473_v41, %v4470_v32  ;;  %v867_v23 = vmul.f32 %v4426_v4, %v829_v16 }
 0x23f   :  { %v3648_v25 = vpop.eup %3647  ;;  %v4481_v42 = vsub.f32 %v4317_v14, %v596_v63  ;;  %v769_v6 = vadd.f32 1e-12, %v737_v34  ;;  %717 = vadd.xlane.f32.xlu0 %v659_v40 }
 0x240   :  { %v684_v55 = vpop.xlane.xlu1 %683  ;;  %1196 = vmatmul.mubr.bf16.gmra.mrb[20].mxu1 %v1030_v1  ;;  %v561_v51 = vpop.xlane.xlu0 %560  ;;  %v830_v15 = vmul.f32 %v3648_v25, %v4256_v24  ;;  %v4493_v20 = vadd.f32 %v4440_v18, %v867_v23 }
 0x241   :  { %3653 = vrsqrt.f32 %v769_v6  ;;  %v738_v3 = vmul.f32 0.0078125, %v684_v55  ;;  %v597_v5 = vmul.f32 0.0078125, %v561_v51  ;;  %v660_v8 = vmul.f32 %v4481_v42, %v4481_v42  ;;  %1205 = vmatprep.mubr.bf16.mxu1 %v3893_v59 }
 0x242   :  { %v868_v14 = vmul.f32 %v4426_v4, %v830_v15 }
 0x243   :  { %v3650_v31 = vpop.eup %3649  ;;  %v770_v50 = vadd.f32 1e-12, %v738_v3  ;;  %v4490_v10 = vsub.f32 %v4329_v27, %v597_v5  ;;  %719 = vadd.xlane.f32.xlu1 %v660_v8 }
 0x244   :  { %v563_v45 = vpop.xlane.xlu1 %562  ;;  %v686_v24 = vpop.xlane.xlu0 %685  ;;  %v4496_v57 = vadd.f32 %v4440_v18, %v868_v14  ;;  %v831_v54 = vmul.f32 %v3650_v31, %v4271_v35 }
 0x245   :  { %3655 = vrsqrt.f32 %v770_v50  ;;  %v598_v21 = vmul.f32 0.0078125, %v563_v45  ;;  %v739_v9 = vmul.f32 0.0078125, %v686_v24  ;;  %v661_v28 = vmul.f32 %v4490_v10, %v4490_v10 }
 0x246   :  { %v1031_v27 = vpack.c.bf16 %v4496_v57, %v4493_v20  ;;  %v869_v16 = vmul.f32 %v4426_v4, %v831_v54 }
 0x247   :  { %v3652_v48 = vpop.eup %3651  ;;  %v4504_v33 = vsub.f32 %v4350_v36, %v598_v21  ;;  %v771_v17 = vadd.f32 1e-12, %v739_v9  ;;  %721 = vadd.xlane.f32.xlu0 %v661_v28 }
 0x248   :  { %v688_v37 = vpop.xlane.xlu1 %687  ;;  %1206 = vmatmul.mubr.bf16.gmra.mrb[24].mxu1 %v1031_v27  ;;  %v565_v39 = vpop.xlane.xlu0 %564  ;;  %v832_v35 = vmul.f32 %v3652_v48, %v4289_v56  ;;  %v4516_v51 = vadd.f32 %v4440_v18, %v869_v16 }
 0x249   :  { %3657 = vrsqrt.f32 %v771_v17  ;;  %v740_v63 = vmul.f32 0.0078125, %v688_v37  ;;  %v599_v34 = vmul.f32 0.0078125, %v565_v39  ;;  %v662_v40 = vmul.f32 %v4504_v33, %v4504_v33  ;;  %1215 = vmatprep.mubr.bf16.mxu1 %v3893_v59 }
 0x24a   :  { %v870_v36 = vmul.f32 %v4426_v4, %v832_v35 }
 0x24b   :  { %v3654_v1 = vpop.eup %3653  ;;  %v772_v25 = vadd.f32 1e-12, %v740_v63  ;;  %v4513_v6 = vsub.f32 %v4362_v61, %v599_v34  ;;  %723 = vadd.xlane.f32.xlu1 %v662_v40 }
 0x24c   :  { %v567_v55 = vpop.xlane.xlu1 %566  ;;  %v690_v56 = vpop.xlane.xlu0 %689  ;;  %v4519_v15 = vadd.f32 %v4440_v18, %v870_v36  ;;  %v833_v23 = vmul.f32 %v3654_v1, %v4307_v49 }
 0x24d   :  { %3659 = vrsqrt.f32 %v772_v25  ;;  %v600_v3 = vmul.f32 0.0078125, %v567_v55  ;;  %v741_v5 = vmul.f32 0.0078125, %v690_v56  ;;  %v663_v8 = vmul.f32 %v4513_v6, %v4513_v6 }
 0x24e   :  { %5890 = vst [vmem:[#allocation4_spill] sm:$0xff] %v4519_v15  ;;  %v1032_v61 = vpack.c.bf16 %v4519_v15, %v4516_v51  ;;  %v871_v54 = vmul.f32 %v4426_v4, %v833_v23 }
 0x24f   :  { %v3656_v14 = vpop.eup %3655  ;;  %v4527_v31 = vsub.f32 %v4372_v7, %v600_v3  ;;  %v773_v50 = vadd.f32 1e-12, %v741_v5  ;;  %725 = vadd.xlane.f32.xlu0 %v663_v8 }
 0x250   :  { %v692_v45 = vpop.xlane.xlu1 %691  ;;  %1216 = vmatmul.mubr.bf16.gmra.mrb[28].mxu1 %v1032_v61  ;;  %v694_v24 = vpop.xlane.xlu0 %693  ;;  %v834_v49 = vmul.f32 %v3656_v14, %v4322_v19  ;;  %v4536_v19 = vadd.f32 %v4440_v18, %v871_v54 }
 0x251   :  { %3661 = vrsqrt.f32 %v773_v50  ;;  %v742_v21 = vmul.f32 0.0078125, %v692_v45  ;;  %v743_v9 = vmul.f32 0.0078125, %v694_v24  ;;  %v664_v28 = vmul.f32 %v4527_v31, %v4527_v31  ;;  %1225 = vmatprep.mubr.bf16.mxu1 %v3893_v59 }
 0x252   :  { %v872_v7 = vmul.f32 %v4426_v4, %v834_v49  ;;  %5891 = vst [vmem:[#allocation5_spill] sm:$0xff] %v4536_v19 }
 0x253   :  { %v3658_v27 = vpop.eup %3657  ;;  %v774_v48 = vadd.f32 1e-12, %v742_v21  ;;  %v775_v17 = vadd.f32 1e-12, %v743_v9  ;;  %727 = vadd.xlane.f32.xlu1 %v664_v28 }
 0x254   :  { %v696_v37 = vpop.xlane.xlu1 %695  ;;  %v698_v39 = vpop.xlane.xlu0 %697  ;;  %v4539_v35 = vadd.f32 %v4440_v18, %v872_v7  ;;  %v835_v16 = vmul.f32 %v3658_v27, %v4337_v26 }
 0x255   :  { %3663 = vrsqrt.f32 %v774_v48  ;;  %v744_v63 = vmul.f32 0.0078125, %v696_v37  ;;  %v745_v1 = vmul.f32 0.0078125, %v698_v39 }
 0x256   :  { %5892 = vst [vmem:[#allocation6_spill] sm:$0xff] %v4539_v35  ;;  %v1033_v34 = vpack.c.bf16 %v4539_v35, %v4536_v19  ;;  %3665 = vrsqrt.f32 %v775_v17  ;;  %v873_v56 = vmul.f32 %v4426_v4, %v835_v16 }
 0x257   :  { %v3660_v40 = vpop.eup %3659  ;;  %v776_v36 = vadd.f32 1e-12, %v744_v63  ;;  %v777_v5 = vadd.f32 1e-12, %v745_v1 }
 0x258   :  { %v700_v25 = vpop.xlane.xlu1 %699  ;;  %1226 = vmatmul.mubr.bf16.gmra.mrb[32].mxu1 %v1033_v34  ;;  %v836_v55 = vmul.f32 %v3660_v40, %v4355_v44  ;;  %v702_v61 = vpop.xlane.xlu0 %701  ;;  %v4549_v50 = vadd.f32 %v4440_v18, %v873_v56 }
 0x259   :  { %3667 = vrsqrt.f32 %v776_v36  ;;  %v746_v23 = vmul.f32 0.0078125, %v700_v25  ;;  %1235 = vmatprep.mubr.bf16.mxu1 %v3893_v59  ;;  %v747_v21 = vmul.f32 0.0078125, %v702_v61 }
 0x25a   :  { %v874_v26 = vmul.f32 %v4426_v4, %v836_v55  ;;  %5893 = vst [vmem:[#allocation7_spill] sm:$0xff] %v4549_v50 }
 0x25b   :  { %v3662_v3 = vpop.eup %3661  ;;  %v778_v8 = vadd.f32 1e-12, %v746_v23  ;;  %v779_v17 = vadd.f32 1e-12, %v747_v21  ;;  %v3622_v21 = vld [vmem:[%s5859_s8] sm:$0xff]  }
 0x25c   :  { %v704_v14 = vpop.xlane.xlu1 %703  ;;  %v4552_v45 = vadd.f32 %v4440_v18, %v874_v26  ;;  %v837_v44 = vmul.f32 %v3662_v3, %v4365_v22 }
 0x25d   :  { %3669 = vrsqrt.f32 %v778_v8  ;;  %v748_v24 = vmul.f32 0.0078125, %v704_v14 }
 0x25e   :  { %5894 = vst [vmem:[#allocation8_spill] sm:$0xff] %v4552_v45  ;;  %v1034_v49 = vpack.c.bf16 %v4552_v45, %v4549_v50  ;;  %3671 = vrsqrt.f32 %v777_v5  ;;  %v875_v28 = vmul.f32 %v4426_v4, %v837_v44 }
 0x25f   :  { %v3664_v54 = vpop.eup %3663  ;;  %v780_v27 = vadd.f32 1e-12, %v748_v24 }
 0x260   :  { %1236 = vmatmul.mubr.bf16.gmra.mrb[36].mxu1 %v1034_v49  ;;  %v838_v9 = vmul.f32 %v3664_v54, %v4369_v29  ;;  %v3666_v7 = vpop.eup %3665  ;;  %v4562_v37 = vadd.f32 %v4440_v18, %v875_v28  ;;  %v3624_v28 = vld [vmem:[%s5859_s8 + $0x8] sm:$0xff]  }
 0x261   :  { %1245 = vmatprep.mubr.bf16.mxu1 %v3893_v59  ;;  %v839_v16 = vmul.f32 %v3666_v7, %v4377_v13  ;;  %3673 = vrsqrt.f32 %v780_v27  ;;  %v3625_v7 = vld [vmem:[%s5859_s8 + $0x50] sm:$0xff]  }
 0x262   :  { %v876_v48 = vmul.f32 %v4426_v4, %v838_v9  ;;  %5895 = vst [vmem:[#allocation9_spill] sm:$0xff] %v4562_v37  ;;  %3675 = vrsqrt.f32 %v779_v17  ;;  %v3623_v9 = vld [vmem:[%s5859_s8 + $0x48] sm:$0xff]   ;;  %v3626_v27 = vld [vmem:[%s5859_s8 + $0x10] sm:$0xff]   ;;  %v3629_v17 = vld [vmem:[%s5859_s8 + $0x60] sm:$0xff]  }
 0x263   :  { %v3668_v22 = vpop.eup %3667  ;;  %v877_v36 = vmul.f32 %v4426_v4, %v839_v16  ;;  %v3630_v16 = vld [vmem:[%s5859_s8 + $0x20] sm:$0xff]  }
 0x264   :  { %v4565_v39 = vadd.f32 %v4440_v18, %v876_v48  ;;  %v840_v29 = vmul.f32 %v3668_v22, %v4383_v52  ;;  %v3627_v48 = vld [vmem:[%s5859_s8 + $0x58] sm:$0xff]  }
 0x265   :  { %v4579_v52 = vadd.f32 %v4440_v18, %v877_v36  ;;  %v3628_v22 = vld [vmem:[%s5859_s8 + $0x18] sm:$0xff]  }
 0x266   :  { %5896 = vst [vmem:[#allocation10_spill] sm:$0xff] %v4565_v39  ;;  %v1035_v63 = vpack.c.bf16 %v4565_v39, %v4562_v37  ;;  %v878_v34 = vmul.f32 %v4426_v4, %v840_v29  ;;  %v3631_v29 = vld [vmem:[%s5859_s8 + $0x68] sm:$0xff]   ;;  %v3635_v36 = vld [vmem:[%s5859_s8 + $0x78] sm:$0xff]  }
 0x267   :  { %v3670_v40 = vpop.eup %3669  ;;  %5898 = vst [vmem:[#allocation12_spill] sm:$0xff] %v4579_v52 }
 0x268   :  { %1246 = vmatmul.mubr.bf16.gmra.mrb[40].mxu1 %v1035_v63  ;;  %v3672_v1 = vpop.eup %3671  ;;  %v4575_v25 = vadd.f32 %v4440_v18, %v878_v34  ;;  %v842_v13 = vmul.f32 %v3670_v40, %v4395_v58  ;;  %v3632_v63 = vld [vmem:[%s5859_s8 + $0x28] sm:$0xff]   ;;  %v3633_v34 = vld [vmem:[%s5859_s8 + $0x70] sm:$0xff]  }
 0x269   :  { %1255 = vmatprep.mubr.bf16.mxu1 %v3893_v59  ;;  %v841_v55 = vmul.f32 %v3672_v1, %v4388_v46  ;;  %v3634_v40 = vld [vmem:[%s5859_s8 + $0x30] sm:$0xff]   ;;  %v3636_v1 = vld [vmem:[%s5859_s8 + $0x38] sm:$0xff]  }
 0x26a   :  { %5897 = vst [vmem:[#allocation11_spill] sm:$0xff] %v4575_v25  ;;  %v1036_v56 = vpack.c.bf16 %v4575_v25, %v4579_v52  ;;  %v880_v23 = vmul.f32 %v4426_v4, %v842_v13 }
 0x26b   :  { %v3674_v26 = vpop.eup %3673  ;;  %v879_v3 = vmul.f32 %v4426_v4, %v841_v55 }
 0x26c   :  { %v3676_v5 = vpop.eup %3675  ;;  %v4588_v8 = vadd.f32 %v4440_v18, %v880_v23  ;;  %v844_v58 = vmul.f32 %v3674_v26, %v4405_v38 }
 0x26d   :  { %v4592_v61 = vadd.f32 %v4440_v18, %v879_v3  ;;  %v843_v46 = vmul.f32 %v3676_v5, %v4398_v60  ;;  %v3621_v60 = vld [vmem:[%s5859_s8 + $0x40] sm:$0xff]  }
 0x26e   :  { %5899 = vst [vmem:[#allocation13_spill] sm:$0xff] %v4588_v8  ;;  %v882_v44 = vmul.f32 %v4426_v4, %v844_v58  ;;  %3396 = vmatprep.subr.bf16.mxu0 %v3621_v60 }
 0x26f   :  { %5900 = vst [vmem:[#allocation14_spill] sm:$0xff] %v4592_v61  ;;  %v1037_v14 = vpack.c.bf16 %v4588_v8, %v4592_v61  ;;  %v881_v24 = vmul.f32 %v4426_v4, %v843_v46  ;;  %3397 = vmatpush3.bf16.msra.mxu0 %v3622_v21 }
 0x270   :  { %1256 = vmatmul.mubr.bf16.gmra.mrb[44].mxu1 %v1036_v56  ;;  %v4601_v49 = vadd.f32 %v4440_v18, %v882_v44  ;;  %3398 = vmatprep.subr.bf16.mxu0 %v3623_v9 }
 0x271   :  { %1265 = vmatprep.mubr.bf16.mxu1 %v3893_v59  ;;  %v4604_v38 = vadd.f32 %v4440_v18, %v881_v24 }
 0x272   :  { %5901 = vst [vmem:[#allocation15_spill] sm:$0xff] %v4601_v49 }
 0x273   :  { %5902 = vst [vmem:[#allocation16_spill] sm:$0xff] %v4604_v38  ;;  %v1038_v54 = vpack.c.bf16 %v4601_v49, %v4604_v38  ;;  %3399 = vmatpush3.bf16.msra.mxu0 %v3624_v28 }
 0x274   :  { %3400 = vmatprep.subr.bf16.mxu0 %v3625_v7 }
 0x277   :  { %3401 = vmatpush3.bf16.msra.mxu0 %v3626_v27 }
 0x278   :  { %1266 = vmatmul.mubr.bf16.gmra.mrb[48].mxu1 %v1037_v14  ;;  %3402 = vmatprep.subr.bf16.mxu0 %v3627_v48 }
 0x279   :  { %1275 = vmatprep.mubr.bf16.mxu1 %v3893_v59 }
 0x27b   :  { %3403 = vmatpush3.bf16.msra.mxu0 %v3628_v22 }
 0x27c   :  { %3404 = vmatprep.subr.bf16.mxu0 %v3629_v17 }
 0x27f   :  { %3405 = vmatpush3.bf16.msra.mxu0 %v3630_v16 }
 0x280   :  { %1276 = vmatmul.mubr.bf16.gmra.mrb[52].mxu1 %v1038_v54  ;;  %3406 = vmatprep.subr.bf16.mxu0 %v3631_v29 }
 0x281   :  { %1285 = vmatprep.mubr.bf16.mxu1 %v3893_v59 }
 0x283   :  { %3407 = vmatpush3.bf16.msra.mxu0 %v3632_v63 }
 0x284   :  { %3408 = vmatprep.subr.bf16.mxu0 %v3633_v34 }
 0x287   :  { %3409 = vmatpush3.bf16.msra.mxu0 %v3634_v40 }
 0x288   :  { %3410 = vmatprep.subr.bf16.mxu0 %v3635_v36 }
 0x28b   :  { %3411 = vmatpush3.bf16.msra.mxu0 %v3636_v1 }
 0x2b4   :  { %v706_v13 = vpop.xlane.xlu0 %705 }
 0x2b5   :  { %v749_v55 = vmul.f32 0.0078125, %v706_v13 }
 0x2b7   :  { %v781_v56 = vadd.f32 1e-12, %v749_v55 }
 0x2b8   :  { %v708_v23 = vpop.xlane.xlu1 %707 }
 0x2b9   :  { %3677 = vrsqrt.f32 %v781_v56  ;;  %v750_v26 = vmul.f32 0.0078125, %v708_v23 }
 0x2bb   :  { %v782_v3 = vadd.f32 1e-12, %v750_v26 }
 0x2bc   :  { %v710_v5 = vpop.xlane.xlu0 %709 }
 0x2bd   :  { %3679 = vrsqrt.f32 %v782_v3  ;;  %v751_v58 = vmul.f32 0.0078125, %v710_v5 }
 0x2bf   :  { %v783_v46 = vadd.f32 1e-12, %v751_v58 }
 0x2c0   :  { %v712_v14 = vpop.xlane.xlu1 %711 }
 0x2c1   :  { %3681 = vrsqrt.f32 %v783_v46  ;;  %v752_v44 = vmul.f32 0.0078125, %v712_v14 }
 0x2c3   :  { %v3678_v24 = vpop.eup %3677  ;;  %v784_v54 = vadd.f32 1e-12, %v752_v44 }
 0x2c4   :  { %v714_v60 = vpop.xlane.xlu0 %713  ;;  %v845_v21 = vmul.f32 %v3678_v24, %v4410_v47 }
 0x2c5   :  { %3683 = vrsqrt.f32 %v784_v54  ;;  %v753_v9 = vmul.f32 0.0078125, %v714_v60 }
 0x2c6   :  { %v883_v22 = vmul.f32 %v4426_v4, %v845_v21 }
 0x2c7   :  { %v3680_v28 = vpop.eup %3679  ;;  %v785_v7 = vadd.f32 1e-12, %v753_v9 }
 0x2c8   :  { %v716_v27 = vpop.xlane.xlu1 %715  ;;  %v846_v48 = vmul.f32 %v3680_v28, %v4415_v62  ;;  %v4662_v40 = vadd.f32 %v4440_v18, %v883_v22 }
 0x2c9   :  { %3685 = vrsqrt.f32 %v785_v7  ;;  %v754_v17 = vmul.f32 0.0078125, %v716_v27 }
 0x2ca   :  { %v884_v16 = vmul.f32 %v4426_v4, %v846_v48  ;;  %5903 = vst [vmem:[#allocation17_spill] sm:$0xff] %v4662_v40 }
 0x2cb   :  { %v3682_v29 = vpop.eup %3681  ;;  %v786_v63 = vadd.f32 1e-12, %v754_v17 }
 0x2cc   :  { %v718_v34 = vpop.xlane.xlu0 %717  ;;  %v4665_v47 = vadd.f32 %v4440_v18, %v884_v16  ;;  %v847_v36 = vmul.f32 %v3682_v29, %v4420_v30 }
 0x2cd   :  { %3687 = vrsqrt.f32 %v786_v63  ;;  %v755_v1 = vmul.f32 0.0078125, %v718_v34 }
 0x2ce   :  { %5904 = vst [vmem:[#allocation18_spill] sm:$0xff] %v4665_v47  ;;  %v1039_v62 = vpack.c.bf16 %v4665_v47, %v4662_v40  ;;  %v885_v26 = vmul.f32 %v4426_v4, %v847_v36 }
 0x2cf   :  { %v3684_v13 = vpop.eup %3683  ;;  %v787_v55 = vadd.f32 1e-12, %v755_v1 }
 0x2d0   :  { %v720_v56 = vpop.xlane.xlu1 %719  ;;  %1286 = vmatmul.mubr.bf16.gmra.mrb[56].mxu1 %v1039_v62  ;;  %v848_v23 = vmul.f32 %v3684_v13, %v4431_v12  ;;  %v4675_v14 = vadd.f32 %v4440_v18, %v885_v26 }
 0x2d1   :  { %3689 = vrsqrt.f32 %v787_v55  ;;  %v756_v3 = vmul.f32 0.0078125, %v720_v56  ;;  %1295 = vmatprep.mubr.bf16.mxu1 %v3893_v59 }
 0x2d2   :  { %v886_v5 = vmul.f32 %v4426_v4, %v848_v23  ;;  %5905 = vst [vmem:[#allocation19_spill] sm:$0xff] %v4675_v14 }
 0x2d3   :  { %v3686_v30 = vpop.eup %3685  ;;  %v788_v58 = vadd.f32 1e-12, %v756_v3 }
 0x2d4   :  { %v722_v46 = vpop.xlane.xlu0 %721  ;;  %v4678_v44 = vadd.f32 %v4440_v18, %v886_v5  ;;  %v849_v24 = vmul.f32 %v3686_v30, %v4444_v0 }
 0x2d5   :  { %3691 = vrsqrt.f32 %v788_v58  ;;  %v757_v12 = vmul.f32 0.0078125, %v722_v46 }
 0x2d6   :  { %5906 = vst [vmem:[#allocation20_spill] sm:$0xff] %v4678_v44  ;;  %v1040_v54 = vpack.c.bf16 %v4678_v44, %v4675_v14  ;;  %v887_v7 = vmul.f32 %v4426_v4, %v849_v24 }
 0x2d7   :  { %v3688_v60 = vpop.eup %3687  ;;  %v789_v21 = vadd.f32 1e-12, %v757_v12 }
 0x2d8   :  { %v724_v9 = vpop.xlane.xlu1 %723  ;;  %1296 = vmatmul.mubr.bf16.gmra.mrb[60].mxu1 %v1040_v54  ;;  %v850_v28 = vmul.f32 %v3688_v60, %v4458_v53  ;;  %v4688_v16 = vadd.f32 %v4440_v18, %v887_v7 }
 0x2d9   :  { %3693 = vrsqrt.f32 %v789_v21  ;;  %v758_v27 = vmul.f32 0.0078125, %v724_v9  ;;  %1305 = vmatprep.mubr.bf16.mxu1 %v3893_v59 }
 0x2da   :  { %v888_v48 = vmul.f32 %v4426_v4, %v850_v28  ;;  %5907 = vst [vmem:[#allocation21_spill] sm:$0xff] %v4688_v16 }
 0x2db   :  { %v3690_v0 = vpop.eup %3689  ;;  %v790_v22 = vadd.f32 1e-12, %v758_v27 }
 0x2dc   :  { %v726_v17 = vpop.xlane.xlu0 %725  ;;  %v4691_v29 = vadd.f32 %v4440_v18, %v888_v48  ;;  %v851_v63 = vmul.f32 %v3690_v0, %v4467_v2 }
 0x2dd   :  { %3695 = vrsqrt.f32 %v790_v22  ;;  %v759_v53 = vmul.f32 0.0078125, %v726_v17  ;;  %v1063_v22 = vlaneseq }
 0x2de   :  { %5908 = vst [vmem:[#allocation22_spill] sm:$0xff] %v4691_v29  ;;  %v1041_v34 = vpack.c.bf16 %v4691_v29, %v4688_v16  ;;  %v889_v55 = vmul.f32 %v4426_v4, %v851_v63 }
 0x2df   :  { %v3692_v36 = vpop.eup %3691  ;;  %v791_v1 = vadd.f32 1e-12, %v759_v53  ;;  %v1064_v17 = vshrl.u32 %v1063_v22, 7 }
 0x2e0   :  { %v728_v62 = vpop.xlane.xlu1 %727  ;;  %1306 = vmatmul.mubr.bf16.gmra.mrb[64].mxu1 %v1041_v34  ;;  %v852_v13 = vmul.f32 %v3692_v36, %v4481_v42  ;;  %v4701_v3 = vadd.f32 %v4440_v18, %v889_v55 }
 0x2e1   :  { %3697 = vrsqrt.f32 %v791_v1  ;;  %v760_v56 = vmul.f32 0.0078125, %v728_v62  ;;  %1315 = vmatprep.mubr.bf16.mxu1 %v3893_v59  ;;  %v1065_v63 = vsub.s32 0, %v1064_v17 }
 0x2e2   :  { %v890_v23 = vmul.f32 %v4426_v4, %v852_v13  ;;  %5909 = vst [vmem:[#allocation23_spill] sm:$0xff] %v4701_v3 }
 0x2e3   :  { %v3694_v2 = vpop.eup %3693  ;;  %v792_v26 = vadd.f32 1e-12, %v760_v56 }
 0x2e4   :  { %v4704_v5 = vadd.f32 %v4440_v18, %v890_v23  ;;  %v853_v30 = vmul.f32 %v3694_v2, %v4490_v10 }
 0x2e5   :  { %3699 = vrsqrt.f32 %v792_v26 }
 0x2e6   :  { %5910 = vst [vmem:[#allocation24_spill] sm:$0xff] %v4704_v5  ;;  %v1042_v42 = vpack.c.bf16 %v4704_v5, %v4701_v3  ;;  %v891_v24 = vmul.f32 %v4426_v4, %v853_v30 }
 0x2e7   :  { %v3696_v58 = vpop.eup %3695 }
 0x2e8   :  { %1316 = vmatmul.mubr.bf16.gmra.mrb[68].mxu1 %v1042_v42  ;;  %v854_v46 = vmul.f32 %v3696_v58, %v4504_v33  ;;  %v4714_v60 = vadd.f32 %v4440_v18, %v891_v24 }
 0x2e9   :  { %1325 = vmatprep.mubr.bf16.mxu1 %v3893_v59 }
 0x2ea   :  { %v892_v12 = vmul.f32 %v4426_v4, %v854_v46  ;;  %5911 = vst [vmem:[#allocation25_spill] sm:$0xff] %v4714_v60 }
 0x2eb   :  { %v3698_v54 = vpop.eup %3697 }
 0x2ec   :  { %v4717_v10 = vadd.f32 %v4440_v18, %v892_v12  ;;  %v855_v21 = vmul.f32 %v3698_v54, %v4513_v6 }
 0x2ee   :  { %5912 = vst [vmem:[#allocation26_spill] sm:$0xff] %v4717_v10  ;;  %v1043_v9 = vpack.c.bf16 %v4717_v10, %v4714_v60  ;;  %v893_v7 = vmul.f32 %v4426_v4, %v855_v21 }
 0x2ef   :  { %v3700_v28 = vpop.eup %3699 }
 0x2f0   :  { %1326 = vmatmul.mubr.bf16.gmra.mrb[72].mxu1 %v1043_v9  ;;  %v856_v33 = vmul.f32 %v3700_v28, %v4527_v31  ;;  %v4727_v48 = vadd.f32 %v4440_v18, %v893_v7  ;;  %v1061_v31 = vld [vmem:[%s5860_s7] sm:$0x3] }
 0x2f1   :  { %1335 = vmatprep.mubr.bf16.mxu1 %v3893_v59  ;;  %v1069_v59 = vsub.s32 1, %v1064_v17  ;;  %v4737_v53 = vrot.slane %v1061_v31, %v1065_v63 }
 0x2f2   :  { %v894_v27 = vmul.f32 %v4426_v4, %v856_v33  ;;  %5913 = vst [vmem:[#allocation27_spill] sm:$0xff] %v4727_v48 }
 0x2f3   :  { %v4739_v4 = vrot.slane %v1061_v31, %v1069_v59 }
 0x2f4   :  { %v4730_v0 = vadd.f32 %v4440_v18, %v894_v27 }
 0x2f6   :  { %5914 = vst [vmem:[#allocation28_spill] sm:$0xff] %v4730_v0  ;;  %v1044_v6 = vpack.c.bf16 %v4730_v0, %v4727_v48 }
 0x2f8   :  { %1336 = vmatmul.mubr.bf16.gmra.mrb[76].mxu1 %v1044_v6 }
 0x30b   :  { %v1187_v34 = vpop.f32.mrb[16].mxu1 }
 0x30c   :  { %v4742_v18 = vadd.f32 %v1187_v34, %v4737_v53  ;;  %v1189_v36 = vpop.f32.mrb[17].mxu1 }
 0x30d   :  { %v4745_v1 = vadd.f32 %v1189_v36, %v4739_v4  ;;  %v1191_v62 = vpop.f32.mrb[18].mxu1 }
 0x30e   :  { %v1346_v13 = vmul.f32 %v4742_v18, %v4742_v18  ;;  %v4750_v55 = vadd.f32 %v1191_v62, %v4737_v53  ;;  %v1193_v56 = vpop.f32.mrb[19].mxu1 }
 0x30f   :  { %v1347_v23 = vmul.f32 %v4745_v1, %v4745_v1  ;;  %v4755_v2 = vadd.f32 %v1193_v56, %v4739_v4 }
 0x310   :  { %v1410_v26 = vmul.f32 %v1346_v13, %v4742_v18  ;;  %v1348_v30 = vmul.f32 %v4750_v55, %v4750_v55 }
 0x311   :  { %v1411_v42 = vmul.f32 %v1347_v23, %v4745_v1  ;;  %v1349_v58 = vmul.f32 %v4755_v2, %v4755_v2 }
 0x312   :  { %v1474_v46 = vmul.f32 0.044715, %v1410_v26  ;;  %v1412_v24 = vmul.f32 %v1348_v30, %v4750_v55 }
 0x313   :  { %v1475_v12 = vmul.f32 0.044715, %v1411_v42  ;;  %v1413_v54 = vmul.f32 %v1349_v58, %v4755_v2  ;;  %v1197_v21 = vpop.f32.mrb[20].mxu1 }
 0x314   :  { %v1538_v9 = vadd.f32 %v1474_v46, %v4742_v18  ;;  %v1476_v28 = vmul.f32 0.044715, %v1412_v24  ;;  %v4767_v33 = vadd.f32 %v1197_v21, %v4737_v53  ;;  %v1199_v7 = vpop.f32.mrb[21].mxu1 }
 0x315   :  { %v1539_v27 = vadd.f32 %v1475_v12, %v4745_v1  ;;  %v1477_v6 = vmul.f32 0.044715, %v1413_v54  ;;  %v4771_v22 = vadd.f32 %v1199_v7, %v4739_v4  ;;  %v1201_v17 = vpop.f32.mrb[22].mxu1 }
 0x316   :  { %v1602_v63 = vmul.f32 0.7978846, %v1538_v9  ;;  %v1540_v31 = vadd.f32 %v1476_v28, %v4750_v55  ;;  %v1350_v59 = vmul.f32 %v4767_v33, %v4767_v33  ;;  %v4777_v34 = vadd.f32 %v1201_v17, %v4737_v53  ;;  %v1203_v36 = vpop.f32.mrb[23].mxu1 }
 0x317   :  { %v1603_v62 = vmul.f32 0.7978846, %v1539_v27  ;;  %v1541_v13 = vadd.f32 %v1477_v6, %v4755_v2  ;;  %v1351_v56 = vmul.f32 %v4771_v22, %v4771_v22  ;;  %v4783_v23 = vadd.f32 %v1203_v36, %v4739_v4 }
 0x318   :  { %3701 = vtanh.f32 %v1602_v63  ;;  %v1604_v26 = vmul.f32 0.7978846, %v1540_v31  ;;  %v1414_v30 = vmul.f32 %v1350_v59, %v4767_v33  ;;  %v1352_v42 = vmul.f32 %v4777_v34, %v4777_v34 }
 0x319   :  { %3703 = vtanh.f32 %v1603_v62  ;;  %v1605_v58 = vmul.f32 0.7978846, %v1541_v13  ;;  %v1415_v46 = vmul.f32 %v1351_v56, %v4771_v22  ;;  %v1353_v24 = vmul.f32 %v4783_v23, %v4783_v23 }
 0x31a   :  { %3705 = vtanh.f32 %v1604_v26  ;;  %v1478_v12 = vmul.f32 0.044715, %v1414_v30  ;;  %v1416_v54 = vmul.f32 %v1352_v42, %v4777_v34 }
 0x31b   :  { %v1479_v21 = vmul.f32 0.044715, %v1415_v46  ;;  %v1417_v9 = vmul.f32 %v1353_v24, %v4783_v23  ;;  %v1207_v28 = vpop.f32.mrb[24].mxu1  ;;  %3707 = vtanh.f32 %v1605_v58 }
 0x31c   :  { %v1542_v7 = vadd.f32 %v1478_v12, %v4767_v33  ;;  %v1480_v27 = vmul.f32 0.044715, %v1416_v54  ;;  %v4795_v6 = vadd.f32 %v1207_v28, %v4737_v53  ;;  %v1209_v17 = vpop.f32.mrb[25].mxu1 }
 0x31d   :  { %v1543_v63 = vadd.f32 %v1479_v21, %v4771_v22  ;;  %v1481_v31 = vmul.f32 0.044715, %v1417_v9  ;;  %v4799_v59 = vadd.f32 %v1209_v17, %v4739_v4  ;;  %v1211_v36 = vpop.f32.mrb[26].mxu1 }
 0x31e   :  { %v1606_v62 = vmul.f32 0.7978846, %v1542_v7  ;;  %v1544_v13 = vadd.f32 %v1480_v27, %v4777_v34  ;;  %v1354_v56 = vmul.f32 %v4795_v6, %v4795_v6  ;;  %v4805_v26 = vadd.f32 %v1211_v36, %v4737_v53  ;;  %v1213_v30 = vpop.f32.mrb[27].mxu1 }
 0x31f   :  { %v1607_v42 = vmul.f32 0.7978846, %v1543_v63  ;;  %v1545_v58 = vadd.f32 %v1481_v31, %v4783_v23  ;;  %v1355_v46 = vmul.f32 %v4799_v59, %v4799_v59  ;;  %v4811_v24 = vadd.f32 %v1213_v30, %v4739_v4 }
 0x320   :  { %3709 = vtanh.f32 %v1606_v62  ;;  %v1608_v12 = vmul.f32 0.7978846, %v1544_v13  ;;  %v1418_v54 = vmul.f32 %v1354_v56, %v4795_v6  ;;  %v1356_v21 = vmul.f32 %v4805_v26, %v4805_v26 }
 0x321   :  { %3711 = vtanh.f32 %v1607_v42  ;;  %v1609_v9 = vmul.f32 0.7978846, %v1545_v58  ;;  %v1419_v28 = vmul.f32 %v1355_v46, %v4799_v59  ;;  %v1357_v7 = vmul.f32 %v4811_v24, %v4811_v24 }
 0x322   :  { %v3702_v27 = vpop.eup %3701  ;;  %3713 = vtanh.f32 %v1608_v12  ;;  %v1482_v17 = vmul.f32 0.044715, %v1418_v54  ;;  %v1420_v63 = vmul.f32 %v1356_v21, %v4805_v26 }
 0x323   :  { %v3704_v31 = vpop.eup %3703  ;;  %v1730_v36 = vadd.f32 1.0, %v3702_v27  ;;  %3715 = vtanh.f32 %v1609_v9  ;;  %v1483_v62 = vmul.f32 0.044715, %v1419_v28  ;;  %v1421_v13 = vmul.f32 %v1357_v7, %v4811_v24  ;;  %v1217_v56 = vpop.f32.mrb[28].mxu1 }
 0x324   :  { %v3706_v30 = vpop.eup %3705  ;;  %v1546_v42 = vadd.f32 %v1482_v17, %v4795_v6  ;;  %v1484_v58 = vmul.f32 0.044715, %v1420_v63  ;;  %v4823_v46 = vadd.f32 %v1217_v56, %v4737_v53  ;;  %v1219_v0 = vpop.f32.mrb[29].mxu1  ;;  %v1731_v48 = vadd.f32 1.0, %v3704_v31 }
 0x325   :  { %v1794_v12 = vmul.f32 0.5, %v1730_v36  ;;  %v1732_v54 = vadd.f32 1.0, %v3706_v30  ;;  %v1547_v21 = vadd.f32 %v1483_v62, %v4799_v59  ;;  %v1485_v10 = vmul.f32 0.044715, %v1421_v13  ;;  %v1221_v27 = vpop.f32.mrb[30].mxu1  ;;  %v3708_v56 = vpop.eup %3707 }
 0x326   :  { %v1610_v9 = vmul.f32 0.7978846, %v1546_v42  ;;  %v1548_v28 = vadd.f32 %v1484_v58, %v4805_v26  ;;  %v1358_v7 = vmul.f32 %v4823_v46, %v4823_v46  ;;  %v4830_v17 = vadd.f32 %v1219_v0, %v4739_v4  ;;  %v1223_v63 = vpop.f32.mrb[31].mxu1 }
 0x327   :  { %v4833_v60 = vmul.f32 %v1794_v12, %v4742_v18  ;;  %v1796_v31 = vmul.f32 0.5, %v1732_v54  ;;  %v1611_v36 = vmul.f32 0.7978846, %v1547_v21  ;;  %v1549_v62 = vadd.f32 %v1485_v10, %v4811_v24 }
 0x328   :  { %3717 = vtanh.f32 %v1610_v9  ;;  %v1612_v13 = vmul.f32 0.7978846, %v1548_v28  ;;  %v1422_v30 = vmul.f32 %v1358_v7, %v4823_v46  ;;  %v1359_v42 = vmul.f32 %v4830_v17, %v4830_v17 }
 0x329   :  { %v4840_v58 = vmul.f32 %v1796_v31, %v4750_v55  ;;  %3719 = vtanh.f32 %v1611_v36  ;;  %v1613_v0 = vmul.f32 0.7978846, %v1549_v62  ;;  %v4843_v5 = vadd.f32 %v1221_v27, %v4737_v53 }
 0x32a   :  { %v4845_v18 = vpop.eup %3709  ;;  %3721 = vtanh.f32 %v1612_v13  ;;  %v1486_v12 = vmul.f32 0.044715, %v1422_v30  ;;  %v1423_v10 = vmul.f32 %v1359_v42, %v4830_v17  ;;  %v4849_v54 = vadd.f32 %v1223_v63, %v4739_v4 }
 0x32b   :  { %v4851_v21 = vpop.eup %3711  ;;  %3723 = vtanh.f32 %v1613_v0  ;;  %v1360_v9 = vmul.f32 %v4843_v5, %v4843_v5  ;;  %v1227_v27 = vpop.f32.mrb[32].mxu1  ;;  %v1733_v28 = vadd.f32 1.0, %v3708_v56  ;;  %v1795_v55 = vmul.f32 0.5, %v1731_v48 }
 0x32c   :  { %v4857_v7 = vpop.eup %3713  ;;  %v1550_v31 = vadd.f32 %v1486_v12, %v4823_v46  ;;  %v1487_v36 = vmul.f32 0.044715, %v1423_v10  ;;  %v1361_v63 = vmul.f32 %v4849_v54, %v4849_v54  ;;  %v4863_v62 = vadd.f32 %v1227_v27, %v4737_v53  ;;  %v1229_v13 = vpop.f32.mrb[33].mxu1 }
 0x32d   :  { %v4865_v30 = vpop.eup %3715  ;;  %v1424_v42 = vmul.f32 %v1360_v9, %v4843_v5  ;;  %v4869_v0 = vadd.f32 %v1229_v13, %v4739_v4  ;;  %v1231_v56 = vpop.f32.mrb[34].mxu1  ;;  %v1797_v3 = vmul.f32 0.5, %v1733_v28 }
 0x32e   :  { %v1614_v29 = vmul.f32 0.7978846, %v1550_v31  ;;  %v1551_v12 = vadd.f32 %v1487_v36, %v4830_v17  ;;  %v1425_v10 = vmul.f32 %v1361_v63, %v4849_v54  ;;  %v1362_v27 = vmul.f32 %v4863_v62, %v4863_v62  ;;  %v1233_v16 = vpop.f32.mrb[35].mxu1 }
 0x32f   :  { %v1488_v44 = vmul.f32 0.044715, %v1424_v42  ;;  %v1363_v14 = vmul.f32 %v4869_v0, %v4869_v0  ;;  %v4878_v9 = vadd.f32 %v1231_v56, %v4737_v53  ;;  %v4881_v13 = vadd.f32 %v1233_v16, %v4739_v4 }
 0x330   :  { %3725 = vtanh.f32 %v1614_v29  ;;  %v1615_v48 = vmul.f32 0.7978846, %v1551_v12  ;;  %v1489_v28 = vmul.f32 0.044715, %v1425_v10  ;;  %v1426_v31 = vmul.f32 %v1362_v27, %v4863_v62 }
 0x331   :  { %v1552_v36 = vadd.f32 %v1488_v44, %v4843_v5  ;;  %v1427_v63 = vmul.f32 %v1363_v14, %v4869_v0  ;;  %v1364_v42 = vmul.f32 %v4878_v9, %v4878_v9  ;;  %v1365_v47 = vmul.f32 %v4881_v13, %v4881_v13 }
 0x332   :  { %v4890_v56 = vpop.eup %3717  ;;  %3727 = vtanh.f32 %v1615_v48  ;;  %v1553_v16 = vadd.f32 %v1489_v28, %v4849_v54  ;;  %v1490_v29 = vmul.f32 0.044715, %v1426_v31  ;;  %v1859_v12 = vmul.f32 %v1795_v55, %v4745_v1 }
 0x333   :  { %v4894_v10 = vpop.eup %3719  ;;  %v1616_v27 = vmul.f32 0.7978846, %v1552_v36  ;;  %v1491_v44 = vmul.f32 0.044715, %v1427_v63  ;;  %v1428_v14 = vmul.f32 %v1364_v42, %v4878_v9  ;;  %v1429_v40 = vmul.f32 %v1365_v47, %v4881_v13  ;;  %v1237_v49 = vpop.f32.mrb[36].mxu1 }
 0x334   :  { %v4898_v38 = vpop.eup %3721  ;;  %v1617_v8 = vmul.f32 0.7978846, %v1553_v16  ;;  %v1554_v61 = vadd.f32 %v1490_v29, %v4863_v62  ;;  %v1861_v48 = vmul.f32 %v1797_v3, %v4755_v2  ;;  %v4903_v28 = vadd.f32 %v1237_v49, %v4737_v53  ;;  %v1239_v1 = vpop.f32.mrb[37].mxu1 }
 0x335   :  { %v4905_v55 = vpop.eup %3723  ;;  %3729 = vtanh.f32 %v1616_v27  ;;  %v1555_v31 = vadd.f32 %v1491_v44, %v4869_v0  ;;  %v1492_v36 = vmul.f32 0.044715, %v1428_v14  ;;  %v1493_v63 = vmul.f32 0.044715, %v1429_v40  ;;  %v1241_v47 = vpop.f32.mrb[38].mxu1 }
 0x336   :  { %3731 = vtanh.f32 %v1617_v8  ;;  %v1618_v42 = vmul.f32 0.7978846, %v1554_v61  ;;  %v1955_v25 = vpack.c.bf16 %v1861_v48, %v1859_v12  ;;  %v1366_v16 = vmul.f32 %v4903_v28, %v4903_v28  ;;  %v1243_v29 = vpop.f32.mrb[39].mxu1 }
 0x337   :  { %v1619_v3 = vmul.f32 0.7978846, %v1555_v31  ;;  %v1556_v49 = vadd.f32 %v1492_v36, %v4878_v9  ;;  %v1557_v2 = vadd.f32 %v1493_v63, %v4881_v13  ;;  %v4913_v52 = vadd.f32 %v1239_v1, %v4739_v4 }
 0x338   :  { %3733 = vtanh.f32 %v1618_v42  ;;  %2146 = vmatprep.mubr.bf16.mxu0 %v1955_v25  ;;  %v1430_v40 = vmul.f32 %v1366_v16, %v4903_v28  ;;  %v4917_v8 = vadd.f32 %v1241_v47, %v4737_v53  ;;  %v4920_v61 = vadd.f32 %v1243_v29, %v4739_v4 }
 0x339   :  { %3735 = vtanh.f32 %v1619_v3  ;;  %v1620_v12 = vmul.f32 0.7978846, %v1556_v49  ;;  %v1621_v27 = vmul.f32 0.7978846, %v1557_v2  ;;  %v5915_v44 = vpack.c.bf16 %v4840_v58, %v4833_v60 }
 0x33a   :  { %v1367_v14 = vmul.f32 %v4913_v52, %v4913_v52  ;;  %v4927_v48 = vpop.eup %3725  ;;  %v1494_v25 = vmul.f32 0.044715, %v1430_v40  ;;  %v1368_v1 = vmul.f32 %v4917_v8, %v4917_v8  ;;  %v1369_v31 = vmul.f32 %v4920_v61, %v4920_v61 }
 0x33b   :  { %2147 = vmatmul.mubr.bf16.vlgmr.msra.gmra.mrb[16].mxu0 %v5915_v44  ;;  %v1735_v36 = vadd.f32 1.0, %v4851_v21  ;;  %3737 = vtanh.f32 %v1620_v12  ;;  %v1737_v60 = vadd.f32 1.0, %v4865_v30  ;;  %v1734_v58 = vadd.f32 1.0, %v4845_v18  ;;  %v1247_v47 = vpop.f32.mrb[40].mxu1 }
 0x33c   :  { %v1431_v63 = vmul.f32 %v1367_v14, %v4913_v52  ;;  %v4937_v42 = vpop.eup %3727  ;;  %3739 = vtanh.f32 %v1621_v27  ;;  %v1558_v16 = vadd.f32 %v1494_v25, %v4903_v28  ;;  %v1432_v29 = vmul.f32 %v1368_v1, %v4917_v8  ;;  %v1249_v49 = vpop.f32.mrb[41].mxu1 }
 0x33d   :  { %v1433_v3 = vmul.f32 %v1369_v31, %v4920_v61  ;;  %v1799_v21 = vmul.f32 0.5, %v1735_v36  ;;  %v1801_v40 = vmul.f32 0.5, %v1737_v60  ;;  %v1736_v12 = vadd.f32 1.0, %v4857_v7  ;;  %v1251_v44 = vpop.f32.mrb[42].mxu1 }
 0x33e   :  { %v1495_v2 = vmul.f32 0.044715, %v1431_v63  ;;  %v1622_v30 = vmul.f32 0.7978846, %v1558_v16  ;;  %v1496_v14 = vmul.f32 0.044715, %v1432_v29  ;;  %v4944_v39 = vadd.f32 %v1247_v47, %v4737_v53 }
 0x33f   :  { %v1497_v18 = vmul.f32 0.044715, %v1433_v3  ;;  %v4946_v27 = vpop.eup %3729  ;;  %v1863_v1 = vmul.f32 %v1799_v21, %v4771_v22  ;;  %v1865_v31 = vmul.f32 %v1801_v40, %v4783_v23  ;;  %v1798_v63 = vmul.f32 0.5, %v1734_v58  ;;  %v1253_v36 = vpop.f32.mrb[43].mxu1 }
 0x340   :  { %v1559_v25 = vadd.f32 %v1495_v2, %v4913_v52  ;;  %v4951_v60 = vpop.eup %3731  ;;  %3741 = vtanh.f32 %v1622_v30  ;;  %v1560_v7 = vadd.f32 %v1496_v14, %v4917_v8  ;;  %v1800_v29 = vmul.f32 0.5, %v1736_v12 }
 0x341   :  { %v1561_v16 = vadd.f32 %v1497_v18, %v4920_v61  ;;  %v1957_v3 = vpack.c.bf16 %v1865_v31, %v1863_v1  ;;  %v1862_v37 = vmul.f32 %v1798_v63, %v4767_v33  ;;  %v1370_v2 = vmul.f32 %v4944_v39, %v4944_v39 }
 0x342   :  { %v1623_v47 = vmul.f32 0.7978846, %v1559_v25  ;;  %v4958_v22 = vpop.eup %3733  ;;  %v1624_v23 = vmul.f32 0.7978846, %v1560_v7  ;;  %v1864_v21 = vmul.f32 %v1800_v29, %v4777_v34  ;;  %v4962_v40 = vadd.f32 %v1249_v49, %v4739_v4 }
 0x343   :  { %v1625_v58 = vmul.f32 0.7978846, %v1561_v16  ;;  %v4964_v30 = vpop.eup %3735  ;;  %2154 = vmatprep.mubr.bf16.mxu0 %v1957_v3  ;;  %v1434_v12 = vmul.f32 %v1370_v2, %v4944_v39  ;;  %v4968_v33 = vadd.f32 %v1251_v44, %v4737_v53  ;;  %v4971_v14 = vadd.f32 %v1253_v36, %v4739_v4  ;;  %v1257_v18 = vpop.f32.mrb[44].mxu1 }
 0x344   :  { %3743 = vtanh.f32 %v1623_v47  ;;  %v1956_v25 = vpack.c.bf16 %v1864_v21, %v1862_v37  ;;  %v1371_v34 = vmul.f32 %v4962_v40, %v4962_v40  ;;  %v1739_v49 = vadd.f32 1.0, %v4894_v10  ;;  %v1259_v1 = vpop.f32.mrb[45].mxu1 }
 0x345   :  { %3745 = vtanh.f32 %v1624_v23  ;;  %v4976_v31 = vpop.eup %3737  ;;  %v1498_v63 = vmul.f32 0.044715, %v1434_v12  ;;  %v1372_v44 = vmul.f32 %v4968_v33, %v4968_v33  ;;  %v1373_v36 = vmul.f32 %v4971_v14, %v4971_v14  ;;  %v1261_v7 = vpop.f32.mrb[46].mxu1 }
 0x346   :  { %3747 = vtanh.f32 %v1625_v58  ;;  %v4982_v16 = vpop.eup %3739  ;;  %2155 = vmatmul.mubr.bf16.gmra.mrb[20].mxu0 %v1956_v25  ;;  %v1435_v37 = vmul.f32 %v1371_v34, %v4962_v40  ;;  %v1741_v29 = vadd.f32 1.0, %v4905_v55  ;;  %v1803_v10 = vmul.f32 0.5, %v1739_v49  ;;  %v1263_v3 = vpop.f32.mrb[47].mxu1 }
 0x347   :  { %v1738_v47 = vadd.f32 1.0, %v4890_v56  ;;  %v1562_v2 = vadd.f32 %v1498_v63, %v4944_v39  ;;  %v1436_v23 = vmul.f32 %v1372_v44, %v4968_v33  ;;  %v1437_v58 = vmul.f32 %v1373_v36, %v4971_v14 }
 0x348   :  { %v1740_v21 = vadd.f32 1.0, %v4898_v38  ;;  %v1499_v12 = vmul.f32 0.044715, %v1435_v37  ;;  %v1805_v45 = vmul.f32 0.5, %v1741_v29  ;;  %v1867_v25 = vmul.f32 %v1803_v10, %v4799_v59 }
 0x349   :  { %v1802_v50 = vmul.f32 0.5, %v1738_v47  ;;  %v1626_v34 = vmul.f32 0.7978846, %v1562_v2  ;;  %v1500_v35 = vmul.f32 0.044715, %v1436_v23  ;;  %v4993_v49 = vadd.f32 %v1257_v18, %v4737_v53 }
 0x34a   :  { %v1501_v55 = vmul.f32 0.044715, %v1437_v58  ;;  %v4995_v56 = vpop.eup %3741  ;;  %v1563_v63 = vadd.f32 %v1499_v12, %v4962_v40  ;;  %v1869_v44 = vmul.f32 %v1805_v45, %v4811_v24  ;;  %v1804_v36 = vmul.f32 0.5, %v1740_v21 }
 0x34b   :  { %v1866_v38 = vmul.f32 %v1802_v50, %v4795_v6  ;;  %3749 = vtanh.f32 %v1626_v34  ;;  %v1564_v37 = vadd.f32 %v1500_v35, %v4968_v33  ;;  %v1374_v29 = vmul.f32 %v4993_v49, %v4993_v49  ;;  %v1267_v10 = vpop.f32.mrb[48].mxu1 }
 0x34c   :  { %v1565_v59 = vadd.f32 %v1501_v55, %v4971_v14  ;;  %v1627_v18 = vmul.f32 0.7978846, %v1563_v63  ;;  %v1959_v47 = vpack.c.bf16 %v1869_v44, %v1867_v25  ;;  %v1868_v2 = vmul.f32 %v1804_v36, %v4805_v26  ;;  %v1269_v45 = vpop.f32.mrb[49].mxu1 }
 0x34d   :  { %v5006_v23 = vadd.f32 %v1259_v1, %v4739_v4  ;;  %v1628_v50 = vmul.f32 0.7978846, %v1564_v37  ;;  %v1438_v35 = vmul.f32 %v1374_v29, %v4993_v49  ;;  %v5012_v58 = vadd.f32 %v1261_v7, %v4737_v53  ;;  %v1271_v21 = vpop.f32.mrb[50].mxu1 }
 0x34e   :  { %v5008_v24 = vpop.eup %3743  ;;  %v1629_v6 = vmul.f32 0.7978846, %v1565_v59  ;;  %3751 = vtanh.f32 %v1627_v18  ;;  %2162 = vmatprep.mubr.bf16.mxu0 %v1959_v47  ;;  %v1958_v25 = vpack.c.bf16 %v1868_v2, %v1866_v38  ;;  %v5019_v1 = vadd.f32 %v1263_v3, %v4739_v4  ;;  %v1273_v34 = vpop.f32.mrb[51].mxu1 }
 0x34f   :  { %v5014_v12 = vpop.eup %3745  ;;  %v1375_v26 = vmul.f32 %v5006_v23, %v5006_v23  ;;  %3753 = vtanh.f32 %v1628_v50  ;;  %v1502_v63 = vmul.f32 0.044715, %v1438_v35  ;;  %v1376_v7 = vmul.f32 %v5012_v58, %v5012_v58 }
 0x350   :  { %v5021_v55 = vpop.eup %3747  ;;  %v1743_v44 = vadd.f32 1.0, %v4937_v42  ;;  %3755 = vtanh.f32 %v1629_v6  ;;  %2163 = vmatmul.mubr.bf16.gmra.mrb[24].mxu0 %v1958_v25  ;;  %v1377_v38 = vmul.f32 %v5019_v1, %v5019_v1  ;;  %v1745_v3 = vadd.f32 1.0, %v4951_v60 }
 0x351   :  { %v1439_v36 = vmul.f32 %v1375_v26, %v5006_v23  ;;  %v1566_v37 = vadd.f32 %v1502_v63, %v4993_v49  ;;  %v1440_v59 = vmul.f32 %v1376_v7, %v5012_v58  ;;  %v1742_v18 = vadd.f32 1.0, %v4927_v48 }
 0x352   :  { %v1807_v29 = vmul.f32 0.5, %v1743_v44  ;;  %v1441_v2 = vmul.f32 %v1377_v38, %v5019_v1  ;;  %v1809_v42 = vmul.f32 0.5, %v1745_v3  ;;  %v1744_v50 = vadd.f32 1.0, %v4946_v27 }
 0x353   :  { %v1503_v47 = vmul.f32 0.044715, %v1439_v36  ;;  %v1630_v6 = vmul.f32 0.7978846, %v1566_v37  ;;  %v1504_v35 = vmul.f32 0.044715, %v1440_v59  ;;  %v5043_v38 = vadd.f32 %v1267_v10, %v4737_v53 }
 0x354   :  { %v1871_v25 = vmul.f32 %v1807_v29, %v4830_v17  ;;  %v1806_v26 = vmul.f32 0.5, %v1742_v18  ;;  %v1277_v19 = vpop.f32.mrb[52].mxu1  ;;  %v1505_v63 = vmul.f32 0.044715, %v1441_v2  ;;  %v1873_v7 = vmul.f32 %v1809_v42, %v4849_v54 }
 0x355   :  { %v1567_v60 = vadd.f32 %v1503_v47, %v5006_v23  ;;  %v1808_v44 = vmul.f32 0.5, %v1744_v50  ;;  %v1279_v15 = vpop.f32.mrb[53].mxu1  ;;  %v5038_v48 = vpop.eup %3749  ;;  %3757 = vtanh.f32 %v1630_v6  ;;  %v1568_v36 = vadd.f32 %v1504_v35, %v5012_v58 }
 0x356   :  { %v1870_v27 = vmul.f32 %v1806_v26, %v4823_v46  ;;  %v1281_v17 = vpop.f32.mrb[54].mxu1  ;;  %v1569_v37 = vadd.f32 %v1505_v63, %v5019_v1  ;;  %v1961_v59 = vpack.c.bf16 %v1873_v7, %v1871_v25  ;;  %v1378_v47 = vmul.f32 %v5043_v38, %v5043_v38 }
 0x357   :  { %v1631_v3 = vmul.f32 0.7978846, %v1567_v60  ;;  %v1872_v29 = vmul.f32 %v1808_v44, %v4843_v5  ;;  %v1283_v54 = vpop.f32.mrb[55].mxu1  ;;  %v1632_v18 = vmul.f32 0.7978846, %v1568_v36  ;;  %v5050_v2 = vadd.f32 %v1269_v45, %v4739_v4 }
 0x358   :  { %v5053_v46 = vadd.f32 %v1271_v21, %v4737_v53  ;;  %v5055_v10 = vpop.eup %3751  ;;  %v1633_v42 = vmul.f32 0.7978846, %v1569_v37  ;;  %2170 = vmatprep.mubr.bf16.mxu0 %v1961_v59  ;;  %v5058_v6 = vadd.f32 %v1273_v34, %v4739_v4  ;;  %v1442_v35 = vmul.f32 %v1378_v47, %v5043_v38 }
 0x359   :  { %3759 = vtanh.f32 %v1631_v3  ;;  %v1960_v50 = vpack.c.bf16 %v1872_v29, %v1870_v27  ;;  %v5060_v5 = vpop.eup %3753  ;;  %v1379_v45 = vmul.f32 %v5050_v2, %v5050_v2  ;;  %v1747_v34 = vadd.f32 1.0, %v4964_v30 }
 0x35a   :  { %3761 = vtanh.f32 %v1632_v18  ;;  %v1380_v21 = vmul.f32 %v5053_v46, %v5053_v46  ;;  %v5067_v25 = vpop.eup %3755  ;;  %v1381_v26 = vmul.f32 %v5058_v6, %v5058_v6  ;;  %v1749_v60 = vadd.f32 1.0, %v4982_v16 }
 0x35b   :  { %3763 = vtanh.f32 %v1633_v42  ;;  %2171 = vmatmul.mubr.bf16.gmra.mrb[28].mxu0 %v1960_v50  ;;  %v1506_v63 = vmul.f32 0.044715, %v1442_v35  ;;  %v1443_v7 = vmul.f32 %v1379_v45, %v5050_v2  ;;  %v1746_v36 = vadd.f32 1.0, %v4958_v22 }
 0x35c   :  { %v1444_v44 = vmul.f32 %v1380_v21, %v5053_v46  ;;  %v1445_v27 = vmul.f32 %v1381_v26, %v5058_v6  ;;  %v1811_v3 = vmul.f32 0.5, %v1747_v34  ;;  %v1813_v37 = vmul.f32 0.5, %v1749_v60 }
 0x35d   :  { %v1748_v59 = vadd.f32 1.0, %v4976_v31  ;;  %v1570_v29 = vadd.f32 %v1506_v63, %v5043_v38  ;;  %v1507_v18 = vmul.f32 0.044715, %v1443_v7  ;;  %v1810_v30 = vmul.f32 0.5, %v1746_v36 }
 0x35e   :  { %v1508_v47 = vmul.f32 0.044715, %v1444_v44  ;;  %v1509_v42 = vmul.f32 0.044715, %v1445_v27  ;;  %v1875_v16 = vmul.f32 %v1811_v3, %v4869_v0  ;;  %v1877_v50 = vmul.f32 %v1813_v37, %v4881_v13 }
 0x35f   :  { %v1812_v35 = vmul.f32 0.5, %v1748_v59  ;;  %v5081_v45 = vpop.eup %3757  ;;  %v1634_v22 = vmul.f32 0.7978846, %v1570_v29  ;;  %v1571_v21 = vadd.f32 %v1507_v18, %v5050_v2  ;;  %v1874_v31 = vmul.f32 %v1810_v30, %v4863_v62 }
 0x360   :  { %v1572_v26 = vadd.f32 %v1508_v47, %v5053_v46  ;;  %v1573_v34 = vadd.f32 %v1509_v42, %v5058_v6  ;;  %v1963_v60 = vpack.c.bf16 %v1877_v50, %v1875_v16  ;;  %v5089_v7 = vadd.f32 %v1277_v19, %v4737_v53 }
 0x361   :  { %v1876_v63 = vmul.f32 %v1812_v35, %v4878_v9  ;;  %3765 = vtanh.f32 %v1634_v22  ;;  %v1635_v0 = vmul.f32 0.7978846, %v1571_v21  ;;  %v5092_v44 = vadd.f32 %v1279_v15, %v4739_v4 }
 0x362   :  { %v1636_v13 = vmul.f32 0.7978846, %v1572_v26  ;;  %v1637_v27 = vmul.f32 0.7978846, %v1573_v34  ;;  %2178 = vmatprep.mubr.bf16.mxu0 %v1963_v60  ;;  %v1382_v62 = vmul.f32 %v5089_v7, %v5089_v7  ;;  %v5099_v37 = vadd.f32 %v1281_v17, %v4737_v53 }
 0x363   :  { %v5094_v36 = vpop.eup %3759  ;;  %v1962_v3 = vpack.c.bf16 %v1876_v63, %v1874_v31  ;;  %3767 = vtanh.f32 %v1635_v0  ;;  %v1383_v19 = vmul.f32 %v5092_v44, %v5092_v44  ;;  %v5106_v15 = vadd.f32 %v1283_v54, %v4739_v4 }
 0x364   :  { %v5101_v9 = vpop.eup %3761  ;;  %v1751_v59 = vadd.f32 1.0, %v5008_v24  ;;  %3769 = vtanh.f32 %v1636_v13  ;;  %v1446_v18 = vmul.f32 %v1382_v62, %v5089_v7  ;;  %v1384_v17 = vmul.f32 %v5099_v37, %v5099_v37 }
 0x365   :  { %v3764_v29 = vpop.eup %3763  ;;  %2179 = vmatmul.mubr.bf16.gmra.mrb[32].mxu0 %v1962_v3  ;;  %v1753_v47 = vadd.f32 1.0, %v5021_v55  ;;  %3771 = vtanh.f32 %v1637_v27  ;;  %v1447_v30 = vmul.f32 %v1383_v19, %v5092_v44  ;;  %v1385_v42 = vmul.f32 %v5106_v15, %v5106_v15 }
 0x366   :  { %v1815_v54 = vmul.f32 0.5, %v1751_v59  ;;  %v1510_v16 = vmul.f32 0.044715, %v1446_v18  ;;  %v1448_v24 = vmul.f32 %v1384_v17, %v5099_v37  ;;  %v1750_v35 = vadd.f32 1.0, %v4995_v56 }
 0x367   :  { %v1817_v50 = vmul.f32 0.5, %v1753_v47  ;;  %v1511_v22 = vmul.f32 0.044715, %v1447_v30  ;;  %v1449_v21 = vmul.f32 %v1385_v42, %v5106_v15  ;;  %v1752_v55 = vadd.f32 1.0, %v5014_v12 }
 0x368   :  { %v1879_v26 = vmul.f32 %v1815_v54, %v4913_v52  ;;  %v1574_v31 = vadd.f32 %v1510_v16, %v5089_v7  ;;  %v1512_v34 = vmul.f32 0.044715, %v1448_v24  ;;  %v1814_v63 = vmul.f32 0.5, %v1750_v35 }
 0x369   :  { %v1881_v60 = vmul.f32 %v1817_v50, %v4920_v61  ;;  %v1575_v0 = vadd.f32 %v1511_v22, %v5092_v44  ;;  %v1513_v13 = vmul.f32 0.044715, %v1449_v21  ;;  %v1816_v27 = vmul.f32 0.5, %v1752_v55 }
 0x36a   :  { %v1755_v3 = vadd.f32 1.0, %v5055_v10  ;;  %v1638_v56 = vmul.f32 0.7978846, %v1574_v31  ;;  %v1576_v62 = vadd.f32 %v1512_v34, %v5099_v37  ;;  %v1878_v52 = vmul.f32 %v1814_v63, %v4903_v28 }
 0x36b   :  { %v1965_v19 = vpack.c.bf16 %v1881_v60, %v1879_v26  ;;  %v3766_v59 = vpop.eup %3765  ;;  %v1639_v12 = vmul.f32 0.7978846, %v1575_v0  ;;  %v1577_v18 = vadd.f32 %v1513_v13, %v5106_v15  ;;  %v1880_v17 = vmul.f32 %v1816_v27, %v4917_v8 }
 0x36c   :  { %v1757_v61 = vadd.f32 1.0, %v5067_v25  ;;  %3773 = vtanh.f32 %v1638_v56  ;;  %v1640_v47 = vmul.f32 0.7978846, %v1576_v62  ;;  %v1819_v30 = vmul.f32 0.5, %v1755_v3 }
 0x36d   :  { %2186 = vmatprep.mubr.bf16.mxu0 %v1965_v19  ;;  %v1754_v10 = vadd.f32 1.0, %v5038_v48  ;;  %v3768_v42 = vpop.eup %3767  ;;  %3775 = vtanh.f32 %v1639_v12  ;;  %v1641_v54 = vmul.f32 0.7978846, %v1577_v18  ;;  %v1964_v16 = vpack.c.bf16 %v1880_v17, %v1878_v52 }
 0x36e   :  { %v1821_v24 = vmul.f32 0.5, %v1757_v61  ;;  %v3770_v28 = vpop.eup %3769  ;;  %3777 = vtanh.f32 %v1640_v47  ;;  %v1883_v50 = vmul.f32 %v1819_v30, %v4962_v40  ;;  %v1756_v35 = vadd.f32 1.0, %v5060_v5 }
 0x36f   :  { %v1818_v8 = vmul.f32 0.5, %v1754_v10  ;;  %v3772_v22 = vpop.eup %3771  ;;  %3779 = vtanh.f32 %v1641_v54  ;;  %2187 = vmatmul.mubr.bf16.gmra.mrb[36].mxu0 %v1964_v16  ;;  %v1759_v21 = vadd.f32 1.0, %v5094_v36  ;;  %v1761_v48 = vadd.f32 1.0, %v3764_v29 }
 0x370   :  { %v1885_v25 = vmul.f32 %v1821_v24, %v4971_v14  ;;  %v1820_v26 = vmul.f32 0.5, %v1756_v35  ;;  %v1758_v31 = vadd.f32 1.0, %v5081_v45  ;;  %v1760_v34 = vadd.f32 1.0, %v5101_v9 }
 0x371   :  { %v1882_v55 = vmul.f32 %v1818_v8, %v4944_v39  ;;  %v1823_v40 = vmul.f32 0.5, %v1759_v21  ;;  %v1825_v63 = vmul.f32 0.5, %v1761_v48  ;;  %v1763_v5 = vadd.f32 1.0, %v3768_v42 }
 0x372   :  { %v1967_v60 = vpack.c.bf16 %v1885_v25, %v1883_v50  ;;  %v1884_v0 = vmul.f32 %v1820_v26, %v4968_v33  ;;  %v1822_v13 = vmul.f32 0.5, %v1758_v31  ;;  %v1824_v27 = vmul.f32 0.5, %v1760_v34 }
 0x373   :  { %v1765_v3 = vadd.f32 1.0, %v3772_v22  ;;  %v1887_v14 = vmul.f32 %v1823_v40, %v5006_v23  ;;  %v1889_v36 = vmul.f32 %v1825_v63, %v5019_v1  ;;  %v1827_v29 = vmul.f32 0.5, %v1763_v5 }
 0x374   :  { %2194 = vmatprep.mubr.bf16.mxu0 %v1967_v60  ;;  %v1762_v39 = vadd.f32 1.0, %v3766_v59  ;;  %v1966_v56 = vpack.c.bf16 %v1884_v0, %v1882_v55  ;;  %v1886_v45 = vmul.f32 %v1822_v13, %v4993_v49  ;;  %v1888_v9 = vmul.f32 %v1824_v27, %v5012_v58 }
 0x375   :  { %v1829_v62 = vmul.f32 0.5, %v1765_v3  ;;  %v1969_v19 = vpack.c.bf16 %v1889_v36, %v1887_v14  ;;  %v1764_v52 = vadd.f32 1.0, %v3770_v28  ;;  %v1891_v17 = vmul.f32 %v1827_v29, %v5050_v2 }
 0x376   :  { %v1826_v12 = vmul.f32 0.5, %v1762_v39  ;;  %v3774_v33 = vpop.eup %3773  ;;  %v1968_v18 = vpack.c.bf16 %v1888_v9, %v1886_v45 }
 0x377   :  { %v1893_v61 = vmul.f32 %v1829_v62, %v5058_v6  ;;  %v3776_v23 = vpop.eup %3775  ;;  %2195 = vmatmul.mubr.bf16.gmra.mrb[40].mxu0 %v1966_v56  ;;  %v1828_v1 = vmul.f32 0.5, %v1764_v52  ;;  %v1766_v47 = vadd.f32 1.0, %v3774_v33 }
 0x378   :  { %v3778_v59 = vpop.eup %3777  ;;  %2202 = vmatprep.mubr.bf16.mxu0 %v1969_v19  ;;  %v1767_v49 = vadd.f32 1.0, %v3776_v23  ;;  %v1890_v58 = vmul.f32 %v1826_v12, %v5043_v38 }
 0x379   :  { %v1971_v30 = vpack.c.bf16 %v1893_v61, %v1891_v17  ;;  %v3780_v10 = vpop.eup %3779  ;;  %v1892_v42 = vmul.f32 %v1828_v1, %v5053_v46  ;;  %v1768_v54 = vadd.f32 1.0, %v3778_v59  ;;  %v1830_v16 = vmul.f32 0.5, %v1766_v47 }
 0x37a   :  { %v1769_v24 = vadd.f32 1.0, %v3780_v10  ;;  %v1831_v28 = vmul.f32 0.5, %v1767_v49 }
 0x37b   :  { %v1970_v2 = vpack.c.bf16 %v1892_v42, %v1890_v58  ;;  %v1832_v50 = vmul.f32 0.5, %v1768_v54  ;;  %v1894_v35 = vmul.f32 %v1830_v16, %v5089_v7 }
 0x37c   :  { %v1833_v6 = vmul.f32 0.5, %v1769_v24  ;;  %v1895_v22 = vmul.f32 %v1831_v28, %v5092_v44 }
 0x37d   :  { %v1896_v8 = vmul.f32 %v1832_v50, %v5099_v37 }
 0x37e   :  { %v1897_v25 = vmul.f32 %v1833_v6, %v5106_v15 }
 0x37f   :  { %2203 = vmatmul.mubr.bf16.gmra.mrb[44].mxu0 %v1968_v18  ;;  %v1972_v21 = vpack.c.bf16 %v1896_v8, %v1894_v35 }
 0x380   :  { %2210 = vmatprep.mubr.bf16.mxu0 %v1971_v30  ;;  %v1973_v38 = vpack.c.bf16 %v1897_v25, %v1895_v22 }
 0x387   :  { %2211 = vmatmul.mubr.bf16.gmra.mrb[48].mxu0 %v1970_v2 }
 0x388   :  { %2218 = vmatprep.mubr.bf16.mxu0 %v1973_v38 }
 0x38f   :  { %2219 = vmatmul.mubr.bf16.gmra.mrb[52].mxu0 %v1972_v21 }
 0x3a3   :  { %v1287_v46 = vpop.f32.mrb[56].mxu1 }
 0x3a4   :  { %v5152_v48 = vadd.f32 %v1287_v46, %v4737_v53  ;;  %v1289_v26 = vpop.f32.mrb[57].mxu1 }
 0x3a5   :  { %v5155_v7 = vadd.f32 %v1289_v26, %v4739_v4  ;;  %v1291_v37 = vpop.f32.mrb[58].mxu1 }
 0x3a6   :  { %v1386_v44 = vmul.f32 %v5152_v48, %v5152_v48  ;;  %v5160_v15 = vadd.f32 %v1291_v37, %v4737_v53  ;;  %v1293_v55 = vpop.f32.mrb[59].mxu1 }
 0x3a7   :  { %v1387_v31 = vmul.f32 %v5155_v7, %v5155_v7  ;;  %v5165_v34 = vadd.f32 %v1293_v55, %v4739_v4 }
 0x3a8   :  { %v1450_v60 = vmul.f32 %v1386_v44, %v5152_v48  ;;  %v1388_v40 = vmul.f32 %v5160_v15, %v5160_v15 }
 0x3a9   :  { %v1451_v63 = vmul.f32 %v1387_v31, %v5155_v7  ;;  %v1389_v5 = vmul.f32 %v5165_v34, %v5165_v34 }
 0x3aa   :  { %v1514_v0 = vmul.f32 0.044715, %v1450_v60  ;;  %v1452_v13 = vmul.f32 %v1388_v40, %v5160_v15 }
 0x3ab   :  { %v1515_v27 = vmul.f32 0.044715, %v1451_v63  ;;  %v1453_v3 = vmul.f32 %v1389_v5, %v5165_v34  ;;  %v1297_v14 = vpop.f32.mrb[60].mxu1 }
 0x3ac   :  { %v1578_v36 = vadd.f32 %v1514_v0, %v5152_v48  ;;  %v1516_v29 = vmul.f32 0.044715, %v1452_v13  ;;  %v5177_v39 = vadd.f32 %v1297_v14, %v4737_v53  ;;  %v1299_v56 = vpop.f32.mrb[61].mxu1 }
 0x3ad   :  { %v1579_v45 = vadd.f32 %v1515_v27, %v5155_v7  ;;  %v1517_v9 = vmul.f32 0.044715, %v1453_v3  ;;  %v5181_v62 = vadd.f32 %v1299_v56, %v4739_v4  ;;  %v1301_v19 = vpop.f32.mrb[62].mxu1 }
 0x3ae   :  { %v1642_v52 = vmul.f32 0.7978846, %v1578_v36  ;;  %v1580_v12 = vadd.f32 %v1516_v29, %v5160_v15  ;;  %v1390_v33 = vmul.f32 %v5177_v39, %v5177_v39  ;;  %v5187_v18 = vadd.f32 %v1301_v19, %v4737_v53  ;;  %v1303_v17 = vpop.f32.mrb[63].mxu1 }
 0x3af   :  { %v1643_v61 = vmul.f32 0.7978846, %v1579_v45  ;;  %v1581_v23 = vadd.f32 %v1517_v9, %v5165_v34  ;;  %v1391_v1 = vmul.f32 %v5181_v62, %v5181_v62  ;;  %v5193_v47 = vadd.f32 %v1303_v17, %v4739_v4 }
 0x3b0   :  { %3781 = vtanh.f32 %v1642_v52  ;;  %v1644_v59 = vmul.f32 0.7978846, %v1580_v12  ;;  %v1454_v30 = vmul.f32 %v1390_v33, %v5177_v39  ;;  %v1392_v49 = vmul.f32 %v5187_v18, %v5187_v18 }
 0x3b1   :  { %3783 = vtanh.f32 %v1643_v61  ;;  %v1645_v10 = vmul.f32 0.7978846, %v1581_v23  ;;  %v1455_v58 = vmul.f32 %v1391_v1, %v5181_v62  ;;  %v1393_v42 = vmul.f32 %v5193_v47, %v5193_v47 }
 0x3b2   :  { %3785 = vtanh.f32 %v1644_v59  ;;  %v1518_v54 = vmul.f32 0.044715, %v1454_v30  ;;  %v1456_v16 = vmul.f32 %v1392_v49, %v5187_v18 }
 0x3b3   :  { %v1519_v24 = vmul.f32 0.044715, %v1455_v58  ;;  %v1457_v28 = vmul.f32 %v1393_v42, %v5193_v47  ;;  %v1307_v2 = vpop.f32.mrb[64].mxu1  ;;  %3787 = vtanh.f32 %v1645_v10 }
 0x3b4   :  { %v1582_v50 = vadd.f32 %v1518_v54, %v5177_v39  ;;  %v1520_v6 = vmul.f32 0.044715, %v1456_v16  ;;  %v5205_v35 = vadd.f32 %v1307_v2, %v4737_v53  ;;  %v1309_v8 = vpop.f32.mrb[65].mxu1 }
 0x3b5   :  { %v1583_v22 = vadd.f32 %v1519_v24, %v5181_v62  ;;  %v1521_v25 = vmul.f32 0.044715, %v1457_v28  ;;  %v5209_v21 = vadd.f32 %v1309_v8, %v4739_v4  ;;  %v1311_v38 = vpop.f32.mrb[66].mxu1 }
 0x3b6   :  { %v1646_v46 = vmul.f32 0.7978846, %v1582_v50  ;;  %v1584_v26 = vadd.f32 %v1520_v6, %v5187_v18  ;;  %v1394_v37 = vmul.f32 %v5205_v35, %v5205_v35  ;;  %v5215_v44 = vadd.f32 %v1311_v38, %v4737_v53  ;;  %v1313_v55 = vpop.f32.mrb[67].mxu1 }
 0x3b7   :  { %v1647_v31 = vmul.f32 0.7978846, %v1583_v22  ;;  %v1585_v60 = vadd.f32 %v1521_v25, %v5193_v47  ;;  %v1395_v40 = vmul.f32 %v5209_v21, %v5209_v21  ;;  %v5221_v63 = vadd.f32 %v1313_v55, %v4739_v4 }
 0x3b8   :  { %3789 = vtanh.f32 %v1646_v46  ;;  %v1648_v5 = vmul.f32 0.7978846, %v1584_v26  ;;  %v1458_v0 = vmul.f32 %v1394_v37, %v5205_v35  ;;  %v1396_v13 = vmul.f32 %v5215_v44, %v5215_v44 }
 0x3b9   :  { %3791 = vtanh.f32 %v1647_v31  ;;  %v1649_v27 = vmul.f32 0.7978846, %v1585_v60  ;;  %v1459_v3 = vmul.f32 %v1395_v40, %v5209_v21  ;;  %v1397_v14 = vmul.f32 %v5221_v63, %v5221_v63 }
 0x3ba   :  { %v3782_v36 = vpop.eup %3781  ;;  %3793 = vtanh.f32 %v1648_v5  ;;  %v1522_v29 = vmul.f32 0.044715, %v1458_v0  ;;  %v1460_v56 = vmul.f32 %v1396_v13, %v5215_v44 }
 0x3bb   :  { %v3784_v45 = vpop.eup %3783  ;;  %3795 = vtanh.f32 %v1649_v27  ;;  %v1523_v9 = vmul.f32 0.044715, %v1459_v3  ;;  %v1461_v19 = vmul.f32 %v1397_v14, %v5221_v63  ;;  %v1317_v52 = vpop.f32.mrb[68].mxu1  ;;  %v5231_v12 = vadd.f32 1.0, %v3782_v36 }
 0x3bc   :  { %v3786_v33 = vpop.eup %3785  ;;  %v1586_v17 = vadd.f32 %v1522_v29, %v5205_v35  ;;  %v1524_v61 = vmul.f32 0.044715, %v1460_v56  ;;  %v5235_v23 = vadd.f32 %v1317_v52, %v4737_v53  ;;  %v1319_v1 = vpop.f32.mrb[69].mxu1  ;;  %v1771_v59 = vadd.f32 1.0, %v3784_v45 }
 0x3bd   :  { %v1587_v30 = vadd.f32 %v1523_v9, %v5209_v21  ;;  %v1525_v49 = vmul.f32 0.044715, %v1461_v19  ;;  %v5239_v10 = vadd.f32 %v1319_v1, %v4739_v4  ;;  %v1321_v58 = vpop.f32.mrb[70].mxu1  ;;  %v5241_v42 = vadd.f32 1.0, %v3786_v33  ;;  %v3788_v50 = vpop.eup %3787 }
 0x3be   :  { %v1650_v54 = vmul.f32 0.7978846, %v1586_v17  ;;  %v1588_v16 = vadd.f32 %v1524_v61, %v5215_v44  ;;  %v1398_v24 = vmul.f32 %v5235_v23, %v5235_v23  ;;  %v5247_v28 = vadd.f32 %v1321_v58, %v4737_v53  ;;  %v1323_v2 = vpop.f32.mrb[71].mxu1 }
 0x3bf   :  { %v1651_v6 = vmul.f32 0.7978846, %v1587_v30  ;;  %v1589_v8 = vadd.f32 %v1525_v49, %v5221_v63  ;;  %v1399_v22 = vmul.f32 %v5239_v10, %v5239_v10  ;;  %v5253_v25 = vadd.f32 %v1323_v2, %v4739_v4 }
 0x3c0   :  { %3797 = vtanh.f32 %v1650_v54  ;;  %v1652_v38 = vmul.f32 0.7978846, %v1588_v16  ;;  %v1462_v46 = vmul.f32 %v1398_v24, %v5235_v23  ;;  %v1400_v26 = vmul.f32 %v5247_v28, %v5247_v28 }
 0x3c1   :  { %3799 = vtanh.f32 %v1651_v6  ;;  %v1653_v37 = vmul.f32 0.7978846, %v1589_v8  ;;  %v1463_v55 = vmul.f32 %v1399_v22, %v5239_v10  ;;  %v1401_v31 = vmul.f32 %v5253_v25, %v5253_v25 }
 0x3c2   :  { %v5261_v60 = vpop.eup %3789  ;;  %3801 = vtanh.f32 %v1652_v38  ;;  %v1526_v40 = vmul.f32 0.044715, %v1462_v46  ;;  %v1464_v5 = vmul.f32 %v1400_v26, %v5247_v28  ;;  %v1773_v0 = vadd.f32 1.0, %v3788_v50 }
 0x3c3   :  { %v5264_v13 = vpop.eup %3791  ;;  %3803 = vtanh.f32 %v1653_v37  ;;  %v1527_v27 = vmul.f32 0.044715, %v1463_v55  ;;  %v1465_v3 = vmul.f32 %v1401_v31, %v5253_v25  ;;  %v1327_v14 = vpop.f32.mrb[72].mxu1  ;;  %v1835_v36 = vmul.f32 0.5, %v1771_v59 }
 0x3c4   :  { %v5267_v29 = vpop.eup %3793  ;;  %v1590_v56 = vadd.f32 %v1526_v40, %v5235_v23  ;;  %v1528_v45 = vmul.f32 0.044715, %v1464_v5  ;;  %v5271_v9 = vadd.f32 %v1327_v14, %v4737_v53  ;;  %v1329_v19 = vpop.f32.mrb[73].mxu1  ;;  %v1837_v52 = vmul.f32 0.5, %v1773_v0 }
 0x3c5   :  { %v5273_v33 = vpop.eup %3795  ;;  %v1591_v17 = vadd.f32 %v1527_v27, %v5239_v10  ;;  %v1529_v61 = vmul.f32 0.044715, %v1465_v3  ;;  %v5277_v1 = vadd.f32 %v1329_v19, %v4739_v4  ;;  %v1331_v30 = vpop.f32.mrb[74].mxu1  ;;  %v1899_v59 = vmul.f32 %v1835_v36, %v5155_v7 }
 0x3c6   :  { %v1654_v49 = vmul.f32 0.7978846, %v1590_v56  ;;  %v1592_v58 = vadd.f32 %v1528_v45, %v5247_v28  ;;  %v1402_v54 = vmul.f32 %v5271_v9, %v5271_v9  ;;  %v5284_v16 = vadd.f32 %v1331_v30, %v4737_v53  ;;  %v1333_v24 = vpop.f32.mrb[75].mxu1 }
 0x3c7   :  { %v1655_v2 = vmul.f32 0.7978846, %v1591_v17  ;;  %v1593_v50 = vadd.f32 %v1529_v61, %v5253_v25  ;;  %v1403_v6 = vmul.f32 %v5277_v1, %v5277_v1  ;;  %v5290_v8 = vadd.f32 %v1333_v24, %v4739_v4 }
 0x3c8   :  { %3805 = vtanh.f32 %v1654_v49  ;;  %v1656_v7 = vmul.f32 0.7978846, %v1592_v58  ;;  %v1466_v22 = vmul.f32 %v1402_v54, %v5271_v9  ;;  %v1404_v38 = vmul.f32 %v5284_v16, %v5284_v16 }
 0x3c9   :  { %3807 = vtanh.f32 %v1655_v2  ;;  %v1657_v46 = vmul.f32 0.7978846, %v1593_v50  ;;  %v1467_v26 = vmul.f32 %v1403_v6, %v5277_v1  ;;  %v1405_v37 = vmul.f32 %v5290_v8, %v5290_v8 }
 0x3ca   :  { %v5298_v55 = vpop.eup %3797  ;;  %3809 = vtanh.f32 %v1656_v7  ;;  %v1530_v31 = vmul.f32 0.044715, %v1466_v22  ;;  %v1468_v40 = vmul.f32 %v1404_v38, %v5284_v16  ;;  %v1901_v5 = vmul.f32 %v1837_v52, %v5165_v34 }
 0x3cb   :  { %v5302_v0 = vpop.eup %3799  ;;  %3811 = vtanh.f32 %v1657_v46  ;;  %v1531_v27 = vmul.f32 0.044715, %v1467_v26  ;;  %v1469_v3 = vmul.f32 %v1405_v37, %v5290_v8  ;;  %v1834_v14 = vmul.f32 0.5, %v5231_v12  ;;  %v1337_v36 = vpop.f32.mrb[76].mxu1 }
 0x3cc   :  { %v5306_v56 = vpop.eup %3801  ;;  %v1594_v45 = vadd.f32 %v1530_v31, %v5271_v9  ;;  %v1532_v19 = vmul.f32 0.044715, %v1468_v40  ;;  %v1975_v17 = vpack.c.bf16 %v1901_v5, %v1899_v59  ;;  %v1836_v61 = vmul.f32 0.5, %v5241_v42  ;;  %v1339_v30 = vpop.f32.mrb[77].mxu1 }
 0x3cd   :  { %v5310_v49 = vpop.eup %3803  ;;  %v1595_v34 = vadd.f32 %v1531_v27, %v5277_v1  ;;  %v1533_v52 = vmul.f32 0.044715, %v1469_v3  ;;  %v1898_v58 = vmul.f32 %v1834_v14, %v5152_v48  ;;  %v5315_v54 = vadd.f32 %v1337_v36, %v4737_v53  ;;  %v1341_v12 = vpop.f32.mrb[78].mxu1 }
 0x3ce   :  { %v1658_v24 = vmul.f32 0.7978846, %v1594_v45  ;;  %v1596_v2 = vadd.f32 %v1532_v19, %v5284_v16  ;;  %2226 = vmatprep.mubr.bf16.mxu0 %v1975_v17  ;;  %v1900_v59 = vmul.f32 %v1836_v61, %v5160_v15  ;;  %v5320_v42 = vadd.f32 %v1339_v30, %v4739_v4  ;;  %v1343_v50 = vpop.f32.mrb[79].mxu1 }
 0x3cf   :  { %v1659_v6 = vmul.f32 0.7978846, %v1595_v34  ;;  %v1597_v7 = vadd.f32 %v1533_v52, %v5290_v8  ;;  %v1406_v48 = vmul.f32 %v5315_v54, %v5315_v54  ;;  %v5326_v22 = vadd.f32 %v1341_v12, %v4737_v53 }
 0x3d0   :  { %3813 = vtanh.f32 %v1658_v24  ;;  %v1660_v38 = vmul.f32 0.7978846, %v1596_v2  ;;  %v1974_v46 = vpack.c.bf16 %v1900_v59, %v1898_v58  ;;  %v1407_v26 = vmul.f32 %v5320_v42, %v5320_v42 }
 0x3d1   :  { %3815 = vtanh.f32 %v1659_v6  ;;  %v1661_v15 = vmul.f32 0.7978846, %v1597_v7  ;;  %v1470_v37 = vmul.f32 %v1406_v48, %v5315_v54  ;;  %v1408_v31 = vmul.f32 %v5326_v22, %v5326_v22 }
 0x3d2   :  { %v3806_v40 = vpop.eup %3805  ;;  %3817 = vtanh.f32 %v1660_v38  ;;  %2227 = vmatmul.mubr.bf16.gmra.mrb[56].mxu0 %v1974_v46  ;;  %v1471_v5 = vmul.f32 %v1407_v26, %v5320_v42  ;;  %v5335_v53 = vadd.f32 %v1343_v50, %v4739_v4  ;;  %v1775_v27 = vadd.f32 1.0, %v5264_v13 }
 0x3d3   :  { %v3808_v3 = vpop.eup %3807  ;;  %3819 = vtanh.f32 %v1661_v15  ;;  %v1534_v14 = vmul.f32 0.044715, %v1470_v37  ;;  %v1472_v36 = vmul.f32 %v1408_v31, %v5326_v22  ;;  %v1777_v45 = vadd.f32 1.0, %v5273_v33 }
 0x3d4   :  { %v3810_v19 = vpop.eup %3809  ;;  %v1535_v17 = vmul.f32 0.044715, %v1471_v5  ;;  %v1409_v61 = vmul.f32 %v5335_v53, %v5335_v53  ;;  %v1839_v30 = vmul.f32 0.5, %v1775_v27  ;;  %v1774_v34 = vadd.f32 1.0, %v5261_v60 }
 0x3d5   :  { %v3812_v52 = vpop.eup %3811  ;;  %v1598_v4 = vadd.f32 %v1534_v14, %v5315_v54  ;;  %v1536_v58 = vmul.f32 0.044715, %v1472_v36  ;;  %v1841_v13 = vmul.f32 0.5, %v1777_v45  ;;  %v1776_v12 = vadd.f32 1.0, %v5267_v29 }
 0x3d6   :  { %v1599_v24 = vadd.f32 %v1535_v17, %v5320_v42  ;;  %v1473_v2 = vmul.f32 %v1409_v61, %v5335_v53  ;;  %v1903_v33 = vmul.f32 %v1839_v30, %v5181_v62  ;;  %v1838_v59 = vmul.f32 0.5, %v1774_v34 }
 0x3d7   :  { %v1662_v50 = vmul.f32 0.7978846, %v1598_v4  ;;  %v1600_v6 = vadd.f32 %v1536_v58, %v5326_v22  ;;  %v1905_v7 = vmul.f32 %v1841_v13, %v5193_v47  ;;  %v1840_v60 = vmul.f32 0.5, %v1776_v12 }
 0x3d8   :  { %v1663_v48 = vmul.f32 0.7978846, %v1599_v24  ;;  %v1537_v38 = vmul.f32 0.044715, %v1473_v2  ;;  %v1902_v46 = vmul.f32 %v1838_v59, %v5177_v39  ;;  %v1779_v26 = vadd.f32 1.0, %v5302_v0 }
 0x3d9   :  { %3821 = vtanh.f32 %v1662_v50  ;;  %v1664_v29 = vmul.f32 0.7978846, %v1600_v6  ;;  %v1977_v15 = vpack.c.bf16 %v1905_v7, %v1903_v33  ;;  %v1904_v37 = vmul.f32 %v1840_v60, %v5187_v18 }
 0x3da   :  { %v3814_v31 = vpop.eup %3813  ;;  %3823 = vtanh.f32 %v1663_v48  ;;  %v1601_v62 = vadd.f32 %v1537_v38, %v5335_v53  ;;  %v1781_v5 = vadd.f32 1.0, %v5310_v49  ;;  %v1843_v27 = vmul.f32 0.5, %v1779_v26 }
 0x3db   :  { %v3816_v47 = vpop.eup %3815  ;;  %3825 = vtanh.f32 %v1664_v29  ;;  %2234 = vmatprep.mubr.bf16.mxu0 %v1977_v15  ;;  %v1976_v14 = vpack.c.bf16 %v1904_v37, %v1902_v46  ;;  %v1778_v39 = vadd.f32 1.0, %v5298_v55  ;;  %v1780_v0 = vadd.f32 1.0, %v5306_v56 }
 0x3dc   :  { %v3818_v36 = vpop.eup %3817  ;;  %v1665_v45 = vmul.f32 0.7978846, %v1601_v62  ;;  %v1845_v17 = vmul.f32 0.5, %v1781_v5  ;;  %v1907_v18 = vmul.f32 %v1843_v27, %v5209_v21  ;;  %v1783_v61 = vadd.f32 1.0, %v3808_v3 }
 0x3dd   :  { %v3820_v30 = vpop.eup %3819  ;;  %2235 = vmatmul.mubr.bf16.gmra.mrb[60].mxu0 %v1976_v14  ;;  %v1842_v34 = vmul.f32 0.5, %v1778_v39  ;;  %v1844_v4 = vmul.f32 0.5, %v1780_v0  ;;  %v1785_v49 = vadd.f32 1.0, %v3812_v52  ;;  %v1782_v58 = vadd.f32 1.0, %v3806_v40 }
 0x3de   :  { %3827 = vtanh.f32 %v1665_v45  ;;  %v1909_v13 = vmul.f32 %v1845_v17, %v5221_v63  ;;  %v1847_v12 = vmul.f32 0.5, %v1783_v61  ;;  %v1784_v24 = vadd.f32 1.0, %v3810_v19 }
 0x3df   :  { %v1906_v55 = vmul.f32 %v1842_v34, %v5205_v35  ;;  %v1908_v56 = vmul.f32 %v1844_v4, %v5215_v44  ;;  %v1849_v2 = vmul.f32 0.5, %v1785_v49  ;;  %v1846_v33 = vmul.f32 0.5, %v1782_v58 }
 0x3e0   :  { %v1979_v59 = vpack.c.bf16 %v1909_v13, %v1907_v18  ;;  %v1911_v21 = vmul.f32 %v1847_v12, %v5239_v10  ;;  %v1848_v3 = vmul.f32 0.5, %v1784_v24  ;;  %v1787_v50 = vadd.f32 1.0, %v3816_v47 }
 0x3e1   :  { %v1978_v6 = vpack.c.bf16 %v1908_v56, %v1906_v55  ;;  %v1913_v52 = vmul.f32 %v1849_v2, %v5253_v25  ;;  %v1910_v40 = vmul.f32 %v1846_v33, %v5235_v23  ;;  %v1789_v7 = vadd.f32 1.0, %v3820_v30 }
 0x3e2   :  { %2242 = vmatprep.mubr.bf16.mxu0 %v1979_v59  ;;  %v1912_v63 = vmul.f32 %v1848_v3, %v5247_v28  ;;  %v1851_v19 = vmul.f32 0.5, %v1787_v50  ;;  %v1786_v35 = vadd.f32 1.0, %v3814_v31  ;;  %v1788_v60 = vadd.f32 1.0, %v3818_v36 }
 0x3e3   :  { %v3822_v44 = vpop.eup %3821  ;;  %v1981_v48 = vpack.c.bf16 %v1913_v52, %v1911_v21  ;;  %v1853_v38 = vmul.f32 0.5, %v1789_v7 }
 0x3e4   :  { %v3824_v46 = vpop.eup %3823  ;;  %v1980_v26 = vpack.c.bf16 %v1912_v63, %v1910_v40  ;;  %v1850_v10 = vmul.f32 0.5, %v1786_v35  ;;  %v1852_v29 = vmul.f32 0.5, %v1788_v60  ;;  %v1915_v25 = vmul.f32 %v1851_v19, %v5277_v1 }
 0x3e5   :  { %v3826_v15 = vpop.eup %3825  ;;  %2243 = vmatmul.mubr.bf16.gmra.mrb[64].mxu0 %v1978_v6  ;;  %v1917_v23 = vmul.f32 %v1853_v38, %v5290_v8  ;;  %v1791_v37 = vadd.f32 1.0, %v3824_v46  ;;  %v1790_v62 = vadd.f32 1.0, %v3822_v44 }
 0x3e6   :  { %2250 = vmatprep.mubr.bf16.mxu0 %v1981_v48  ;;  %v1914_v28 = vmul.f32 %v1850_v10, %v5271_v9  ;;  %v1916_v31 = vmul.f32 %v1852_v29, %v5284_v16  ;;  %v1792_v5 = vadd.f32 1.0, %v3826_v15  ;;  %v5916_v10 = vld [vmem:[#allocation4_spill] sm:$0xff] }
 0x3e7   :  { %v1983_v27 = vpack.c.bf16 %v1917_v23, %v1915_v25  ;;  %v1854_v47 = vmul.f32 0.5, %v1790_v62  ;;  %v1855_v45 = vmul.f32 0.5, %v1791_v37 }
 0x3e8   :  { %v3828_v14 = vpop.eup %3827  ;;  %v1982_v39 = vpack.c.bf16 %v1916_v31, %v1914_v28  ;;  %v1856_v0 = vmul.f32 0.5, %v1792_v5  ;;  %v5917_v31 = vld [vmem:[#allocation5_spill] sm:$0xff] }
 0x3e9   :  { %v1793_v36 = vadd.f32 1.0, %v3828_v14  ;;  %v1918_v17 = vmul.f32 %v1854_v47, %v5315_v54  ;;  %v1919_v61 = vmul.f32 %v1855_v45, %v5320_v42  ;;  %v5376_v54 = vld [vmem:[%s5861_s9] ss:$0 sm:$0xff] }
 0x3ea   :  { %v1920_v1 = vmul.f32 %v1856_v0, %v5326_v22 }
 0x3eb   :  { %v1857_v8 = vmul.f32 0.5, %v1793_v36 }
 0x3ec   :  { %v1984_v18 = vpack.c.bf16 %v1920_v1, %v1918_v17 }
 0x3ed   :  { %2251 = vmatmul.mubr.bf16.gmra.mrb[68].mxu0 %v1980_v26  ;;  %v1921_v9 = vmul.f32 %v1857_v8, %v5335_v53  ;;  %v5919_v8 = vld [vmem:[#allocation7_spill] sm:$0xff] }
 0x3ee   :  { %2258 = vmatprep.mubr.bf16.mxu0 %v1983_v27  ;;  %v5918_v27 = vld [vmem:[#allocation6_spill] sm:$0xff] }
 0x3ef   :  { %v1985_v16 = vpack.c.bf16 %v1921_v9, %v1919_v61  ;;  %v5920_v9 = vld [vmem:[#allocation8_spill] sm:$0xff] }
 0x3f5   :  { %2259 = vmatmul.mubr.bf16.gmra.mrb[72].mxu0 %v1982_v39 }
 0x3f6   :  { %2266 = vmatprep.mubr.bf16.mxu0 %v1985_v16 }
 0x3fd   :  { %2267 = vmatmul.mubr.bf16.gmra.mrb[76].mxu0 %v1984_v18 }
 0x40e   :  { %v3412_v30 = vpop.f32.mrb[16].mxu0 }
 0x40f   :  { %v3413_v34 = vpop.f32.mrb[17].mxu0 }
 0x410   :  { %v3414_v4 = vadd.f32 %v3413_v34, %v3412_v30  ;;  %v3415_v49 = vpop.f32.mrb[18].mxu0 }
 0x411   :  { %v3416_v58 = vpop.f32.mrb[19].mxu0 }
 0x412   :  { %v2406_v22 = vadd.f32 %v3414_v4, %v4447_v43  ;;  %v3417_v42 = vadd.f32 %v3416_v58, %v3415_v49 }
 0x414   :  { %v2407_v53 = vadd.f32 %v3417_v42, %v4450_v11  ;;  %v5381_v13 = vadd.f32 %v5376_v54, %v2406_v22 }
 0x416   :  { %2479 = vadd.xlane.f32.xlu0 %v5381_v13  ;;  %v5385_v12 = vadd.f32 %v5376_v54, %v2407_v53  ;;  %v5921_v53 = vld [vmem:[#allocation9_spill] sm:$0xff] }
 0x418   :  { %2481 = vadd.xlane.f32.xlu1 %v5385_v12 }
 0x419   :  { %v3418_v24 = vpop.f32.mrb[20].mxu0 }
 0x41a   :  { %v3419_v55 = vpop.f32.mrb[21].mxu0 }
 0x41b   :  { %v3420_v56 = vadd.f32 %v3419_v55, %v3418_v24  ;;  %v3421_v2 = vpop.f32.mrb[22].mxu0 }
 0x41c   :  { %v3422_v33 = vpop.f32.mrb[23].mxu0 }
 0x41d   :  { %v2408_v43 = vadd.f32 %v3420_v56, %v4470_v32  ;;  %v3423_v59 = vadd.f32 %v3422_v33, %v3421_v2  ;;  %v5922_v56 = vld [vmem:[#allocation10_spill] sm:$0xff] }
 0x41f   :  { %v2409_v11 = vadd.f32 %v3423_v59, %v4473_v41  ;;  %v5391_v21 = vadd.f32 %v5376_v54, %v2408_v43 }
 0x421   :  { %2483 = vadd.xlane.f32.xlu0 %v5391_v21  ;;  %v5395_v3 = vadd.f32 %v5376_v54, %v2409_v11 }
 0x423   :  { %v3424_v50 = vpop.f32.mrb[24].mxu0  ;;  %2485 = vadd.xlane.f32.xlu1 %v5395_v3 }
 0x424   :  { %v3425_v6 = vpop.f32.mrb[25].mxu0 }
 0x425   :  { %v3426_v52 = vadd.f32 %v3425_v6, %v3424_v50  ;;  %v3427_v40 = vpop.f32.mrb[26].mxu0 }
 0x426   :  { %v3428_v7 = vpop.f32.mrb[27].mxu0 }
 0x427   :  { %v2410_v32 = vadd.f32 %v3426_v52, %v4493_v20  ;;  %v3429_v63 = vadd.f32 %v3428_v7, %v3427_v40  ;;  %v5923_v40 = vld [vmem:[#allocation12_spill] sm:$0xff] }
 0x429   :  { %v2411_v41 = vadd.f32 %v3429_v63, %v4496_v57  ;;  %v5401_v19 = vadd.f32 %v5376_v54, %v2410_v32  ;;  %v5924_v63 = vld [vmem:[#allocation11_spill] sm:$0xff] }
 0x42b   :  { %2487 = vadd.xlane.f32.xlu0 %v5401_v19  ;;  %v5405_v35 = vadd.f32 %v5376_v54, %v2411_v41 }
 0x42d   :  { %2489 = vadd.xlane.f32.xlu1 %v5405_v35 }
 0x42e   :  { %v3430_v60 = vpop.f32.mrb[28].mxu0 }
 0x42f   :  { %v3431_v44 = vpop.f32.mrb[29].mxu0 }
 0x430   :  { %v3432_v48 = vadd.f32 %v3431_v44, %v3430_v60  ;;  %v3433_v38 = vpop.f32.mrb[30].mxu0 }
 0x431   :  { %v3434_v46 = vpop.f32.mrb[31].mxu0 }
 0x432   :  { %v2412_v20 = vadd.f32 %v3432_v48, %v4516_v51  ;;  %v3435_v26 = vadd.f32 %v3434_v46, %v3433_v38 }
 0x434   :  { %v2413_v57 = vadd.f32 %v3435_v26, %v5916_v10  ;;  %v5411_v29 = vadd.f32 %v5376_v54, %v2412_v20  ;;  %v5925_v10 = vld [vmem:[#allocation14_spill] sm:$0xff] }
 0x436   :  { %2491 = vadd.xlane.f32.xlu0 %v5411_v29  ;;  %v5415_v15 = vadd.f32 %v5376_v54, %v2413_v57 }
 0x438   :  { %v3436_v25 = vpop.f32.mrb[32].mxu0  ;;  %2493 = vadd.xlane.f32.xlu1 %v5415_v15 }
 0x439   :  { %v3437_v23 = vpop.f32.mrb[33].mxu0 }
 0x43a   :  { %v3438_v37 = vadd.f32 %v3437_v23, %v3436_v25  ;;  %v3439_v62 = vpop.f32.mrb[34].mxu0  ;;  %v5926_v23 = vld [vmem:[#allocation13_spill] sm:$0xff] }
 0x43b   :  { %v3440_v28 = vpop.f32.mrb[35].mxu0 }
 0x43c   :  { %v2414_v51 = vadd.f32 %v3438_v37, %v5917_v31  ;;  %v3441_v5 = vadd.f32 %v3440_v28, %v3439_v62 }
 0x43e   :  { %v2415_v47 = vadd.f32 %v3441_v5, %v5918_v27  ;;  %v5421_v14 = vadd.f32 %v5376_v54, %v2414_v51 }
 0x440   :  { %2495 = vadd.xlane.f32.xlu0 %v5421_v14  ;;  %v5425_v39 = vadd.f32 %v5376_v54, %v2415_v47 }
 0x442   :  { %2497 = vadd.xlane.f32.xlu1 %v5425_v39  ;;  %v3442_v0 = vpop.f32.mrb[36].mxu0 }
 0x443   :  { %v3443_v36 = vpop.f32.mrb[37].mxu0 }
 0x444   :  { %v3444_v45 = vadd.f32 %v3443_v36, %v3442_v0  ;;  %v3445_v17 = vpop.f32.mrb[38].mxu0  ;;  %v5927_v0 = vld [vmem:[#allocation16_spill] sm:$0xff] }
 0x445   :  { %v3446_v1 = vpop.f32.mrb[39].mxu0 }
 0x446   :  { %v2416_v18 = vadd.f32 %v3444_v45, %v5919_v8  ;;  %v3447_v61 = vadd.f32 %v3446_v1, %v3445_v17  ;;  %v5928_v17 = vld [vmem:[#allocation15_spill] sm:$0xff] }
 0x448   :  { %v2417_v16 = vadd.f32 %v3447_v61, %v5920_v9  ;;  %v5431_v30 = vadd.f32 %v5376_v54, %v2416_v18 }
 0x44a   :  { %2499 = vadd.xlane.f32.xlu0 %v5431_v30  ;;  %v3448_v34 = vpop.f32.mrb[40].mxu0  ;;  %v5435_v4 = vadd.f32 %v5376_v54, %v2417_v16 }
 0x44b   :  { %v3449_v49 = vpop.f32.mrb[41].mxu0 }
 0x44c   :  { %v3450_v58 = vadd.f32 %v3449_v49, %v3448_v34  ;;  %2501 = vadd.xlane.f32.xlu1 %v5435_v4  ;;  %v3451_v22 = vpop.f32.mrb[42].mxu0 }
 0x44d   :  { %v3452_v42 = vpop.f32.mrb[43].mxu0 }
 0x44e   :  { %v2418_v24 = vadd.f32 %v3450_v58, %v5921_v53  ;;  %v3453_v55 = vadd.f32 %v3452_v42, %v3451_v22  ;;  %v5929_v58 = vld [vmem:[#allocation17_spill] sm:$0xff]  ;;  %v5930_v53 = vld [vmem:[#allocation18_spill] sm:$0xff] }
 0x450   :  { %v2419_v2 = vadd.f32 %v3453_v55, %v5922_v56  ;;  %v5441_v33 = vadd.f32 %v5376_v54, %v2418_v24 }
 0x452   :  { %2503 = vadd.xlane.f32.xlu0 %v5441_v33  ;;  %v3454_v43 = vpop.f32.mrb[44].mxu0  ;;  %v5445_v59 = vadd.f32 %v5376_v54, %v2419_v2 }
 0x453   :  { %v3455_v11 = vpop.f32.mrb[45].mxu0 }
 0x454   :  { %v3456_v50 = vadd.f32 %v3455_v11, %v3454_v43  ;;  %2505 = vadd.xlane.f32.xlu1 %v5445_v59  ;;  %v3457_v6 = vpop.f32.mrb[46].mxu0 }
 0x455   :  { %v3458_v52 = vpop.f32.mrb[47].mxu0 }
 0x456   :  { %v2420_v7 = vadd.f32 %v3456_v50, %v5923_v40  ;;  %v3459_v32 = vadd.f32 %v3458_v52, %v3457_v6  ;;  %v5931_v52 = vld [vmem:[#allocation19_spill] sm:$0xff] }
 0x458   :  { %v2421_v41 = vadd.f32 %v3459_v32, %v5924_v63  ;;  %v5451_v60 = vadd.f32 %v5376_v54, %v2420_v7  ;;  %v5932_v32 = vld [vmem:[#allocation20_spill] sm:$0xff] }
 0x45a   :  { %2507 = vadd.xlane.f32.xlu0 %v5451_v60  ;;  %v3460_v44 = vpop.f32.mrb[48].mxu0  ;;  %v5455_v48 = vadd.f32 %v5376_v54, %v2421_v41 }
 0x45b   :  { %v3461_v38 = vpop.f32.mrb[49].mxu0 }
 0x45c   :  { %v3462_v46 = vadd.f32 %v3461_v38, %v3460_v44  ;;  %2509 = vadd.xlane.f32.xlu1 %v5455_v48  ;;  %v3463_v20 = vpop.f32.mrb[50].mxu0 }
 0x45d   :  { %v3464_v26 = vpop.f32.mrb[51].mxu0 }
 0x45e   :  { %v2422_v57 = vadd.f32 %v3462_v46, %v5925_v10  ;;  %v3465_v25 = vadd.f32 %v3464_v26, %v3463_v20 }
 0x460   :  { %v2423_v37 = vadd.f32 %v3465_v25, %v5926_v23  ;;  %v5461_v62 = vadd.f32 %v5376_v54, %v2422_v57  ;;  %v5933_v57 = vld [vmem:[#allocation21_spill] sm:$0xff] }
 0x462   :  { %2511 = vadd.xlane.f32.xlu0 %v5461_v62  ;;  %v3466_v28 = vpop.f32.mrb[52].mxu0  ;;  %v5465_v31 = vadd.f32 %v5376_v54, %v2423_v37  ;;  %v5934_v37 = vld [vmem:[#allocation22_spill] sm:$0xff] }
 0x463   :  { %v3467_v51 = vpop.f32.mrb[53].mxu0 }
 0x464   :  { %v3468_v5 = vadd.f32 %v3467_v51, %v3466_v28  ;;  %2513 = vadd.xlane.f32.xlu1 %v5465_v31  ;;  %v3469_v27 = vpop.f32.mrb[54].mxu0 }
 0x465   :  { %v3470_v47 = vpop.f32.mrb[55].mxu0 }
 0x466   :  { %v2424_v36 = vadd.f32 %v3468_v5, %v5927_v0  ;;  %v3471_v45 = vadd.f32 %v3470_v47, %v3469_v27 }
 0x468   :  { %v2425_v1 = vadd.f32 %v3471_v45, %v5928_v17  ;;  %v5471_v8 = vadd.f32 %v5376_v54, %v2424_v36  ;;  %v5935_v17 = vld [vmem:[#allocation23_spill] sm:$0xff] }
 0x46a   :  { %2515 = vadd.xlane.f32.xlu0 %v5471_v8  ;;  %v5475_v18 = vadd.f32 %v5376_v54, %v2425_v1 }
 0x46c   :  { %2517 = vadd.xlane.f32.xlu1 %v5475_v18 }
 0x4a5   :  { %v3472_v61 = vpop.f32.mrb[56].mxu0 }
 0x4a6   :  { %v3473_v9 = vpop.f32.mrb[57].mxu0 }
 0x4a7   :  { %v3474_v16 = vadd.f32 %v3473_v9, %v3472_v61  ;;  %v3475_v34 = vpop.f32.mrb[58].mxu0  ;;  %v5936_v9 = vld [vmem:[#allocation24_spill] sm:$0xff] }
 0x4a8   :  { %v3476_v49 = vpop.f32.mrb[59].mxu0 }
 0x4a9   :  { %v2426_v22 = vadd.f32 %v3474_v16, %v5929_v58  ;;  %v3477_v42 = vadd.f32 %v3476_v49, %v3475_v34 }
 0x4ab   :  { %v2427_v24 = vadd.f32 %v3477_v42, %v5930_v53  ;;  %v5481_v55 = vadd.f32 %v5376_v54, %v2426_v22 }
 0x4ad   :  { %2519 = vadd.xlane.f32.xlu0 %v5481_v55  ;;  %v5485_v56 = vadd.f32 %v5376_v54, %v2427_v24 }
 0x4af   :  { %2521 = vadd.xlane.f32.xlu1 %v5485_v56 }
 0x4b0   :  { %v3478_v2 = vpop.f32.mrb[60].mxu0 }
 0x4b1   :  { %v3479_v43 = vpop.f32.mrb[61].mxu0 }
 0x4b2   :  { %v3480_v11 = vadd.f32 %v3479_v43, %v3478_v2  ;;  %v3481_v50 = vpop.f32.mrb[62].mxu0  ;;  %v5937_v2 = vld [vmem:[#allocation25_spill] sm:$0xff] }
 0x4b3   :  { %v3482_v6 = vpop.f32.mrb[63].mxu0 }
 0x4b4   :  { %v2428_v40 = vadd.f32 %v3480_v11, %v5931_v52  ;;  %v3483_v7 = vadd.f32 %v3482_v6, %v3481_v50  ;;  %v5938_v50 = vld [vmem:[#allocation26_spill] sm:$0xff] }
 0x4b6   :  { %v2429_v63 = vadd.f32 %v3483_v7, %v5932_v32  ;;  %v5491_v41 = vadd.f32 %v5376_v54, %v2428_v40  ;;  %v2480_v40 = vpop.xlane.xlu0 %2479 }
 0x4b8   :  { %2523 = vadd.xlane.f32.xlu0 %v5491_v41  ;;  %v3484_v44 = vpop.f32.mrb[64].mxu0  ;;  %v5495_v38 = vadd.f32 %v5376_v54, %v2429_v63  ;;  %v2482_v63 = vpop.xlane.xlu1 %2481 }
 0x4b9   :  { %v3485_v46 = vpop.f32.mrb[65].mxu0 }
 0x4ba   :  { %v3486_v20 = vadd.f32 %v3485_v46, %v3484_v44  ;;  %2525 = vadd.xlane.f32.xlu1 %v5495_v38  ;;  %v3487_v26 = vpop.f32.mrb[66].mxu0  ;;  %v2544_v46 = vmul.f32 0.0078125, %v2480_v40 }
 0x4bb   :  { %v3488_v10 = vpop.f32.mrb[67].mxu0 }
 0x4bc   :  { %v2430_v25 = vadd.f32 %v3486_v20, %v5933_v57  ;;  %v3489_v23 = vadd.f32 %v3488_v10, %v3487_v26  ;;  %v2484_v10 = vpop.xlane.xlu0 %2483 }
 0x4be   :  { %v2431_v28 = vadd.f32 %v3489_v23, %v5934_v37  ;;  %v5501_v51 = vadd.f32 %v5376_v54, %v2430_v25  ;;  %v2545_v25 = vmul.f32 0.0078125, %v2482_v63  ;;  %v5939_v23 = vld [vmem:[#allocation27_spill] sm:$0xff] }
 0x4c0   :  { %2527 = vadd.xlane.f32.xlu0 %v5501_v51  ;;  %v3490_v5 = vpop.f32.mrb[68].mxu0  ;;  %v5505_v27 = vadd.f32 %v5376_v54, %v2431_v28 }
 0x4c1   :  { %v3491_v47 = vpop.f32.mrb[69].mxu0 }
 0x4c2   :  { %v3492_v0 = vadd.f32 %v3491_v47, %v3490_v5  ;;  %2529 = vadd.xlane.f32.xlu1 %v5505_v27  ;;  %v3493_v36 = vpop.f32.mrb[70].mxu0  ;;  %v2486_v5 = vpop.xlane.xlu1 %2485  ;;  %v5530_v47 = vsub.f32 %v5381_v13, %v2544_v46 }
 0x4c3   :  { %v3494_v45 = vpop.f32.mrb[71].mxu0 }
 0x4c4   :  { %v2432_v1 = vadd.f32 %v3492_v0, %v5935_v17  ;;  %v3495_v61 = vadd.f32 %v3494_v45, %v3493_v36  ;;  %v2546_v0 = vmul.f32 0.0078125, %v2484_v10  ;;  %v5940_v36 = vld [vmem:[#allocation28_spill] sm:$0xff] }
 0x4c6   :  { %v2433_v16 = vadd.f32 %v3495_v61, %v5936_v9  ;;  %v5511_v34 = vadd.f32 %v5376_v54, %v2432_v1  ;;  %v2488_v1 = vpop.xlane.xlu0 %2487  ;;  %v5537_v61 = vsub.f32 %v5385_v12, %v2545_v25  ;;  %v2547_v9 = vmul.f32 0.0078125, %v2486_v5 }
 0x4c7   :  { %v5544_v13 = vsub.f32 %v5391_v21, %v2546_v0 }
 0x4c8   :  { %2531 = vadd.xlane.f32.xlu0 %v5511_v34  ;;  %v3496_v49 = vpop.f32.mrb[72].mxu0  ;;  %v5515_v58 = vadd.f32 %v5376_v54, %v2433_v16  ;;  %v5550_v12 = vsub.f32 %v5395_v3, %v2547_v9 }
 0x4c9   :  { %v3497_v22 = vpop.f32.mrb[73].mxu0 }
 0x4ca   :  { %v3498_v42 = vadd.f32 %v3497_v22, %v3496_v49  ;;  %2533 = vadd.xlane.f32.xlu1 %v5515_v58  ;;  %v3499_v53 = vpop.f32.mrb[74].mxu0  ;;  %v2490_v49 = vpop.xlane.xlu1 %2489  ;;  %v2548_v22 = vmul.f32 0.0078125, %v2488_v1  ;;  %v2611_v40 = vmul.f32 %v5550_v12, %v5550_v12 }
 0x4cb   :  { %v3500_v24 = vpop.f32.mrb[75].mxu0 }
 0x4cc   :  { %v2434_v43 = vadd.f32 %v3498_v42, %v5937_v2  ;;  %v3501_v11 = vadd.f32 %v3500_v24, %v3499_v53  ;;  %v2608_v42 = vmul.f32 %v5530_v47, %v5530_v47  ;;  %v2492_v53 = vpop.xlane.xlu0 %2491  ;;  %v2549_v24 = vmul.f32 0.0078125, %v2490_v49 }
 0x4cd   :  { %v2550_v21 = vmul.f32 0.0078125, %v2492_v53 }
 0x4ce   :  { %v2435_v6 = vadd.f32 %v3501_v11, %v5938_v50  ;;  %v5521_v52 = vadd.f32 %v5376_v54, %v2434_v43  ;;  %v2494_v2 = vpop.xlane.xlu1 %2493  ;;  %v5555_v43 = vsub.f32 %v5401_v19, %v2548_v22  ;;  %v2610_v11 = vmul.f32 %v5544_v13, %v5544_v13 }
 0x4cf   :  { %v2551_v3 = vmul.f32 0.0078125, %v2494_v2  ;;  %v5565_v63 = vsub.f32 %v5411_v29, %v2550_v21 }
 0x4d0   :  { %2535 = vadd.xlane.f32.xlu0 %v5521_v52  ;;  %v3502_v7 = vpop.f32.mrb[76].mxu0  ;;  %v5525_v32 = vadd.f32 %v5376_v54, %v2435_v6  ;;  %v2496_v50 = vpop.xlane.xlu0 %2495  ;;  %v5560_v6 = vsub.f32 %v5405_v35, %v2549_v24 }
 0x4d1   :  { %v3503_v44 = vpop.f32.mrb[77].mxu0  ;;  %v2552_v19 = vmul.f32 0.0078125, %v2496_v50  ;;  %v2614_v25 = vmul.f32 %v5565_v63, %v5565_v63 }
 0x4d2   :  { %v3504_v20 = vadd.f32 %v3503_v44, %v3502_v7  ;;  %2537 = vadd.xlane.f32.xlu1 %v5525_v32  ;;  %v3505_v26 = vpop.f32.mrb[78].mxu0  ;;  %v2498_v7 = vpop.xlane.xlu1 %2497  ;;  %v2612_v44 = vmul.f32 %v5555_v43, %v5555_v43 }
 0x4d3   :  { %v3506_v57 = vpop.f32.mrb[79].mxu0  ;;  %v2553_v35 = vmul.f32 0.0078125, %v2498_v7 }
 0x4d4   :  { %v2436_v37 = vadd.f32 %v3504_v20, %v5939_v23  ;;  %v3507_v28 = vadd.f32 %v3506_v57, %v3505_v26  ;;  %v5570_v20 = vsub.f32 %v5415_v15, %v2551_v3  ;;  %v2613_v26 = vmul.f32 %v5560_v6, %v5560_v6 }
 0x4d5   :  { %v5575_v57 = vsub.f32 %v5421_v14, %v2552_v19 }
 0x4d6   :  { %v2437_v45 = vadd.f32 %v3507_v28, %v5940_v36  ;;  %v5534_v17 = vadd.f32 %v5376_v54, %v2436_v37  ;;  %v5580_v37 = vsub.f32 %v5425_v39, %v2553_v35  ;;  %v2615_v28 = vmul.f32 %v5570_v20, %v5570_v20 }
 0x4d7   :  { %v2500_v46 = vpop.xlane.xlu0 %2499  ;;  %v2616_v36 = vmul.f32 %v5575_v57, %v5575_v57 }
 0x4d8   :  { %2539 = vadd.xlane.f32.xlu0 %v5534_v17  ;;  %v5541_v16 = vadd.f32 %v5376_v54, %v2437_v45  ;;  %v2609_v54 = vmul.f32 %v5537_v61, %v5537_v61  ;;  %v2554_v29 = vmul.f32 0.0078125, %v2500_v46  ;;  %v2617_v9 = vmul.f32 %v5580_v37, %v5580_v37 }
 0x4d9   :  { %v2502_v10 = vpop.xlane.xlu1 %2501 }
 0x4da   :  { %2541 = vadd.xlane.f32.xlu1 %v5541_v16  ;;  %v2555_v15 = vmul.f32 0.0078125, %v2502_v10  ;;  %v5585_v0 = vsub.f32 %v5431_v30, %v2554_v29 }
 0x4dc   :  { %2640 = vadd.xlane.f32.xlu0 %v2608_v42  ;;  %v5590_v1 = vsub.f32 %v5435_v4, %v2555_v15  ;;  %v2618_v42 = vmul.f32 %v5585_v0, %v5585_v0 }
 0x4de   :  { %2642 = vadd.xlane.f32.xlu1 %v2609_v54  ;;  %v2619_v54 = vmul.f32 %v5590_v1, %v5590_v1 }
 0x4df   :  { %v2504_v23 = vpop.xlane.xlu0 %2503 }
 0x4e0   :  { %2644 = vadd.xlane.f32.xlu0 %v2610_v11  ;;  %v2556_v14 = vmul.f32 0.0078125, %v2504_v23 }
 0x4e1   :  { %v2506_v5 = vpop.xlane.xlu1 %2505 }
 0x4e2   :  { %2646 = vadd.xlane.f32.xlu1 %v2611_v40  ;;  %v2557_v39 = vmul.f32 0.0078125, %v2506_v5  ;;  %v5595_v22 = vsub.f32 %v5441_v33, %v2556_v14 }
 0x4e4   :  { %2648 = vadd.xlane.f32.xlu0 %v2612_v44  ;;  %v5600_v24 = vsub.f32 %v5445_v59, %v2557_v39  ;;  %v2620_v11 = vmul.f32 %v5595_v22, %v5595_v22 }
 0x4e6   :  { %2650 = vadd.xlane.f32.xlu1 %v2613_v26  ;;  %v2621_v59 = vmul.f32 %v5600_v24, %v5600_v24 }
 0x4e7   :  { %v2508_v45 = vpop.xlane.xlu0 %2507 }
 0x4e8   :  { %2652 = vadd.xlane.f32.xlu0 %v2614_v25  ;;  %v2558_v30 = vmul.f32 0.0078125, %v2508_v45 }
 0x4e9   :  { %v2510_v49 = vpop.xlane.xlu1 %2509 }
 0x4ea   :  { %2654 = vadd.xlane.f32.xlu1 %v2615_v28  ;;  %v2559_v4 = vmul.f32 0.0078125, %v2510_v49  ;;  %v5605_v21 = vsub.f32 %v5451_v60, %v2558_v30 }
 0x4ec   :  { %2656 = vadd.xlane.f32.xlu0 %v2616_v36  ;;  %v5610_v50 = vsub.f32 %v5455_v48, %v2559_v4  ;;  %v2622_v60 = vmul.f32 %v5605_v21, %v5605_v21 }
 0x4ee   :  { %2658 = vadd.xlane.f32.xlu1 %v2617_v9  ;;  %v2623_v48 = vmul.f32 %v5610_v50, %v5610_v50 }
 0x4ef   :  { %v2512_v53 = vpop.xlane.xlu0 %2511 }
 0x4f0   :  { %2660 = vadd.xlane.f32.xlu0 %v2618_v42  ;;  %v2560_v33 = vmul.f32 0.0078125, %v2512_v53 }
 0x4f1   :  { %v2514_v2 = vpop.xlane.xlu1 %2513 }
 0x4f2   :  { %2662 = vadd.xlane.f32.xlu1 %v2619_v54  ;;  %v2561_v3 = vmul.f32 0.0078125, %v2514_v2  ;;  %v5615_v40 = vsub.f32 %v5461_v62, %v2560_v33 }
 0x4f4   :  { %2664 = vadd.xlane.f32.xlu0 %v2620_v11  ;;  %v5620_v19 = vsub.f32 %v5465_v31, %v2561_v3  ;;  %v2624_v62 = vmul.f32 %v5615_v40, %v5615_v40 }
 0x4f6   :  { %2666 = vadd.xlane.f32.xlu1 %v2621_v59  ;;  %v2625_v31 = vmul.f32 %v5620_v19, %v5620_v19 }
 0x4f7   :  { %v2516_v7 = vpop.xlane.xlu0 %2515 }
 0x4f8   :  { %v2562_v44 = vmul.f32 0.0078125, %v2516_v7  ;;  %2668 = vadd.xlane.f32.xlu0 %v2622_v60 }
 0x4f9   :  { %v2518_v46 = vpop.xlane.xlu1 %2517 }
 0x4fa   :  { %v5625_v35 = vsub.f32 %v5471_v8, %v2562_v44  ;;  %v2563_v26 = vmul.f32 0.0078125, %v2518_v46  ;;  %2670 = vadd.xlane.f32.xlu1 %v2623_v48 }
 0x4fc   :  { %v5630_v10 = vsub.f32 %v5475_v18, %v2563_v26  ;;  %2672 = vadd.xlane.f32.xlu0 %v2624_v62  ;;  %v2626_v29 = vmul.f32 %v5625_v35, %v5625_v35 }
 0x4fe   :  { %2674 = vadd.xlane.f32.xlu1 %v2625_v31  ;;  %v2627_v8 = vmul.f32 %v5630_v10, %v5630_v10 }
 0x500   :  { %2676 = vadd.xlane.f32.xlu0 %v2626_v29 }
 0x502   :  { %2678 = vadd.xlane.f32.xlu1 %v2627_v8 }
 0x53a   :  { %v2520_v25 = vpop.xlane.xlu0 %2519 }
 0x53b   :  { %v2564_v23 = vmul.f32 0.0078125, %v2520_v25 }
 0x53c   :  { %v2522_v15 = vpop.xlane.xlu1 %2521 }
 0x53d   :  { %v5639_v28 = vsub.f32 %v5481_v55, %v2564_v23  ;;  %v2565_v18 = vmul.f32 0.0078125, %v2522_v15 }
 0x53f   :  { %v5642_v5 = vsub.f32 %v5485_v56, %v2565_v18  ;;  %v2628_v14 = vmul.f32 %v5639_v28, %v5639_v28 }
 0x541   :  { %2680 = vadd.xlane.f32.xlu0 %v2628_v14  ;;  %v2629_v36 = vmul.f32 %v5642_v5, %v5642_v5 }
 0x543   :  { %2682 = vadd.xlane.f32.xlu1 %v2629_v36 }
 0x545   :  { %v2524_v45 = vpop.xlane.xlu0 %2523 }
 0x546   :  { %v2566_v39 = vmul.f32 0.0078125, %v2524_v45 }
 0x547   :  { %v2526_v9 = vpop.xlane.xlu1 %2525 }
 0x548   :  { %v5649_v49 = vsub.f32 %v5491_v41, %v2566_v39  ;;  %v2567_v55 = vmul.f32 0.0078125, %v2526_v9 }
 0x54a   :  { %v5652_v30 = vsub.f32 %v5495_v38, %v2567_v55  ;;  %v2630_v56 = vmul.f32 %v5649_v49, %v5649_v49 }
 0x54c   :  { %2684 = vadd.xlane.f32.xlu0 %v2630_v56  ;;  %v2631_v42 = vmul.f32 %v5652_v30, %v5652_v30 }
 0x54d   :  { %v2528_v53 = vpop.xlane.xlu0 %2527 }
 0x54e   :  { %v2568_v4 = vmul.f32 0.0078125, %v2528_v53  ;;  %2686 = vadd.xlane.f32.xlu1 %v2631_v42 }
 0x54f   :  { %v2530_v54 = vpop.xlane.xlu1 %2529 }
 0x550   :  { %v5659_v2 = vsub.f32 %v5501_v51, %v2568_v4  ;;  %v2569_v41 = vmul.f32 0.0078125, %v2530_v54 }
 0x552   :  { %v5662_v33 = vsub.f32 %v5505_v27, %v2569_v41  ;;  %v2632_v38 = vmul.f32 %v5659_v2, %v5659_v2 }
 0x554   :  { %2688 = vadd.xlane.f32.xlu0 %v2632_v38  ;;  %v2633_v11 = vmul.f32 %v5662_v33, %v5662_v33 }
 0x555   :  { %v2532_v3 = vpop.xlane.xlu0 %2531 }
 0x556   :  { %v2570_v59 = vmul.f32 0.0078125, %v2532_v3  ;;  %2690 = vadd.xlane.f32.xlu1 %v2633_v11 }
 0x557   :  { %v2534_v60 = vpop.xlane.xlu1 %2533 }
 0x558   :  { %v5669_v7 = vsub.f32 %v5511_v34, %v2570_v59  ;;  %v2571_v51 = vmul.f32 0.0078125, %v2534_v60 }
 0x55a   :  { %v5672_v44 = vsub.f32 %v5515_v58, %v2571_v51  ;;  %v2634_v27 = vmul.f32 %v5669_v7, %v5669_v7 }
 0x55c   :  { %2692 = vadd.xlane.f32.xlu0 %v2634_v27  ;;  %v2635_v48 = vmul.f32 %v5672_v44, %v5672_v44 }
 0x55d   :  { %v2536_v46 = vpop.xlane.xlu0 %2535 }
 0x55e   :  { %v2572_v26 = vmul.f32 0.0078125, %v2536_v46  ;;  %2694 = vadd.xlane.f32.xlu1 %v2635_v48 }
 0x55f   :  { %v2538_v62 = vpop.xlane.xlu1 %2537 }
 0x560   :  { %v5679_v31 = vsub.f32 %v5521_v52, %v2572_v26  ;;  %v2573_v34 = vmul.f32 0.0078125, %v2538_v62  ;;  %v5701_v62 = vld [vmem:[%s5862_s10] ss:$0 sm:$0xff] }
 0x562   :  { %v5682_v29 = vsub.f32 %v5525_v32, %v2573_v34  ;;  %v2636_v58 = vmul.f32 %v5679_v31, %v5679_v31 }
 0x564   :  { %2696 = vadd.xlane.f32.xlu0 %v2636_v58  ;;  %v2637_v8 = vmul.f32 %v5682_v29, %v5682_v29 }
 0x565   :  { %v2540_v25 = vpop.xlane.xlu0 %2539 }
 0x566   :  { %v2574_v23 = vmul.f32 0.0078125, %v2540_v25  ;;  %2698 = vadd.xlane.f32.xlu1 %v2637_v8 }
 0x567   :  { %v2542_v15 = vpop.xlane.xlu1 %2541 }
 0x568   :  { %v5689_v18 = vsub.f32 %v5534_v17, %v2574_v23  ;;  %v2575_v52 = vmul.f32 0.0078125, %v2542_v15 }
 0x569   :  { %v2641_v14 = vpop.xlane.xlu0 %2640 }
 0x56a   :  { %v5692_v36 = vsub.f32 %v5541_v16, %v2575_v52  ;;  %v2704_v32 = vmul.f32 0.0078125, %v2641_v14  ;;  %v2638_v45 = vmul.f32 %v5689_v18, %v5689_v18 }
 0x56b   :  { %v2643_v39 = vpop.xlane.xlu1 %2642 }
 0x56c   :  { %v2736_v9 = vadd.f32 1e-12, %v2704_v32  ;;  %v2705_v55 = vmul.f32 0.0078125, %v2643_v39  ;;  %2700 = vadd.xlane.f32.xlu0 %v2638_v45  ;;  %v2639_v56 = vmul.f32 %v5692_v36, %v5692_v36 }
 0x56d   :  { %v2645_v42 = vpop.xlane.xlu0 %2644 }
 0x56e   :  { %3829 = vrsqrt.f32 %v2736_v9  ;;  %v2737_v17 = vadd.f32 1e-12, %v2705_v55  ;;  %v2706_v53 = vmul.f32 0.0078125, %v2645_v42  ;;  %2702 = vadd.xlane.f32.xlu1 %v2639_v56  ;;  %v5709_v9 = vld [vmem:[%s5863_s11] ss:$0 sm:$0xff] }
 0x56f   :  { %v2647_v4 = vpop.xlane.xlu1 %2646 }
 0x570   :  { %3831 = vrsqrt.f32 %v2737_v17  ;;  %v2738_v16 = vadd.f32 1e-12, %v2706_v53  ;;  %v2707_v54 = vmul.f32 0.0078125, %v2647_v4 }
 0x571   :  { %v2649_v41 = vpop.xlane.xlu0 %2648 }
 0x572   :  { %3833 = vrsqrt.f32 %v2738_v16  ;;  %v2739_v38 = vadd.f32 1e-12, %v2707_v54  ;;  %v2708_v11 = vmul.f32 0.0078125, %v2649_v41 }
 0x573   :  { %v2651_v3 = vpop.xlane.xlu1 %2650 }
 0x574   :  { %3835 = vrsqrt.f32 %v2739_v38  ;;  %v2740_v59 = vadd.f32 1e-12, %v2708_v11  ;;  %v2709_v60 = vmul.f32 0.0078125, %v2651_v3 }
 0x575   :  { %v2653_v51 = vpop.xlane.xlu0 %2652 }
 0x576   :  { %3837 = vrsqrt.f32 %v2740_v59  ;;  %v2741_v27 = vadd.f32 1e-12, %v2709_v60  ;;  %v2710_v48 = vmul.f32 0.0078125, %v2653_v51 }
 0x577   :  { %v2655_v46 = vpop.xlane.xlu1 %2654 }
 0x578   :  { %v3830_v26 = vpop.eup %3829  ;;  %3839 = vrsqrt.f32 %v2741_v27  ;;  %v2742_v34 = vadd.f32 1e-12, %v2710_v48  ;;  %v2711_v58 = vmul.f32 0.0078125, %v2655_v46 }
 0x579   :  { %v2800_v8 = vmul.f32 %v3830_v26, %v5530_v47  ;;  %v2657_v25 = vpop.xlane.xlu0 %2656 }
 0x57a   :  { %v3832_v23 = vpop.eup %3831  ;;  %3841 = vrsqrt.f32 %v2742_v34  ;;  %v2743_v15 = vadd.f32 1e-12, %v2711_v58  ;;  %v2712_v52 = vmul.f32 0.0078125, %v2657_v25 }
 0x57b   :  { %v2838_v14 = vmul.f32 %v5701_v62, %v2800_v8  ;;  %v2801_v32 = vmul.f32 %v3832_v23, %v5537_v61  ;;  %v2659_v45 = vpop.xlane.xlu1 %2658 }
 0x57c   :  { %v3834_v39 = vpop.eup %3833  ;;  %3843 = vrsqrt.f32 %v2743_v15  ;;  %v2744_v55 = vadd.f32 1e-12, %v2712_v52  ;;  %v2713_v56 = vmul.f32 0.0078125, %v2659_v45 }
 0x57d   :  { %v2839_v47 = vmul.f32 %v5701_v62, %v2801_v32  ;;  %v2802_v42 = vmul.f32 %v3834_v39, %v5544_v13  ;;  %v2661_v17 = vpop.xlane.xlu0 %2660  ;;  %v2876_v61 = vadd.f32 %v5709_v9, %v2838_v14 }
 0x57e   :  { %v3836_v53 = vpop.eup %3835  ;;  %3845 = vrsqrt.f32 %v2744_v55  ;;  %v2745_v4 = vadd.f32 1e-12, %v2713_v56  ;;  %v2714_v16 = vmul.f32 0.0078125, %v2661_v17 }
 0x57f   :  { %v2877_v54 = vadd.f32 %v5709_v9, %v2839_v47  ;;  %v2840_v41 = vmul.f32 %v5701_v62, %v2802_v42  ;;  %v2803_v38 = vmul.f32 %v3836_v53, %v5550_v12  ;;  %v2663_v11 = vpop.xlane.xlu1 %2662 }
 0x580   :  { %v3838_v3 = vpop.eup %3837  ;;  %3847 = vrsqrt.f32 %v2745_v4  ;;  %v2746_v59 = vadd.f32 1e-12, %v2714_v16  ;;  %v2715_v60 = vmul.f32 0.0078125, %v2663_v11 }
 0x581   :  { %v3265_v51 = vpack.c.bf16 %v2877_v54, %v2876_v61  ;;  %v2841_v13 = vmul.f32 %v5701_v62, %v2803_v38  ;;  %v2804_v27 = vmul.f32 %v3838_v3, %v5555_v43  ;;  %v2665_v48 = vpop.xlane.xlu0 %2664  ;;  %v2878_v12 = vadd.f32 %v5709_v9, %v2840_v41 }
 0x582   :  { %v3840_v46 = vpop.eup %3839  ;;  %3849 = vrsqrt.f32 %v2746_v59  ;;  %v2747_v26 = vadd.f32 1e-12, %v2715_v60  ;;  %v2716_v34 = vmul.f32 0.0078125, %v2665_v48 }
 0x583   :  { %3266 = vst [vmem:[%s5864_s12] sm:$0xff] %v3265_v51   ;;  %v2879_v58 = vadd.f32 %v5709_v9, %v2841_v13  ;;  %v2842_v8 = vmul.f32 %v5701_v62, %v2804_v27  ;;  %v2805_v25 = vmul.f32 %v3840_v46, %v5560_v6  ;;  %v2667_v23 = vpop.xlane.xlu1 %2666 }
 0x584   :  { %v3842_v15 = vpop.eup %3841  ;;  %3851 = vrsqrt.f32 %v2747_v26  ;;  %v2748_v43 = vadd.f32 1e-12, %v2716_v34  ;;  %v2717_v52 = vmul.f32 0.0078125, %v2667_v23 }
 0x585   :  { %v3270_v14 = vpack.c.bf16 %v2879_v58, %v2878_v12  ;;  %v2843_v32 = vmul.f32 %v5701_v62, %v2805_v25  ;;  %v2806_v45 = vmul.f32 %v3842_v15, %v5565_v63  ;;  %v2669_v39 = vpop.xlane.xlu0 %2668  ;;  %v2880_v6 = vadd.f32 %v5709_v9, %v2842_v8 }
 0x586   :  { %v3844_v55 = vpop.eup %3843  ;;  %3853 = vrsqrt.f32 %v2748_v43  ;;  %v2749_v56 = vadd.f32 1e-12, %v2717_v52  ;;  %v2718_v47 = vmul.f32 0.0078125, %v2669_v39 }
 0x587   :  { %3357 = vst [vmem:[%s5864_s12 + $0x8] sm:$0xff] %v3270_v14   ;;  %v2881_v42 = vadd.f32 %v5709_v9, %v2843_v32  ;;  %v2844_v17 = vmul.f32 %v5701_v62, %v2806_v45  ;;  %v2807_v53 = vmul.f32 %v3844_v55, %v5570_v20  ;;  %v2671_v4 = vpop.xlane.xlu1 %2670 }
 0x588   :  { %v3846_v16 = vpop.eup %3845  ;;  %3855 = vrsqrt.f32 %v2749_v56  ;;  %v2750_v63 = vadd.f32 1e-12, %v2718_v47  ;;  %v2719_v61 = vmul.f32 0.0078125, %v2671_v4 }
 0x589   :  { %v3275_v54 = vpack.c.bf16 %v2881_v42, %v2880_v6  ;;  %v2845_v41 = vmul.f32 %v5701_v62, %v2807_v53  ;;  %v2808_v38 = vmul.f32 %v3846_v16, %v5575_v57  ;;  %v2673_v11 = vpop.xlane.xlu0 %2672  ;;  %v2882_v20 = vadd.f32 %v5709_v9, %v2844_v17 }
 0x58a   :  { %v3848_v3 = vpop.eup %3847  ;;  %3857 = vrsqrt.f32 %v2750_v63  ;;  %v2751_v59 = vadd.f32 1e-12, %v2719_v61  ;;  %v2720_v60 = vmul.f32 0.0078125, %v2673_v11 }
 0x58b   :  { %3358 = vst [vmem:[%s5864_s12 + $0x10] sm:$0xff] %v3275_v54   ;;  %v2883_v51 = vadd.f32 %v5709_v9, %v2845_v41  ;;  %v2846_v13 = vmul.f32 %v5701_v62, %v2808_v38  ;;  %v2809_v27 = vmul.f32 %v3848_v3, %v5580_v37  ;;  %v2675_v48 = vpop.xlane.xlu1 %2674 }
 0x58c   :  { %v3850_v46 = vpop.eup %3849  ;;  %3859 = vrsqrt.f32 %v2751_v59  ;;  %v2752_v57 = vadd.f32 1e-12, %v2720_v60  ;;  %v2721_v26 = vmul.f32 0.0078125, %v2675_v48 }
 0x58d   :  { %v3280_v34 = vpack.c.bf16 %v2883_v51, %v2882_v20  ;;  %v2847_v12 = vmul.f32 %v5701_v62, %v2809_v27  ;;  %v2810_v58 = vmul.f32 %v3850_v46, %v5585_v0  ;;  %v2677_v8 = vpop.xlane.xlu0 %2676  ;;  %v2884_v37 = vadd.f32 %v5709_v9, %v2846_v13 }
 0x58e   :  { %v3852_v25 = vpop.eup %3851  ;;  %3861 = vrsqrt.f32 %v2752_v57  ;;  %v2753_v23 = vadd.f32 1e-12, %v2721_v26  ;;  %v2722_v15 = vmul.f32 0.0078125, %v2677_v8 }
 0x58f   :  { %3359 = vst [vmem:[%s5864_s12 + $0x18] sm:$0xff] %v3280_v34   ;;  %v2885_v43 = vadd.f32 %v5709_v9, %v2847_v12  ;;  %v2848_v52 = vmul.f32 %v5701_v62, %v2810_v58  ;;  %v2811_v14 = vmul.f32 %v3852_v25, %v5590_v1  ;;  %v2679_v32 = vpop.xlane.xlu1 %2678 }
 0x590   :  { %v3854_v45 = vpop.eup %3853  ;;  %3863 = vrsqrt.f32 %v2753_v23  ;;  %v2754_v0 = vadd.f32 1e-12, %v2722_v15  ;;  %v2723_v39 = vmul.f32 0.0078125, %v2679_v32 }
 0x591   :  { %v3285_v55 = vpack.c.bf16 %v2885_v43, %v2884_v37  ;;  %v2849_v56 = vmul.f32 %v5701_v62, %v2811_v14  ;;  %v2812_v47 = vmul.f32 %v3854_v45, %v5595_v22  ;;  %v2886_v17 = vadd.f32 %v5709_v9, %v2848_v52 }
 0x592   :  { %v3856_v6 = vpop.eup %3855  ;;  %3865 = vrsqrt.f32 %v2754_v0  ;;  %v2755_v42 = vadd.f32 1e-12, %v2723_v39 }
 0x593   :  { %3360 = vst [vmem:[%s5864_s12 + $0x20] sm:$0xff] %v3285_v55   ;;  %v2887_v1 = vadd.f32 %v5709_v9, %v2849_v56  ;;  %v2850_v53 = vmul.f32 %v5701_v62, %v2812_v47  ;;  %v2813_v4 = vmul.f32 %v3856_v6, %v5600_v24 }
 0x594   :  { %v3858_v16 = vpop.eup %3857  ;;  %3867 = vrsqrt.f32 %v2755_v42 }
 0x595   :  { %v3290_v63 = vpack.c.bf16 %v2887_v1, %v2886_v17  ;;  %v2851_v22 = vmul.f32 %v5701_v62, %v2813_v4  ;;  %v2814_v61 = vmul.f32 %v3858_v16, %v5605_v21  ;;  %v2888_v41 = vadd.f32 %v5709_v9, %v2850_v53 }
 0x596   :  { %v3860_v54 = vpop.eup %3859 }
 0x597   :  { %3361 = vst [vmem:[%s5864_s12 + $0x28] sm:$0xff] %v3290_v63   ;;  %v2889_v38 = vadd.f32 %v5709_v9, %v2851_v22  ;;  %v2852_v11 = vmul.f32 %v5701_v62, %v2814_v61  ;;  %v2815_v24 = vmul.f32 %v3860_v54, %v5610_v50 }
 0x598   :  { %v3862_v3 = vpop.eup %3861 }
 0x599   :  { %v3295_v59 = vpack.c.bf16 %v2889_v38, %v2888_v41  ;;  %v2853_v60 = vmul.f32 %v5701_v62, %v2815_v24  ;;  %v2816_v20 = vmul.f32 %v3862_v3, %v5615_v40  ;;  %v2890_v51 = vadd.f32 %v5709_v9, %v2852_v11 }
 0x59a   :  { %v3864_v21 = vpop.eup %3863 }
 0x59b   :  { %3362 = vst [vmem:[%s5864_s12 + $0x30] sm:$0xff] %v3295_v59   ;;  %v2891_v13 = vadd.f32 %v5709_v9, %v2853_v60  ;;  %v2854_v27 = vmul.f32 %v5701_v62, %v2816_v20  ;;  %v2817_v48 = vmul.f32 %v3864_v21, %v5620_v19 }
 0x59c   :  { %v3866_v50 = vpop.eup %3865 }
 0x59d   :  { %v3300_v46 = vpack.c.bf16 %v2891_v13, %v2890_v51  ;;  %v2855_v57 = vmul.f32 %v5701_v62, %v2817_v48  ;;  %v2818_v26 = vmul.f32 %v3866_v50, %v5625_v35  ;;  %v2892_v34 = vadd.f32 %v5709_v9, %v2854_v27 }
 0x59e   :  { %v3868_v40 = vpop.eup %3867 }
 0x59f   :  { %3363 = vst [vmem:[%s5864_s12 + $0x38] sm:$0xff] %v3300_v46   ;;  %v2893_v12 = vadd.f32 %v5709_v9, %v2855_v57  ;;  %v2856_v58 = vmul.f32 %v5701_v62, %v2818_v26  ;;  %v2819_v8 = vmul.f32 %v3868_v40, %v5630_v10 }
 0x5a1   :  { %v3305_v19 = vpack.c.bf16 %v2893_v12, %v2892_v34  ;;  %v2857_v25 = vmul.f32 %v5701_v62, %v2819_v8  ;;  %v2894_v35 = vadd.f32 %v5709_v9, %v2856_v58 }
 0x5a3   :  { %3364 = vst [vmem:[%s5864_s12 + $0x40] sm:$0xff] %v3305_v19   ;;  %v2895_v23 = vadd.f32 %v5709_v9, %v2857_v25 }
 0x5a5   :  { %v3310_v15 = vpack.c.bf16 %v2895_v23, %v2894_v35 }
 0x5a7   :  { %3365 = vst [vmem:[%s5864_s12 + $0x48] sm:$0xff] %v3310_v15  }
 0x5ce   :  { %v2681_v37 = vpop.xlane.xlu0 %2680 }
 0x5cf   :  { %v2724_v43 = vmul.f32 0.0078125, %v2681_v37 }
 0x5d0   :  { %v2683_v52 = vpop.xlane.xlu1 %2682 }
 0x5d1   :  { %v2756_v10 = vadd.f32 1e-12, %v2724_v43  ;;  %v2725_v14 = vmul.f32 0.0078125, %v2683_v52 }
 0x5d3   :  { %3869 = vrsqrt.f32 %v2756_v10  ;;  %v2757_v32 = vadd.f32 1e-12, %v2725_v14 }
 0x5d5   :  { %3871 = vrsqrt.f32 %v2757_v32 }
 0x5d9   :  { %v2685_v45 = vpop.xlane.xlu0 %2684 }
 0x5da   :  { %v2726_v0 = vmul.f32 0.0078125, %v2685_v45 }
 0x5db   :  { %v2687_v39 = vpop.xlane.xlu1 %2686 }
 0x5dc   :  { %v2758_v55 = vadd.f32 1e-12, %v2726_v0  ;;  %v2727_v56 = vmul.f32 0.0078125, %v2687_v39 }
 0x5dd   :  { %v3870_v47 = vpop.eup %3869 }
 0x5de   :  { %v2820_v6 = vmul.f32 %v3870_v47, %v5639_v28  ;;  %3873 = vrsqrt.f32 %v2758_v55  ;;  %v2759_v42 = vadd.f32 1e-12, %v2727_v56 }
 0x5df   :  { %v3872_v17 = vpop.eup %3871 }
 0x5e0   :  { %v2858_v1 = vmul.f32 %v5701_v62, %v2820_v6  ;;  %v2821_v53 = vmul.f32 %v3872_v17, %v5642_v5  ;;  %3875 = vrsqrt.f32 %v2759_v42 }
 0x5e1   :  { %v2689_v4 = vpop.xlane.xlu0 %2688 }
 0x5e2   :  { %v2859_v16 = vmul.f32 %v5701_v62, %v2821_v53  ;;  %v2728_v63 = vmul.f32 0.0078125, %v2689_v4  ;;  %v2896_v61 = vadd.f32 %v5709_v9, %v2858_v1 }
 0x5e3   :  { %v2691_v22 = vpop.xlane.xlu1 %2690 }
 0x5e4   :  { %v2897_v54 = vadd.f32 %v5709_v9, %v2859_v16  ;;  %v2760_v41 = vadd.f32 1e-12, %v2728_v63  ;;  %v2729_v38 = vmul.f32 0.0078125, %v2691_v22 }
 0x5e6   :  { %v3315_v28 = vpack.c.bf16 %v2897_v54, %v2896_v61  ;;  %3877 = vrsqrt.f32 %v2760_v41  ;;  %v2761_v11 = vadd.f32 1e-12, %v2729_v38 }
 0x5e8   :  { %v3874_v24 = vpop.eup %3873  ;;  %3366 = vst [vmem:[%s5864_s12 + $0x50] sm:$0xff] %v3315_v28   ;;  %3879 = vrsqrt.f32 %v2761_v11 }
 0x5e9   :  { %v2822_v5 = vmul.f32 %v3874_v24, %v5649_v49  ;;  %v2693_v3 = vpop.xlane.xlu0 %2692 }
 0x5ea   :  { %v3876_v59 = vpop.eup %3875  ;;  %v2730_v60 = vmul.f32 0.0078125, %v2693_v3 }
 0x5eb   :  { %v2860_v20 = vmul.f32 %v5701_v62, %v2822_v5  ;;  %v2823_v21 = vmul.f32 %v3876_v59, %v5652_v30  ;;  %v2695_v51 = vpop.xlane.xlu1 %2694 }
 0x5ec   :  { %v2762_v13 = vadd.f32 1e-12, %v2730_v60  ;;  %v2731_v27 = vmul.f32 0.0078125, %v2695_v51 }
 0x5ed   :  { %v2861_v48 = vmul.f32 %v5701_v62, %v2823_v21  ;;  %v2898_v46 = vadd.f32 %v5709_v9, %v2860_v20 }
 0x5ee   :  { %3881 = vrsqrt.f32 %v2762_v13  ;;  %v2763_v50 = vadd.f32 1e-12, %v2731_v27 }
 0x5ef   :  { %v2899_v57 = vadd.f32 %v5709_v9, %v2861_v48 }
 0x5f0   :  { %v3878_v26 = vpop.eup %3877  ;;  %3883 = vrsqrt.f32 %v2763_v50 }
 0x5f1   :  { %v3320_v49 = vpack.c.bf16 %v2899_v57, %v2898_v46  ;;  %v2824_v40 = vmul.f32 %v3878_v26, %v5659_v2  ;;  %v2697_v34 = vpop.xlane.xlu0 %2696 }
 0x5f2   :  { %v3880_v12 = vpop.eup %3879  ;;  %v2732_v58 = vmul.f32 0.0078125, %v2697_v34 }
 0x5f3   :  { %3367 = vst [vmem:[%s5864_s12 + $0x58] sm:$0xff] %v3320_v49   ;;  %v2862_v30 = vmul.f32 %v5701_v62, %v2824_v40  ;;  %v2825_v8 = vmul.f32 %v3880_v12, %v5662_v33  ;;  %v2699_v19 = vpop.xlane.xlu1 %2698 }
 0x5f4   :  { %v2764_v25 = vadd.f32 1e-12, %v2732_v58  ;;  %v2733_v35 = vmul.f32 0.0078125, %v2699_v19 }
 0x5f5   :  { %v2863_v23 = vmul.f32 %v5701_v62, %v2825_v8  ;;  %v2900_v2 = vadd.f32 %v5709_v9, %v2862_v30 }
 0x5f6   :  { %3885 = vrsqrt.f32 %v2764_v25  ;;  %v2765_v15 = vadd.f32 1e-12, %v2733_v35 }
 0x5f7   :  { %v2901_v37 = vadd.f32 %v5709_v9, %v2863_v23 }
 0x5f8   :  { %v3882_v43 = vpop.eup %3881  ;;  %3887 = vrsqrt.f32 %v2765_v15 }
 0x5f9   :  { %v3325_v52 = vpack.c.bf16 %v2901_v37, %v2900_v2  ;;  %v2826_v10 = vmul.f32 %v3882_v43, %v5669_v7  ;;  %v2701_v14 = vpop.xlane.xlu0 %2700 }
 0x5fa   :  { %v3884_v32 = vpop.eup %3883  ;;  %v2734_v45 = vmul.f32 0.0078125, %v2701_v14 }
 0x5fb   :  { %3368 = vst [vmem:[%s5864_s12 + $0x60] sm:$0xff] %v3325_v52   ;;  %v2864_v33 = vmul.f32 %v5701_v62, %v2826_v10  ;;  %v2827_v0 = vmul.f32 %v3884_v32, %v5672_v44  ;;  %v2703_v39 = vpop.xlane.xlu1 %2702 }
 0x5fc   :  { %v2766_v55 = vadd.f32 1e-12, %v2734_v45  ;;  %v2735_v56 = vmul.f32 0.0078125, %v2703_v39 }
 0x5fd   :  { %v2865_v47 = vmul.f32 %v5701_v62, %v2827_v0  ;;  %v2902_v7 = vadd.f32 %v5709_v9, %v2864_v33 }
 0x5fe   :  { %3889 = vrsqrt.f32 %v2766_v55  ;;  %v2767_v6 = vadd.f32 1e-12, %v2735_v56 }
 0x5ff   :  { %v2903_v42 = vadd.f32 %v5709_v9, %v2865_v47 }
 0x600   :  { %v3886_v17 = vpop.eup %3885  ;;  %3891 = vrsqrt.f32 %v2767_v6 }
 0x601   :  { %v3330_v1 = vpack.c.bf16 %v2903_v42, %v2902_v7  ;;  %v2828_v53 = vmul.f32 %v3886_v17, %v5679_v31 }
 0x602   :  { %v3888_v4 = vpop.eup %3887 }
 0x603   :  { %3369 = vst [vmem:[%s5864_s12 + $0x68] sm:$0xff] %v3330_v1   ;;  %v2866_v44 = vmul.f32 %v5701_v62, %v2828_v53  ;;  %v2829_v16 = vmul.f32 %v3888_v4, %v5682_v29 }
 0x605   :  { %v2867_v63 = vmul.f32 %v5701_v62, %v2829_v16  ;;  %v2904_v22 = vadd.f32 %v5709_v9, %v2866_v44 }
 0x607   :  { %v2905_v61 = vadd.f32 %v5709_v9, %v2867_v63 }
 0x608   :  { %v3890_v54 = vpop.eup %3889 }
 0x609   :  { %v3335_v41 = vpack.c.bf16 %v2905_v61, %v2904_v22  ;;  %v2830_v38 = vmul.f32 %v3890_v54, %v5689_v18 }
 0x60a   :  { %v3892_v31 = vpop.eup %3891 }
 0x60b   :  { %3370 = vst [vmem:[%s5864_s12 + $0x70] sm:$0xff] %v3335_v41   ;;  %v2868_v28 = vmul.f32 %v5701_v62, %v2830_v38  ;;  %v2831_v11 = vmul.f32 %v3892_v31, %v5692_v36 }
 0x60d   :  { %v2869_v29 = vmul.f32 %v5701_v62, %v2831_v11  ;;  %v2906_v24 = vadd.f32 %v5709_v9, %v2868_v28 }
 0x60f   :  { %v2907_v5 = vadd.f32 %v5709_v9, %v2869_v29 }
 0x611   :  { %v3340_v3 = vpack.c.bf16 %v2907_v5, %v2906_v24 }
 0x613   :  { %3371 = vst [vmem:[%s5864_s12 + $0x78] sm:$0xff] %v3340_v3  }

// kernel: bert_forward.9
= control target key start
LH: loop header
LB: loop body
LE: loop exit
PB: predicated region body
PF: predicated region fallthrough
CT: control target
= control target key end

     0   :  { %s9832_s0 = inlined_call_operand.vmem [shape: s32[2], index: 0, kind: input, shape index: {}]   ;;  %s9833_s1 = inlined_call_operand.vmem [shape: bf16[2,128,384], index: 1, kind: input, shape index: {}, may-alias: {1,2,3}]   ;;  %s9834_s2 = inlined_call_operand.vmem [shape: bf16[2,128,384], index: 2, kind: input, shape index: {}, may-alias: {1,2,3}]   ;;  %s9835_s3 = inlined_call_operand.vmem [shape: bf16[2,128,384], index: 3, kind: input, shape index: {}, may-alias: {1,2,3}]   ;;  %s9836_s4 = inlined_call_operand.vmem [shape: f32[2,1,128], index: 4, kind: input, shape index: {}]   ;;  %s9837_s5 = inlined_call_operand.vmem [shape: bf16[2,128,128], index: 5, kind: output, shape index: {}]  }
   0x1   :  { %s10_s20 = sshll.u32 %s9832_s0, 4  ;;  %s11_s20 = int_to_ptr.vmem [resolvable:$true] %s10_s20 }
   0x2   :  { %s6652_s21 = scalar_lea.vmem %s11_s20, 16  ;;  %p6657_p1 = scmp.lt.s32.totalorder %s11_s20, %s11_s20 }
   0x3   :  { %p6653_p0 = scmp.ne.s32.totalorder %s11_s20, %s6652_s21  ;;  %p6658_p2 = scmp.lt.s32.totalorder %s6652_s21, %s6652_s21 }
   0x5   :  { %p6659_p3 = por %p6658_p2, %p6657_p1 }
   0x7   :  { %p6660_p4 = pnand %p6659_p3, %p6653_p0 }
   0x9   :  { %6663 = shalt.err (!%p6660_p4)  }
   0xa   :  { %s6738_s22 = smov [#allocation6]  }
   0xb   :  { %13 = dma.vmem_to_smem %s11_s20, 16, %s6738_s22, [#allocation5] }
   0xc   :  { %6700 = dma.done.wait [#allocation5], 16 }
   0xd   :  { %6701 = vsyncadd [#allocation5], 4294967280 }
   0xe   :  { %15 = sfence }
   0xf   :  { %s6779_s23 = smov 0   ;;  %s6781_s24 = smov 0  }
  0x10   :  { %s6783_s25 = smov 0   ;;  %s6785_s0 = smov 0  }
  0x11   :  { %s6787_s26 = smov 0   ;;  %s6789_s27 = smov 0  }
  0x12   :  { %s6791_s28 = smov 0   ;;  %s6793_s29 = smov 0  }
  0x13   :  { %s6795_s30 = smov 0  }
  0x14 LB: > { %s40_s6 = sadd.s32 1, %s6732_s29  ;;  %p56_p6 = scmp.ne.s32.totalorder %s6724_s27, %s6720_s26  ;;  %s6736_s30 = sphi %s6795_s30, %s21_s30   ;;  %s6732_s29 = sphi %s6793_s29, %s10251_s29   ;;  %s6728_s28 = sphi %s6791_s28, %s10250_s28   ;;  %s6724_s27 = sphi %s6789_s27, %s10249_s27   ;;  %s6720_s26 = sphi %s6787_s26, %s10248_s26   ;;  %s6716_s0 = sphi %s6785_s0, %s10247_s0   ;;  %s6712_s25 = sphi %s6783_s25, %s10246_s25   ;;  %s6708_s24 = sphi %s6781_s24, %s10245_s24   ;;  %s6704_s23 = sphi %s6779_s23, %s10244_s23  }
  0x15   : > { %p42_p5 = scmp.ge.s32.totalorder %s40_s6, 2  ;;  %p57_p7 = scmp.eq.s32.totalorder %s6736_s30, 0 }
  0x16   : > { %s72_s7 = sld [smem:[#allocation6 + %s6732_s29]]  ;;  %s49_s8 = sadd.s32 1, %s6724_s27 }
  0x17   : > { %s10253_s6 = smov (%p42_p5, %s40_s6), 0  ;;  %p6834_p8 = por %p57_p7, %p56_p6 }
  0x18   : > { %9931 = sst [smem:[#allocation11_spill]] %s10253_s6  ;;  %s44_s10 = ssub.s32 %s6732_s29, %s10253_s6 }
  0x19   : > { %s76_s11 = sld [smem:[#allocation6 + %s10253_s6]]  ;;  %p47_p9 = scmp.eq.s32.totalorder %s44_s10, 0 }
  0x1a   : > { %p92_p10 = scmp.ne.s32.totalorder %s6716_s0, %s6712_s25  ;;  %s108_s12 = sld [smem:[#allocation6 + %s6732_s29]] }
  0x1b   : > { %s112_s13 = sld [smem:[#allocation6 + %s10253_s6]]  ;;  %s85_s17 = sadd.s32 1, %s6716_s0 }
  0x1c   : > { %s6846_s14 = scalar_select %p47_p9, %s6724_s27, %s49_s8  }
  0x1d   : > { %s5436_s15 = sadd.s32 4294967295, %s72_s7  ;;  %p6850_p11 = por %p92_p10, %p57_p7 }
  0x1e   : > { %9933 = sst [smem:[#allocation12_spill]] %s6846_s14  ;;  %p5437_p12 = scmp.gt.s32.totalorder %s5436_s15, 0 }
  0x1f   : > { %s5438_s18 = sadd.s32 4294967295, %s76_s11  ;;  %p128_p13 = scmp.ne.s32.totalorder %s6708_s24, %s6704_s23 }
  0x20   : > { %s10255_s15 = smov (%p5437_p12, %s5436_s15), 0  ;;  %p5439_p0 = scmp.gt.s32.totalorder %s5438_s18, 0 }
  0x21   : > { %s5440_s19 = sadd.s32 4294967295, %s108_s12  ;;  %s5442_s20 = sadd.s32 4294967295, %s112_s13 }
  0x22   : > { %p5441_p1 = scmp.gt.s32.totalorder %s5440_s19, 0  ;;  %s10257_s18 = smov (%p5439_p0, %s5438_s18), 0 }
  0x23   : > { %s81_s21 = ssub.s32 %s10255_s15, %s10257_s18  ;;  %p5443_p2 = scmp.gt.s32.totalorder %s5442_s20, 0 }
  0x24   : > { %s10259_s19 = smov (%p5441_p1, %s5440_s19), 0  ;;  %s82_s22 = sor.u32 %s81_s21, %s44_s10 }
  0x25   : > { %p6859_p3 = por %p128_p13, %p57_p7  ;;  %p83_p4 = scmp.eq.s32.totalorder %s82_s22, 0 }
  0x26   : > { %s10261_s20 = smov (%p5443_p2, %s5442_s20), 0  ;;  %s121_s12 = sadd.s32 1, %s6708_s24 }
  0x27   : > { %s6864_s8 = scalar_select %p83_p4, %s6716_s0, %s85_s17  }
  0x28   : > { %s117_s11 = ssub.s32 %s10259_s19, %s10261_s20  ;;  %p5449_p6 = scmp.ge.s32.totalorder %s6736_s30, 2 }
  0x29   : > { %s118_s6 = sor.u32 %s117_s11, %s44_s10 }
  0x2a   : > { %p119_p5 = scmp.eq.s32.totalorder %s118_s6, 0  ;;  %218 = sbr.rel (%p5449_p6) target bundleno = 116 (0x74), region = 16 }
  0x2c   : > { %s6868_s14 = scalar_select %p119_p5, %s6708_s24, %s121_s12  }
  0x31   : > { %221 = sbr.rel (!%p6834_p8) target bundleno = 64 (0x40), region = 20  ;;  %s223_s13 = sand.u32 (%p6834_p8), 1, %s6724_s27  }
  0x32   : > { %s6109_s15 = smul.u32 (%p6834_p8), 192, %s6732_s29  ;;  %s5450_s18 = sshll.u32 (%p6834_p8), %s223_s13, 6 }
  0x33   : > { %s225_s6 = scalar_lea.vmem (%p6834_p8), [#allocation7], %s5450_s18 }
  0x34   : > { %s6878_s19 = scalar_lea.vmem (%p6834_p8), %s9833_s1, %s6109_s15 }
  0x35   : > { %v247_v0 = vld [vmem:[%s6878_s19] sm:$0xf] (%p6834_p8)  ;;  %v249_v1 = vld [vmem:[%s6878_s19 + $0xc] sm:$0xf] (%p6834_p8)  ;;  %v251_v2 = vld [vmem:[%s6878_s19 + $0x18] sm:$0xf] (%p6834_p8) }
  0x36   : > { %248 = vst [vmem:[%s225_s6] sm:$0xf] (%p6834_p8), %v247_v0  ;;  %250 = vst [vmem:[%s225_s6 + $0x4] sm:$0xf] (%p6834_p8), %v249_v1  ;;  %v253_v3 = vld [vmem:[%s6878_s19 + $0x24] sm:$0xf] (%p6834_p8) }
  0x37   : > { %252 = vst [vmem:[%s225_s6 + $0x8] sm:$0xf] (%p6834_p8), %v251_v2  ;;  %v255_v4 = vld [vmem:[%s6878_s19 + $0x30] sm:$0xf] (%p6834_p8)  ;;  %v257_v5 = vld [vmem:[%s6878_s19 + $0x3c] sm:$0xf] (%p6834_p8) }
  0x38   : > { %254 = vst [vmem:[%s225_s6 + $0xc] sm:$0xf] %v253_v3  ;;  %256 = vst [vmem:[%s225_s6 + $0x10] sm:$0xf] %v255_v4  ;;  %v259_v6 = vld [vmem:[%s6878_s19 + $0x48] sm:$0xf] }
  0x39   : > { %258 = vst [vmem:[%s225_s6 + $0x14] sm:$0xf] %v257_v5  ;;  %v261_v7 = vld [vmem:[%s6878_s19 + $0x54] sm:$0xf]  ;;  %v263_v8 = vld [vmem:[%s6878_s19 + $0x60] sm:$0xf] }
  0x3a   : > { %260 = vst [vmem:[%s225_s6 + $0x18] sm:$0xf] %v259_v6  ;;  %262 = vst [vmem:[%s225_s6 + $0x1c] sm:$0xf] %v261_v7  ;;  %v265_v9 = vld [vmem:[%s6878_s19 + $0x6c] sm:$0xf] }
  0x3b   : > { %264 = vst [vmem:[%s225_s6 + $0x20] sm:$0xf] %v263_v8  ;;  %v267_v10 = vld [vmem:[%s6878_s19 + $0x78] sm:$0xf]  ;;  %v269_v11 = vld [vmem:[%s6878_s19 + $0x84] sm:$0xf] }
  0x3c   : > { %266 = vst [vmem:[%s225_s6 + $0x24] sm:$0xf] %v265_v9  ;;  %268 = vst [vmem:[%s225_s6 + $0x28] sm:$0xf] %v267_v10  ;;  %v271_v12 = vld [vmem:[%s6878_s19 + $0x90] sm:$0xf] }
  0x3d   : > { %270 = vst [vmem:[%s225_s6 + $0x2c] sm:$0xf] %v269_v11  ;;  %v273_v13 = vld [vmem:[%s6878_s19 + $0x9c] sm:$0xf]  ;;  %v275_v14 = vld [vmem:[%s6878_s19 + $0xa8] sm:$0xf] }
  0x3e   : > { %272 = vst [vmem:[%s225_s6 + $0x30] sm:$0xf] %v271_v12  ;;  %274 = vst [vmem:[%s225_s6 + $0x34] sm:$0xf] %v273_v13  ;;  %v277_v15 = vld [vmem:[%s6878_s19 + $0xb4] sm:$0xf] }
  0x3f   : > { %276 = vst [vmem:[%s225_s6 + $0x38] sm:$0xf] %v275_v14  ;;  %278 = vst [vmem:[%s225_s6 + $0x3c] sm:$0xf] %v277_v15 }
  0x40 PF: > { %333 = sbr.rel (!%p6850_p11) target bundleno = 90 (0x5a), region = 61  ;;  %s338_s9 = sld [smem:[#allocation6 + %s6732_s29]] (%p6850_p11) }
  0x41   : > { %s335_s20 = sand.u32 (%p6850_p11), 1, %s6716_s0   ;;  %s5325_s22 = smul.u32 (%p6850_p11), 48, %s6732_s29 }
  0x42   : > { %s5452_s11 = sshll.u32 (%p6850_p11), %s335_s20, 6 }
  0x43   : > { %s337_s16 = scalar_lea.vmem (%p6850_p11), [#allocation8], %s5452_s11 }
  0x46   : > { %s5453_s10 = sadd.s32 (%p6850_p11), 4294967295, %s338_s9 }
  0x47   : > { %p5454_p7 = scmp.gt.s32.totalorder %s5453_s10, 0 }
  0x49   : > { %s10263_s10 = smov (%p5454_p7, %s5453_s10), 0 }
  0x4a   : > { %s5324_s12 = smul.u32 48, %s10263_s10 }
  0x4c   : > { %s5326_s13 = sadd.s32 %s5325_s22, %s5324_s12 }
  0x4d   : > { %s5455_s15 = sshll.u32 %s5326_s13, 2 }
  0x4e   : > { %s6904_s17 = scalar_lea.vmem %s9834_s2, %s5455_s15 }
  0x4f   : > { %v5456_v16 = vld [vmem:[%s6904_s17 + $0x4] sm:$0xf]  ;;  %v5457_v17 = vld [vmem:[%s6904_s17 + $0x10] sm:$0xf]  ;;  %v5458_v18 = vld [vmem:[%s6904_s17 + $0x1c] sm:$0xf] }
  0x50   : > { %365 = vst [vmem:[%s337_s16] sm:$0xf] %v5456_v16  ;;  %367 = vst [vmem:[%s337_s16 + $0x4] sm:$0xf] %v5457_v17  ;;  %v5459_v19 = vld [vmem:[%s6904_s17 + $0x28] sm:$0xf] }
  0x51   : > { %369 = vst [vmem:[%s337_s16 + $0x8] sm:$0xf] %v5458_v18  ;;  %v5460_v20 = vld [vmem:[%s6904_s17 + $0x34] sm:$0xf]  ;;  %v5461_v21 = vld [vmem:[%s6904_s17 + $0x40] sm:$0xf] }
  0x52   : > { %371 = vst [vmem:[%s337_s16 + $0xc] sm:$0xf] %v5459_v19  ;;  %373 = vst [vmem:[%s337_s16 + $0x10] sm:$0xf] %v5460_v20  ;;  %v5462_v22 = vld [vmem:[%s6904_s17 + $0x4c] sm:$0xf] }
  0x53   : > { %375 = vst [vmem:[%s337_s16 + $0x14] sm:$0xf] %v5461_v21  ;;  %v5463_v23 = vld [vmem:[%s6904_s17 + $0x58] sm:$0xf]  ;;  %v5464_v24 = vld [vmem:[%s6904_s17 + $0x64] sm:$0xf] }
  0x54   : > { %377 = vst [vmem:[%s337_s16 + $0x18] sm:$0xf] %v5462_v22  ;;  %379 = vst [vmem:[%s337_s16 + $0x1c] sm:$0xf] %v5463_v23  ;;  %v5465_v25 = vld [vmem:[%s6904_s17 + $0x70] sm:$0xf] }
  0x55   : > { %381 = vst [vmem:[%s337_s16 + $0x20] sm:$0xf] %v5464_v24  ;;  %v5466_v26 = vld [vmem:[%s6904_s17 + $0x7c] sm:$0xf]  ;;  %v5467_v27 = vld [vmem:[%s6904_s17 + $0x88] sm:$0xf] }
  0x56   : > { %383 = vst [vmem:[%s337_s16 + $0x24] sm:$0xf] %v5465_v25  ;;  %385 = vst [vmem:[%s337_s16 + $0x28] sm:$0xf] %v5466_v26  ;;  %v5468_v28 = vld [vmem:[%s6904_s17 + $0x94] sm:$0xf] }
  0x57   : > { %387 = vst [vmem:[%s337_s16 + $0x2c] sm:$0xf] %v5467_v27  ;;  %v5469_v29 = vld [vmem:[%s6904_s17 + $0xa0] sm:$0xf]  ;;  %v5470_v30 = vld [vmem:[%s6904_s17 + $0xac] sm:$0xf] }
  0x58   : > { %389 = vst [vmem:[%s337_s16 + $0x30] sm:$0xf] %v5468_v28  ;;  %391 = vst [vmem:[%s337_s16 + $0x34] sm:$0xf] %v5469_v29  ;;  %v5471_v31 = vld [vmem:[%s6904_s17 + $0xb8] sm:$0xf] }
  0x59   : > { %393 = vst [vmem:[%s337_s16 + $0x38] sm:$0xf] %v5470_v30  ;;  %395 = vst [vmem:[%s337_s16 + $0x3c] sm:$0xf] %v5471_v31 }
  0x5a PF: > { %450 = sbr.rel (!%p6859_p3) target bundleno = 116 (0x74), region = 102  ;;  %s455_s19 = sld [smem:[#allocation6 + %s6732_s29]] (%p6859_p3) }
  0x5b   : > { %s452_s9 = sand.u32 (%p6859_p3), 1, %s6708_s24   ;;  %s5333_s10 = smul.u32 (%p6859_p3), 48, %s6732_s29 }
  0x5c   : > { %s5472_s20 = sshll.u32 (%p6859_p3), %s452_s9, 6 }
  0x5d   : > { %s454_s7 = scalar_lea.vmem (%p6859_p3), [#allocation9], %s5472_s20 }
  0x60   : > { %s5473_s6 = sadd.s32 (%p6859_p3), 4294967295, %s455_s19 }
  0x61   : > { %p5474_p8 = scmp.gt.s32.totalorder %s5473_s6, 0 }
  0x63   : > { %s10265_s6 = smov (%p5474_p8, %s5473_s6), 0 }
  0x64   : > { %s5332_s22 = smul.u32 48, %s10265_s6 }
  0x66   : > { %s5334_s11 = sadd.s32 %s5333_s10, %s5332_s22 }
  0x67   : > { %s5475_s12 = sshll.u32 %s5334_s11, 2 }
  0x68   : > { %s6930_s18 = scalar_lea.vmem %s9835_s3, %s5475_s12 }
  0x69   : > { %v5476_v32 = vld [vmem:[%s6930_s18 + $0x8] sm:$0xf]  ;;  %v5477_v33 = vld [vmem:[%s6930_s18 + $0x14] sm:$0xf]  ;;  %v5478_v34 = vld [vmem:[%s6930_s18 + $0x20] sm:$0xf] }
  0x6a   : > { %482 = vst [vmem:[%s454_s7] sm:$0xf] %v5476_v32  ;;  %484 = vst [vmem:[%s454_s7 + $0x4] sm:$0xf] %v5477_v33  ;;  %v5479_v35 = vld [vmem:[%s6930_s18 + $0x2c] sm:$0xf] }
  0x6b   : > { %486 = vst [vmem:[%s454_s7 + $0x8] sm:$0xf] %v5478_v34  ;;  %v5480_v36 = vld [vmem:[%s6930_s18 + $0x38] sm:$0xf]  ;;  %v5481_v37 = vld [vmem:[%s6930_s18 + $0x44] sm:$0xf] }
  0x6c   : > { %488 = vst [vmem:[%s454_s7 + $0xc] sm:$0xf] %v5479_v35  ;;  %490 = vst [vmem:[%s454_s7 + $0x10] sm:$0xf] %v5480_v36  ;;  %v5482_v38 = vld [vmem:[%s6930_s18 + $0x50] sm:$0xf] }
  0x6d   : > { %492 = vst [vmem:[%s454_s7 + $0x14] sm:$0xf] %v5481_v37  ;;  %v5483_v39 = vld [vmem:[%s6930_s18 + $0x5c] sm:$0xf]  ;;  %v5484_v40 = vld [vmem:[%s6930_s18 + $0x68] sm:$0xf] }
  0x6e   : > { %494 = vst [vmem:[%s454_s7 + $0x18] sm:$0xf] %v5482_v38  ;;  %496 = vst [vmem:[%s454_s7 + $0x1c] sm:$0xf] %v5483_v39  ;;  %v5485_v41 = vld [vmem:[%s6930_s18 + $0x74] sm:$0xf] }
  0x6f   : > { %498 = vst [vmem:[%s454_s7 + $0x20] sm:$0xf] %v5484_v40  ;;  %v5486_v42 = vld [vmem:[%s6930_s18 + $0x80] sm:$0xf]  ;;  %v5487_v43 = vld [vmem:[%s6930_s18 + $0x8c] sm:$0xf] }
  0x70   : > { %500 = vst [vmem:[%s454_s7 + $0x24] sm:$0xf] %v5485_v41  ;;  %502 = vst [vmem:[%s454_s7 + $0x28] sm:$0xf] %v5486_v42  ;;  %v5488_v44 = vld [vmem:[%s6930_s18 + $0x98] sm:$0xf] }
  0x71   : > { %504 = vst [vmem:[%s454_s7 + $0x2c] sm:$0xf] %v5487_v43  ;;  %v5489_v45 = vld [vmem:[%s6930_s18 + $0xa4] sm:$0xf]  ;;  %v5490_v46 = vld [vmem:[%s6930_s18 + $0xb0] sm:$0xf] }
  0x72   : > { %506 = vst [vmem:[%s454_s7 + $0x30] sm:$0xf] %v5488_v44  ;;  %508 = vst [vmem:[%s454_s7 + $0x34] sm:$0xf] %v5489_v45  ;;  %v5491_v47 = vld [vmem:[%s6930_s18 + $0xbc] sm:$0xf] }
  0x73   : > { %510 = vst [vmem:[%s454_s7 + $0x38] sm:$0xf] %v5490_v46  ;;  %512 = vst [vmem:[%s454_s7 + $0x3c] sm:$0xf] %v5491_v47 }
  0x74 PF: > { %p5492_p9 = scmp.ge.s32.totalorder %s6736_s30, 1  ;;  %p583_p10 = scmp.lt.s32.totalorder %s6736_s30, 3 }
  0x76   : > { %p584_p11 = pnand %p5492_p9, %p583_p10 }
  0x77   : > { %s590_s21 = sand.u32 (!%p584_p11), 1, %s6720_s26   ;;  %s597_s17 = sand.u32 (!%p584_p11), 1, %s6712_s25   ;;  %vm691_vm0 = vcmask (!%p584_p11), 7168   ;;  %v6739_v48 = vmov (!%p584_p11), -inf   ;;  %v6740_v49 = vmov (!%p584_p11), 0.0  }
  0x78   : > { %587 = sbr.rel (%p584_p11) target bundleno = 3241 (0xca9), region = 147  ;;  %s6952_s16 = sshll.u32 (!%p584_p11), %s590_s21, 6  ;;  %692 = vst.msk [vmem:[#allocation2] sm:$0xff] (!%p584_p11), %vm691_vm0, %v6739_v48  ;;  %693 = vst.msk [vmem:[#allocation2 + $0x8] sm:$0xff] (!%p584_p11), %vm691_vm0, %v6739_v48 }
  0x79   : > { %s6954_s19 = sshll.u32 (!%p584_p11), %s597_s17, 6  ;;  %694 = vst.msk [vmem:[#allocation2 + $0x10] sm:$0xff] (!%p584_p11), %vm691_vm0, %v6739_v48  ;;  %695 = vst.msk [vmem:[#allocation2 + $0x18] sm:$0xff] (!%p584_p11), %vm691_vm0, %v6739_v48  ;;  %s604_s25 = sand.u32 (!%p584_p11), 1, %s6704_s23  }
  0x7a   : > { %696 = vst.msk [vmem:[#allocation2 + $0x20] sm:$0xff] (!%p584_p11), %vm691_vm0, %v6739_v48  ;;  %697 = vst.msk [vmem:[#allocation2 + $0x28] sm:$0xff] (!%p584_p11), %vm691_vm0, %v6739_v48  ;;  %s662_s26 = sld [smem:[#allocation6 + %s6728_s28]] (!%p584_p11)  ;;  %s5495_s6 = sshll.u32 (!%p584_p11), %s604_s25, 6 }
  0x7b   : > { %698 = vst.msk [vmem:[#allocation2 + $0x30] sm:$0xff] (!%p584_p11), %vm691_vm0, %v6739_v48  ;;  %699 = vst.msk [vmem:[#allocation2 + $0x38] sm:$0xff] (!%p584_p11), %vm691_vm0, %v6739_v48  ;;  %p666_p12 = scmp.lt.s32.totalorder (!%p584_p11), %s6728_s28, 1  ;;  %s836_s9 = sld [smem:[#allocation6 + %s6728_s28]] (!%p584_p11) }
  0x7c   : > { %700 = vst.msk [vmem:[#allocation2 + $0x40] sm:$0xff] (!%p584_p11), %vm691_vm0, %v6739_v48  ;;  %701 = vst.msk [vmem:[#allocation2 + $0x48] sm:$0xff] (!%p584_p11), %vm691_vm0, %v6739_v48  ;;  %s7244_s7 = scalar_lea.vmem (!%p584_p11), [#allocation7], %s6952_s16  ;;  %s7247_s21 = scalar_lea.vmem (!%p584_p11), [#allocation8], %s6954_s19 }
  0x7d   : > { %702 = vst.msk [vmem:[#allocation2 + $0x50] sm:$0xff] (!%p584_p11), %vm691_vm0, %v6739_v48  ;;  %703 = vst.msk [vmem:[#allocation2 + $0x58] sm:$0xff] (!%p584_p11), %vm691_vm0, %v6739_v48  ;;  %s7249_s17 = scalar_lea.vmem (!%p584_p11), [#allocation9], %s5495_s6 }
  0x7e   : > { %704 = vst.msk [vmem:[#allocation2 + $0x60] sm:$0xff] (!%p584_p11), %vm691_vm0, %v6739_v48  ;;  %705 = vst.msk [vmem:[#allocation2 + $0x68] sm:$0xff] (!%p584_p11), %vm691_vm0, %v6739_v48 }
  0x7f   : > { %706 = vst.msk [vmem:[#allocation2 + $0x70] sm:$0xff] %vm691_vm0, %v6739_v48  ;;  %707 = vst.msk [vmem:[#allocation2 + $0x78] sm:$0xff] %vm691_vm0, %v6739_v48  ;;  %s10267_s28 = smov (!%p666_p12, %s6728_s28), 1 }
  0x80   : > { %708 = vst.msk [vmem:[#allocation2 + $0x80] sm:$0xff] %vm691_vm0, %v6739_v48  ;;  %709 = vst.msk [vmem:[#allocation2 + $0x88] sm:$0xff] %vm691_vm0, %v6739_v48  ;;  %s5628_s10 = sshll.u32 %s10267_s28, 6  ;;  %s5496_s20 = sadd.s32 4294967295, %s662_s26 }
  0x81   : > { %710 = vst.msk [vmem:[#allocation2 + $0x90] sm:$0xff] %vm691_vm0, %v6739_v48  ;;  %711 = vst.msk [vmem:[#allocation2 + $0x98] sm:$0xff] %vm691_vm0, %v6739_v48  ;;  %s7236_s12 = scalar_lea.vmem %s9837_s5, %s5628_s10  ;;  %p5497_p13 = scmp.gt.s32.totalorder %s5496_s20, 0 }
  0x82   : > { %712 = vst.msk [vmem:[#allocation2 + $0xa0] sm:$0xff] %vm691_vm0, %v6739_v48  ;;  %713 = vst.msk [vmem:[#allocation2 + $0xa8] sm:$0xff] %vm691_vm0, %v6739_v48  ;;  %p5499_p0 = scmp.lt.s32.totalorder %s5496_s20, 0  ;;  %p5504_p1 = scmp.le.s32.totalorder %s836_s9, 0 }
  0x83   : > { %714 = vst.msk [vmem:[#allocation2 + $0xb0] sm:$0xff] %vm691_vm0, %v6739_v48  ;;  %715 = vst.msk [vmem:[#allocation2 + $0xb8] sm:$0xff] %vm691_vm0, %v6739_v48  ;;  %s10269_s20 = smov (%p5497_p13, %s5496_s20), 0 }
  0x84   : > { %716 = vst.msk [vmem:[#allocation2 + $0xc0] sm:$0xff] %vm691_vm0, %v6739_v48  ;;  %717 = vst.msk [vmem:[#allocation2 + $0xc8] sm:$0xff] %vm691_vm0, %v6739_v48  ;;  %s10271_s20 = smov (!%p5499_p0, %s10269_s20), 0 }
  0x85   : > { %718 = vst.msk [vmem:[#allocation2 + $0xd0] sm:$0xff] %vm691_vm0, %v6739_v48  ;;  %719 = vst.msk [vmem:[#allocation2 + $0xd8] sm:$0xff] %vm691_vm0, %v6739_v48  ;;  %s670_s13 = sadd.s32 %s10271_s20, %s10267_s28 }
  0x86   : > { %720 = vst.msk [vmem:[#allocation2 + $0xe0] sm:$0xff] %vm691_vm0, %v6739_v48  ;;  %721 = vst.msk [vmem:[#allocation2 + $0xe8] sm:$0xff] %vm691_vm0, %v6739_v48  ;;  %s7241_s18 = scalar_lea.vmem %s9836_s4, %s670_s13 }
  0x87   : > { %722 = vst.msk [vmem:[#allocation2 + $0xf0] sm:$0xff] %vm691_vm0, %v6739_v48  ;;  %723 = vst.msk [vmem:[#allocation2 + $0xf8] sm:$0xff] %vm691_vm0, %v6739_v48 }
  0x88   : > { %724 = vst.msk [vmem:[#allocation2 + $0x100] sm:$0xff] %vm691_vm0, %v6739_v48  ;;  %725 = vst.msk [vmem:[#allocation2 + $0x108] sm:$0xff] %vm691_vm0, %v6739_v48 }
  0x89   : > { %726 = vst.msk [vmem:[#allocation2 + $0x110] sm:$0xff] %vm691_vm0, %v6739_v48  ;;  %727 = vst.msk [vmem:[#allocation2 + $0x118] sm:$0xff] %vm691_vm0, %v6739_v48 }
  0x8a   : > { %728 = vst.msk [vmem:[#allocation2 + $0x120] sm:$0xff] %vm691_vm0, %v6739_v48  ;;  %729 = vst.msk [vmem:[#allocation2 + $0x128] sm:$0xff] %vm691_vm0, %v6739_v48 }
  0x8b   : > { %730 = vst.msk [vmem:[#allocation2 + $0x130] sm:$0xff] %vm691_vm0, %v6739_v48  ;;  %731 = vst.msk [vmem:[#allocation2 + $0x138] sm:$0xff] %vm691_vm0, %v6739_v48 }
  0x8c   : > { %732 = vst.msk [vmem:[#allocation2 + $0x140] sm:$0xff] %vm691_vm0, %v6739_v48  ;;  %733 = vst.msk [vmem:[#allocation2 + $0x148] sm:$0xff] %vm691_vm0, %v6739_v48 }
  0x8d   : > { %734 = vst.msk [vmem:[#allocation2 + $0x150] sm:$0xff] %vm691_vm0, %v6739_v48  ;;  %735 = vst.msk [vmem:[#allocation2 + $0x158] sm:$0xff] %vm691_vm0, %v6739_v48 }
  0x8e   : > { %736 = vst.msk [vmem:[#allocation2 + $0x160] sm:$0xff] %vm691_vm0, %v6739_v48  ;;  %737 = vst.msk [vmem:[#allocation2 + $0x168] sm:$0xff] %vm691_vm0, %v6739_v48 }
  0x8f   : > { %738 = vst.msk [vmem:[#allocation2 + $0x170] sm:$0xff] %vm691_vm0, %v6739_v48  ;;  %739 = vst.msk [vmem:[#allocation2 + $0x178] sm:$0xff] %vm691_vm0, %v6739_v48 }
  0x90   : > { %740 = vst.msk [vmem:[#allocation2 + $0x180] sm:$0xff] %vm691_vm0, %v6739_v48  ;;  %741 = vst.msk [vmem:[#allocation2 + $0x188] sm:$0xff] %vm691_vm0, %v6739_v48 }
  0x91   : > { %742 = vst.msk [vmem:[#allocation2 + $0x190] sm:$0xff] %vm691_vm0, %v6739_v48  ;;  %743 = vst.msk [vmem:[#allocation2 + $0x198] sm:$0xff] %vm691_vm0, %v6739_v48 }
  0x92   : > { %744 = vst.msk [vmem:[#allocation2 + $0x1a0] sm:$0xff] %vm691_vm0, %v6739_v48  ;;  %745 = vst.msk [vmem:[#allocation2 + $0x1a8] sm:$0xff] %vm691_vm0, %v6739_v48 }
  0x93   : > { %746 = vst.msk [vmem:[#allocation2 + $0x1b0] sm:$0xff] %vm691_vm0, %v6739_v48  ;;  %747 = vst.msk [vmem:[#allocation2 + $0x1b8] sm:$0xff] %vm691_vm0, %v6739_v48 }
  0x94   : > { %748 = vst.msk [vmem:[#allocation2 + $0x1c0] sm:$0xff] %vm691_vm0, %v6739_v48  ;;  %749 = vst.msk [vmem:[#allocation2 + $0x1c8] sm:$0xff] %vm691_vm0, %v6739_v48 }
  0x95   : > { %750 = vst.msk [vmem:[#allocation2 + $0x1d0] sm:$0xff] %vm691_vm0, %v6739_v48  ;;  %751 = vst.msk [vmem:[#allocation2 + $0x1d8] sm:$0xff] %vm691_vm0, %v6739_v48 }
  0x96   : > { %752 = vst.msk [vmem:[#allocation2 + $0x1e0] sm:$0xff] %vm691_vm0, %v6739_v48  ;;  %753 = vst.msk [vmem:[#allocation2 + $0x1e8] sm:$0xff] %vm691_vm0, %v6739_v48 }
  0x97   : > { %754 = vst.msk [vmem:[#allocation2 + $0x1f0] sm:$0xff] %vm691_vm0, %v6739_v48  ;;  %755 = vst.msk [vmem:[#allocation2 + $0x1f8] sm:$0xff] %vm691_vm0, %v6739_v48 }
  0x98   : > { %756 = vst.msk [vmem:[#allocation3] sm:$0xff] %vm691_vm0, %v6740_v49  ;;  %757 = vst.msk [vmem:[#allocation3 + $0x8] sm:$0xff] %vm691_vm0, %v6740_v49 }
  0x99   : > { %758 = vst.msk [vmem:[#allocation3 + $0x10] sm:$0xff] %vm691_vm0, %v6740_v49  ;;  %759 = vst.msk [vmem:[#allocation3 + $0x18] sm:$0xff] %vm691_vm0, %v6740_v49 }
  0x9a   : > { %760 = vst.msk [vmem:[#allocation3 + $0x20] sm:$0xff] %vm691_vm0, %v6740_v49  ;;  %761 = vst.msk [vmem:[#allocation3 + $0x28] sm:$0xff] %vm691_vm0, %v6740_v49 }
  0x9b   : > { %762 = vst.msk [vmem:[#allocation3 + $0x30] sm:$0xff] %vm691_vm0, %v6740_v49  ;;  %763 = vst.msk [vmem:[#allocation3 + $0x38] sm:$0xff] %vm691_vm0, %v6740_v49 }
  0x9c   : > { %764 = vst.msk [vmem:[#allocation3 + $0x40] sm:$0xff] %vm691_vm0, %v6740_v49  ;;  %765 = vst.msk [vmem:[#allocation3 + $0x48] sm:$0xff] %vm691_vm0, %v6740_v49 }
  0x9d   : > { %766 = vst.msk [vmem:[#allocation3 + $0x50] sm:$0xff] %vm691_vm0, %v6740_v49  ;;  %767 = vst.msk [vmem:[#allocation3 + $0x58] sm:$0xff] %vm691_vm0, %v6740_v49 }
  0x9e   : > { %768 = vst.msk [vmem:[#allocation3 + $0x60] sm:$0xff] %vm691_vm0, %v6740_v49  ;;  %769 = vst.msk [vmem:[#allocation3 + $0x68] sm:$0xff] %vm691_vm0, %v6740_v49 }
  0x9f   : > { %770 = vst.msk [vmem:[#allocation3 + $0x70] sm:$0xff] %vm691_vm0, %v6740_v49  ;;  %771 = vst.msk [vmem:[#allocation3 + $0x78] sm:$0xff] %vm691_vm0, %v6740_v49 }
  0xa0   : > { %772 = vst.msk [vmem:[#allocation3 + $0x80] sm:$0xff] %vm691_vm0, %v6740_v49  ;;  %773 = vst.msk [vmem:[#allocation3 + $0x88] sm:$0xff] %vm691_vm0, %v6740_v49 }
  0xa1   : > { %774 = vst.msk [vmem:[#allocation3 + $0x90] sm:$0xff] %vm691_vm0, %v6740_v49  ;;  %775 = vst.msk [vmem:[#allocation3 + $0x98] sm:$0xff] %vm691_vm0, %v6740_v49 }
  0xa2   : > { %776 = vst.msk [vmem:[#allocation3 + $0xa0] sm:$0xff] %vm691_vm0, %v6740_v49  ;;  %777 = vst.msk [vmem:[#allocation3 + $0xa8] sm:$0xff] %vm691_vm0, %v6740_v49 }
  0xa3   : > { %778 = vst.msk [vmem:[#allocation3 + $0xb0] sm:$0xff] %vm691_vm0, %v6740_v49  ;;  %779 = vst.msk [vmem:[#allocation3 + $0xb8] sm:$0xff] %vm691_vm0, %v6740_v49 }
  0xa4   : > { %780 = vst.msk [vmem:[#allocation3 + $0xc0] sm:$0xff] %vm691_vm0, %v6740_v49  ;;  %781 = vst.msk [vmem:[#allocation3 + $0xc8] sm:$0xff] %vm691_vm0, %v6740_v49 }
  0xa5   : > { %782 = vst.msk [vmem:[#allocation3 + $0xd0] sm:$0xff] %vm691_vm0, %v6740_v49  ;;  %783 = vst.msk [vmem:[#allocation3 + $0xd8] sm:$0xff] %vm691_vm0, %v6740_v49 }
  0xa6   : > { %784 = vst.msk [vmem:[#allocation3 + $0xe0] sm:$0xff] %vm691_vm0, %v6740_v49  ;;  %785 = vst.msk [vmem:[#allocation3 + $0xe8] sm:$0xff] %vm691_vm0, %v6740_v49 }
  0xa7   : > { %786 = vst.msk [vmem:[#allocation3 + $0xf0] sm:$0xff] %vm691_vm0, %v6740_v49  ;;  %787 = vst.msk [vmem:[#allocation3 + $0xf8] sm:$0xff] %vm691_vm0, %v6740_v49 }
  0xa8   : > { %788 = vst.msk [vmem:[#allocation3 + $0x100] sm:$0xff] %vm691_vm0, %v6740_v49  ;;  %789 = vst.msk [vmem:[#allocation3 + $0x108] sm:$0xff] %vm691_vm0, %v6740_v49 }
  0xa9   : > { %790 = vst.msk [vmem:[#allocation3 + $0x110] sm:$0xff] %vm691_vm0, %v6740_v49  ;;  %791 = vst.msk [vmem:[#allocation3 + $0x118] sm:$0xff] %vm691_vm0, %v6740_v49 }
  0xaa   : > { %792 = vst.msk [vmem:[#allocation3 + $0x120] sm:$0xff] %vm691_vm0, %v6740_v49  ;;  %793 = vst.msk [vmem:[#allocation3 + $0x128] sm:$0xff] %vm691_vm0, %v6740_v49 }
  0xab   : > { %794 = vst.msk [vmem:[#allocation3 + $0x130] sm:$0xff] %vm691_vm0, %v6740_v49  ;;  %795 = vst.msk [vmem:[#allocation3 + $0x138] sm:$0xff] %vm691_vm0, %v6740_v49 }
  0xac   : > { %796 = vst.msk [vmem:[#allocation3 + $0x140] sm:$0xff] %vm691_vm0, %v6740_v49  ;;  %797 = vst.msk [vmem:[#allocation3 + $0x148] sm:$0xff] %vm691_vm0, %v6740_v49 }
  0xad   : > { %798 = vst.msk [vmem:[#allocation3 + $0x150] sm:$0xff] %vm691_vm0, %v6740_v49  ;;  %799 = vst.msk [vmem:[#allocation3 + $0x158] sm:$0xff] %vm691_vm0, %v6740_v49 }
  0xae   : > { %800 = vst.msk [vmem:[#allocation3 + $0x160] sm:$0xff] %vm691_vm0, %v6740_v49  ;;  %801 = vst.msk [vmem:[#allocation3 + $0x168] sm:$0xff] %vm691_vm0, %v6740_v49 }
  0xaf   : > { %802 = vst.msk [vmem:[#allocation3 + $0x170] sm:$0xff] %vm691_vm0, %v6740_v49  ;;  %803 = vst.msk [vmem:[#allocation3 + $0x178] sm:$0xff] %vm691_vm0, %v6740_v49 }
  0xb0   : > { %804 = vst.msk [vmem:[#allocation3 + $0x180] sm:$0xff] %vm691_vm0, %v6740_v49  ;;  %805 = vst.msk [vmem:[#allocation3 + $0x188] sm:$0xff] %vm691_vm0, %v6740_v49 }
  0xb1   : > { %806 = vst.msk [vmem:[#allocation3 + $0x190] sm:$0xff] %vm691_vm0, %v6740_v49  ;;  %807 = vst.msk [vmem:[#allocation3 + $0x198] sm:$0xff] %vm691_vm0, %v6740_v49 }
  0xb2   : > { %808 = vst.msk [vmem:[#allocation3 + $0x1a0] sm:$0xff] %vm691_vm0, %v6740_v49  ;;  %809 = vst.msk [vmem:[#allocation3 + $0x1a8] sm:$0xff] %vm691_vm0, %v6740_v49 }
  0xb3   : > { %810 = vst.msk [vmem:[#allocation3 + $0x1b0] sm:$0xff] %vm691_vm0, %v6740_v49  ;;  %811 = vst.msk [vmem:[#allocation3 + $0x1b8] sm:$0xff] %vm691_vm0, %v6740_v49 }
  0xb4   : > { %812 = vst.msk [vmem:[#allocation3 + $0x1c0] sm:$0xff] %vm691_vm0, %v6740_v49  ;;  %813 = vst.msk [vmem:[#allocation3 + $0x1c8] sm:$0xff] %vm691_vm0, %v6740_v49 }
  0xb5   : > { %814 = vst.msk [vmem:[#allocation3 + $0x1d0] sm:$0xff] %vm691_vm0, %v6740_v49  ;;  %815 = vst.msk [vmem:[#allocation3 + $0x1d8] sm:$0xff] %vm691_vm0, %v6740_v49 }
  0xb6   : > { %816 = vst.msk [vmem:[#allocation3 + $0x1e0] sm:$0xff] %vm691_vm0, %v6740_v49  ;;  %817 = vst.msk [vmem:[#allocation3 + $0x1e8] sm:$0xff] %vm691_vm0, %v6740_v49 }
  0xb7   : > { %818 = vst.msk [vmem:[#allocation3 + $0x1f0] sm:$0xff] %vm691_vm0, %v6740_v49  ;;  %819 = vst.msk [vmem:[#allocation3 + $0x1f8] sm:$0xff] %vm691_vm0, %v6740_v49 }
  0xb8   : > { %820 = vst [vmem:[#allocation4] sm:$0xff] %v6740_v49  ;;  %821 = vst [vmem:[#allocation4 + $0x8] sm:$0xff] %v6740_v49 }
  0xb9   : > { %822 = vst [vmem:[#allocation4 + $0x10] sm:$0xff] %v6740_v49  ;;  %823 = vst [vmem:[#allocation4 + $0x18] sm:$0xff] %v6740_v49  ;;  %840 = sbr.rel (%p5504_p1) target bundleno = 2971 (0xb9b), region = 167 }
  0xba   : > { %824 = vst [vmem:[#allocation4 + $0x20] sm:$0xff] %v6740_v49  ;;  %825 = vst [vmem:[#allocation4 + $0x28] sm:$0xff] %v6740_v49 }
  0xbb   : > { %826 = vst [vmem:[#allocation4 + $0x30] sm:$0xff] %v6740_v49  ;;  %827 = vst [vmem:[#allocation4 + $0x38] sm:$0xff] %v6740_v49 }
  0xbc   : > { %828 = vst [vmem:[#allocation4 + $0x40] sm:$0xff] %v6740_v49  ;;  %829 = vst [vmem:[#allocation4 + $0x48] sm:$0xff] %v6740_v49 }
  0xbd   : > { %830 = vst [vmem:[#allocation4 + $0x50] sm:$0xff] %v6740_v49  ;;  %831 = vst [vmem:[#allocation4 + $0x58] sm:$0xff] %v6740_v49 }
  0xbe   : > { %832 = vst [vmem:[#allocation4 + $0x60] sm:$0xff] %v6740_v49  ;;  %833 = vst [vmem:[#allocation4 + $0x68] sm:$0xff] %v6740_v49 }
  0xbf   : > { %834 = vst [vmem:[#allocation4 + $0x70] sm:$0xff] %v6740_v49  ;;  %835 = vst [vmem:[#allocation4 + $0x78] sm:$0xff] %v6740_v49 }
  0xc0   : > { %v7252_v50 = vld [vmem:[%s7247_s21] sm:$0xff]   ;;  %vm976_vm1 = vcmask 261120   ;;  %v7255_v51 = vld [vmem:[%s7247_s21 + $0x8] sm:$0xff]   ;;  %v7264_v53 = vld [vmem:[%s7247_s21 + $0x10] sm:$0xff]   ;;  %v6741_v31 = vmov 0   ;;  %s6742_s28 = smov 96  }
  0xc1   : > { %6077 = vmatprep.subr.msk.bf16.mxu0 %vm976_vm1, %v7252_v50  ;;  %v1002_v52 = vsel %vm976_vm1, %v7252_v50, 0  ;;  %v1005_v54 = vsel %vm976_vm1, %v7255_v51, 0  ;;  %v7269_v55 = vld [vmem:[%s7244_s7] sm:$0xff]   ;;  %v1008_v56 = vsel %vm976_vm1, %v7264_v53, 0  ;;  %v7278_v57 = vld [vmem:[%s7247_s21 + $0x18] sm:$0xff]   ;;  %v7292_v61 = vld [vmem:[%s7247_s21 + $0x28] sm:$0xff]   ;;  %6191 = vset.pattern.permute.xlu1 %v6741_v31 }
  0xc2   : > { %5822 = vmatpush3.bf16.xpose.msra.mxu0 %v1002_v52  ;;  %5837 = vmatprep.mubr.msk.bf16.mxu0 %vm976_vm1, %v7269_v55  ;;  %v1011_v58 = vsel %vm976_vm1, %v7278_v57, 0  ;;  %v7285_v59 = vld [vmem:[%s7247_s21 + $0x20] sm:$0xff]   ;;  %v1017_v62 = vsel %vm976_vm1, %v7292_v61, 0  ;;  %v7299_v63 = vld [vmem:[%s7247_s21 + $0x30] sm:$0xff]   ;;  %v7306_v1 = vld [vmem:[%s7247_s21 + $0x38] sm:$0xff]   ;;  %s6743_s16 = smov 64  }
  0xc3   : > { %6078 = vmatprep.subr.msk.bf16.mxu0 %vm976_vm1, %v7255_v51  ;;  %v1014_v60 = vsel %vm976_vm1, %v7285_v59, 0  ;;  %v1020_v0 = vsel %vm976_vm1, %v7299_v63, 0  ;;  %v1023_v2 = vsel %vm976_vm1, %v7306_v1, 0  ;;  %v7313_v3 = vld [vmem:[%s7244_s7 + $0x8] sm:$0xff]   ;;  %v7316_v4 = vld [vmem:[%s7244_s7 + $0x10] sm:$0xff]   ;;  %v7323_v5 = vld [vmem:[%s7244_s7 + $0x18] sm:$0xff]   ;;  %6190 = vset.pattern.permute.xlu0 %v6741_v31 }
  0xc4   : > { %v7326_v6 = vld [vmem:[%s7244_s7 + $0x20] sm:$0xff]   ;;  %v7333_v7 = vld [vmem:[%s7244_s7 + $0x28] sm:$0xff]   ;;  %v7336_v8 = vld [vmem:[%s7244_s7 + $0x30] sm:$0xff]   ;;  %s6744_s19 = smov 32   ;;  %vm2608_vm2 = vcmask 523520   ;;  %vm3477_vm3 = vcmask 785920  }
  0xc5   : > { %v7343_v9 = vld [vmem:[%s7244_s7 + $0x38] sm:$0xff]   ;;  %v7348_v10 = vld [vmem:[%s7241_s18] ss:$0 sm:$0xff]  ;;  %v7418_v45 = vld [vmem:[%s7249_s17 + $0x8] sm:$0xff]   ;;  %vm4346_vm4 = vcmask 1048320  }
  0xc6   : > { %v7415_v44 = vld [vmem:[%s7249_s17] sm:$0xff]   ;;  %v7424_v46 = vld [vmem:[%s7249_s17 + $0x10] sm:$0xff]   ;;  %v7429_v47 = vld [vmem:[%s7249_s17 + $0x18] sm:$0xff]  }
  0xc7   : > { %5853 = vmatprep.subr.bf16.mxu1 %v7415_v44  ;;  %v7434_v48 = vld [vmem:[%s7249_s17 + $0x20] sm:$0xff]   ;;  %v7439_v49 = vld [vmem:[#allocation2 + $0x10] sm:$0xff] }
  0xc8   : > { %5854 = vmatpush3.bf16.msra.mxu1 %v7415_v44  ;;  %v7441_v52 = vld [vmem:[#allocation2] sm:$0xff] }
  0xc9   : > { %5855 = vmatprep.subr.bf16.mxu1 %v7418_v45 }
  0xca   : > { %5824 = vmatpush3.bf16.xpose.msra.mxu0 %v1005_v54 }
  0xcb   : > { %6079 = vmatprep.subr.msk.bf16.mxu0 %vm976_vm1, %v7264_v53 }
  0xcc   : > { %5856 = vmatpush3.bf16.msra.mxu1 %v7418_v45 }
  0xcd   : > { %5857 = vmatprep.subr.bf16.mxu1 %v7424_v46 }
  0xd0   : > { %5858 = vmatpush3.bf16.msra.mxu1 %v7424_v46 }
  0xd1   : > { %5859 = vmatprep.subr.bf16.mxu1 %v7429_v47 }
  0xd2   : > { %5826 = vmatpush3.bf16.xpose.msra.mxu0 %v1008_v56 }
  0xd3   : > { %6080 = vmatprep.subr.msk.bf16.mxu0 %vm976_vm1, %v7278_v57 }
  0xd4   : > { %5860 = vmatpush3.bf16.msra.mxu1 %v7429_v47 }
  0xd5   : > { %5861 = vmatprep.subr.bf16.mxu1 %v7434_v48 }
  0xd8   : > { %5862 = vmatpush3.bf16.msra.mxu1 %v7434_v48 }
  0xda   : > { %5828 = vmatpush3.bf16.xpose.msra.mxu0 %v1011_v58 }
  0xdb   : > { %6081 = vmatprep.subr.msk.bf16.mxu0 %vm976_vm1, %v7285_v59 }
  0xe2   : > { %5830 = vmatpush3.bf16.xpose.msra.mxu0 %v1014_v60 }
  0xe3   : > { %6082 = vmatprep.subr.msk.bf16.mxu0 %vm976_vm1, %v7292_v61 }
  0xea   : > { %5832 = vmatpush3.bf16.xpose.msra.mxu0 %v1017_v62  ;;  %v7449_v62 = vld [vmem:[#allocation2 + $0x18] sm:$0xff] }
  0xeb   : > { %6083 = vmatprep.subr.msk.bf16.mxu0 %vm976_vm1, %v7299_v63 }
  0xf2   : > { %5834 = vmatpush3.bf16.xpose.msra.mxu0 %v1020_v0 }
  0xf3   : > { %6084 = vmatprep.subr.msk.bf16.mxu0 %vm976_vm1, %v7306_v1 }
  0xfa   : > { %5836 = vmatpush3.bf16.xpose.msra.mxu0 %v1023_v2  ;;  %v7456_v2 = vld [vmem:[#allocation2 + $0x8] sm:$0xff] }
 0x101   : > { %5838 = vmatmul.mubr.msk.bf16.vlgmr.msra.gmra.mrb[0].mxu0 %vm976_vm1, %v7313_v3 }
 0x102   : > { %5841 = vmatprep.mubr.msk.bf16.mxu0 %vm976_vm1, %v7316_v4 }
 0x109   : > { %5842 = vmatmul.mubr.msk.bf16.gmra.mrb[4].mxu0 %vm976_vm1, %v7323_v5 }
 0x10a   : > { %5845 = vmatprep.mubr.msk.bf16.mxu0 %vm976_vm1, %v7326_v6 }
 0x111   : > { %5846 = vmatmul.mubr.msk.bf16.gmra.mrb[8].mxu0 %vm976_vm1, %v7333_v7 }
 0x112   : > { %5849 = vmatprep.mubr.msk.bf16.mxu0 %vm976_vm1, %v7336_v8 }
 0x119   : > { %5850 = vmatmul.mubr.msk.bf16.gmra.mrb[12].mxu0 %vm976_vm1, %v7343_v9 }
 0x1d4   : > { %v5839_v11 = vpop.f32.mrb[0].mxu0 }
 0x1d5   : > { %v7351_v12 = vadd.f32 %v5839_v11, %v7348_v10  ;;  %v1059_v13 = vpop.f32.mrb[1].mxu0 }
 0x1d6   : > { %v7354_v14 = vadd.f32 %v7348_v10, %v1059_v13  ;;  %v5840_v15 = vpop.f32.mrb[2].mxu0 }
 0x1d7   : > { %1142 = vmax.xlane.f32.xlu1 %v7351_v12  ;;  %v1062_v16 = vpop.f32.mrb[3].mxu0  ;;  %v7359_v17 = vadd.f32 %v5840_v15, %v7348_v10  ;;  %v7464_v15 = vld [vmem:[%s7249_s17 + $0x28] sm:$0xff]  }
 0x1d8   : > { %1138 = vmax.xlane.f32.xlu0 %v7354_v14  ;;  %v7362_v18 = vadd.f32 %v7348_v10, %v1062_v16  ;;  %5863 = vmatprep.subr.bf16.mxu1 %v7464_v15 }
 0x1d9   : > { %5864 = vmatpush3.bf16.msra.mxu1 %v7464_v15 }
 0x1db   : > { %1144 = vmax.xlane.f32.xlu1 %v7359_v17 }
 0x1dc   : > { %v5843_v19 = vpop.f32.mrb[4].mxu0  ;;  %1140 = vmax.xlane.f32.xlu0 %v7362_v18 }
 0x1dd   : > { %v7367_v20 = vadd.f32 %v5843_v19, %v7348_v10  ;;  %v1075_v21 = vpop.f32.mrb[5].mxu0 }
 0x1de   : > { %v5844_v22 = vpop.f32.mrb[6].mxu0  ;;  %v7373_v25 = vadd.f32 %v7348_v10, %v1075_v21 }
 0x1df   : > { %v7370_v23 = vadd.f32 %v5844_v22, %v7348_v10  ;;  %v1078_v24 = vpop.f32.mrb[7].mxu0  ;;  %v7522_v22 = vld [vmem:[#allocation2 + $0x50] sm:$0xff] }
 0x1e0   : > { %1150 = vmax.xlane.f32.xlu0 %v7367_v20  ;;  %v7378_v26 = vadd.f32 %v7348_v10, %v1078_v24  ;;  %v7477_v24 = vld [vmem:[#allocation2 + $0x30] sm:$0xff]  ;;  %9939 = vst [vmem:[#allocation16_spill] sm:$0xff] %v7522_v22 }
 0x1e1   : > { %1152 = vmax.xlane.f32.xlu1 %v7370_v23  ;;  %9936 = vst [vmem:[#allocation13_spill] sm:$0xff] %v7477_v24 }
 0x1e4   : > { %v5847_v27 = vpop.f32.mrb[8].mxu0  ;;  %1146 = vmax.xlane.f32.xlu0 %v7373_v25 }
 0x1e5   : > { %v7382_v28 = vadd.f32 %v5847_v27, %v7348_v10  ;;  %v1091_v29 = vpop.f32.mrb[9].mxu0  ;;  %1148 = vmax.xlane.f32.xlu1 %v7378_v26 }
 0x1e6   : > { %v5848_v30 = vpop.f32.mrb[10].mxu0  ;;  %v7389_v34 = vadd.f32 %v7348_v10, %v1091_v29  ;;  %v7485_v29 = vld [vmem:[#allocation2 + $0x38] sm:$0xff] }
 0x1e7   : > { %v7386_v32 = vadd.f32 %v5848_v30, %v7348_v10  ;;  %v1094_v33 = vpop.f32.mrb[11].mxu0  ;;  %9937 = vst [vmem:[#allocation14_spill] sm:$0xff] %v7485_v29  ;;  %v7488_v30 = vld [vmem:[%s7249_s17 + $0x30] sm:$0xff]  }
 0x1e8   : > { %1158 = vmax.xlane.f32.xlu0 %v7382_v28  ;;  %v7394_v35 = vadd.f32 %v7348_v10, %v1094_v33  ;;  %5865 = vmatprep.subr.bf16.mxu1 %v7488_v30 }
 0x1e9   : > { %1160 = vmax.xlane.f32.xlu1 %v7386_v32  ;;  %5866 = vmatpush3.bf16.msra.mxu1 %v7488_v30 }
 0x1ec   : > { %v5851_v36 = vpop.f32.mrb[12].mxu0  ;;  %1154 = vmax.xlane.f32.xlu0 %v7389_v34 }
 0x1ed   : > { %v7398_v37 = vadd.f32 %v5851_v36, %v7348_v10  ;;  %v1107_v38 = vpop.f32.mrb[13].mxu0  ;;  %1156 = vmax.xlane.f32.xlu1 %v7394_v35 }
 0x1ee   : > { %v5852_v39 = vpop.f32.mrb[14].mxu0  ;;  %v7405_v42 = vadd.f32 %v7348_v10, %v1107_v38 }
 0x1ef   : > { %v7402_v40 = vadd.f32 %v5852_v39, %v7348_v10  ;;  %v1110_v41 = vpop.f32.mrb[15].mxu0  ;;  %v7497_v39 = vld [vmem:[#allocation2 + $0x20] sm:$0xff] }
 0x1f0   : > { %1166 = vmax.xlane.f32.xlu0 %v7398_v37  ;;  %v7410_v43 = vadd.f32 %v7348_v10, %v1110_v41 }
 0x1f1   : > { %1168 = vmax.xlane.f32.xlu1 %v7402_v40 }
 0x1f4   : > { %1162 = vmax.xlane.f32.xlu0 %v7405_v42 }
 0x1f5   : > { %1164 = vmax.xlane.f32.xlu1 %v7410_v43 }
 0x264   : > { %v1143_v54 = vpop.xlane.xlu1 %1142 }
 0x265   : > { %v7444_v56 = vmax.f32 %v7439_v49, %v1143_v54  ;;  %v1139_v58 = vpop.xlane.xlu0 %1138  ;;  %v7505_v54 = vld [vmem:[#allocation2 + $0x28] sm:$0xff] }
 0x266   : > { %v7447_v60 = vmax.f32 %v7441_v52, %v1139_v58  ;;  %v7508_v58 = vld [vmem:[%s7249_s17 + $0x38] sm:$0xff]  }
 0x267   : > { %1758 = vst.msk [vmem:[#allocation2 + $0x10] sm:$0xff] %vm691_vm0, %v7444_v56  ;;  %1246 = vperm.xlu1 %6191, %v7444_v56   ;;  %5867 = vmatprep.subr.bf16.mxu1 %v7508_v58 }
 0x268   : > { %1756 = vst.msk [vmem:[#allocation2] sm:$0xff] %vm691_vm0, %v7447_v60  ;;  %v1145_v13 = vpop.xlane.xlu1 %1144  ;;  %1236 = vperm.xlu0 %6190, %v7447_v60   ;;  %5868 = vmatpush3.bf16.msra.mxu1 %v7508_v58 }
 0x269   : > { %v7467_v16 = vmax.f32 %v7449_v62, %v1145_v13  ;;  %v1141_v19 = vpop.xlane.xlu0 %1140 }
 0x26a   : > { %v7470_v21 = vmax.f32 %v7456_v2, %v1141_v19 }
 0x26b   : > { %1759 = vst.msk [vmem:[#allocation2 + $0x18] sm:$0xff] %vm691_vm0, %v7467_v16 }
 0x26c   : > { %1757 = vst.msk [vmem:[#allocation2 + $0x8] sm:$0xff] %vm691_vm0, %v7470_v21  ;;  %1241 = vperm.xlu1 %6191, %v7470_v21  }
 0x26d   : > { %v1151_v31 = vpop.xlane.xlu0 %1150 }
 0x26e   : > { %v7491_v33 = vmax.f32 %v7477_v24, %v1151_v31  ;;  %v1153_v36 = vpop.xlane.xlu1 %1152  ;;  %v7564_v24 = vld [vmem:[#allocation2 + $0x70] sm:$0xff] }
 0x26f   : > { %v7495_v38 = vmax.f32 %v7485_v29, %v1153_v36  ;;  %9945 = vst [vmem:[#allocation22_spill] sm:$0xff] %v7564_v24 }
 0x270   : > { %1762 = vst.msk [vmem:[#allocation2 + $0x30] sm:$0xff] %vm691_vm0, %v7491_v33  ;;  %1251 = vperm.xlu1 %6191, %v7467_v16  }
 0x271   : > { %9938 = vst [vmem:[#allocation15_spill] sm:$0xff] %v7495_v38  ;;  %1763 = vst.msk [vmem:[#allocation2 + $0x38] sm:$0xff] %vm691_vm0, %v7495_v38  ;;  %1271 = vperm.xlu0 %6190, %v7495_v38   ;;  %v1147_v19 = vpop.xlane.xlu0 %1146  ;;  %v7543_v38 = vld [vmem:[#allocation2 + $0x40] sm:$0xff] }
 0x272   : > { %v7516_v31 = vmax.f32 %v7497_v39, %v1147_v19  ;;  %v1149_v36 = vpop.xlane.xlu1 %1148  ;;  %v7531_v19 = vld [vmem:[#allocation2 + $0x58] sm:$0xff]  ;;  %9942 = vst [vmem:[#allocation19_spill] sm:$0xff] %v7543_v38 }
 0x273   : > { %v7520_v41 = vmax.f32 %v7505_v54, %v1149_v36  ;;  %9940 = vst [vmem:[#allocation17_spill] sm:$0xff] %v7531_v19  ;;  %v7552_v36 = vld [vmem:[#allocation2 + $0x48] sm:$0xff] }
 0x274   : > { %1760 = vst.msk [vmem:[#allocation2 + $0x20] sm:$0xff] %vm691_vm0, %v7516_v31  ;;  %1788 = vrot.lane.b32.xlu1 %v7252_v50, %s6742_s28  ;;  %9943 = vst [vmem:[#allocation20_spill] sm:$0xff] %v7552_v36 }
 0x275   : > { %1761 = vst.msk [vmem:[#allocation2 + $0x28] sm:$0xff] %vm691_vm0, %v7520_v41  ;;  %v1159_v11 = vpop.xlane.xlu0 %1158 }
 0x276   : > { %v7538_v0 = vmax.f32 %v7522_v22, %v1159_v11  ;;  %v1161_v13 = vpop.xlane.xlu1 %1160  ;;  %v7573_v11 = vld [vmem:[#allocation2 + $0x78] sm:$0xff] }
 0x277   : > { %v7541_v27 = vmax.f32 %v7531_v19, %v1161_v13  ;;  %9946 = vst [vmem:[#allocation23_spill] sm:$0xff] %v7573_v11 }
 0x278   : > { %9941 = vst [vmem:[#allocation18_spill] sm:$0xff] %v7538_v0  ;;  %1766 = vst.msk [vmem:[#allocation2 + $0x50] sm:$0xff] %vm691_vm0, %v7538_v0  ;;  %1790 = vrot.lane.b32.xlu1 %v7255_v51, %s6742_s28  ;;  %1286 = vperm.xlu0 %6190, %v7538_v0  }
 0x279   : > { %1767 = vst.msk [vmem:[#allocation2 + $0x58] sm:$0xff] %vm691_vm0, %v7541_v27  ;;  %v1155_v13 = vpop.xlane.xlu0 %1154 }
 0x27a   : > { %v7559_v29 = vmax.f32 %v7543_v38, %v1155_v13  ;;  %v1157_v50 = vpop.xlane.xlu1 %1156  ;;  %v7585_v38 = vld [vmem:[#allocation2 + $0x60] sm:$0xff] }
 0x27b   : > { %v7562_v22 = vmax.f32 %v7552_v36, %v1157_v50 }
 0x27c   : > { %9944 = vst [vmem:[#allocation21_spill] sm:$0xff] %v7559_v29  ;;  %1764 = vst.msk [vmem:[#allocation2 + $0x40] sm:$0xff] %vm691_vm0, %v7559_v29  ;;  %1792 = vrot.lane.b32.xlu1 %v7264_v53, %s6742_s28  ;;  %1276 = vperm.xlu0 %6190, %v7559_v29   ;;  %v7590_v53 = vld [vmem:[#allocation2 + $0x68] sm:$0xff] }
 0x27d   : > { %1765 = vst.msk [vmem:[#allocation2 + $0x48] sm:$0xff] %vm691_vm0, %v7562_v22  ;;  %v1167_v50 = vpop.xlane.xlu0 %1166  ;;  %9949 = vst [vmem:[#allocation26_spill] sm:$0xff] %v7590_v53 }
 0x27e   : > { %v1169_v19 = vpop.xlane.xlu1 %1168  ;;  %v7580_v51 = vmax.f32 %v7564_v24, %v1167_v50 }
 0x27f   : > { %v7583_v0 = vmax.f32 %v7573_v11, %v1169_v19 }
 0x280   : > { %9947 = vst [vmem:[#allocation24_spill] sm:$0xff] %v7580_v51  ;;  %1266 = vperm.xlu1 %6191, %v7491_v33   ;;  %1794 = vrot.lane.b32.xlu0 %v7278_v57, %s6742_s28  ;;  %1770 = vst.msk [vmem:[#allocation2 + $0x70] sm:$0xff] %vm691_vm0, %v7580_v51 }
 0x281   : > { %9948 = vst [vmem:[#allocation25_spill] sm:$0xff] %v7583_v0  ;;  %1771 = vst.msk [vmem:[#allocation2 + $0x78] sm:$0xff] %vm691_vm0, %v7583_v0  ;;  %v1163_v19 = vpop.xlane.xlu0 %1162 }
 0x282   : > { %v1165_v36 = vpop.xlane.xlu1 %1164  ;;  %v7601_v29 = vmax.f32 %v7585_v38, %v1163_v19 }
 0x283   : > { %v7604_v57 = vmax.f32 %v7590_v53, %v1165_v36 }
 0x284   : > { %1256 = vperm.xlu1 %6191, %v7516_v31   ;;  %1768 = vst.msk [vmem:[#allocation2 + $0x60] sm:$0xff] %vm691_vm0, %v7601_v29 }
 0x285   : > { %9950 = vst [vmem:[#allocation27_spill] sm:$0xff] %v7604_v57  ;;  %1769 = vst.msk [vmem:[#allocation2 + $0x68] sm:$0xff] %vm691_vm0, %v7604_v57  ;;  %1301 = vperm.xlu0 %6190, %v7604_v57  }
 0x288   : > { %1261 = vperm.xlu1 %6191, %v7520_v41  }
 0x289   : > { %1311 = vperm.xlu0 %6190, %v7583_v0  }
 0x28c   : > { %1291 = vperm.xlu1 %6191, %v7541_v27  }
 0x28d   : > { %1798 = vrot.lane.b32.xlu0 %v7292_v61, %s6742_s28 }
 0x290   : > { %1281 = vperm.xlu1 %6191, %v7562_v22  }
 0x291   : > { %1802 = vrot.lane.b32.xlu0 %v7306_v1, %s6742_s28 }
 0x294   : > { %1306 = vperm.xlu1 %6191, %v7580_v51  }
 0x295   : > { %1774 = vrot.lane.b32.xlu0 %v7313_v3, %s6742_s28 }
 0x298   : > { %1296 = vperm.xlu1 %6191, %v7601_v29  }
 0x299   : > { %1778 = vrot.lane.b32.xlu0 %v7323_v5, %s6742_s28 }
 0x29c   : > { %1796 = vrot.lane.b32.xlu1 %v7285_v59, %s6742_s28 }
 0x29d   : > { %1782 = vrot.lane.b32.xlu0 %v7333_v7, %s6742_s28 }
 0x2a0   : > { %1800 = vrot.lane.b32.xlu1 %v7299_v63, %s6742_s28 }
 0x2a1   : > { %1786 = vrot.lane.b32.xlu0 %v7343_v9, %s6742_s28 }
 0x2a4   : > { %1772 = vrot.lane.b32.xlu1 %v7269_v55, %s6742_s28 }
 0x2a5   : > { %2407 = vrot.lane.b32.xlu0 %v7415_v44, %s6742_s28 }
 0x2a8   : > { %1776 = vrot.lane.b32.xlu1 %v7316_v4, %s6742_s28 }
 0x2ac   : > { %1780 = vrot.lane.b32.xlu1 %v7326_v6, %s6742_s28 }
 0x2b0   : > { %1784 = vrot.lane.b32.xlu1 %v7336_v8, %s6742_s28 }
 0x2b4   : > { %2409 = vrot.lane.b32.xlu1 %v7418_v45, %s6742_s28 }
 0x2e6   : > { %v1247_v59 = vpop.permute.xlu1 %1246 }
 0x2e7   : > { %v1237_v61 = vpop.permute.xlu0 %1236  ;;  %v1316_v55 = vsub.f32 %v7351_v12, %v1247_v59 }
 0x2e8   : > { %v1314_v63 = vsub.f32 %v7354_v14, %v1237_v61 }
 0x2e9   : > { %v1334_v7 = vmul.f32 1.442695, %v1316_v55 }
 0x2ea   : > { %v1330_v1 = vmul.f32 1.442695, %v1314_v63 }
 0x2eb   : > { %v1242_v3 = vpop.permute.xlu1 %1241 }
 0x2ec   : > { %v1315_v5 = vsub.f32 %v7362_v18, %v1242_v3  ;;  %6216 = vpow2.f32 %v1330_v1 }
 0x2ee   : > { %v1332_v4 = vmul.f32 1.442695, %v1315_v5 }
 0x2ef   : > { %v1252_v6 = vpop.permute.xlu1 %1251 }
 0x2f0   : > { %6218 = vpow2.f32 %v1332_v4  ;;  %v1317_v8 = vsub.f32 %v7359_v17, %v1252_v6  ;;  %v1272_v14 = vpop.permute.xlu0 %1271 }
 0x2f1   : > { %6220 = vpow2.f32 %v1334_v7  ;;  %v1321_v6 = vsub.f32 %v7370_v23, %v1272_v14 }
 0x2f2   : > { %v1336_v9 = vmul.f32 1.442695, %v1317_v8 }
 0x2f3   : > { %v1789_v44 = vpop.permute.xlu1 %1788  ;;  %v1344_v0 = vmul.f32 1.442695, %v1321_v6 }
 0x2f4   : > { %6222 = vpow2.f32 %v1336_v9  ;;  %6085 = vmatprep.subr.msk.bf16.mxu1 %vm976_vm1, %v1789_v44  ;;  %v1829_v3 = vsel %vm976_vm1, %v1789_v44, 0 }
 0x2f6   : > { %v7655_v12 = vpop.eup %6216 }
 0x2f7   : > { %v1791_v45 = vpop.permute.xlu1 %1790  ;;  %v1287_v18 = vpop.permute.xlu0 %1286 }
 0x2fa   : > { %v7657_v36 = vpop.eup %6218 }
 0x2fb   : > { %v1793_v19 = vpop.permute.xlu1 %1792  ;;  %v1571_v59 = vpack.c.bf16 %v7657_v36, %v7655_v12  ;;  %v7661_v61 = vpop.eup %6220 }
 0x2fc   : > { %v1277_v1 = vpop.permute.xlu0 %1276 }
 0x2fd   : > { %5869 = vmatprep.mubr.bf16.mxu1 %v1571_v59  ;;  %v1322_v44 = vsub.f32 %v7389_v34, %v1277_v1  ;;  %v1835_v34 = vsel %vm976_vm1, %v1793_v19, 0 }
 0x2fe   : > { %v7663_v17 = vpop.eup %6222 }
 0x2ff   : > { %v1267_v63 = vpop.permute.xlu1 %1266  ;;  %v1572_v55 = vpack.c.bf16 %v7663_v17, %v7661_v61 }
 0x300   : > { %v1320_v5 = vsub.f32 %v7367_v20, %v1267_v63  ;;  %v1795_v9 = vpop.permute.xlu0 %1794  ;;  %v1324_v63 = vsub.f32 %v7382_v28, %v1287_v18 }
 0x301   : > { %5870 = vmatmul.mubr.bf16.vlgmr.msra.gmra.mrb[0].mxu1 %v1572_v55  ;;  %v1832_v55 = vsel %vm976_vm1, %v1791_v45, 0 }
 0x302   : > { %5886 = vmatpush3.bf16.xpose.msra.mxu1 %v1829_v3  ;;  %v1342_v8 = vmul.f32 1.442695, %v1320_v5 }
 0x303   : > { %6086 = vmatprep.subr.msk.bf16.mxu1 %vm976_vm1, %v1791_v45  ;;  %v1257_v4 = vpop.permute.xlu1 %1256 }
 0x304   : > { %v1318_v7 = vsub.f32 %v7373_v25, %v1257_v4  ;;  %6224 = vpow2.f32 %v1342_v8  ;;  %v1302_v14 = vpop.permute.xlu0 %1301 }
 0x305   : > { %v1327_v1 = vsub.f32 %v7410_v43, %v1302_v14 }
 0x306   : > { %v1338_v59 = vmul.f32 1.442695, %v1318_v7 }
 0x307   : > { %v1262_v50 = vpop.permute.xlu1 %1261 }
 0x308   : > { %v1319_v13 = vsub.f32 %v7378_v26, %v1262_v50  ;;  %6226 = vpow2.f32 %v1338_v59  ;;  %v1346_v26 = vmul.f32 1.442695, %v1322_v44  ;;  %v1312_v4 = vpop.permute.xlu0 %1311 }
 0x309   : > { %v1329_v43 = vsub.f32 %v7402_v40, %v1312_v4 }
 0x30a   : > { %v1340_v20 = vmul.f32 1.442695, %v1319_v13  ;;  %5888 = vmatpush3.bf16.xpose.msra.mxu1 %v1832_v55  ;;  %v1350_v13 = vmul.f32 1.442695, %v1324_v63 }
 0x30b   : > { %6087 = vmatprep.subr.msk.bf16.mxu1 %vm976_vm1, %v1793_v19  ;;  %v1292_v25 = vpop.permute.xlu1 %1291  ;;  %v1356_v19 = vmul.f32 1.442695, %v1327_v1 }
 0x30c   : > { %6228 = vpow2.f32 %v1340_v20  ;;  %v1325_v23 = vsub.f32 %v7386_v32, %v1292_v25  ;;  %v1360_v20 = vmul.f32 1.442695, %v1329_v43 }
 0x30d   : > { %6230 = vpow2.f32 %v1344_v0 }
 0x30e   : > { %v1352_v50 = vmul.f32 1.442695, %v1325_v23  ;;  %6232 = vpow2.f32 %v1346_v26  ;;  %v7682_v0 = vpop.eup %6224 }
 0x30f   : > { %v1282_v45 = vpop.permute.xlu1 %1281 }
 0x310   : > { %v1323_v3 = vsub.f32 %v7394_v35, %v1282_v45  ;;  %6234 = vpow2.f32 %v1352_v50  ;;  %v1799_v50 = vpop.permute.xlu0 %1798 }
 0x311   : > { %v1844_v4 = vsel %vm976_vm1, %v1799_v50, 0 }
 0x312   : > { %v1348_v5 = vmul.f32 1.442695, %v1323_v3  ;;  %5890 = vmatpush3.bf16.xpose.msra.mxu1 %v1835_v34  ;;  %v7685_v18 = vpop.eup %6226 }
 0x313   : > { %6088 = vmatprep.subr.msk.bf16.mxu1 %vm976_vm1, %v1795_v9  ;;  %v1307_v32 = vpop.permute.xlu1 %1306 }
 0x314   : > { %6236 = vpow2.f32 %v1348_v5  ;;  %v1328_v28 = vsub.f32 %v7398_v37, %v1307_v32  ;;  %v1838_v37 = vsel %vm976_vm1, %v1795_v9, 0 }
 0x315   : > { %6238 = vpow2.f32 %v1350_v13 }
 0x316   : > { %v7687_v35 = vpop.eup %6228  ;;  %v1358_v7 = vmul.f32 1.442695, %v1328_v28  ;;  %6240 = vpow2.f32 %v1356_v19 }
 0x317   : > { %v1297_v6 = vpop.permute.xlu1 %1296  ;;  %v1573_v8 = vpack.c.bf16 %v7687_v35, %v7685_v18  ;;  %v7692_v59 = vpop.eup %6230 }
 0x318   : > { %v1326_v55 = vsub.f32 %v7405_v42, %v1297_v6  ;;  %v1574_v44 = vpack.c.bf16 %v7692_v59, %v7682_v0  ;;  %6242 = vpow2.f32 %v1358_v7  ;;  %v7698_v23 = vpop.eup %6232  ;;  %v1803_v7 = vpop.permute.xlu0 %1802 }
 0x319   : > { %5873 = vmatprep.mubr.bf16.mxu1 %v1573_v8  ;;  %v1850_v6 = vsel %vm976_vm1, %v1803_v7, 0 }
 0x31a   : > { %v1354_v25 = vmul.f32 1.442695, %v1326_v55  ;;  %5892 = vmatpush3.bf16.xpose.msra.mxu1 %v1838_v37  ;;  %v7701_v14 = vpop.eup %6234 }
 0x31b   : > { %5874 = vmatmul.mubr.bf16.gmra.mrb[4].mxu1 %v1574_v44  ;;  %v1797_v40 = vpop.permute.xlu1 %1796 }
 0x31c   : > { %6244 = vpow2.f32 %v1354_v25  ;;  %6089 = vmatprep.subr.msk.bf16.mxu1 %vm976_vm1, %v1797_v40  ;;  %v1841_v63 = vsel %vm976_vm1, %v1797_v40, 0  ;;  %v1775_v8 = vpop.permute.xlu0 %1774 }
 0x31d   : > { %6246 = vpow2.f32 %v1360_v20 }
 0x31e   : > { %v7703_v42 = vpop.eup %6236 }
 0x31f   : > { %v1575_v9 = vpack.c.bf16 %v7703_v42, %v7698_v23  ;;  %v7708_v26 = vpop.eup %6238  ;;  %v1801_v13 = vpop.permute.xlu1 %1800 }
 0x320   : > { %v1576_v45 = vpack.c.bf16 %v7701_v14, %v7708_v26  ;;  %v7713_v3 = vpop.eup %6240  ;;  %v1847_v43 = vsel %vm976_vm1, %v1801_v13, 0  ;;  %v1779_v37 = vpop.permute.xlu0 %1778 }
 0x321   : > { %5877 = vmatprep.mubr.bf16.mxu1 %v1575_v9 }
 0x322   : > { %5894 = vmatpush3.bf16.xpose.msra.mxu1 %v1841_v63  ;;  %v7715_v34 = vpop.eup %6242 }
 0x323   : > { %5878 = vmatmul.mubr.bf16.gmra.mrb[8].mxu1 %v1576_v45  ;;  %6090 = vmatprep.subr.msk.bf16.mxu1 %vm976_vm1, %v1799_v50  ;;  %v1773_v19 = vpop.permute.xlu1 %1772 }
 0x324   : > { %v1783_v20 = vpop.permute.xlu0 %1782 }
 0x326   : > { %v7717_v1 = vpop.eup %6244 }
 0x327   : > { %v1577_v5 = vpack.c.bf16 %v7713_v3, %v7717_v1  ;;  %v7722_v32 = vpop.eup %6246  ;;  %v1777_v55 = vpop.permute.xlu1 %1776 }
 0x328   : > { %v1578_v28 = vpack.c.bf16 %v7722_v32, %v7715_v34  ;;  %v1787_v40 = vpop.permute.xlu0 %1786 }
 0x329   : > { %5881 = vmatprep.mubr.bf16.mxu1 %v1577_v5 }
 0x32a   : > { %5896 = vmatpush3.bf16.xpose.msra.mxu1 %v1844_v4 }
 0x32b   : > { %5882 = vmatmul.mubr.bf16.gmra.mrb[12].mxu1 %v1578_v28  ;;  %6091 = vmatprep.subr.msk.bf16.mxu1 %vm976_vm1, %v1801_v13  ;;  %v1781_v44 = vpop.permute.xlu1 %1780 }
 0x32c   : > { %5901 = vmatprep.mubr.msk.bf16.mxu1 %vm976_vm1, %v1773_v19  ;;  %v2408_v13 = vpop.permute.xlu0 %2407 }
 0x32d   : > { %5917 = vmatprep.subr.bf16.mxu0 %v2408_v13 }
 0x32e   : > { %5918 = vmatpush3.bf16.msra.mxu0 %v2408_v13 }
 0x32f   : > { %v1785_v25 = vpop.permute.xlu1 %1784 }
 0x332   : > { %5898 = vmatpush3.bf16.xpose.msra.mxu1 %v1847_v43 }
 0x333   : > { %6092 = vmatprep.subr.msk.bf16.mxu1 %vm976_vm1, %v1803_v7  ;;  %v2410_v5 = vpop.permute.xlu1 %2409 }
 0x334   : > { %5919 = vmatprep.subr.bf16.mxu0 %v2410_v5 }
 0x335   : > { %5920 = vmatpush3.bf16.msra.mxu0 %v2410_v5 }
 0x33a   : > { %5900 = vmatpush3.bf16.xpose.msra.mxu1 %v1850_v6 }
 0x341   : > { %5902 = vmatmul.mubr.msk.bf16.vlgmr.msra.gmra.mrb[16].mxu1 %vm976_vm1, %v1775_v8 }
 0x342   : > { %5905 = vmatprep.mubr.msk.bf16.mxu1 %vm976_vm1, %v1777_v55 }
 0x349   : > { %5906 = vmatmul.mubr.msk.bf16.gmra.mrb[20].mxu1 %vm976_vm1, %v1779_v37 }
 0x34a   : > { %5909 = vmatprep.mubr.msk.bf16.mxu1 %vm976_vm1, %v1781_v44 }
 0x351   : > { %5910 = vmatmul.mubr.msk.bf16.gmra.mrb[24].mxu1 %vm976_vm1, %v1783_v20 }
 0x352   : > { %5913 = vmatprep.mubr.msk.bf16.mxu1 %vm976_vm1, %v1785_v25 }
 0x359   : > { %5914 = vmatmul.mubr.msk.bf16.gmra.mrb[28].mxu1 %vm976_vm1, %v1787_v40 }
 0x3d4   : > { %v7738_v9 = vpop.f32.mrb[0].mxu1 }
 0x3d5   : > { %9951 = vst [vmem:[#allocation28_spill] sm:$0xff] %v7738_v9  ;;  %v7740_v63 = vpop.f32.mrb[1].mxu1 }
 0x3d6   : > { %9952 = vst [vmem:[#allocation29_spill] sm:$0xff] %v7740_v63  ;;  %v7742_v50 = vpop.f32.mrb[2].mxu1 }
 0x3d7   : > { %9953 = vst [vmem:[#allocation30_spill] sm:$0xff] %v7742_v50  ;;  %v7744_v45 = vpop.f32.mrb[3].mxu1 }
 0x3d8   : > { %9954 = vst [vmem:[#allocation31_spill] sm:$0xff] %v7744_v45 }
 0x3ee   : > { %v7746_v4 = vpop.f32.mrb[4].mxu1 }
 0x3ef   : > { %9955 = vst [vmem:[#allocation32_spill] sm:$0xff] %v7746_v4  ;;  %v7748_v28 = vpop.f32.mrb[5].mxu1 }
 0x3f0   : > { %9956 = vst [vmem:[#allocation33_spill] sm:$0xff] %v7748_v28  ;;  %v7750_v19 = vpop.f32.mrb[6].mxu1 }
 0x3f1   : > { %9957 = vst [vmem:[#allocation34_spill] sm:$0xff] %v7750_v19  ;;  %v7752_v43 = vpop.f32.mrb[7].mxu1 }
 0x3f2   : > { %9958 = vst [vmem:[#allocation35_spill] sm:$0xff] %v7752_v43 }
 0x3f6   : > { %v7754_v7 = vpop.f32.mrb[8].mxu1 }
 0x3f7   : > { %9959 = vst [vmem:[#allocation36_spill] sm:$0xff] %v7754_v7  ;;  %v7756_v6 = vpop.f32.mrb[9].mxu1 }
 0x3f8   : > { %9960 = vst [vmem:[#allocation37_spill] sm:$0xff] %v7756_v6  ;;  %v7758_v8 = vpop.f32.mrb[10].mxu1 }
 0x3f9   : > { %9961 = vst [vmem:[#allocation38_spill] sm:$0xff] %v7758_v8  ;;  %v7760_v55 = vpop.f32.mrb[11].mxu1 }
 0x3fa   : > { %9962 = vst [vmem:[#allocation39_spill] sm:$0xff] %v7760_v55 }
 0x3fe   : > { %v7762_v37 = vpop.f32.mrb[12].mxu1 }
 0x3ff   : > { %9963 = vst [vmem:[#allocation40_spill] sm:$0xff] %v7762_v37  ;;  %v7764_v44 = vpop.f32.mrb[13].mxu1 }
 0x400   : > { %9964 = vst [vmem:[#allocation41_spill] sm:$0xff] %v7764_v44  ;;  %v7766_v20 = vpop.f32.mrb[14].mxu1 }
 0x401   : > { %9965 = vst [vmem:[#allocation42_spill] sm:$0xff] %v7766_v20  ;;  %v7768_v25 = vpop.f32.mrb[15].mxu1 }
 0x402   : > { %9966 = vst [vmem:[#allocation43_spill] sm:$0xff] %v7768_v25 }
 0x414   : > { %v5903_v40 = vpop.f32.mrb[16].mxu1 }
 0x415   : > { %v7771_v13 = vadd.f32 %v5903_v40, %v7348_v10  ;;  %v1886_v5 = vpop.f32.mrb[17].mxu1 }
 0x416   : > { %v7774_v7 = vadd.f32 %v7348_v10, %v1886_v5  ;;  %v5904_v6 = vpop.f32.mrb[18].mxu1 }
 0x417   : > { %1970 = vmax.xlane.f32.xlu0 %v7771_v13  ;;  %v1889_v8 = vpop.f32.mrb[19].mxu1  ;;  %v7782_v44 = vadd.f32 %v5904_v6, %v7348_v10 }
 0x418   : > { %v7778_v37 = vadd.f32 %v7348_v10, %v1889_v8  ;;  %1966 = vmax.xlane.f32.xlu1 %v7774_v7 }
 0x41b   : > { %1968 = vmax.xlane.f32.xlu0 %v7778_v37 }
 0x41c   : > { %1972 = vmax.xlane.f32.xlu1 %v7782_v44  ;;  %v5907_v40 = vpop.f32.mrb[20].mxu1 }
 0x41d   : > { %v1902_v20 = vpop.f32.mrb[21].mxu1  ;;  %v7791_v9 = vadd.f32 %v5907_v40, %v7348_v10  ;;  %v7840_v40 = vld [vmem:[#allocation2 + $0x80] sm:$0xff] }
 0x41e   : > { %v5908_v5 = vpop.f32.mrb[22].mxu1  ;;  %v7799_v45 = vadd.f32 %v7348_v10, %v1902_v20 }
 0x41f   : > { %v1905_v25 = vpop.f32.mrb[23].mxu1  ;;  %v7794_v63 = vadd.f32 %v5908_v5, %v7348_v10 }
 0x424   : > { %v5911_v4 = vpop.f32.mrb[24].mxu1 }
 0x425   : > { %v1918_v55 = vpop.f32.mrb[25].mxu1  ;;  %v7805_v11 = vadd.f32 %v5911_v4, %v7348_v10 }
 0x426   : > { %v5912_v28 = vpop.f32.mrb[26].mxu1  ;;  %v7815_v20 = vadd.f32 %v7348_v10, %v1918_v55 }
 0x427   : > { %v1921_v19 = vpop.f32.mrb[27].mxu1 }
 0x42c   : > { %v5915_v43 = vpop.f32.mrb[28].mxu1 }
 0x42d   : > { %2411 = vrot.lane.b32.xlu1 %v7424_v46, %s6742_s28  ;;  %v1934_v8 = vpop.f32.mrb[29].mxu1  ;;  %v7802_v46 = vadd.f32 %v7348_v10, %v1905_v25  ;;  %v7818_v25 = vadd.f32 %v7348_v10, %v1921_v19  ;;  %v7821_v4 = vadd.f32 %v5915_v43, %v7348_v10  ;;  %v7838_v43 = vld [vmem:[#allocation2 + $0x90] sm:$0xff] }
 0x42e   : > { %v5916_v50 = vpop.f32.mrb[30].mxu1  ;;  %v7831_v55 = vadd.f32 %v7348_v10, %v1934_v8  ;;  %9967 = vst [vmem:[#allocation44_spill] sm:$0xff] %v7838_v43  ;;  %v7848_v8 = vld [vmem:[#allocation2 + $0x88] sm:$0xff] }
 0x42f   : > { %v1937_v6 = vpop.f32.mrb[31].mxu1  ;;  %9969 = vst [vmem:[#allocation46_spill] sm:$0xff] %v7848_v8 }
 0x430   : > { %v7834_v19 = vadd.f32 %v7348_v10, %v1937_v6  ;;  %v7855_v6 = vld [vmem:[#allocation2 + $0x98] sm:$0xff] }
 0x431   : > { %2413 = vrot.lane.b32.xlu0 %v7429_v47, %s6742_s28  ;;  %v7810_v47 = vadd.f32 %v5912_v28, %v7348_v10  ;;  %v7826_v28 = vadd.f32 %v5916_v50, %v7348_v10  ;;  %9970 = vst [vmem:[#allocation47_spill] sm:$0xff] %v7855_v6 }
 0x450   : > { %1978 = vmax.xlane.f32.xlu0 %v7791_v9 }
 0x451   : > { %1980 = vmax.xlane.f32.xlu1 %v7794_v63 }
 0x454   : > { %1974 = vmax.xlane.f32.xlu0 %v7799_v45 }
 0x455   : > { %1976 = vmax.xlane.f32.xlu1 %v7802_v46 }
 0x458   : > { %1986 = vmax.xlane.f32.xlu0 %v7805_v11 }
 0x459   : > { %1988 = vmax.xlane.f32.xlu1 %v7810_v47 }
 0x45c   : > { %1982 = vmax.xlane.f32.xlu0 %v7815_v20 }
 0x45d   : > { %1984 = vmax.xlane.f32.xlu1 %v7818_v25 }
 0x460   : > { %1994 = vmax.xlane.f32.xlu0 %v7821_v4 }
 0x461   : > { %1996 = vmax.xlane.f32.xlu1 %v7826_v28 }
 0x464   : > { %1990 = vmax.xlane.f32.xlu0 %v7831_v55 }
 0x465   : > { %1992 = vmax.xlane.f32.xlu1 %v7834_v19 }
 0x4a4   : > { %v1971_v50 = vpop.xlane.xlu0 %1970 }
 0x4a5   : > { %v7843_v5 = vmax.f32 %v7838_v43, %v1971_v50  ;;  %v1967_v51 = vpop.xlane.xlu1 %1966  ;;  %v6472_v50 = vld [vmem:[%s7247_s21] sm:$0xff]   ;;  %v6474_v43 = vld [vmem:[%s7247_s21 + $0x10] sm:$0xff]  }
 0x4a6   : > { %v7846_v24 = vmax.f32 %v7840_v40, %v1967_v51 }
 0x4a7   : > { %9968 = vst [vmem:[#allocation45_spill] sm:$0xff] %v7843_v5  ;;  %2627 = vst.msk [vmem:[#allocation2 + $0x90] sm:$0xff] %vm691_vm0, %v7843_v5  ;;  %2074 = vperm.xlu1 %6191, %v7843_v5  }
 0x4a8   : > { %2625 = vst.msk [vmem:[#allocation2 + $0x80] sm:$0xff] %vm691_vm0, %v7846_v24  ;;  %v1969_v51 = vpop.xlane.xlu0 %1968 }
 0x4a9   : > { %v7862_v57 = vmax.f32 %v7848_v8, %v1969_v51  ;;  %v1973_v53 = vpop.xlane.xlu1 %1972 }
 0x4aa   : > { %v7865_v10 = vmax.f32 %v7855_v6, %v1973_v53  ;;  %v7902_v6 = vld [vmem:[#allocation2 + $0xa0] sm:$0xff] }
 0x4ab   : > { %9971 = vst [vmem:[#allocation48_spill] sm:$0xff] %v7862_v57  ;;  %2626 = vst.msk [vmem:[#allocation2 + $0x88] sm:$0xff] %vm691_vm0, %v7862_v57  ;;  %2064 = vperm.xlu1 %6191, %v7846_v24   ;;  %2069 = vperm.xlu0 %6190, %v7862_v57   ;;  %v7922_v57 = vld [vmem:[#allocation2 + $0xd0] sm:$0xff] }
 0x4ac   : > { %9972 = vst [vmem:[#allocation49_spill] sm:$0xff] %v7865_v10  ;;  %2628 = vst.msk [vmem:[#allocation2 + $0x98] sm:$0xff] %vm691_vm0, %v7865_v10  ;;  %v2414_v51 = vpop.permute.xlu0 %2413 }
 0x4ad   : > { %v2412_v53 = vpop.permute.xlu1 %2411  ;;  %9977 = vst [vmem:[#allocation54_spill] sm:$0xff] %v7902_v6  ;;  %9981 = vst [vmem:[#allocation58_spill] sm:$0xff] %v7922_v57 }
 0x4ae   : > { %5921 = vmatprep.subr.bf16.mxu0 %v2412_v53 }
 0x4af   : > { %5922 = vmatpush3.bf16.msra.mxu0 %v2412_v53  ;;  %2079 = vperm.xlu0 %6190, %v7865_v10   ;;  %v6473_v53 = vld [vmem:[%s7247_s21 + $0x8] sm:$0xff]  }
 0x4b0   : > { %5923 = vmatprep.subr.bf16.mxu0 %v2414_v51  ;;  %2415 = vrot.lane.b32.xlu1 %v7434_v48, %s6742_s28  ;;  %v7892_v48 = vld [vmem:[#allocation2 + $0xb0] sm:$0xff] }
 0x4b1   : > { %9973 = vst [vmem:[#allocation50_spill] sm:$0xff] %v7892_v48 }
 0x4b3   : > { %5924 = vmatpush3.bf16.msra.mxu0 %v2414_v51  ;;  %2417 = vrot.lane.b32.xlu0 %v7464_v15, %s6742_s28  ;;  %v7894_v51 = vld [vmem:[#allocation2 + $0xb8] sm:$0xff] }
 0x4b4   : > { %2419 = vrot.lane.b32.xlu1 %v7488_v30, %s6742_s28  ;;  %9974 = vst [vmem:[#allocation51_spill] sm:$0xff] %v7894_v51 }
 0x4b7   : > { %2421 = vrot.lane.b32.xlu0 %v7508_v58, %s6742_s28 }
 0x4b8   : > { %2657 = vrot.lane.b32.xlu1 %v6472_v50, %s6743_s16 }
 0x4bb   : > { %2659 = vrot.lane.b32.xlu0 %v6473_v53, %s6743_s16  ;;  %v7929_v53 = vld [vmem:[#allocation2 + $0xd8] sm:$0xff] }
 0x4bc   : > { %2661 = vrot.lane.b32.xlu1 %v6474_v43, %s6743_s16  ;;  %v7909_v43 = vld [vmem:[#allocation2 + $0xa8] sm:$0xff]  ;;  %9982 = vst [vmem:[#allocation59_spill] sm:$0xff] %v7929_v53 }
 0x4bd   : > { %9978 = vst [vmem:[#allocation55_spill] sm:$0xff] %v7909_v43 }
 0x4dd   : > { %v1979_v15 = vpop.xlane.xlu0 %1978 }
 0x4de   : > { %v7897_v30 = vmax.f32 %v7892_v48, %v1979_v15  ;;  %v1981_v10 = vpop.xlane.xlu1 %1980 }
 0x4df   : > { %v7900_v58 = vmax.f32 %v7894_v51, %v1981_v10  ;;  %v7942_v51 = vld [vmem:[#allocation2 + $0xc0] sm:$0xff] }
 0x4e0   : > { %9975 = vst [vmem:[#allocation52_spill] sm:$0xff] %v7897_v30  ;;  %2631 = vst.msk [vmem:[#allocation2 + $0xb0] sm:$0xff] %vm691_vm0, %v7897_v30  ;;  %2094 = vperm.xlu1 %6191, %v7897_v30  }
 0x4e1   : > { %9976 = vst [vmem:[#allocation53_spill] sm:$0xff] %v7900_v58  ;;  %2632 = vst.msk [vmem:[#allocation2 + $0xb8] sm:$0xff] %vm691_vm0, %v7900_v58  ;;  %2099 = vperm.xlu0 %6190, %v7900_v58   ;;  %v1975_v10 = vpop.xlane.xlu0 %1974 }
 0x4e2   : > { %v7917_v15 = vmax.f32 %v7902_v6, %v1975_v10  ;;  %v1977_v50 = vpop.xlane.xlu1 %1976  ;;  %9985 = vst [vmem:[#allocation62_spill] sm:$0xff] %v7942_v51  ;;  %v7948_v10 = vld [vmem:[#allocation2 + $0xc8] sm:$0xff] }
 0x4e3   : > { %v7920_v48 = vmax.f32 %v7909_v43, %v1977_v50  ;;  %9986 = vst [vmem:[#allocation63_spill] sm:$0xff] %v7948_v10  ;;  %v7962_v43 = vld [vmem:[#allocation2 + $0xf0] sm:$0xff] }
 0x4e4   : > { %9979 = vst [vmem:[#allocation56_spill] sm:$0xff] %v7917_v15  ;;  %2629 = vst.msk [vmem:[#allocation2 + $0xa0] sm:$0xff] %vm691_vm0, %v7917_v15  ;;  %2084 = vperm.xlu1 %6191, %v7917_v15  }
 0x4e5   : > { %9980 = vst [vmem:[#allocation57_spill] sm:$0xff] %v7920_v48  ;;  %2630 = vst.msk [vmem:[#allocation2 + $0xa8] sm:$0xff] %vm691_vm0, %v7920_v48  ;;  %2089 = vperm.xlu0 %6190, %v7920_v48   ;;  %v1987_v50 = vpop.xlane.xlu0 %1986 }
 0x4e6   : > { %v7937_v58 = vmax.f32 %v7922_v57, %v1987_v50  ;;  %v1989_v30 = vpop.xlane.xlu1 %1988  ;;  %9989 = vst [vmem:[#allocation66_spill] sm:$0xff] %v7962_v43 }
 0x4e7   : > { %v7940_v6 = vmax.f32 %v7929_v53, %v1989_v30  ;;  %v7982_v53 = vld [vmem:[#allocation2 + $0xe0] sm:$0xff] }
 0x4e8   : > { %9983 = vst [vmem:[#allocation60_spill] sm:$0xff] %v7937_v58  ;;  %2635 = vst.msk [vmem:[#allocation2 + $0xd0] sm:$0xff] %vm691_vm0, %v7937_v58 }
 0x4e9   : > { %9984 = vst [vmem:[#allocation61_spill] sm:$0xff] %v7940_v6  ;;  %2636 = vst.msk [vmem:[#allocation2 + $0xd8] sm:$0xff] %vm691_vm0, %v7940_v6  ;;  %2119 = vperm.xlu1 %6191, %v7940_v6   ;;  %2114 = vperm.xlu0 %6190, %v7937_v58   ;;  %v1983_v30 = vpop.xlane.xlu0 %1982  ;;  %v7968_v6 = vld [vmem:[#allocation2 + $0xf8] sm:$0xff] }
 0x4ea   : > { %v7957_v50 = vmax.f32 %v7942_v51, %v1983_v30  ;;  %v1985_v15 = vpop.xlane.xlu1 %1984  ;;  %9990 = vst [vmem:[#allocation67_spill] sm:$0xff] %v7968_v6  ;;  %9993 = vst [vmem:[#allocation70_spill] sm:$0xff] %v7982_v53 }
 0x4eb   : > { %v7960_v57 = vmax.f32 %v7948_v10, %v1985_v15  ;;  %v7988_v10 = vld [vmem:[#allocation2 + $0xe8] sm:$0xff] }
 0x4ec   : > { %9987 = vst [vmem:[#allocation64_spill] sm:$0xff] %v7957_v50  ;;  %2633 = vst.msk [vmem:[#allocation2 + $0xc0] sm:$0xff] %vm691_vm0, %v7957_v50 }
 0x4ed   : > { %9988 = vst [vmem:[#allocation65_spill] sm:$0xff] %v7960_v57  ;;  %2634 = vst.msk [vmem:[#allocation2 + $0xc8] sm:$0xff] %vm691_vm0, %v7960_v57  ;;  %2109 = vperm.xlu1 %6191, %v7960_v57   ;;  %2104 = vperm.xlu0 %6190, %v7957_v50   ;;  %v1995_v15 = vpop.xlane.xlu0 %1994  ;;  %v6478_v50 = vld [vmem:[%s7247_s21 + $0x30] sm:$0xff]  }
 0x4ee   : > { %v7977_v30 = vmax.f32 %v7962_v43, %v1995_v15  ;;  %v1997_v48 = vpop.xlane.xlu1 %1996  ;;  %9994 = vst [vmem:[#allocation71_spill] sm:$0xff] %v7988_v10  ;;  %v6475_v15 = vld [vmem:[%s7247_s21 + $0x18] sm:$0xff]  }
 0x4ef   : > { %v7980_v51 = vmax.f32 %v7968_v6, %v1997_v48 }
 0x4f0   : > { %9991 = vst [vmem:[#allocation68_spill] sm:$0xff] %v7977_v30  ;;  %2639 = vst.msk [vmem:[#allocation2 + $0xf0] sm:$0xff] %vm691_vm0, %v7977_v30 }
 0x4f1   : > { %9992 = vst [vmem:[#allocation69_spill] sm:$0xff] %v7980_v51  ;;  %2640 = vst.msk [vmem:[#allocation2 + $0xf8] sm:$0xff] %vm691_vm0, %v7980_v51  ;;  %2663 = vrot.lane.b32.xlu0 %v6475_v15, %s6743_s16  ;;  %2134 = vperm.xlu1 %6191, %v7977_v30   ;;  %v1991_v48 = vpop.xlane.xlu0 %1990  ;;  %v6479_v15 = vld [vmem:[%s7247_s21 + $0x38] sm:$0xff]   ;;  %v6480_v30 = vld [vmem:[%s7244_s7] sm:$0xff]  }
 0x4f2   : > { %v7998_v58 = vmax.f32 %v7982_v53, %v1991_v48  ;;  %v1993_v43 = vpop.xlane.xlu1 %1992  ;;  %v6477_v48 = vld [vmem:[%s7247_s21 + $0x28] sm:$0xff]   ;;  %v6482_v53 = vld [vmem:[%s7244_s7 + $0x10] sm:$0xff]  }
 0x4f3   : > { %v8001_v57 = vmax.f32 %v7988_v10, %v1993_v43  ;;  %v6476_v43 = vld [vmem:[%s7247_s21 + $0x20] sm:$0xff]  }
 0x4f4   : > { %9995 = vst [vmem:[#allocation72_spill] sm:$0xff] %v7998_v58  ;;  %2637 = vst.msk [vmem:[#allocation2 + $0xe0] sm:$0xff] %vm691_vm0, %v7998_v58 }
 0x4f5   : > { %9996 = vst [vmem:[#allocation73_spill] sm:$0xff] %v8001_v57  ;;  %2638 = vst.msk [vmem:[#allocation2 + $0xe8] sm:$0xff] %vm691_vm0, %v8001_v57  ;;  %2129 = vperm.xlu0 %6190, %v8001_v57   ;;  %2124 = vperm.xlu1 %6191, %v7998_v58   ;;  %v6481_v58 = vld [vmem:[%s7244_s7 + $0x8] sm:$0xff]  }
 0x4f9   : > { %2139 = vperm.xlu0 %6190, %v7980_v51   ;;  %2665 = vrot.lane.b32.xlu1 %v6476_v43, %s6743_s16  ;;  %v6483_v43 = vld [vmem:[%s7244_s7 + $0x18] sm:$0xff]   ;;  %v6486_v51 = vld [vmem:[%s7244_s7 + $0x30] sm:$0xff]  }
 0x4fd   : > { %2667 = vrot.lane.b32.xlu0 %v6477_v48, %s6743_s16  ;;  %2669 = vrot.lane.b32.xlu1 %v6478_v50, %s6743_s16  ;;  %v6484_v48 = vld [vmem:[%s7244_s7 + $0x20] sm:$0xff]   ;;  %v6485_v50 = vld [vmem:[%s7244_s7 + $0x28] sm:$0xff]  }
 0x501   : > { %2671 = vrot.lane.b32.xlu0 %v6479_v15, %s6743_s16  ;;  %2641 = vrot.lane.b32.xlu1 %v6480_v30, %s6743_s16  ;;  %v6487_v15 = vld [vmem:[%s7244_s7 + $0x38] sm:$0xff]  }
 0x505   : > { %2643 = vrot.lane.b32.xlu0 %v6481_v58, %s6743_s16  ;;  %2645 = vrot.lane.b32.xlu1 %v6482_v53, %s6743_s16 }
 0x509   : > { %2647 = vrot.lane.b32.xlu0 %v6483_v43, %s6743_s16  ;;  %2649 = vrot.lane.b32.xlu1 %v6484_v48, %s6743_s16 }
 0x50d   : > { %2651 = vrot.lane.b32.xlu0 %v6485_v50, %s6743_s16  ;;  %2653 = vrot.lane.b32.xlu1 %v6486_v51, %s6743_s16 }
 0x511   : > { %2655 = vrot.lane.b32.xlu0 %v6487_v15, %s6743_s16 }
 0x526   : > { %v2075_v30 = vpop.permute.xlu1 %2074 }
 0x527   : > { %v2144_v58 = vsub.f32 %v7771_v13, %v2075_v30 }
 0x529   : > { %v2162_v8 = vmul.f32 1.442695, %v2144_v58 }
 0x52a   : > { %v2065_v6 = vpop.permute.xlu1 %2064  ;;  %v2070_v53 = vpop.permute.xlu0 %2069 }
 0x52b   : > { %v2142_v57 = vsub.f32 %v7774_v7, %v2065_v6  ;;  %v2143_v43 = vsub.f32 %v7778_v37, %v2070_v53 }
 0x52d   : > { %v2158_v10 = vmul.f32 1.442695, %v2142_v57  ;;  %v2160_v48 = vmul.f32 1.442695, %v2143_v43 }
 0x52e   : > { %v2416_v5 = vpop.permute.xlu1 %2415  ;;  %v2080_v50 = vpop.permute.xlu0 %2079 }
 0x52f   : > { %6248 = vpow2.f32 %v2158_v10  ;;  %v2145_v51 = vsub.f32 %v7782_v44, %v2080_v50  ;;  %5925 = vmatprep.subr.bf16.mxu0 %v2416_v5 }
 0x530   : > { %6250 = vpow2.f32 %v2160_v48  ;;  %5926 = vmatpush3.bf16.msra.mxu0 %v2416_v5  ;;  %1396 = vadd.xlane.f32.xlu0 %v7657_v36 }
 0x531   : > { %v2164_v13 = vmul.f32 1.442695, %v2145_v51  ;;  %1394 = vadd.xlane.f32.xlu1 %v7655_v12  ;;  %6252 = vpow2.f32 %v2162_v8 }
 0x532   : > { %v2418_v7 = vpop.permute.xlu0 %2417  ;;  %v2420_v6 = vpop.permute.xlu1 %2419 }
 0x533   : > { %6254 = vpow2.f32 %v2164_v13  ;;  %5927 = vmatprep.subr.bf16.mxu0 %v2418_v7 }
 0x534   : > { %1398 = vadd.xlane.f32.xlu0 %v7661_v61  ;;  %5928 = vmatpush3.bf16.msra.mxu0 %v2418_v7 }
 0x535   : > { %1400 = vadd.xlane.f32.xlu1 %v7663_v17  ;;  %5929 = vmatprep.subr.bf16.mxu0 %v2420_v6 }
 0x536   : > { %v2422_v57 = vpop.permute.xlu0 %2421  ;;  %v2658_v44 = vpop.permute.xlu1 %2657 }
 0x538   : > { %1402 = vadd.xlane.f32.xlu0 %v7685_v18  ;;  %5930 = vmatpush3.bf16.msra.mxu0 %v2420_v6 }
 0x539   : > { %v8047_v37 = vpop.eup %6248  ;;  %1404 = vadd.xlane.f32.xlu1 %v7687_v35  ;;  %5931 = vmatprep.subr.bf16.mxu0 %v2422_v57  ;;  %v2698_v35 = vsel %vm976_vm1, %v2658_v44, 0 }
 0x53a   : > { %v8050_v12 = vpop.eup %6250  ;;  %v2660_v5 = vpop.permute.xlu0 %2659 }
 0x53b   : > { %v2399_v36 = vpack.c.bf16 %v8050_v12, %v8047_v37  ;;  %v8054_v61 = vpop.eup %6252 }
 0x53c   : > { %1406 = vadd.xlane.f32.xlu0 %v7682_v0  ;;  %5932 = vmatpush3.bf16.msra.mxu0 %v2422_v57  ;;  %v2701_v0 = vsel %vm976_vm1, %v2660_v5, 0 }
 0x53d   : > { %v8057_v17 = vpop.eup %6254  ;;  %5933 = vmatprep.mubr.bf16.mxu0 %v2399_v36  ;;  %1408 = vadd.xlane.f32.xlu1 %v7692_v59  ;;  %v2662_v59 = vpop.permute.xlu1 %2661 }
 0x53e   : > { %v2400_v18 = vpack.c.bf16 %v8057_v17, %v8054_v61  ;;  %6093 = vmatprep.subr.msk.bf16.mxu0 %vm976_vm1, %v2658_v44 }
 0x540   : > { %1410 = vadd.xlane.f32.xlu0 %v7698_v23  ;;  %5934 = vmatmul.mubr.bf16.vlgmr.msra.gmra.mrb[16].mxu0 %v2400_v18  ;;  %v9997_v23 = vsub.f32 %v7456_v2, %v7470_v21 }
 0x541   : > { %1412 = vadd.xlane.f32.xlu1 %v7703_v42  ;;  %v9998_v42 = vsub.f32 %v7439_v49, %v7444_v56 }
 0x544   : > { %1414 = vadd.xlane.f32.xlu0 %v7708_v26  ;;  %v1206_v26 = vmul.f32 1.442695, %v9998_v42 }
 0x545   : > { %1416 = vadd.xlane.f32.xlu1 %v7701_v14  ;;  %5950 = vmatpush3.bf16.xpose.msra.mxu0 %v2698_v35  ;;  %v1204_v14 = vmul.f32 1.442695, %v9997_v23 }
 0x546   : > { %6094 = vmatprep.subr.msk.bf16.mxu0 %vm976_vm1, %v2660_v5 }
 0x547   : > { %6256 = vpow2.f32 %v1204_v14 }
 0x548   : > { %1418 = vadd.xlane.f32.xlu0 %v7717_v1  ;;  %6258 = vpow2.f32 %v1206_v26 }
 0x549   : > { %1420 = vadd.xlane.f32.xlu1 %v7713_v3  ;;  %v9999_v3 = vsub.f32 %v7441_v52, %v7447_v60 }
 0x54b   : > { %v1202_v1 = vmul.f32 1.442695, %v9999_v3 }
 0x54c   : > { %1422 = vadd.xlane.f32.xlu0 %v7715_v34  ;;  %v2704_v34 = vsel %vm976_vm1, %v2662_v59, 0 }
 0x54d   : > { %1424 = vadd.xlane.f32.xlu1 %v7722_v32  ;;  %5952 = vmatpush3.bf16.xpose.msra.mxu0 %v2701_v0  ;;  %6260 = vpow2.f32 %v1202_v1 }
 0x54e   : > { %6095 = vmatprep.subr.msk.bf16.mxu0 %vm976_vm1, %v2662_v59 }
 0x551   : > { %v8085_v32 = vpop.eup %6256 }
 0x552   : > { %v8088_v21 = vpop.eup %6258 }
 0x555   : > { %5954 = vmatpush3.bf16.xpose.msra.mxu0 %v2704_v34 }
 0x557   : > { %v8091_v8 = vpop.eup %6260 }
 0x55e   : > { %1482 = vperm.xlu1 %6191, %v8085_v32  }
 0x55f   : > { %v2095_v2 = vpop.permute.xlu1 %2094 }
 0x560   : > { %v2148_v49 = vsub.f32 %v7791_v9, %v2095_v2  ;;  %v2100_v56 = vpop.permute.xlu0 %2099  ;;  %v6488_v9 = vld [vmem:[%s7249_s17] sm:$0xff]  }
 0x561   : > { %v2149_v52 = vsub.f32 %v7794_v63, %v2100_v56 }
 0x562   : > { %v2170_v60 = vmul.f32 1.442695, %v2148_v49  ;;  %1477 = vperm.xlu0 %6190, %v8091_v8   ;;  %1487 = vperm.xlu1 %6191, %v8088_v21  }
 0x563   : > { %v2172_v10 = vmul.f32 1.442695, %v2149_v52  ;;  %v2085_v15 = vpop.permute.xlu1 %2084 }
 0x564   : > { %v2146_v30 = vsub.f32 %v7799_v45, %v2085_v15  ;;  %v2090_v58 = vpop.permute.xlu0 %2089  ;;  %6262 = vpow2.f32 %v2170_v60 }
 0x565   : > { %v2147_v53 = vsub.f32 %v7802_v46, %v2090_v58  ;;  %6264 = vpow2.f32 %v2172_v10 }
 0x566   : > { %v2166_v43 = vmul.f32 1.442695, %v2146_v30  ;;  %3276 = vrot.lane.b32.xlu1 %v6488_v9, %s6743_s16 }
 0x567   : > { %v2168_v48 = vmul.f32 1.442695, %v2147_v53 }
 0x568   : > { %6266 = vpow2.f32 %v2166_v43  ;;  %v2120_v63 = vpop.permute.xlu1 %2119  ;;  %v2115_v50 = vpop.permute.xlu0 %2114 }
 0x569   : > { %6268 = vpow2.f32 %v2168_v48  ;;  %v2153_v51 = vsub.f32 %v7810_v47, %v2120_v63  ;;  %v2152_v13 = vsub.f32 %v7805_v11, %v2115_v50 }
 0x56b   : > { %v2180_v7 = vmul.f32 1.442695, %v2153_v51  ;;  %v2178_v45 = vmul.f32 1.442695, %v2152_v13 }
 0x56c   : > { %v2110_v6 = vpop.permute.xlu1 %2109  ;;  %v2105_v57 = vpop.permute.xlu0 %2104 }
 0x56d   : > { %v2151_v46 = vsub.f32 %v7818_v25, %v2110_v6  ;;  %v2150_v36 = vsub.f32 %v7815_v20, %v2105_v57  ;;  %6270 = vpow2.f32 %v2180_v7 }
 0x56e   : > { %v8104_v35 = vpop.eup %6262  ;;  %6272 = vpow2.f32 %v2178_v45 }
 0x56f   : > { %v2176_v44 = vmul.f32 1.442695, %v2151_v46  ;;  %v2174_v18 = vmul.f32 1.442695, %v2150_v36  ;;  %v8106_v59 = vpop.eup %6264 }
 0x570   : > { %v2135_v5 = vpop.permute.xlu1 %2134  ;;  %v2664_v0 = vpop.permute.xlu0 %2663  ;;  %v2402_v1 = vpack.c.bf16 %v8106_v59, %v8104_v35 }
 0x571   : > { %6274 = vpow2.f32 %v2176_v44  ;;  %6096 = vmatprep.subr.msk.bf16.mxu0 %vm976_vm1, %v2664_v0  ;;  %v2707_v11 = vsel %vm976_vm1, %v2664_v0, 0  ;;  %v2156_v25 = vsub.f32 %v7821_v4, %v2135_v5 }
 0x572   : > { %v8110_v47 = vpop.eup %6266  ;;  %6276 = vpow2.f32 %v2174_v18  ;;  %5956 = vmatpush3.bf16.xpose.msra.mxu0 %v2707_v11 }
 0x573   : > { %v8112_v20 = vpop.eup %6268  ;;  %v2186_v49 = vmul.f32 1.442695, %v2156_v25  ;;  %v10000_v25 = vsub.f32 %v7449_v62, %v7467_v16  ;;  %v10006_v62 = vld [vmem:[#allocation15_spill] sm:$0xff] }
 0x574   : > { %v2125_v23 = vpop.permute.xlu1 %2124  ;;  %v2130_v14 = vpop.permute.xlu0 %2129  ;;  %v2401_v42 = vpack.c.bf16 %v8112_v20, %v8110_v47 }
 0x575   : > { %v2154_v26 = vsub.f32 %v7831_v55, %v2125_v23  ;;  %v2155_v3 = vsub.f32 %v7834_v19, %v2130_v14  ;;  %v1208_v23 = vmul.f32 1.442695, %v10000_v25 }
 0x576   : > { %5937 = vmatprep.mubr.bf16.mxu0 %v2401_v42  ;;  %v10001_v42 = vsub.f32 %v7497_v39, %v7516_v31  ;;  %v10008_v39 = vld [vmem:[#allocation19_spill] sm:$0xff]  ;;  %v10009_v31 = vld [vmem:[#allocation21_spill] sm:$0xff] }
 0x577   : > { %v2182_v34 = vmul.f32 1.442695, %v2154_v26  ;;  %v2184_v2 = vmul.f32 1.442695, %v2155_v3  ;;  %5938 = vmatmul.mubr.bf16.gmra.mrb[20].mxu0 %v2402_v1  ;;  %v8121_v4 = vpop.eup %6270  ;;  %v10002_v3 = vsub.f32 %v7505_v54, %v7520_v41  ;;  %v10011_v41 = vld [vmem:[#allocation20_spill] sm:$0xff] }
 0x578   : > { %v2666_v56 = vpop.permute.xlu1 %2665  ;;  %v2140_v52 = vpop.permute.xlu0 %2139  ;;  %v1210_v26 = vmul.f32 1.442695, %v10001_v42  ;;  %v10012_v54 = vsub.f32 %v10011_v41, %v7562_v22 }
 0x579   : > { %6278 = vpow2.f32 %v2182_v34  ;;  %v2157_v60 = vsub.f32 %v7826_v28, %v2140_v52  ;;  %6097 = vmatprep.subr.msk.bf16.mxu0 %vm976_vm1, %v2666_v56  ;;  %v2710_v55 = vsel %vm976_vm1, %v2666_v56, 0  ;;  %v8126_v19 = vpop.eup %6272  ;;  %v1212_v1 = vmul.f32 1.442695, %v10002_v3  ;;  %v10003_v34 = vld [vmem:[#allocation13_spill] sm:$0xff]  ;;  %v10005_v56 = vld [vmem:[#allocation14_spill] sm:$0xff] }
 0x57a   : > { %6280 = vpow2.f32 %v2184_v2  ;;  %5958 = vmatpush3.bf16.xpose.msra.mxu0 %v2710_v55  ;;  %v2404_v28 = vpack.c.bf16 %v8121_v4, %v8126_v19  ;;  %v10004_v2 = vsub.f32 %v10003_v34, %v7491_v33  ;;  %v10007_v16 = vsub.f32 %v10005_v56, %v10006_v62  ;;  %v1362_v55 = vld [vmem:[#allocation3] sm:$0xff]  ;;  %v1367_v3 = vld [vmem:[#allocation3 + $0x28] sm:$0xff] }
 0x57b   : > { %v8128_v10 = vpop.eup %6274  ;;  %v2188_v15 = vmul.f32 1.442695, %v2157_v60  ;;  %6282 = vpow2.f32 %v2186_v49  ;;  %v1363_v60 = vld [vmem:[#allocation3 + $0x8] sm:$0xff] }
 0x57c   : > { %v8130_v30 = vpop.eup %6276  ;;  %v2668_v58 = vpop.permute.xlu0 %2667  ;;  %v1214_v49 = vmul.f32 1.442695, %v10004_v2  ;;  %v1216_v52 = vmul.f32 1.442695, %v10007_v16  ;;  %v1379_v33 = vmul.f32 %v8085_v32, %v1363_v60  ;;  %v10020_v2 = vld [vmem:[#allocation27_spill] sm:$0xff] }
 0x57d   : > { %6284 = vpow2.f32 %v2188_v15  ;;  %v2403_v53 = vpack.c.bf16 %v8128_v10, %v8130_v30  ;;  %6098 = vmatprep.subr.msk.bf16.mxu0 %vm976_vm1, %v2668_v58  ;;  %v2713_v43 = vsel %vm976_vm1, %v2668_v58, 0  ;;  %v2670_v9 = vpop.permute.xlu1 %2669  ;;  %v10010_v15 = vsub.f32 %v10008_v39, %v10009_v31  ;;  %v1369_v31 = vld [vmem:[#allocation3 + $0x38] sm:$0xff] }
 0x57e   : > { %v2716_v45 = vsel %vm976_vm1, %v2670_v9, 0  ;;  %6286 = vpow2.f32 %v1208_v23  ;;  %v1366_v23 = vld [vmem:[#allocation3 + $0x20] sm:$0xff] }
 0x57f   : > { %5941 = vmatprep.mubr.bf16.mxu0 %v2403_v53  ;;  %6288 = vpow2.f32 %v1210_v26  ;;  %v1218_v58 = vmul.f32 1.442695, %v10010_v15  ;;  %v1220_v53 = vmul.f32 1.442695, %v10012_v54  ;;  %v10022_v15 = vld [vmem:[#allocation22_spill] sm:$0xff] }
 0x580   : > { %5942 = vmatmul.mubr.bf16.gmra.mrb[24].mxu0 %v2404_v28  ;;  %v2672_v57 = vpop.permute.xlu0 %2671  ;;  %6290 = vpow2.f32 %v1212_v1 }
 0x581   : > { %v2642_v6 = vpop.permute.xlu1 %2641  ;;  %v2719_v46 = vsel %vm976_vm1, %v2672_v57, 0  ;;  %6292 = vpow2.f32 %v1214_v49 }
 0x582   : > { %5960 = vmatpush3.bf16.xpose.msra.mxu0 %v2713_v43  ;;  %6294 = vpow2.f32 %v1216_v52  ;;  %v1378_v43 = vmul.f32 %v8091_v8, %v1362_v55  ;;  %v1368_v55 = vld [vmem:[#allocation3 + $0x30] sm:$0xff] }
 0x583   : > { %v8138_v48 = vpop.eup %6278  ;;  %6099 = vmatprep.subr.msk.bf16.mxu0 %vm976_vm1, %v2670_v9  ;;  %v1364_v9 = vld [vmem:[#allocation3 + $0x10] sm:$0xff]  ;;  %6296 = vpow2.f32 %v1218_v58  ;;  %v10023_v58 = vld [vmem:[#allocation24_spill] sm:$0xff] }
 0x584   : > { %v8141_v63 = vpop.eup %6280  ;;  %v2644_v36 = vpop.permute.xlu0 %2643  ;;  %6298 = vpow2.f32 %v1220_v53  ;;  %v1380_v32 = vmul.f32 %v8088_v21, %v1364_v9  ;;  %v10019_v21 = vld [vmem:[#allocation26_spill] sm:$0xff]  ;;  %v10024_v41 = vsub.f32 %v10022_v15, %v10023_v58 }
 0x585   : > { %v2405_v50 = vpack.c.bf16 %v8141_v63, %v8138_v48  ;;  %v8145_v51 = vpop.eup %6282  ;;  %v2646_v44 = vpop.permute.xlu1 %2645  ;;  %v10021_v49 = vsub.f32 %v10019_v21, %v10020_v2 }
 0x586   : > { %v1230_v54 = vmul.f32 1.442695, %v10024_v41  ;;  %v1376_v41 = vld [vmem:[#allocation3 + $0x70] sm:$0xff] }
 0x587   : > { %v8147_v13 = vpop.eup %6284  ;;  %5945 = vmatprep.mubr.bf16.mxu0 %v2405_v50  ;;  %v1228_v56 = vmul.f32 1.442695, %v10021_v49 }
 0x588   : > { %v2406_v7 = vpack.c.bf16 %v8147_v13, %v8145_v51  ;;  %v2648_v18 = vpop.permute.xlu0 %2647  ;;  %v8185_v50 = vpop.eup %6286 }
 0x589   : > { %v2650_v5 = vpop.permute.xlu1 %2649  ;;  %v8195_v8 = vpop.eup %6288 }
 0x58a   : > { %5946 = vmatmul.mubr.bf16.gmra.mrb[28].mxu0 %v2406_v7  ;;  %v1382_v62 = vmul.f32 %v8195_v8, %v1366_v23  ;;  %v1372_v23 = vld [vmem:[#allocation3 + $0x50] sm:$0xff] }
 0x58b   : > { %5962 = vmatpush3.bf16.xpose.msra.mxu0 %v2716_v45  ;;  %5965 = vmatprep.mubr.msk.bf16.mxu0 %vm976_vm1, %v2642_v6  ;;  %v1365_v6 = vld [vmem:[#allocation3 + $0x18] sm:$0xff] }
 0x58c   : > { %6100 = vmatprep.subr.msk.bf16.mxu0 %vm976_vm1, %v2672_v57  ;;  %v2652_v0 = vpop.permute.xlu0 %2651  ;;  %v10013_v57 = vld [vmem:[#allocation16_spill] sm:$0xff]  ;;  %v1381_v25 = vmul.f32 %v8185_v50, %v1365_v6 }
 0x58d   : > { %v2654_v11 = vpop.permute.xlu1 %2653 }
 0x590   : > { %v2656_v14 = vpop.permute.xlu0 %2655 }
 0x593   : > { %5964 = vmatpush3.bf16.xpose.msra.mxu0 %v2719_v46  ;;  %v10014_v46 = vld [vmem:[#allocation18_spill] sm:$0xff] }
 0x59a   : > { %5966 = vmatmul.mubr.msk.bf16.vlgmr.msra.gmra.mrb[32].mxu0 %vm976_vm1, %v2644_v36  ;;  %v10015_v36 = vsub.f32 %v10013_v57, %v10014_v46  ;;  %v1370_v46 = vld [vmem:[#allocation3 + $0x40] sm:$0xff] }
 0x59b   : > { %5969 = vmatprep.mubr.msk.bf16.mxu0 %vm976_vm1, %v2646_v44 }
 0x59c   : > { %v1222_v44 = vmul.f32 1.442695, %v10015_v36 }
 0x59e   : > { %6300 = vpow2.f32 %v1222_v44 }
 0x5a2   : > { %5970 = vmatmul.mubr.msk.bf16.gmra.mrb[36].mxu0 %vm976_vm1, %v2648_v18 }
 0x5a3   : > { %5973 = vmatprep.mubr.msk.bf16.mxu0 %vm976_vm1, %v2650_v5  ;;  %v10016_v5 = vld [vmem:[#allocation17_spill] sm:$0xff] }
 0x5a4   : > { %v10017_v22 = vsub.f32 %v10016_v5, %v7541_v27  ;;  %v10018_v27 = vsub.f32 %v7585_v38, %v7601_v29  ;;  %v1371_v5 = vld [vmem:[#allocation3 + $0x48] sm:$0xff] }
 0x5a6   : > { %v1226_v1 = vmul.f32 1.442695, %v10018_v27  ;;  %v1373_v27 = vld [vmem:[#allocation3 + $0x58] sm:$0xff] }
 0x5aa   : > { %5974 = vmatmul.mubr.msk.bf16.gmra.mrb[40].mxu0 %vm976_vm1, %v2652_v0  ;;  %v1224_v0 = vmul.f32 1.442695, %v10017_v22 }
 0x5ab   : > { %5977 = vmatprep.mubr.msk.bf16.mxu0 %vm976_vm1, %v2654_v11 }
 0x5ac   : > { %6302 = vpow2.f32 %v1224_v0 }
 0x5ad   : > { %6304 = vpow2.f32 %v1226_v1 }
 0x5ae   : > { %6306 = vpow2.f32 %v1228_v56  ;;  %v1374_v56 = vld [vmem:[#allocation3 + $0x60] sm:$0xff] }
 0x5af   : > { %6308 = vpow2.f32 %v1230_v54 }
 0x5b2   : > { %5978 = vmatmul.mubr.msk.bf16.gmra.mrb[44].mxu0 %vm976_vm1, %v2656_v14  ;;  %v8199_v14 = vpop.eup %6290 }
 0x5b3   : > { %v8209_v16 = vpop.eup %6292  ;;  %v1383_v60 = vmul.f32 %v8199_v14, %v1367_v3 }
 0x5b4   : > { %v8213_v29 = vpop.eup %6294 }
 0x5b5   : > { %v1385_v57 = vmul.f32 %v8213_v29, %v1369_v31 }
 0x5bd   : > { %v1397_v28 = vpop.xlane.xlu0 %1396 }
 0x5be   : > { %v1427_v7 = vadd.f32 %v1397_v28, %v1379_v33  ;;  %v1395_v45 = vpop.xlane.xlu1 %1394  ;;  %v10025_v33 = vld [vmem:[#allocation23_spill] sm:$0xff]  ;;  %v10026_v28 = vld [vmem:[#allocation25_spill] sm:$0xff] }
 0x5bf   : > { %v1426_v18 = vadd.f32 %v1395_v45, %v1378_v43  ;;  %v10027_v43 = vsub.f32 %v10025_v33, %v10026_v28  ;;  %v8223_v45 = vpop.eup %6296  ;;  %v1377_v28 = vld [vmem:[#allocation3 + $0x78] sm:$0xff] }
 0x5c0   : > { %1444 = vst.msk [vmem:[#allocation3 + $0x8] sm:$0xff] %vm691_vm0, %v1427_v7  ;;  %v1384_v7 = vmul.f32 %v8209_v16, %v1368_v55  ;;  %v8227_v36 = vpop.eup %6298  ;;  %v1386_v0 = vmul.f32 %v8223_v45, %v1370_v46  ;;  %v1375_v55 = vld [vmem:[#allocation3 + $0x68] sm:$0xff] }
 0x5c1   : > { %1443 = vst.msk [vmem:[#allocation3] sm:$0xff] %vm691_vm0, %v1426_v18  ;;  %v1399_v11 = vpop.xlane.xlu0 %1398  ;;  %v1232_v9 = vmul.f32 1.442695, %v10027_v43 }
 0x5c2   : > { %v1428_v42 = vadd.f32 %v1399_v11, %v1380_v32  ;;  %v1401_v26 = vpop.xlane.xlu1 %1400  ;;  %v8231_v32 = vpop.eup %6300 }
 0x5c3   : > { %v1429_v34 = vadd.f32 %v1401_v26, %v1381_v25  ;;  %6310 = vpow2.f32 %v1232_v9  ;;  %v1387_v25 = vmul.f32 %v8227_v36, %v1371_v5 }
 0x5c4   : > { %1445 = vst.msk [vmem:[#allocation3 + $0x10] sm:$0xff] %vm691_vm0, %v1428_v42  ;;  %v8235_v42 = vpop.eup %6302 }
 0x5c5   : > { %1446 = vst.msk [vmem:[#allocation3 + $0x18] sm:$0xff] %vm691_vm0, %v1429_v34  ;;  %v1403_v52 = vpop.xlane.xlu0 %1402  ;;  %v1388_v34 = vmul.f32 %v8231_v32, %v1372_v23  ;;  %v8239_v21 = vpop.eup %6304  ;;  %v1389_v49 = vmul.f32 %v8235_v42, %v1373_v27 }
 0x5c6   : > { %v1430_v38 = vadd.f32 %v1403_v52, %v1382_v62  ;;  %v1405_v39 = vpop.xlane.xlu1 %1404  ;;  %v8243_v62 = vpop.eup %6306 }
 0x5c7   : > { %v1431_v53 = vadd.f32 %v1405_v39, %v1383_v60  ;;  %v1390_v39 = vmul.f32 %v8239_v21, %v1374_v56  ;;  %v8247_v31 = vpop.eup %6308  ;;  %v1391_v58 = vmul.f32 %v8243_v62, %v1375_v55 }
 0x5c8   : > { %1447 = vst.msk [vmem:[#allocation3 + $0x20] sm:$0xff] %vm691_vm0, %v1430_v38  ;;  %v1392_v9 = vmul.f32 %v8247_v31, %v1376_v41 }
 0x5c9   : > { %1448 = vst.msk [vmem:[#allocation3 + $0x28] sm:$0xff] %vm691_vm0, %v1431_v53  ;;  %v1407_v6 = vpop.xlane.xlu0 %1406 }
 0x5ca   : > { %v1432_v44 = vadd.f32 %v1407_v6, %v1384_v7  ;;  %v1409_v18 = vpop.xlane.xlu1 %1408 }
 0x5cb   : > { %v1433_v22 = vadd.f32 %v1409_v18, %v1385_v57  ;;  %v1460_v18 = vld [vmem:[#allocation4 + $0x8] sm:$0xff] }
 0x5cc   : > { %1449 = vst.msk [vmem:[#allocation3 + $0x30] sm:$0xff] %vm691_vm0, %v1432_v44 }
 0x5cd   : > { %1450 = vst.msk [vmem:[#allocation3 + $0x38] sm:$0xff] %vm691_vm0, %v1433_v22  ;;  %v1411_v11 = vpop.xlane.xlu0 %1410  ;;  %v8251_v54 = vpop.eup %6310 }
 0x5ce   : > { %v1434_v26 = vadd.f32 %v1411_v11, %v1386_v0  ;;  %v1413_v3 = vpop.xlane.xlu1 %1412  ;;  %v1393_v6 = vmul.f32 %v8251_v54, %v1377_v28  ;;  %v1459_v0 = vld [vmem:[#allocation4] sm:$0xff]  ;;  %v1461_v11 = vld [vmem:[#allocation4 + $0x10] sm:$0xff] }
 0x5cf   : > { %v1435_v1 = vadd.f32 %v1413_v3, %v1387_v25  ;;  %v10028_v25 = vld [vmem:[#allocation31_spill] sm:$0xff] }
 0x5d0   : > { %1451 = vst.msk [vmem:[#allocation3 + $0x40] sm:$0xff] %vm691_vm0, %v1434_v26 }
 0x5d1   : > { %1452 = vst.msk [vmem:[#allocation3 + $0x48] sm:$0xff] %vm691_vm0, %v1435_v1  ;;  %v1415_v2 = vpop.xlane.xlu0 %1414 }
 0x5d2   : > { %v1436_v52 = vadd.f32 %v1415_v2, %v1388_v34  ;;  %v1417_v60 = vpop.xlane.xlu1 %1416  ;;  %v10029_v34 = vld [vmem:[#allocation29_spill] sm:$0xff] }
 0x5d3   : > { %v1437_v38 = vadd.f32 %v1417_v60, %v1389_v49  ;;  %v10030_v49 = vld [vmem:[#allocation28_spill] sm:$0xff] }
 0x5d4   : > { %1453 = vst.msk [vmem:[#allocation3 + $0x50] sm:$0xff] %vm691_vm0, %v1436_v52 }
 0x5d5   : > { %1454 = vst.msk [vmem:[#allocation3 + $0x58] sm:$0xff] %vm691_vm0, %v1437_v38  ;;  %v1419_v15 = vpop.xlane.xlu0 %1418 }
 0x5d6   : > { %v1438_v53 = vadd.f32 %v1419_v15, %v1390_v39  ;;  %v1421_v33 = vpop.xlane.xlu1 %1420 }
 0x5d7   : > { %v1439_v43 = vadd.f32 %v1421_v33, %v1391_v58 }
 0x5d8   : > { %1455 = vst.msk [vmem:[#allocation3 + $0x60] sm:$0xff] %vm691_vm0, %v1438_v53 }
 0x5d9   : > { %1456 = vst.msk [vmem:[#allocation3 + $0x68] sm:$0xff] %vm691_vm0, %v1439_v43  ;;  %v1423_v7 = vpop.xlane.xlu0 %1422 }
 0x5da   : > { %v1440_v57 = vadd.f32 %v1423_v7, %v1392_v9  ;;  %v1425_v46 = vpop.xlane.xlu1 %1424 }
 0x5db   : > { %v1441_v44 = vadd.f32 %v1425_v46, %v1393_v6 }
 0x5dc   : > { %1457 = vst.msk [vmem:[#allocation3 + $0x70] sm:$0xff] %vm691_vm0, %v1440_v57 }
 0x5dd   : > { %1458 = vst.msk [vmem:[#allocation3 + $0x78] sm:$0xff] %vm691_vm0, %v1441_v44 }
 0x5de   : > { %v1483_v5 = vpop.permute.xlu1 %1482 }
 0x5df   : > { %v1556_v22 = vmul.f32 %v1483_v5, %v1460_v18  ;;  %v6489_v18 = vld [vmem:[%s7241_s18] ss:$0 sm:$0xff] }
 0x5e1   : > { %v1725_v23 = vadd.f32 %v10028_v25, %v1556_v22  ;;  %v1478_v26 = vpop.permute.xlu0 %1477 }
 0x5e2   : > { %v1555_v3 = vmul.f32 %v1478_v26, %v1459_v0  ;;  %v1488_v27 = vpop.permute.xlu1 %1487 }
 0x5e3   : > { %1741 = vst.msk [vmem:[#allocation4 + $0x8] sm:$0xff] %vm976_vm1, %v1725_v23  ;;  %v1557_v1 = vmul.f32 %v1488_v27, %v1461_v11 }
 0x5e4   : > { %v1724_v2 = vadd.f32 %v10029_v34, %v1555_v3 }
 0x5e5   : > { %v1726_v56 = vadd.f32 %v10030_v49, %v1557_v1 }
 0x5e6   : > { %1740 = vst.msk [vmem:[#allocation4] sm:$0xff] %vm976_vm1, %v1724_v2  ;;  %v3277_v39 = vpop.permute.xlu1 %3276 }
 0x5e7   : > { %1742 = vst.msk [vmem:[#allocation4 + $0x10] sm:$0xff] %vm976_vm1, %v1726_v56  ;;  %5981 = vmatprep.subr.bf16.mxu1 %v3277_v39 }
 0x5e8   : > { %5982 = vmatpush3.bf16.msra.mxu1 %v3277_v39 }
 0x613   : > { %v8265_v52 = vpop.f32.mrb[16].mxu0 }
 0x614   : > { %10031 = vst [vmem:[#allocation13_spill] sm:$0xff] %v8265_v52  ;;  %v8267_v60 = vpop.f32.mrb[17].mxu0  ;;  %v8461_v52 = vld [vmem:[#allocation2 + $0x170] sm:$0xff] }
 0x615   : > { %v8269_v55 = vpop.f32.mrb[18].mxu0  ;;  %10064 = vst [vmem:[#allocation89_spill] sm:$0xff] %v8461_v52 }
 0x616   : > { %v8271_v38 = vpop.f32.mrb[19].mxu0 }
 0x64a   : > { %v8273_v15 = vpop.f32.mrb[20].mxu0 }
 0x64b   : > { %10032 = vst [vmem:[#allocation14_spill] sm:$0xff] %v8273_v15  ;;  %v8275_v58 = vpop.f32.mrb[21].mxu0  ;;  %v8359_v15 = vld [vmem:[#allocation2 + $0x100] sm:$0xff] }
 0x64c   : > { %10033 = vst [vmem:[#allocation15_spill] sm:$0xff] %v8275_v58  ;;  %v8277_v41 = vpop.f32.mrb[22].mxu0  ;;  %10047 = vst [vmem:[#allocation29_spill] sm:$0xff] %v8359_v15 }
 0x64d   : > { %10034 = vst [vmem:[#allocation19_spill] sm:$0xff] %v8277_v41  ;;  %v8279_v53 = vpop.f32.mrb[23].mxu0 }
 0x64e   : > { %10035 = vst [vmem:[#allocation21_spill] sm:$0xff] %v8279_v53 }
 0x653   : > { %v8281_v33 = vpop.f32.mrb[24].mxu0 }
 0x654   : > { %10036 = vst [vmem:[#allocation20_spill] sm:$0xff] %v8281_v33  ;;  %v8283_v28 = vpop.f32.mrb[25].mxu0 }
 0x655   : > { %10037 = vst [vmem:[#allocation16_spill] sm:$0xff] %v8283_v28  ;;  %v8285_v43 = vpop.f32.mrb[26].mxu0 }
 0x656   : > { %10038 = vst [vmem:[#allocation18_spill] sm:$0xff] %v8285_v43  ;;  %v8287_v9 = vpop.f32.mrb[27].mxu0 }
 0x657   : > { %10039 = vst [vmem:[#allocation17_spill] sm:$0xff] %v8287_v9  ;;  %v8369_v9 = vld [vmem:[#allocation2 + $0x108] sm:$0xff] }
 0x658   : > { %10049 = vst [vmem:[#allocation74_spill] sm:$0xff] %v8369_v9 }
 0x65d   : > { %v8289_v7 = vpop.f32.mrb[28].mxu0 }
 0x65e   : > { %10040 = vst [vmem:[#allocation26_spill] sm:$0xff] %v8289_v7  ;;  %v8291_v6 = vpop.f32.mrb[29].mxu0 }
 0x65f   : > { %10041 = vst [vmem:[#allocation27_spill] sm:$0xff] %v8291_v6  ;;  %v8293_v57 = vpop.f32.mrb[30].mxu0  ;;  %v6492_v6 = vld [vmem:[%s7249_s17 + $0x8] sm:$0xff]  }
 0x660   : > { %10042 = vst [vmem:[#allocation22_spill] sm:$0xff] %v8293_v57  ;;  %v8295_v46 = vpop.f32.mrb[31].mxu0  ;;  %v6491_v57 = vld [vmem:[%s7249_s17 + $0x18] sm:$0xff]  }
 0x661   : > { %10043 = vst [vmem:[#allocation24_spill] sm:$0xff] %v8295_v46 }
 0x66d   : > { %v5967_v44 = vpop.f32.mrb[32].mxu0 }
 0x66e   : > { %v8298_v5 = vadd.f32 %v6489_v18, %v5967_v44  ;;  %v2755_v22 = vpop.f32.mrb[33].mxu0  ;;  %v6490_v44 = vld [vmem:[%s7249_s17 + $0x10] sm:$0xff]  }
 0x66f   : > { %v5968_v0 = vpop.f32.mrb[34].mxu0  ;;  %v8303_v23 = vadd.f32 %v6489_v18, %v2755_v22 }
 0x670   : > { %v8300_v11 = vadd.f32 %v6489_v18, %v5968_v0  ;;  %2839 = vmax.xlane.f32.xlu1 %v8298_v5  ;;  %v2758_v25 = vpop.f32.mrb[35].mxu0 }
 0x671   : > { %v8306_v26 = vadd.f32 %v6489_v18, %v2758_v25 }
 0x672   : > { %2841 = vmax.xlane.f32.xlu0 %v8300_v11 }
 0x674   : > { %2835 = vmax.xlane.f32.xlu1 %v8303_v23 }
 0x675   : > { %v5971_v3 = vpop.f32.mrb[36].mxu0 }
 0x676   : > { %2837 = vmax.xlane.f32.xlu0 %v8306_v26  ;;  %v2771_v27 = vpop.f32.mrb[37].mxu0  ;;  %v8316_v33 = vadd.f32 %v6489_v18, %v5971_v3 }
 0x677   : > { %v5972_v1 = vpop.f32.mrb[38].mxu0  ;;  %v8321_v28 = vadd.f32 %v6489_v18, %v2771_v27 }
 0x678   : > { %v2774_v34 = vpop.f32.mrb[39].mxu0  ;;  %v8327_v43 = vadd.f32 %v6489_v18, %v5972_v1 }
 0x679   : > { %v8318_v46 = vadd.f32 %v6489_v18, %v2774_v34 }
 0x67d   : > { %v5975_v2 = vpop.f32.mrb[40].mxu0 }
 0x67e   : > { %v2787_v49 = vpop.f32.mrb[41].mxu0 }
 0x67f   : > { %v5976_v56 = vpop.f32.mrb[42].mxu0 }
 0x680   : > { %v2790_v39 = vpop.f32.mrb[43].mxu0 }
 0x681   : > { %v8339_v27 = vadd.f32 %v6489_v18, %v2790_v39  ;;  %v8354_v39 = vld [vmem:[#allocation2 + $0x118] sm:$0xff] }
 0x682   : > { %10045 = vst [vmem:[#allocation25_spill] sm:$0xff] %v8354_v39 }
 0x685   : > { %3280 = vrot.lane.b32.xlu1 %v6490_v44, %s6743_s16  ;;  %v5979_v22 = vpop.f32.mrb[44].mxu0  ;;  %v8324_v44 = vadd.f32 %v6489_v18, %v5975_v2 }
 0x686   : > { %v2803_v0 = vpop.f32.mrb[45].mxu0  ;;  %v8336_v3 = vadd.f32 %v6489_v18, %v5979_v22 }
 0x687   : > { %v5980_v25 = vpop.f32.mrb[46].mxu0  ;;  %v8341_v34 = vadd.f32 %v6489_v18, %v2803_v0 }
 0x688   : > { %v2806_v7 = vpop.f32.mrb[47].mxu0  ;;  %v8345_v1 = vadd.f32 %v6489_v18, %v5980_v25 }
 0x689   : > { %3282 = vrot.lane.b32.xlu1 %v6491_v57, %s6743_s16  ;;  %v8329_v57 = vadd.f32 %v6489_v18, %v2787_v49  ;;  %v8349_v2 = vadd.f32 %v6489_v18, %v2806_v7  ;;  %v8352_v49 = vld [vmem:[#allocation2 + $0x110] sm:$0xff] }
 0x68a   : > { %10044 = vst [vmem:[#allocation23_spill] sm:$0xff] %v8352_v49 }
 0x68c   : > { %3278 = vrot.lane.b32.xlu0 %v6492_v6, %s6743_s16  ;;  %v8333_v6 = vadd.f32 %v6489_v18, %v5976_v56 }
 0x6ab   : > { %2847 = vmax.xlane.f32.xlu0 %v8316_v33 }
 0x6ad   : > { %2845 = vmax.xlane.f32.xlu1 %v8318_v46 }
 0x6af   : > { %2843 = vmax.xlane.f32.xlu0 %v8321_v28 }
 0x6b1   : > { %2855 = vmax.xlane.f32.xlu1 %v8324_v44 }
 0x6b3   : > { %2849 = vmax.xlane.f32.xlu0 %v8327_v43 }
 0x6b5   : > { %2851 = vmax.xlane.f32.xlu1 %v8329_v57 }
 0x6b7   : > { %2857 = vmax.xlane.f32.xlu0 %v8333_v6 }
 0x6b9   : > { %2863 = vmax.xlane.f32.xlu1 %v8336_v3 }
 0x6bb   : > { %2853 = vmax.xlane.f32.xlu0 %v8339_v27 }
 0x6bd   : > { %2859 = vmax.xlane.f32.xlu1 %v8341_v34 }
 0x6bf   : > { %2865 = vmax.xlane.f32.xlu0 %v8345_v1 }
 0x6c3   : > { %2861 = vmax.xlane.f32.xlu0 %v8349_v2 }
 0x6fd   : > { %v2840_v56 = vpop.xlane.xlu1 %2839 }
 0x6fe   : > { %v8357_v22 = vmax.f32 %v8352_v49, %v2840_v56 }
 0x6ff   : > { %v2842_v0 = vpop.xlane.xlu0 %2841 }
 0x700   : > { %10046 = vst [vmem:[#allocation31_spill] sm:$0xff] %v8357_v22  ;;  %3496 = vst.msk [vmem:[#allocation2 + $0x110] sm:$0xff] %vm691_vm0, %v8357_v22  ;;  %v8366_v7 = vmax.f32 %v8354_v39, %v2842_v0  ;;  %2943 = vperm.xlu0 %6190, %v8357_v22   ;;  %v6493_v39 = vld [vmem:[%s7249_s17 + $0x20] sm:$0xff]  }
 0x701   : > { %v2836_v18 = vpop.xlane.xlu1 %2835 }
 0x702   : > { %10048 = vst [vmem:[#allocation28_spill] sm:$0xff] %v8366_v7  ;;  %3497 = vst.msk [vmem:[#allocation2 + $0x118] sm:$0xff] %vm691_vm0, %v8366_v7  ;;  %v8376_v25 = vmax.f32 %v8359_v15, %v2836_v18  ;;  %v6496_v15 = vld [vmem:[%s7247_s21] sm:$0xff]  }
 0x703   : > { %v2838_v49 = vpop.xlane.xlu0 %2837 }
 0x704   : > { %10050 = vst [vmem:[#allocation75_spill] sm:$0xff] %v8376_v25  ;;  %3494 = vst.msk [vmem:[#allocation2 + $0x100] sm:$0xff] %vm691_vm0, %v8376_v25  ;;  %v8383_v22 = vmax.f32 %v8369_v9, %v2838_v49  ;;  %2933 = vperm.xlu0 %6190, %v8376_v25   ;;  %v6494_v49 = vld [vmem:[%s7249_s17 + $0x30] sm:$0xff]   ;;  %v6495_v25 = vld [vmem:[%s7249_s17 + $0x28] sm:$0xff]  }
 0x705   : > { %v3281_v18 = vpop.permute.xlu1 %3280 }
 0x706   : > { %10051 = vst [vmem:[#allocation76_spill] sm:$0xff] %v8383_v22  ;;  %3495 = vst.msk [vmem:[#allocation2 + $0x108] sm:$0xff] %vm691_vm0, %v8383_v22  ;;  %2938 = vperm.xlu1 %6191, %v8383_v22   ;;  %v8408_v22 = vld [vmem:[#allocation2 + $0x128] sm:$0xff] }
 0x707   : > { %v3279_v0 = vpop.permute.xlu0 %3278  ;;  %10053 = vst [vmem:[#allocation78_spill] sm:$0xff] %v8408_v22 }
 0x708   : > { %5983 = vmatprep.subr.bf16.mxu1 %v3279_v0  ;;  %3284 = vrot.lane.b32.xlu0 %v6493_v39, %s6743_s16  ;;  %v6497_v39 = vld [vmem:[%s7249_s17 + $0x38] sm:$0xff]  }
 0x709   : > { %5984 = vmatpush3.bf16.msra.mxu1 %v3279_v0  ;;  %v3283_v56 = vpop.permute.xlu1 %3282  ;;  %v6498_v0 = vld [vmem:[%s7247_s21 + $0x10] sm:$0xff]  }
 0x70a   : > { %2948 = vperm.xlu1 %6191, %v8366_v7   ;;  %5985 = vmatprep.subr.bf16.mxu1 %v3281_v18  ;;  %v6499_v7 = vld [vmem:[%s7247_s21 + $0x8] sm:$0xff]  }
 0x70c   : > { %3288 = vrot.lane.b32.xlu0 %v6494_v49, %s6743_s16  ;;  %v8406_v49 = vld [vmem:[#allocation2 + $0x130] sm:$0xff] }
 0x70d   : > { %5986 = vmatpush3.bf16.msra.mxu1 %v3281_v18  ;;  %10052 = vst [vmem:[#allocation77_spill] sm:$0xff] %v8406_v49 }
 0x70e   : > { %5987 = vmatprep.subr.bf16.mxu1 %v3283_v56  ;;  %3286 = vrot.lane.b32.xlu1 %v6495_v25, %s6743_s16 }
 0x710   : > { %3526 = vrot.lane.b32.xlu0 %v6496_v15, %s6744_s19  ;;  %v8413_v15 = vld [vmem:[#allocation2 + $0x120] sm:$0xff] }
 0x711   : > { %5988 = vmatpush3.bf16.msra.mxu1 %v3283_v56  ;;  %10055 = vst [vmem:[#allocation80_spill] sm:$0xff] %v8413_v15  ;;  %v8432_v56 = vld [vmem:[#allocation2 + $0x138] sm:$0xff] }
 0x712   : > { %3290 = vrot.lane.b32.xlu1 %v6497_v39, %s6743_s16  ;;  %10059 = vst [vmem:[#allocation84_spill] sm:$0xff] %v8432_v56 }
 0x714   : > { %3530 = vrot.lane.b32.xlu0 %v6498_v0, %s6744_s19  ;;  %v8423_v0 = vld [vmem:[#allocation2 + $0x150] sm:$0xff] }
 0x715   : > { %10057 = vst [vmem:[#allocation82_spill] sm:$0xff] %v8423_v0 }
 0x716   : > { %3528 = vrot.lane.b32.xlu1 %v6499_v7, %s6744_s19 }
 0x738   : > { %v2848_v18 = vpop.xlane.xlu0 %2847 }
 0x739   : > { %v8411_v25 = vmax.f32 %v8406_v49, %v2848_v18 }
 0x73a   : > { %v2846_v9 = vpop.xlane.xlu1 %2845 }
 0x73b   : > { %10054 = vst [vmem:[#allocation79_spill] sm:$0xff] %v8411_v25  ;;  %3500 = vst.msk [vmem:[#allocation2 + $0x130] sm:$0xff] %vm691_vm0, %v8411_v25  ;;  %v8420_v39 = vmax.f32 %v8408_v22, %v2846_v9  ;;  %2963 = vperm.xlu0 %6190, %v8411_v25   ;;  %v8442_v22 = vld [vmem:[#allocation2 + $0x140] sm:$0xff]  ;;  %v8451_v9 = vld [vmem:[#allocation2 + $0x158] sm:$0xff] }
 0x73c   : > { %v2844_v7 = vpop.xlane.xlu0 %2843  ;;  %10060 = vst [vmem:[#allocation85_spill] sm:$0xff] %v8442_v22  ;;  %10062 = vst [vmem:[#allocation87_spill] sm:$0xff] %v8451_v9 }
 0x73d   : > { %10056 = vst [vmem:[#allocation81_spill] sm:$0xff] %v8420_v39  ;;  %3499 = vst.msk [vmem:[#allocation2 + $0x128] sm:$0xff] %vm691_vm0, %v8420_v39  ;;  %v8430_v58 = vmax.f32 %v8413_v15, %v2844_v7 }
 0x73e   : > { %v2856_v49 = vpop.xlane.xlu1 %2855 }
 0x73f   : > { %10058 = vst [vmem:[#allocation83_spill] sm:$0xff] %v8430_v58  ;;  %3498 = vst.msk [vmem:[#allocation2 + $0x120] sm:$0xff] %vm691_vm0, %v8430_v58  ;;  %2953 = vperm.xlu0 %6190, %v8430_v58   ;;  %v8440_v25 = vmax.f32 %v8423_v0, %v2856_v49  ;;  %v8470_v58 = vld [vmem:[#allocation2 + $0x148] sm:$0xff]  ;;  %v8481_v0 = vld [vmem:[#allocation2 + $0x160] sm:$0xff] }
 0x740   : > { %v2850_v18 = vpop.xlane.xlu0 %2849  ;;  %10066 = vst [vmem:[#allocation91_spill] sm:$0xff] %v8470_v58  ;;  %10068 = vst [vmem:[#allocation93_spill] sm:$0xff] %v8481_v0 }
 0x741   : > { %v8445_v7 = vmax.f32 %v8432_v56, %v2850_v18  ;;  %3504 = vst.msk [vmem:[#allocation2 + $0x150] sm:$0xff] %vm691_vm0, %v8440_v25 }
 0x742   : > { %v2852_v15 = vpop.xlane.xlu1 %2851 }
 0x743   : > { %10061 = vst [vmem:[#allocation86_spill] sm:$0xff] %v8445_v7  ;;  %3501 = vst.msk [vmem:[#allocation2 + $0x138] sm:$0xff] %vm691_vm0, %v8445_v7  ;;  %2968 = vperm.xlu1 %6191, %v8445_v7   ;;  %v8459_v49 = vmax.f32 %v8442_v22, %v2852_v15  ;;  %v8490_v7 = vld [vmem:[#allocation2 + $0x178] sm:$0xff] }
 0x744   : > { %v2858_v18 = vpop.xlane.xlu0 %2857  ;;  %10070 = vst [vmem:[#allocation95_spill] sm:$0xff] %v8490_v7 }
 0x745   : > { %10063 = vst [vmem:[#allocation88_spill] sm:$0xff] %v8459_v49  ;;  %v8464_v41 = vmax.f32 %v8451_v9, %v2858_v18  ;;  %3502 = vst.msk [vmem:[#allocation2 + $0x140] sm:$0xff] %vm691_vm0, %v8459_v49 }
 0x746   : > { %v2864_v56 = vpop.xlane.xlu1 %2863 }
 0x747   : > { %10065 = vst [vmem:[#allocation90_spill] sm:$0xff] %v8464_v41  ;;  %3505 = vst.msk [vmem:[#allocation2 + $0x158] sm:$0xff] %vm691_vm0, %v8464_v41  ;;  %2958 = vperm.xlu1 %6191, %v8420_v39   ;;  %2988 = vperm.xlu0 %6190, %v8464_v41   ;;  %v8479_v15 = vmax.f32 %v8461_v52, %v2864_v56  ;;  %v8508_v41 = vld [vmem:[#allocation2 + $0x168] sm:$0xff]  ;;  %v6503_v52 = vld [vmem:[%s7244_s7] sm:$0xff]  }
 0x748   : > { %v2854_v18 = vpop.xlane.xlu0 %2853  ;;  %10073 = vst [vmem:[#allocation98_spill] sm:$0xff] %v8508_v41 }
 0x749   : > { %10067 = vst [vmem:[#allocation92_spill] sm:$0xff] %v8479_v15  ;;  %v8484_v22 = vmax.f32 %v8470_v58, %v2854_v18  ;;  %3508 = vst.msk [vmem:[#allocation2 + $0x170] sm:$0xff] %vm691_vm0, %v8479_v15  ;;  %v6511_v58 = vld [vmem:[%s7244_s7 + $0x28] sm:$0xff]  }
 0x74a   : > { %v2860_v9 = vpop.xlane.xlu1 %2859 }
 0x74b   : > { %10069 = vst [vmem:[#allocation94_spill] sm:$0xff] %v8484_v22  ;;  %3503 = vst.msk [vmem:[#allocation2 + $0x148] sm:$0xff] %vm691_vm0, %v8484_v22  ;;  %2983 = vperm.xlu1 %6191, %v8440_v25   ;;  %2978 = vperm.xlu0 %6190, %v8484_v22   ;;  %v8499_v56 = vmax.f32 %v8481_v0, %v2860_v9  ;;  %v6500_v22 = vld [vmem:[%s7247_s21 + $0x18] sm:$0xff]  }
 0x74c   : > { %v2866_v18 = vpop.xlane.xlu0 %2865 }
 0x74d   : > { %10071 = vst [vmem:[#allocation96_spill] sm:$0xff] %v8499_v56  ;;  %v8502_v53 = vmax.f32 %v8490_v7, %v2866_v18  ;;  %3506 = vst.msk [vmem:[#allocation2 + $0x160] sm:$0xff] %vm691_vm0, %v8499_v56  ;;  %v6501_v7 = vld [vmem:[%s7247_s21 + $0x20] sm:$0xff]  }
 0x74f   : > { %10072 = vst [vmem:[#allocation97_spill] sm:$0xff] %v8502_v53  ;;  %3509 = vst.msk [vmem:[#allocation2 + $0x178] sm:$0xff] %vm691_vm0, %v8502_v53  ;;  %2973 = vperm.xlu1 %6191, %v8459_v49   ;;  %3003 = vperm.xlu0 %6190, %v8479_v15  }
 0x750   : > { %v2862_v9 = vpop.xlane.xlu0 %2861 }
 0x751   : > { %v8517_v18 = vmax.f32 %v8508_v41, %v2862_v9  ;;  %v6502_v9 = vld [vmem:[%s7247_s21 + $0x30] sm:$0xff]  }
 0x752   : > { %v6505_v41 = vld [vmem:[%s7244_s7 + $0x10] sm:$0xff]  }
 0x753   : > { %10074 = vst [vmem:[#allocation99_spill] sm:$0xff] %v8517_v18  ;;  %3507 = vst.msk [vmem:[#allocation2 + $0x168] sm:$0xff] %vm691_vm0, %v8517_v18  ;;  %3532 = vrot.lane.b32.xlu1 %v6500_v22, %s6744_s19  ;;  %2993 = vperm.xlu0 %6190, %v8499_v56   ;;  %v6504_v22 = vld [vmem:[%s7247_s21 + $0x28] sm:$0xff]  }
 0x757   : > { %3534 = vrot.lane.b32.xlu0 %v6501_v7, %s6744_s19  ;;  %2998 = vperm.xlu1 %6191, %v8517_v18   ;;  %v6506_v7 = vld [vmem:[%s7247_s21 + $0x38] sm:$0xff]   ;;  %v6507_v18 = vld [vmem:[%s7244_s7 + $0x20] sm:$0xff]  }
 0x75b   : > { %3538 = vrot.lane.b32.xlu0 %v6502_v9, %s6744_s19  ;;  %3008 = vperm.xlu1 %6191, %v8502_v53   ;;  %v6508_v9 = vld [vmem:[%s7244_s7 + $0x8] sm:$0xff]   ;;  %v6509_v53 = vld [vmem:[%s7244_s7 + $0x30] sm:$0xff]  }
 0x75f   : > { %3510 = vrot.lane.b32.xlu0 %v6503_v52, %s6744_s19  ;;  %3536 = vrot.lane.b32.xlu1 %v6504_v22, %s6744_s19  ;;  %v6510_v52 = vld [vmem:[%s7244_s7 + $0x18] sm:$0xff]  }
 0x760   : > { %v6512_v22 = vld [vmem:[%s7244_s7 + $0x38] sm:$0xff]  }
 0x763   : > { %3514 = vrot.lane.b32.xlu0 %v6505_v41, %s6744_s19  ;;  %3540 = vrot.lane.b32.xlu1 %v6506_v7, %s6744_s19 }
 0x767   : > { %3518 = vrot.lane.b32.xlu0 %v6507_v18, %s6744_s19  ;;  %3512 = vrot.lane.b32.xlu1 %v6508_v9, %s6744_s19 }
 0x76b   : > { %3522 = vrot.lane.b32.xlu0 %v6509_v53, %s6744_s19  ;;  %3516 = vrot.lane.b32.xlu1 %v6510_v52, %s6744_s19 }
 0x76f   : > { %3520 = vrot.lane.b32.xlu1 %v6511_v58, %s6744_s19 }
 0x773   : > { %3524 = vrot.lane.b32.xlu1 %v6512_v22, %s6744_s19 }
 0x77f   : > { %v2944_v41 = vpop.permute.xlu0 %2943 }
 0x780   : > { %v3013_v18 = vsub.f32 %v8298_v5, %v2944_v41 }
 0x782   : > { %v3031_v52 = vmul.f32 1.442695, %v3013_v18 }
 0x783   : > { %v2934_v7 = vpop.permute.xlu0 %2933 }
 0x784   : > { %v3011_v56 = vsub.f32 %v8303_v23, %v2934_v7 }
 0x785   : > { %v2939_v0 = vpop.permute.xlu1 %2938 }
 0x786   : > { %v3027_v9 = vmul.f32 1.442695, %v3011_v56  ;;  %v3012_v15 = vsub.f32 %v8306_v26, %v2939_v0 }
 0x787   : > { %v3285_v53 = vpop.permute.xlu0 %3284 }
 0x788   : > { %v3029_v39 = vmul.f32 1.442695, %v3012_v15  ;;  %5989 = vmatprep.subr.bf16.mxu1 %v3285_v53  ;;  %6312 = vpow2.f32 %v3027_v9 }
 0x789   : > { %v2949_v49 = vpop.permute.xlu1 %2948  ;;  %5990 = vmatpush3.bf16.msra.mxu1 %v3285_v53  ;;  %v10079_v53 = vld [vmem:[#allocation46_spill] sm:$0xff] }
 0x78a   : > { %6314 = vpow2.f32 %v3029_v39  ;;  %v3014_v58 = vsub.f32 %v8300_v11, %v2949_v49  ;;  %2225 = vadd.xlane.f32.xlu0 %v8050_v12 }
 0x78b   : > { %6316 = vpow2.f32 %v3031_v52  ;;  %v3289_v5 = vpop.permute.xlu0 %3288 }
 0x78c   : > { %v3033_v22 = vmul.f32 1.442695, %v3014_v58 }
 0x78d   : > { %v3287_v23 = vpop.permute.xlu1 %3286 }
 0x78e   : > { %6318 = vpow2.f32 %v3033_v22  ;;  %2227 = vadd.xlane.f32.xlu0 %v8054_v61  ;;  %5991 = vmatprep.subr.bf16.mxu1 %v3287_v23 }
 0x78f   : > { %5992 = vmatpush3.bf16.msra.mxu1 %v3287_v23  ;;  %v3527_v11 = vpop.permute.xlu0 %3526 }
 0x790   : > { %5993 = vmatprep.subr.bf16.mxu1 %v3289_v5 }
 0x791   : > { %v3291_v26 = vpop.permute.xlu1 %3290 }
 0x792   : > { %2231 = vadd.xlane.f32.xlu0 %v8110_v47  ;;  %v8559_v0 = vpop.eup %6312 }
 0x793   : > { %5994 = vmatpush3.bf16.msra.mxu1 %v3289_v5 }
 0x794   : > { %v8561_v39 = vpop.eup %6314  ;;  %5995 = vmatprep.subr.bf16.mxu1 %v3291_v26 }
 0x795   : > { %v3268_v12 = vpack.c.bf16 %v8561_v39, %v8559_v0  ;;  %v8566_v49 = vpop.eup %6316 }
 0x796   : > { %2235 = vadd.xlane.f32.xlu0 %v8104_v35  ;;  %v3567_v35 = vsel %vm976_vm1, %v3527_v11, 0 }
 0x797   : > { %2223 = vadd.xlane.f32.xlu1 %v8047_v37  ;;  %5997 = vmatprep.mubr.bf16.mxu1 %v3268_v12  ;;  %v3529_v37 = vpop.permute.xlu1 %3528 }
 0x798   : > { %v8569_v61 = vpop.eup %6318  ;;  %5996 = vmatpush3.bf16.msra.mxu1 %v3291_v26 }
 0x799   : > { %v3269_v47 = vpack.c.bf16 %v8569_v61, %v8566_v49  ;;  %6101 = vmatprep.subr.msk.bf16.mxu1 %vm976_vm1, %v3527_v11 }
 0x79a   : > { %2239 = vadd.xlane.f32.xlu0 %v8130_v30  ;;  %v3570_v30 = vsel %vm976_vm1, %v3529_v37, 0 }
 0x79b   : > { %2229 = vadd.xlane.f32.xlu1 %v8057_v17  ;;  %5998 = vmatmul.mubr.bf16.vlgmr.msra.gmra.mrb[32].mxu1 %v3269_v47  ;;  %v3531_v17 = vpop.permute.xlu0 %3530 }
 0x79e   : > { %2243 = vadd.xlane.f32.xlu0 %v8126_v19 }
 0x79f   : > { %2233 = vadd.xlane.f32.xlu1 %v8112_v20  ;;  %v3573_v20 = vsel %vm976_vm1, %v3531_v17, 0 }
 0x7a1   : > { %6014 = vmatpush3.bf16.xpose.msra.mxu1 %v3567_v35  ;;  %v10086_v35 = vld [vmem:[#allocation57_spill] sm:$0xff] }
 0x7a2   : > { %2247 = vadd.xlane.f32.xlu0 %v8138_v48  ;;  %6102 = vmatprep.subr.msk.bf16.mxu1 %vm976_vm1, %v3529_v37 }
 0x7a3   : > { %2237 = vadd.xlane.f32.xlu1 %v8106_v59 }
 0x7a6   : > { %2251 = vadd.xlane.f32.xlu0 %v8145_v51 }
 0x7a7   : > { %2241 = vadd.xlane.f32.xlu1 %v8128_v10 }
 0x7a9   : > { %6016 = vmatpush3.bf16.xpose.msra.mxu1 %v3570_v30 }
 0x7aa   : > { %6103 = vmatprep.subr.msk.bf16.mxu1 %vm976_vm1, %v3531_v17 }
 0x7ab   : > { %2245 = vadd.xlane.f32.xlu1 %v8121_v4 }
 0x7af   : > { %2249 = vadd.xlane.f32.xlu1 %v8141_v63 }
 0x7b1   : > { %6018 = vmatpush3.bf16.xpose.msra.mxu1 %v3573_v20 }
 0x7b3   : > { %2253 = vadd.xlane.f32.xlu1 %v8147_v13 }
 0x7ba   : > { %v2964_v59 = vpop.permute.xlu0 %2963 }
 0x7bb   : > { %v3017_v4 = vsub.f32 %v8316_v33, %v2964_v59 }
 0x7bc   : > { %1492 = vperm.xlu0 %6190, %v8185_v50  }
 0x7be   : > { %v2954_v19 = vpop.permute.xlu0 %2953 }
 0x7bf   : > { %v3015_v10 = vsub.f32 %v8321_v28, %v2954_v19  ;;  %v3039_v28 = vmul.f32 1.442695, %v3017_v4  ;;  %v10091_v4 = vld [vmem:[#allocation54_spill] sm:$0xff] }
 0x7c0   : > { %1502 = vperm.xlu0 %6190, %v8199_v14   ;;  %v10075_v14 = vsub.f32 %v7840_v40, %v7846_v24 }
 0x7c1   : > { %v3035_v63 = vmul.f32 1.442695, %v3015_v10  ;;  %v10089_v10 = vld [vmem:[#allocation53_spill] sm:$0xff] }
 0x7c2   : > { %v2969_v48 = vpop.permute.xlu1 %2968  ;;  %v2030_v41 = vmul.f32 1.442695, %v10075_v14 }
 0x7c3   : > { %v3018_v51 = vsub.f32 %v8327_v43, %v2969_v48  ;;  %6320 = vpow2.f32 %v3035_v63  ;;  %v10077_v43 = vld [vmem:[#allocation45_spill] sm:$0xff]  ;;  %v10092_v63 = vld [vmem:[#allocation56_spill] sm:$0xff] }
 0x7c4   : > { %1512 = vperm.xlu0 %6190, %v8213_v29   ;;  %1497 = vperm.xlu1 %6191, %v8195_v8   ;;  %v10076_v8 = vld [vmem:[#allocation44_spill] sm:$0xff] }
 0x7c5   : > { %v3041_v15 = vmul.f32 1.442695, %v3018_v51  ;;  %v10078_v33 = vsub.f32 %v10076_v8, %v10077_v43  ;;  %v10094_v8 = vld [vmem:[#allocation50_spill] sm:$0xff]  ;;  %v10095_v43 = vld [vmem:[#allocation52_spill] sm:$0xff] }
 0x7c6   : > { %v2959_v13 = vpop.permute.xlu1 %2958  ;;  %v2989_v56 = vpop.permute.xlu0 %2988 }
 0x7c7   : > { %v3016_v50 = vsub.f32 %v8318_v46, %v2959_v13  ;;  %v2034_v7 = vmul.f32 1.442695, %v10078_v33  ;;  %6322 = vpow2.f32 %v3041_v15  ;;  %v10080_v46 = vld [vmem:[#allocation48_spill] sm:$0xff]  ;;  %v3022_v5 = vsub.f32 %v8333_v6, %v2989_v56 }
 0x7c8   : > { %1522 = vperm.xlu0 %6190, %v8227_v36   ;;  %1507 = vperm.xlu1 %6191, %v8209_v16   ;;  %v10081_v52 = vsub.f32 %v10079_v53, %v10080_v46  ;;  %v10082_v16 = vld [vmem:[#allocation47_spill] sm:$0xff]  ;;  %v10083_v36 = vld [vmem:[#allocation49_spill] sm:$0xff]  ;;  %v10096_v33 = vsub.f32 %v10094_v8, %v10095_v43  ;;  %v10115_v43 = vld [vmem:[#allocation70_spill] sm:$0xff] }
 0x7c9   : > { %v3037_v29 = vmul.f32 1.442695, %v3016_v50  ;;  %v10084_v22 = vsub.f32 %v10082_v16, %v10083_v36 }
 0x7ca   : > { %v2984_v18 = vpop.permute.xlu1 %2983  ;;  %v2979_v9 = vpop.permute.xlu0 %2978  ;;  %v2032_v58 = vmul.f32 1.442695, %v10081_v52 }
 0x7cb   : > { %6324 = vpow2.f32 %v3037_v29  ;;  %v3021_v24 = vsub.f32 %v8324_v44, %v2984_v18  ;;  %v3020_v40 = vsub.f32 %v8339_v27, %v2979_v9  ;;  %v2036_v23 = vmul.f32 1.442695, %v10084_v22  ;;  %v10085_v27 = vld [vmem:[#allocation55_spill] sm:$0xff]  ;;  %v10098_v9 = vld [vmem:[#allocation65_spill] sm:$0xff] }
 0x7cc   : > { %6326 = vpow2.f32 %v2030_v41  ;;  %1532 = vperm.xlu0 %6190, %v8235_v42   ;;  %1517 = vperm.xlu1 %6191, %v8223_v45   ;;  %v10087_v37 = vsub.f32 %v10085_v27, %v10086_v35  ;;  %v3049_v45 = vmul.f32 1.442695, %v3022_v5  ;;  %v10101_v5 = vld [vmem:[#allocation61_spill] sm:$0xff] }
 0x7cd   : > { %6328 = vpow2.f32 %v3039_v28  ;;  %v3047_v26 = vmul.f32 1.442695, %v3021_v24  ;;  %v3045_v12 = vmul.f32 1.442695, %v3020_v40  ;;  %v8623_v20 = vpop.eup %6320 }
 0x7ce   : > { %6330 = vpow2.f32 %v2034_v7  ;;  %v2974_v11 = vpop.permute.xlu1 %2973  ;;  %v3004_v47 = vpop.permute.xlu0 %3003  ;;  %v2040_v30 = vmul.f32 1.442695, %v10087_v37  ;;  %v2042_v7 = vmul.f32 1.442695, %v10096_v33  ;;  %v10116_v33 = vld [vmem:[#allocation72_spill] sm:$0xff] }
 0x7cf   : > { %6332 = vpow2.f32 %v2032_v58  ;;  %v3019_v44 = vsub.f32 %v8329_v57, %v2974_v11  ;;  %v3025_v56 = vsub.f32 %v8336_v3, %v3004_v47  ;;  %v10103_v47 = vld [vmem:[#allocation62_spill] sm:$0xff] }
 0x7d0   : > { %6334 = vpow2.f32 %v2036_v23  ;;  %1542 = vperm.xlu0 %6190, %v8243_v62   ;;  %1527 = vperm.xlu1 %6191, %v8231_v32   ;;  %v10088_v62 = vld [vmem:[#allocation51_spill] sm:$0xff] }
 0x7d1   : > { %6336 = vpow2.f32 %v3047_v26  ;;  %v3043_v42 = vmul.f32 1.442695, %v3019_v44  ;;  %v8628_v19 = vpop.eup %6322  ;;  %v10090_v32 = vsub.f32 %v10088_v62, %v10089_v10  ;;  %v3055_v24 = vmul.f32 1.442695, %v3025_v56  ;;  %v10100_v23 = vld [vmem:[#allocation59_spill] sm:$0xff]  ;;  %v10104_v44 = vld [vmem:[#allocation64_spill] sm:$0xff] }
 0x7d2   : > { %6338 = vpow2.f32 %v3045_v12  ;;  %v3533_v6 = vpop.permute.xlu1 %3532  ;;  %v2994_v17 = vpop.permute.xlu0 %2993  ;;  %v10102_v26 = vsub.f32 %v10100_v23, %v10101_v5  ;;  %v10105_v27 = vsub.f32 %v10103_v47, %v10104_v44  ;;  %v10109_v10 = vld [vmem:[#allocation71_spill] sm:$0xff] }
 0x7d3   : > { %6340 = vpow2.f32 %v3043_v42  ;;  %v3023_v57 = vsub.f32 %v8341_v34, %v2994_v17  ;;  %6104 = vmatprep.subr.msk.bf16.mxu1 %vm976_vm1, %v3533_v6  ;;  %v3576_v59 = vsel %vm976_vm1, %v3533_v6, 0  ;;  %v2044_v48 = vmul.f32 1.442695, %v10090_v32  ;;  %v10106_v6 = vld [vmem:[#allocation58_spill] sm:$0xff]  ;;  %v10107_v17 = vld [vmem:[#allocation60_spill] sm:$0xff]  ;;  %v10110_v32 = vld [vmem:[#allocation73_spill] sm:$0xff] }
 0x7d4   : > { %6342 = vpow2.f32 %v2040_v30  ;;  %1552 = vperm.xlu0 %6190, %v8251_v54   ;;  %1537 = vperm.xlu1 %6191, %v8239_v21   ;;  %v10093_v34 = vsub.f32 %v10091_v4, %v10092_v63  ;;  %v2052_v12 = vmul.f32 1.442695, %v10102_v26  ;;  %v2046_v35 = vmul.f32 1.442695, %v10105_v27 }
 0x7d5   : > { %v8635_v51 = vpop.eup %6324  ;;  %6344 = vpow2.f32 %v3049_v45  ;;  %6020 = vmatpush3.bf16.xpose.msra.mxu1 %v3576_v59  ;;  %v3051_v50 = vmul.f32 1.442695, %v3023_v57  ;;  %v10108_v57 = vsub.f32 %v10106_v6, %v10107_v17 }
 0x7d6   : > { %v2038_v15 = vmul.f32 1.442695, %v10093_v34  ;;  %v8640_v13 = vpop.eup %6326  ;;  %v2999_v14 = vpop.permute.xlu1 %2998  ;;  %v3270_v41 = vpack.c.bf16 %v8635_v51, %v8623_v20  ;;  %6346 = vpow2.f32 %v2044_v48  ;;  %v10111_v48 = vsub.f32 %v10109_v10, %v10110_v32  ;;  %v10123_v32 = vld [vmem:[#allocation19_spill] sm:$0xff] }
 0x7d7   : > { %v3535_v54 = vpop.permute.xlu0 %3534  ;;  %v8645_v28 = vpop.eup %6328  ;;  %v3024_v21 = vsub.f32 %v8349_v2, %v2999_v14  ;;  %v10097_v2 = vld [vmem:[#allocation63_spill] sm:$0xff]  ;;  %v2050_v59 = vmul.f32 1.442695, %v10108_v57 }
 0x7d8   : > { %6105 = vmatprep.subr.msk.bf16.mxu1 %vm976_vm1, %v3535_v54  ;;  %v8649_v29 = vpop.eup %6330  ;;  %2305 = vperm.xlu0 %6190, %v8640_v13   ;;  %v3271_v3 = vpack.c.bf16 %v8628_v19, %v8645_v28  ;;  %6348 = vpow2.f32 %v2038_v15  ;;  %v10099_v53 = vsub.f32 %v10097_v2, %v10098_v9  ;;  %v2056_v4 = vmul.f32 1.442695, %v10111_v48  ;;  %v10112_v14 = vld [vmem:[#allocation67_spill] sm:$0xff]  ;;  %v10126_v48 = vld [vmem:[#allocation14_spill] sm:$0xff] }
 0x7d9   : > { %1547 = vperm.xlu1 %6191, %v8247_v31   ;;  %v8658_v18 = vpop.eup %6332  ;;  %v3053_v52 = vmul.f32 1.442695, %v3024_v21  ;;  %6001 = vmatprep.mubr.bf16.mxu1 %v3270_v41  ;;  %6350 = vpow2.f32 %v3051_v50  ;;  %v3579_v31 = vsel %vm976_vm1, %v3535_v54, 0  ;;  %v10113_v41 = vld [vmem:[#allocation69_spill] sm:$0xff] }
 0x7da   : > { %v2048_v46 = vmul.f32 1.442695, %v10099_v53  ;;  %v8663_v58 = vpop.eup %6334  ;;  %6002 = vmatmul.mubr.bf16.gmra.mrb[36].mxu1 %v3271_v3  ;;  %v3009_v40 = vpop.permute.xlu1 %3008  ;;  %v10114_v54 = vsub.f32 %v10112_v14, %v10113_v41  ;;  %v10128_v14 = vld [vmem:[#allocation16_spill] sm:$0xff] }
 0x7db   : > { %v8666_v16 = vpop.eup %6336  ;;  %6352 = vpow2.f32 %v3053_v52  ;;  %v3026_v36 = vsub.f32 %v8345_v1, %v3009_v40  ;;  %v3539_v56 = vpop.permute.xlu0 %3538  ;;  %v10119_v40 = vld [vmem:[#allocation68_spill] sm:$0xff] }
 0x7dc   : > { %v8669_v22 = vpop.eup %6338  ;;  %6354 = vpow2.f32 %v2042_v7  ;;  %2320 = vperm.xlu0 %6190, %v8663_v58   ;;  %v2060_v21 = vmul.f32 1.442695, %v10114_v54  ;;  %v10117_v7 = vsub.f32 %v10115_v43, %v10116_v33  ;;  %v10129_v41 = vld [vmem:[#allocation24_spill] sm:$0xff]  ;;  %v2192_v43 = vld [vmem:[#allocation3 + $0x88] sm:$0xff]  ;;  %v10131_v33 = vld [vmem:[#allocation27_spill] sm:$0xff] }
 0x7dd   : > { %2310 = vperm.xlu1 %6191, %v8658_v18   ;;  %v8676_v11 = vpop.eup %6340  ;;  %6356 = vpow2.f32 %v2048_v46  ;;  %v3057_v37 = vmul.f32 1.442695, %v3026_v36  ;;  %6022 = vmatpush3.bf16.xpose.msra.mxu1 %v3579_v31  ;;  %v10130_v54 = vld [vmem:[#allocation20_spill] sm:$0xff] }
 0x7de   : > { %v8681_v1 = vpop.eup %6342  ;;  %6358 = vpow2.f32 %v3055_v24  ;;  %v3272_v30 = vpack.c.bf16 %v8669_v22, %v8676_v11  ;;  %v3537_v45 = vpop.permute.xlu1 %3536  ;;  %v2054_v3 = vmul.f32 1.442695, %v10117_v7  ;;  %v10118_v24 = vld [vmem:[#allocation66_spill] sm:$0xff] }
 0x7df   : > { %v8685_v42 = vpop.eup %6344  ;;  %6360 = vpow2.f32 %v3057_v37  ;;  %6106 = vmatprep.subr.msk.bf16.mxu1 %vm976_vm1, %v3537_v45  ;;  %v3582_v34 = vsel %vm976_vm1, %v3537_v45, 0  ;;  %v10120_v31 = vsub.f32 %v10118_v24, %v10119_v40  ;;  %v3511_v47 = vpop.permute.xlu0 %3510  ;;  %v10132_v7 = vld [vmem:[#allocation22_spill] sm:$0xff]  ;;  %v2193_v24 = vld [vmem:[#allocation3 + $0x90] sm:$0xff] }
 0x7e0   : > { %6362 = vpow2.f32 %v2052_v12  ;;  %2330 = vperm.xlu0 %6190, %v8681_v1   ;;  %v3273_v62 = vpack.c.bf16 %v8685_v42, %v8666_v16  ;;  %6005 = vmatprep.mubr.bf16.mxu1 %v3272_v30  ;;  %v8698_v63 = vpop.eup %6346  ;;  %v3585_v12 = vsel %vm976_vm1, %v3539_v56, 0 }
 0x7e1   : > { %2315 = vperm.xlu1 %6191, %v8649_v29   ;;  %6364 = vpow2.f32 %v2046_v35  ;;  %v2058_v36 = vmul.f32 1.442695, %v10120_v31  ;;  %v10133_v31 = vld [vmem:[#allocation26_spill] sm:$0xff] }
 0x7e2   : > { %6006 = vmatmul.mubr.bf16.gmra.mrb[40].mxu1 %v3273_v62  ;;  %v8701_v15 = vpop.eup %6348  ;;  %6366 = vpow2.f32 %v2050_v59  ;;  %v3541_v44 = vpop.permute.xlu1 %3540  ;;  %v10121_v59 = vld [vmem:[#allocation21_spill] sm:$0xff] }
 0x7e3   : > { %v8703_v50 = vpop.eup %6350  ;;  %6368 = vpow2.f32 %v2056_v4  ;;  %v3588_v45 = vsel %vm976_vm1, %v3541_v44, 0  ;;  %v3515_v57 = vpop.permute.xlu0 %3514  ;;  %v10122_v62 = vld [vmem:[#allocation13_spill] sm:$0xff] }
 0x7e4   : > { %2340 = vperm.xlu0 %6190, %v8698_v63   ;;  %6370 = vpow2.f32 %v2060_v21 }
 0x7e5   : > { %2325 = vperm.xlu1 %6191, %v8701_v15   ;;  %v8710_v8 = vpop.eup %6352  ;;  %6024 = vmatpush3.bf16.xpose.msra.mxu1 %v3582_v34  ;;  %6372 = vpow2.f32 %v2054_v3  ;;  %v2208_v3 = vmul.f32 %v8658_v18, %v2192_v43 }
 0x7e6   : > { %v8715_v2 = vpop.eup %6354  ;;  %v3274_v9 = vpack.c.bf16 %v8710_v8, %v8703_v50  ;;  %6107 = vmatprep.subr.msk.bf16.mxu1 %vm976_vm1, %v3539_v56  ;;  %6374 = vpow2.f32 %v2058_v36  ;;  %v3513_v17 = vpop.permute.xlu1 %3512  ;;  %v10127_v56 = vld [vmem:[#allocation18_spill] sm:$0xff]  ;;  %v2209_v36 = vmul.f32 %v8649_v29, %v2193_v24 }
 0x7e7   : > { %v8720_v53 = vpop.eup %6356  ;;  %v3519_v10 = vpop.permute.xlu0 %3518 }
 0x7e8   : > { %v8722_v46 = vpop.eup %6358  ;;  %2350 = vperm.xlu0 %6190, %v8720_v53   ;;  %6009 = vmatprep.mubr.bf16.mxu1 %v3274_v9 }
 0x7e9   : > { %2335 = vperm.xlu1 %6191, %v8715_v2   ;;  %v8726_v52 = vpop.eup %6360 }
 0x7ea   : > { %v8731_v23 = vpop.eup %6362  ;;  %v3275_v5 = vpack.c.bf16 %v8726_v52, %v8722_v46 }
 0x7eb   : > { %v8735_v26 = vpop.eup %6364  ;;  %v3523_v34 = vpop.permute.xlu0 %3522 }
 0x7ec   : > { %2360 = vperm.xlu0 %6190, %v8731_v23   ;;  %6010 = vmatmul.mubr.bf16.gmra.mrb[44].mxu1 %v3275_v5  ;;  %v8740_v27 = vpop.eup %6366 }
 0x7ed   : > { %2345 = vperm.xlu1 %6191, %v8735_v26   ;;  %6026 = vmatpush3.bf16.xpose.msra.mxu1 %v3585_v12  ;;  %v8743_v35 = vpop.eup %6368  ;;  %v2195_v12 = vld [vmem:[#allocation3 + $0xa0] sm:$0xff] }
 0x7ee   : > { %6029 = vmatprep.mubr.msk.bf16.mxu1 %vm976_vm1, %v3511_v47  ;;  %6108 = vmatprep.subr.msk.bf16.mxu1 %vm976_vm1, %v3541_v44  ;;  %v8748_v37 = vpop.eup %6370  ;;  %v2211_v44 = vmul.f32 %v8701_v15, %v2195_v12 }
 0x7ef   : > { %v8750_v30 = vpop.eup %6372 }
 0x7f0   : > { %2370 = vperm.xlu0 %6190, %v8743_v35   ;;  %v8755_v6 = vpop.eup %6374 }
 0x7f1   : > { %2355 = vperm.xlu1 %6191, %v8740_v27  }
 0x7f4   : > { %2380 = vperm.xlu0 %6190, %v8748_v37  }
 0x7f5   : > { %2365 = vperm.xlu1 %6191, %v8750_v30   ;;  %6028 = vmatpush3.bf16.xpose.msra.mxu1 %v3588_v45 }
 0x7f8   : > { %2546 = vrot.lane.b32.xlu0 %v8271_v38, %s6744_s19  ;;  %v3517_v38 = vpop.permute.xlu1 %3516 }
 0x7f9   : > { %2375 = vperm.xlu1 %6191, %v8755_v6  }
 0x7fc   : > { %2550 = vrot.lane.b32.xlu0 %v8269_v55, %s6744_s19  ;;  %6030 = vmatmul.mubr.msk.bf16.vlgmr.msra.gmra.mrb[48].mxu1 %vm976_vm1, %v3513_v17  ;;  %v10124_v55 = vld [vmem:[#allocation15_spill] sm:$0xff]  ;;  %v3521_v4 = vpop.permute.xlu1 %3520 }
 0x7fd   : > { %2544 = vrot.lane.b32.xlu1 %v8267_v60, %s6744_s19  ;;  %6033 = vmatprep.mubr.msk.bf16.mxu1 %vm976_vm1, %v3515_v57  ;;  %v10125_v60 = vld [vmem:[#allocation17_spill] sm:$0xff]  ;;  %v2197_v17 = vld [vmem:[#allocation3 + $0xb0] sm:$0xff] }
 0x7fe   : > { %v2191_v57 = vld [vmem:[#allocation3 + $0x80] sm:$0xff] }
 0x800   : > { %2554 = vrot.lane.b32.xlu0 %v10121_v59, %s6744_s19  ;;  %v3525_v21 = vpop.permute.xlu1 %3524  ;;  %v2213_v59 = vmul.f32 %v8715_v2, %v2197_v17 }
 0x801   : > { %2548 = vrot.lane.b32.xlu1 %v10122_v62, %s6744_s19 }
 0x804   : > { %2558 = vrot.lane.b32.xlu0 %v10123_v32, %s6744_s19  ;;  %6034 = vmatmul.mubr.msk.bf16.gmra.mrb[52].mxu1 %vm976_vm1, %v3517_v38  ;;  %v2207_v38 = vmul.f32 %v8640_v13, %v2191_v57 }
 0x805   : > { %2552 = vrot.lane.b32.xlu1 %v10124_v55, %s6744_s19  ;;  %6037 = vmatprep.mubr.msk.bf16.mxu1 %vm976_vm1, %v3519_v10  ;;  %v2199_v10 = vld [vmem:[#allocation3 + $0xc0] sm:$0xff]  ;;  %v2194_v55 = vld [vmem:[#allocation3 + $0x98] sm:$0xff] }
 0x806   : > { %v2215_v15 = vmul.f32 %v8735_v26, %v2199_v10  ;;  %v2203_v26 = vld [vmem:[#allocation3 + $0xe0] sm:$0xff]  ;;  %v2206_v10 = vld [vmem:[#allocation3 + $0xf8] sm:$0xff] }
 0x808   : > { %2562 = vrot.lane.b32.xlu0 %v10125_v60, %s6744_s19 }
 0x809   : > { %2556 = vrot.lane.b32.xlu1 %v10126_v48, %s6744_s19 }
 0x80c   : > { %2566 = vrot.lane.b32.xlu0 %v10127_v56, %s6744_s19  ;;  %6038 = vmatmul.mubr.msk.bf16.gmra.mrb[56].mxu1 %vm976_vm1, %v3521_v4  ;;  %v2210_v4 = vmul.f32 %v8663_v58, %v2194_v55  ;;  %v2219_v58 = vmul.f32 %v8750_v30, %v2203_v26 }
 0x80d   : > { %2560 = vrot.lane.b32.xlu1 %v10128_v14, %s6744_s19  ;;  %6041 = vmatprep.mubr.msk.bf16.mxu1 %vm976_vm1, %v3523_v34  ;;  %v2201_v34 = vld [vmem:[#allocation3 + $0xd0] sm:$0xff]  ;;  %v2196_v14 = vld [vmem:[#allocation3 + $0xa8] sm:$0xff] }
 0x80e   : > { %v2217_v13 = vmul.f32 %v8740_v27, %v2201_v34  ;;  %v2205_v27 = vld [vmem:[#allocation3 + $0xf0] sm:$0xff]  ;;  %v1463_v34 = vld [vmem:[#allocation4 + $0x20] sm:$0xff] }
 0x810   : > { %2570 = vrot.lane.b32.xlu0 %v10129_v41, %s6744_s19 }
 0x811   : > { %2564 = vrot.lane.b32.xlu1 %v10130_v54, %s6744_s19 }
 0x814   : > { %2574 = vrot.lane.b32.xlu0 %v10132_v7, %s6744_s19  ;;  %6042 = vmatmul.mubr.msk.bf16.gmra.mrb[60].mxu1 %vm976_vm1, %v3525_v21  ;;  %v2212_v21 = vmul.f32 %v8681_v1, %v2196_v14  ;;  %v2198_v7 = vld [vmem:[#allocation3 + $0xb8] sm:$0xff]  ;;  %v2221_v1 = vmul.f32 %v8755_v6, %v2205_v27  ;;  %v1468_v14 = vld [vmem:[#allocation4 + $0x48] sm:$0xff] }
 0x815   : > { %2568 = vrot.lane.b32.xlu1 %v10131_v33, %s6744_s19  ;;  %v2214_v24 = vmul.f32 %v8698_v63, %v2198_v7  ;;  %v10138_v7 = vld [vmem:[#allocation39_spill] sm:$0xff] }
 0x817   : > { %v2226_v9 = vpop.xlane.xlu0 %2225 }
 0x818   : > { %v2256_v40 = vadd.f32 %v2226_v9, %v2208_v3 }
 0x819   : > { %2572 = vrot.lane.b32.xlu1 %v10133_v31, %s6744_s19 }
 0x81a   : > { %2272 = vst.msk [vmem:[#allocation3 + $0x88] sm:$0xff] %vm691_vm0, %v2256_v40 }
 0x81b   : > { %v2228_v5 = vpop.xlane.xlu0 %2227 }
 0x81c   : > { %v2257_v47 = vadd.f32 %v2228_v5, %v2209_v36  ;;  %v2200_v36 = vld [vmem:[#allocation3 + $0xc8] sm:$0xff] }
 0x81d   : > { %v2216_v30 = vmul.f32 %v8720_v53, %v2200_v36  ;;  %v10140_v36 = vld [vmem:[#allocation38_spill] sm:$0xff] }
 0x81e   : > { %2273 = vst.msk [vmem:[#allocation3 + $0x90] sm:$0xff] %vm691_vm0, %v2257_v47 }
 0x81f   : > { %v2232_v45 = vpop.xlane.xlu0 %2231 }
 0x820   : > { %v2259_v18 = vadd.f32 %v2232_v45, %v2211_v44  ;;  %v2202_v45 = vld [vmem:[#allocation3 + $0xd8] sm:$0xff] }
 0x821   : > { %v2218_v17 = vmul.f32 %v8731_v23, %v2202_v45  ;;  %v1474_v45 = vld [vmem:[#allocation4 + $0x78] sm:$0xff] }
 0x822   : > { %2275 = vst.msk [vmem:[#allocation3 + $0xa0] sm:$0xff] %vm691_vm0, %v2259_v18  ;;  %v2204_v18 = vld [vmem:[#allocation3 + $0xe8] sm:$0xff] }
 0x823   : > { %v2236_v62 = vpop.xlane.xlu0 %2235  ;;  %v2220_v53 = vmul.f32 %v8743_v35, %v2204_v18  ;;  %v10143_v18 = vld [vmem:[#allocation36_spill] sm:$0xff] }
 0x824   : > { %v2261_v29 = vadd.f32 %v2236_v62, %v2213_v59  ;;  %v2224_v32 = vpop.xlane.xlu1 %2223  ;;  %v1462_v59 = vld [vmem:[#allocation4 + $0x18] sm:$0xff] }
 0x825   : > { %v2255_v60 = vadd.f32 %v2224_v32, %v2207_v38  ;;  %v10134_v32 = vld [vmem:[#allocation30_spill] sm:$0xff] }
 0x826   : > { %2277 = vst.msk [vmem:[#allocation3 + $0xb0] sm:$0xff] %vm691_vm0, %v2261_v29 }
 0x827   : > { %2271 = vst.msk [vmem:[#allocation3 + $0x80] sm:$0xff] %vm691_vm0, %v2255_v60  ;;  %v2240_v48 = vpop.xlane.xlu0 %2239  ;;  %v2222_v60 = vmul.f32 %v8748_v37, %v2206_v10  ;;  %v10145_v10 = vld [vmem:[#allocation41_spill] sm:$0xff] }
 0x828   : > { %v2263_v56 = vadd.f32 %v2240_v48, %v2215_v15  ;;  %v2230_v2 = vpop.xlane.xlu1 %2229  ;;  %v10135_v48 = vld [vmem:[#allocation35_spill] sm:$0xff] }
 0x829   : > { %v2258_v41 = vadd.f32 %v2230_v2, %v2210_v4 }
 0x82a   : > { %2279 = vst.msk [vmem:[#allocation3 + $0xc0] sm:$0xff] %vm691_vm0, %v2263_v56 }
 0x82b   : > { %2274 = vst.msk [vmem:[#allocation3 + $0x98] sm:$0xff] %vm691_vm0, %v2258_v41  ;;  %v2244_v54 = vpop.xlane.xlu0 %2243  ;;  %v10136_v41 = vld [vmem:[#allocation34_spill] sm:$0xff] }
 0x82c   : > { %v2265_v43 = vadd.f32 %v2244_v54, %v2217_v13  ;;  %v2234_v33 = vpop.xlane.xlu1 %2233  ;;  %v1465_v13 = vld [vmem:[#allocation4 + $0x30] sm:$0xff]  ;;  %v10137_v54 = vld [vmem:[#allocation33_spill] sm:$0xff] }
 0x82d   : > { %v2260_v3 = vadd.f32 %v2234_v33, %v2212_v21 }
 0x82e   : > { %2281 = vst.msk [vmem:[#allocation3 + $0xd0] sm:$0xff] %vm691_vm0, %v2265_v43 }
 0x82f   : > { %2276 = vst.msk [vmem:[#allocation3 + $0xa8] sm:$0xff] %vm691_vm0, %v2260_v3  ;;  %v2248_v9 = vpop.xlane.xlu0 %2247 }
 0x830   : > { %v2267_v40 = vadd.f32 %v2248_v9, %v2219_v58  ;;  %v2238_v31 = vpop.xlane.xlu1 %2237  ;;  %v1467_v58 = vld [vmem:[#allocation4 + $0x40] sm:$0xff]  ;;  %v10139_v9 = vld [vmem:[#allocation32_spill] sm:$0xff] }
 0x831   : > { %v2262_v5 = vadd.f32 %v2238_v31, %v2214_v24  ;;  %v1472_v31 = vld [vmem:[#allocation4 + $0x68] sm:$0xff] }
 0x832   : > { %2283 = vst.msk [vmem:[#allocation3 + $0xe0] sm:$0xff] %vm691_vm0, %v2267_v40 }
 0x833   : > { %2278 = vst.msk [vmem:[#allocation3 + $0xb8] sm:$0xff] %vm691_vm0, %v2262_v5  ;;  %3096 = vadd.xlane.f32.xlu0 %v8566_v49  ;;  %v2252_v12 = vpop.xlane.xlu0 %2251 }
 0x834   : > { %v2269_v47 = vadd.f32 %v2252_v12, %v2221_v1  ;;  %v2242_v44 = vpop.xlane.xlu1 %2241  ;;  %v1469_v1 = vld [vmem:[#allocation4 + $0x50] sm:$0xff]  ;;  %v10141_v12 = vld [vmem:[#allocation37_spill] sm:$0xff] }
 0x835   : > { %v2264_v63 = vadd.f32 %v2242_v44, %v2216_v30 }
 0x836   : > { %2285 = vst.msk [vmem:[#allocation3 + $0xf0] sm:$0xff] %vm691_vm0, %v2269_v47 }
 0x837   : > { %2280 = vst.msk [vmem:[#allocation3 + $0xc8] sm:$0xff] %vm691_vm0, %v2264_v63  ;;  %3094 = vadd.xlane.f32.xlu0 %v8561_v39  ;;  %v1464_v39 = vld [vmem:[#allocation4 + $0x28] sm:$0xff]  ;;  %v10142_v63 = vld [vmem:[#allocation43_spill] sm:$0xff] }
 0x838   : > { %v2246_v6 = vpop.xlane.xlu1 %2245 }
 0x839   : > { %v2266_v57 = vadd.f32 %v2246_v6, %v2218_v17  ;;  %v1471_v6 = vld [vmem:[#allocation4 + $0x60] sm:$0xff] }
 0x83b   : > { %2282 = vst.msk [vmem:[#allocation3 + $0xd8] sm:$0xff] %vm691_vm0, %v2266_v57  ;;  %3104 = vadd.xlane.f32.xlu0 %v8645_v28  ;;  %v1493_v49 = vpop.permute.xlu0 %1492 }
 0x83c   : > { %v1558_v62 = vmul.f32 %v1493_v49, %v1462_v59  ;;  %v2250_v38 = vpop.xlane.xlu1 %2249 }
 0x83d   : > { %3092 = vadd.xlane.f32.xlu1 %v8559_v0  ;;  %v2268_v29 = vadd.f32 %v2250_v38, %v2220_v53  ;;  %v1466_v0 = vld [vmem:[#allocation4 + $0x38] sm:$0xff]  ;;  %v1473_v38 = vld [vmem:[#allocation4 + $0x70] sm:$0xff] }
 0x83e   : > { %v1727_v23 = vadd.f32 %v10134_v32, %v1558_v62 }
 0x83f   : > { %2284 = vst.msk [vmem:[#allocation3 + $0xe8] sm:$0xff] %vm691_vm0, %v2268_v29  ;;  %3100 = vadd.xlane.f32.xlu0 %v8623_v20  ;;  %v1503_v55 = vpop.permute.xlu0 %1502 }
 0x840   : > { %1743 = vst.msk [vmem:[#allocation4 + $0x18] sm:$0xff] %vm976_vm1, %v1727_v23  ;;  %v1560_v28 = vmul.f32 %v1503_v55, %v1464_v39  ;;  %v2254_v35 = vpop.xlane.xlu1 %2253  ;;  %v10146_v55 = vld [vmem:[#allocation40_spill] sm:$0xff] }
 0x841   : > { %3098 = vadd.xlane.f32.xlu1 %v8569_v61  ;;  %v2270_v15 = vadd.f32 %v2254_v35, %v2222_v60 }
 0x842   : > { %v1729_v4 = vadd.f32 %v10135_v48, %v1560_v28 }
 0x843   : > { %2286 = vst.msk [vmem:[#allocation3 + $0xf8] sm:$0xff] %vm691_vm0, %v2270_v15  ;;  %3112 = vadd.xlane.f32.xlu0 %v8666_v16  ;;  %v1513_v56 = vpop.permute.xlu0 %1512 }
 0x844   : > { %1745 = vst.msk [vmem:[#allocation4 + $0x28] sm:$0xff] %vm976_vm1, %v1729_v4  ;;  %v1562_v20 = vmul.f32 %v1513_v56, %v1466_v0  ;;  %v1498_v37 = vpop.permute.xlu1 %1497 }
 0x845   : > { %3106 = vadd.xlane.f32.xlu1 %v8628_v19  ;;  %v1559_v2 = vmul.f32 %v1498_v37, %v1463_v34  ;;  %v1470_v19 = vld [vmem:[#allocation4 + $0x58] sm:$0xff] }
 0x846   : > { %v1731_v61 = vadd.f32 %v10136_v41, %v1562_v20 }
 0x847   : > { %v1728_v21 = vadd.f32 %v10137_v54, %v1559_v2  ;;  %3108 = vadd.xlane.f32.xlu0 %v8676_v11  ;;  %v1523_v26 = vpop.permute.xlu0 %1522 }
 0x848   : > { %1747 = vst.msk [vmem:[#allocation4 + $0x38] sm:$0xff] %vm976_vm1, %v1731_v61  ;;  %v1564_v16 = vmul.f32 %v1523_v26, %v1468_v14  ;;  %v1508_v43 = vpop.permute.xlu1 %1507 }
 0x849   : > { %3102 = vadd.xlane.f32.xlu1 %v8635_v51  ;;  %1744 = vst.msk [vmem:[#allocation4 + $0x20] sm:$0xff] %vm976_vm1, %v1728_v21  ;;  %v1561_v33 = vmul.f32 %v1508_v43, %v1465_v13  ;;  %v2288_v21 = vld [vmem:[#allocation4 + $0x8] sm:$0xff] }
 0x84a   : > { %v1733_v3 = vadd.f32 %v10138_v7, %v1564_v16  ;;  %v2287_v7 = vld [vmem:[#allocation4] sm:$0xff] }
 0x84b   : > { %v1730_v24 = vadd.f32 %v10139_v9, %v1561_v33  ;;  %3120 = vadd.xlane.f32.xlu0 %v8722_v46  ;;  %v1533_v27 = vpop.permute.xlu0 %1532 }
 0x84c   : > { %1749 = vst.msk [vmem:[#allocation4 + $0x48] sm:$0xff] %vm976_vm1, %v1733_v3  ;;  %v1566_v11 = vmul.f32 %v1533_v27, %v1470_v19  ;;  %v1518_v40 = vpop.permute.xlu1 %1517  ;;  %v2290_v19 = vld [vmem:[#allocation4 + $0x18] sm:$0xff] }
 0x84d   : > { %3114 = vadd.xlane.f32.xlu1 %v8685_v42  ;;  %1746 = vst.msk [vmem:[#allocation4 + $0x30] sm:$0xff] %vm976_vm1, %v1730_v24  ;;  %v1563_v51 = vmul.f32 %v1518_v40, %v1467_v58 }
 0x84e   : > { %v1735_v5 = vadd.f32 %v10140_v36, %v1566_v11  ;;  %v2292_v11 = vld [vmem:[#allocation4 + $0x28] sm:$0xff] }
 0x84f   : > { %v1732_v30 = vadd.f32 %v10141_v12, %v1563_v51  ;;  %3116 = vadd.xlane.f32.xlu0 %v8703_v50  ;;  %v1543_v47 = vpop.permute.xlu0 %1542 }
 0x850   : > { %1751 = vst.msk [vmem:[#allocation4 + $0x58] sm:$0xff] %vm976_vm1, %v1735_v5  ;;  %v1568_v46 = vmul.f32 %v1543_v47, %v1472_v31  ;;  %v1528_v44 = vpop.permute.xlu1 %1527  ;;  %v2289_v31 = vld [vmem:[#allocation4 + $0x10] sm:$0xff] }
 0x851   : > { %3110 = vadd.xlane.f32.xlu1 %v8669_v22  ;;  %1748 = vst.msk [vmem:[#allocation4 + $0x40] sm:$0xff] %vm976_vm1, %v1732_v30  ;;  %v1565_v42 = vmul.f32 %v1528_v44, %v1469_v1  ;;  %v10144_v22 = vld [vmem:[#allocation42_spill] sm:$0xff]  ;;  %v2294_v30 = vld [vmem:[#allocation4 + $0x38] sm:$0xff]  ;;  %v2291_v44 = vld [vmem:[#allocation4 + $0x20] sm:$0xff] }
 0x852   : > { %v1737_v17 = vadd.f32 %v10142_v63, %v1568_v46 }
 0x853   : > { %v1734_v57 = vadd.f32 %v10143_v18, %v1565_v42  ;;  %v1553_v59 = vpop.permute.xlu0 %1552 }
 0x854   : > { %1753 = vst.msk [vmem:[#allocation4 + $0x68] sm:$0xff] %vm976_vm1, %v1737_v17  ;;  %v1570_v50 = vmul.f32 %v1553_v59, %v1474_v45  ;;  %v1538_v49 = vpop.permute.xlu1 %1537  ;;  %v2293_v59 = vld [vmem:[#allocation4 + $0x30] sm:$0xff] }
 0x855   : > { %3122 = vadd.xlane.f32.xlu1 %v8726_v52  ;;  %1750 = vst.msk [vmem:[#allocation4 + $0x50] sm:$0xff] %vm976_vm1, %v1734_v57  ;;  %v1567_v53 = vmul.f32 %v1538_v49, %v1471_v6  ;;  %v2296_v6 = vld [vmem:[#allocation4 + $0x48] sm:$0xff] }
 0x856   : > { %v1739_v62 = vadd.f32 %v10144_v22, %v1570_v50 }
 0x857   : > { %v1736_v29 = vadd.f32 %v10145_v10, %v1567_v53  ;;  %v2306_v39 = vpop.permute.xlu0 %2305 }
 0x858   : > { %1755 = vst.msk [vmem:[#allocation4 + $0x78] sm:$0xff] %vm976_vm1, %v1739_v62  ;;  %v1548_v32 = vpop.permute.xlu1 %1547  ;;  %v2383_v58 = vmul.f32 %v2306_v39, %v2287_v7  ;;  %v2298_v62 = vld [vmem:[#allocation4 + $0x58] sm:$0xff] }
 0x859   : > { %3118 = vadd.xlane.f32.xlu1 %v8710_v8  ;;  %1752 = vst.msk [vmem:[#allocation4 + $0x60] sm:$0xff] %vm976_vm1, %v1736_v29  ;;  %v1569_v23 = vmul.f32 %v1548_v32, %v1473_v38  ;;  %v2295_v29 = vld [vmem:[#allocation4 + $0x40] sm:$0xff] }
 0x85b   : > { %v1738_v60 = vadd.f32 %v10146_v55, %v1569_v23  ;;  %v2321_v52 = vpop.permute.xlu0 %2320 }
 0x85c   : > { %v2311_v28 = vpop.permute.xlu1 %2310  ;;  %v2386_v3 = vmul.f32 %v2321_v52, %v2290_v19 }
 0x85d   : > { %1754 = vst.msk [vmem:[#allocation4 + $0x70] sm:$0xff] %vm976_vm1, %v1738_v60  ;;  %v2384_v26 = vmul.f32 %v2311_v28, %v2288_v21  ;;  %v2300_v60 = vld [vmem:[#allocation4 + $0x68] sm:$0xff] }
 0x85f   : > { %v2331_v35 = vpop.permute.xlu0 %2330 }
 0x860   : > { %v2316_v15 = vpop.permute.xlu1 %2315  ;;  %v2388_v51 = vmul.f32 %v2331_v35, %v2292_v11  ;;  %v2297_v35 = vld [vmem:[#allocation4 + $0x50] sm:$0xff]  ;;  %v2299_v21 = vld [vmem:[#allocation4 + $0x60] sm:$0xff] }
 0x861   : > { %v2385_v36 = vmul.f32 %v2316_v15, %v2289_v31  ;;  %v10151_v31 = vld [vmem:[#allocation76_spill] sm:$0xff] }
 0x863   : > { %v2341_v0 = vpop.permute.xlu0 %2340 }
 0x864   : > { %v2326_v48 = vpop.permute.xlu1 %2325  ;;  %v2390_v46 = vmul.f32 %v2341_v0, %v2294_v30  ;;  %v2301_v19 = vld [vmem:[#allocation4 + $0x70] sm:$0xff] }
 0x865   : > { %v2387_v42 = vmul.f32 %v2326_v48, %v2291_v44  ;;  %v10154_v30 = vld [vmem:[#allocation79_spill] sm:$0xff] }
 0x867   : > { %v2351_v4 = vpop.permute.xlu0 %2350 }
 0x868   : > { %v2336_v34 = vpop.permute.xlu1 %2335  ;;  %v2392_v57 = vmul.f32 %v2351_v4, %v2296_v6 }
 0x869   : > { %v2389_v50 = vmul.f32 %v2336_v34, %v2293_v59  ;;  %v2302_v34 = vld [vmem:[#allocation4 + $0x78] sm:$0xff]  ;;  %v10160_v59 = vld [vmem:[#allocation83_spill] sm:$0xff] }
 0x86b   : > { %v2361_v56 = vpop.permute.xlu0 %2360 }
 0x86c   : > { %v2346_v20 = vpop.permute.xlu1 %2345  ;;  %v2394_v10 = vmul.f32 %v2361_v56, %v2298_v62 }
 0x86d   : > { %v2391_v39 = vmul.f32 %v2346_v20, %v2295_v29  ;;  %v3062_v29 = vld [vmem:[#allocation3 + $0x110] sm:$0xff] }
 0x86e   : > { %v8871_v37 = vpop.f32.mrb[32].mxu1 }
 0x86f   : > { %v8873_v8 = vpop.f32.mrb[33].mxu1  ;;  %v2371_v2 = vpop.permute.xlu0 %2370 }
 0x870   : > { %v8875_v14 = vpop.permute.xlu1 %2355  ;;  %v8877_v41 = vpop.f32.mrb[34].mxu1  ;;  %v2396_v28 = vmul.f32 %v2371_v2, %v2300_v60  ;;  %v10168_v60 = vld [vmem:[#allocation86_spill] sm:$0xff] }
 0x871   : > { %v8879_v61 = vpop.f32.mrb[35].mxu1  ;;  %v2393_v15 = vmul.f32 %v8875_v14, %v2297_v35 }
 0x873   : > { %v8881_v13 = vpop.permute.xlu0 %2380 }
 0x874   : > { %v8883_v54 = vpop.permute.xlu1 %2365  ;;  %v2398_v20 = vmul.f32 %v8881_v13, %v2302_v34 }
 0x877   : > { %v2547_v16 = vpop.permute.xlu0 %2546 }
 0x878   : > { %v2593_v43 = vadd.f32 %v2547_v16, %v2384_v26  ;;  %v8885_v33 = vpop.permute.xlu1 %2375  ;;  %v2395_v26 = vmul.f32 %v8883_v54, %v2299_v21  ;;  %v10147_v54 = vld [vmem:[#allocation23_spill] sm:$0xff] }
 0x879   : > { %v2397_v7 = vmul.f32 %v8885_v33, %v2301_v19  ;;  %v10150_v33 = vld [vmem:[#allocation74_spill] sm:$0xff] }
 0x87a   : > { %2610 = vst.msk [vmem:[#allocation4 + $0x8] sm:$0xff] %vm2608_vm2, %v2593_v43 }
 0x87b   : > { %v2551_v9 = vpop.permute.xlu0 %2550 }
 0x87c   : > { %v2595_v24 = vadd.f32 %v2551_v9, %v2386_v3  ;;  %v2545_v27 = vpop.permute.xlu1 %2544  ;;  %v10148_v9 = vld [vmem:[#allocation31_spill] sm:$0xff] }
 0x87d   : > { %v2592_v40 = vadd.f32 %v2545_v27, %v2383_v58 }
 0x87e   : > { %2612 = vst.msk [vmem:[#allocation4 + $0x18] sm:$0xff] %vm2608_vm2, %v2595_v24  ;;  %v10149_v24 = vsub.f32 %v10147_v54, %v10148_v9  ;;  %v3066_v9 = vld [vmem:[#allocation3 + $0x130] sm:$0xff] }
 0x87f   : > { %2609 = vst.msk [vmem:[#allocation4] sm:$0xff] %vm2608_vm2, %v2592_v40  ;;  %v2555_v5 = vpop.permute.xlu0 %2554 }
 0x880   : > { %v2597_v1 = vadd.f32 %v2555_v5, %v2388_v51  ;;  %v2549_v12 = vpop.permute.xlu1 %2548  ;;  %v2903_v27 = vmul.f32 1.442695, %v10149_v24 }
 0x881   : > { %v2594_v47 = vadd.f32 %v2549_v12, %v2385_v36  ;;  %v10152_v36 = vsub.f32 %v10150_v33, %v10151_v31  ;;  %v10153_v12 = vld [vmem:[#allocation77_spill] sm:$0xff] }
 0x882   : > { %2614 = vst.msk [vmem:[#allocation4 + $0x28] sm:$0xff] %vm2608_vm2, %v2597_v1  ;;  %6376 = vpow2.f32 %v2903_v27  ;;  %v3060_v33 = vld [vmem:[#allocation3 + $0x100] sm:$0xff] }
 0x883   : > { %2611 = vst.msk [vmem:[#allocation4 + $0x10] sm:$0xff] %vm2608_vm2, %v2594_v47  ;;  %v2559_v45 = vpop.permute.xlu0 %2558  ;;  %v2901_v5 = vmul.f32 1.442695, %v10152_v36  ;;  %v10155_v47 = vsub.f32 %v10153_v12, %v10154_v30  ;;  %v10178_v31 = vld [vmem:[#allocation89_spill] sm:$0xff]  ;;  %v10179_v36 = vld [vmem:[#allocation92_spill] sm:$0xff]  ;;  %v10181_v30 = vld [vmem:[#allocation87_spill] sm:$0xff] }
 0x884   : > { %v2599_v63 = vadd.f32 %v2559_v45, %v2390_v46  ;;  %v2553_v17 = vpop.permute.xlu1 %2552  ;;  %v10157_v45 = vld [vmem:[#allocation75_spill] sm:$0xff] }
 0x885   : > { %v2596_v18 = vadd.f32 %v2553_v17, %v2387_v42  ;;  %6378 = vpow2.f32 %v2901_v5  ;;  %v2911_v46 = vmul.f32 1.442695, %v10155_v47  ;;  %v10156_v42 = vld [vmem:[#allocation29_spill] sm:$0xff]  ;;  %v10180_v5 = vsub.f32 %v10178_v31, %v10179_v36  ;;  %v10182_v47 = vld [vmem:[#allocation90_spill] sm:$0xff] }
 0x886   : > { %2616 = vst.msk [vmem:[#allocation4 + $0x38] sm:$0xff] %vm2608_vm2, %v2599_v63  ;;  %v10158_v63 = vsub.f32 %v10156_v42, %v10157_v45  ;;  %v3068_v36 = vld [vmem:[#allocation3 + $0x140] sm:$0xff] }
 0x887   : > { %2613 = vst.msk [vmem:[#allocation4 + $0x20] sm:$0xff] %vm2608_vm2, %v2596_v18  ;;  %v2563_v49 = vpop.permute.xlu0 %2562  ;;  %6380 = vpow2.f32 %v2911_v46  ;;  %v2927_v12 = vmul.f32 1.442695, %v10180_v5  ;;  %v10183_v46 = vsub.f32 %v10181_v30, %v10182_v47 }
 0x888   : > { %v2601_v53 = vadd.f32 %v2563_v49, %v2392_v57  ;;  %v2557_v22 = vpop.permute.xlu1 %2556  ;;  %v2899_v17 = vmul.f32 1.442695, %v10158_v63  ;;  %v10159_v57 = vld [vmem:[#allocation80_spill] sm:$0xff] }
 0x889   : > { %v2598_v38 = vadd.f32 %v2557_v22, %v2389_v50  ;;  %v10161_v50 = vsub.f32 %v10159_v57, %v10160_v59  ;;  %v10163_v22 = vld [vmem:[#allocation28_spill] sm:$0xff]  ;;  %v2921_v42 = vmul.f32 1.442695, %v10183_v46  ;;  %v3064_v59 = vld [vmem:[#allocation3 + $0x120] sm:$0xff] }
 0x88a   : > { %2618 = vst.msk [vmem:[#allocation4 + $0x48] sm:$0xff] %vm2608_vm2, %v2601_v53  ;;  %v10162_v53 = vld [vmem:[#allocation25_spill] sm:$0xff]  ;;  %6382 = vpow2.f32 %v2899_v17 }
 0x88b   : > { %2615 = vst.msk [vmem:[#allocation4 + $0x30] sm:$0xff] %vm2608_vm2, %v2598_v38  ;;  %v2567_v32 = vpop.permute.xlu0 %2566  ;;  %v2907_v49 = vmul.f32 1.442695, %v10161_v50  ;;  %v10164_v62 = vsub.f32 %v10162_v53, %v10163_v22  ;;  %v3063_v22 = vld [vmem:[#allocation3 + $0x118] sm:$0xff] }
 0x88c   : > { %v2603_v23 = vadd.f32 %v2567_v32, %v2394_v10  ;;  %v2561_v55 = vpop.permute.xlu1 %2560  ;;  %v8941_v10 = vpop.eup %6376 }
 0x88d   : > { %v2600_v52 = vadd.f32 %v2561_v55, %v2391_v39  ;;  %v2905_v38 = vmul.f32 1.442695, %v10164_v62  ;;  %6384 = vpow2.f32 %v2907_v49  ;;  %v10165_v39 = vld [vmem:[#allocation82_spill] sm:$0xff]  ;;  %v10167_v55 = vld [vmem:[#allocation84_spill] sm:$0xff]  ;;  %v3078_v35 = vmul.f32 %v8941_v10, %v3062_v29  ;;  %v10184_v62 = vld [vmem:[#allocation93_spill] sm:$0xff] }
 0x88e   : > { %2620 = vst.msk [vmem:[#allocation4 + $0x58] sm:$0xff] %vm2608_vm2, %v2603_v23  ;;  %v10166_v32 = vsub.f32 %v10165_v39, %v8440_v25  ;;  %v10173_v25 = vld [vmem:[#allocation88_spill] sm:$0xff] }
 0x88f   : > { %2617 = vst.msk [vmem:[#allocation4 + $0x40] sm:$0xff] %vm2608_vm2, %v2600_v52  ;;  %v2571_v0 = vpop.permute.xlu0 %2570  ;;  %6386 = vpow2.f32 %v2905_v38  ;;  %v10169_v52 = vsub.f32 %v10167_v55, %v10168_v60  ;;  %v10185_v38 = vld [vmem:[#allocation96_spill] sm:$0xff]  ;;  %v10188_v55 = vld [vmem:[#allocation94_spill] sm:$0xff] }
 0x890   : > { %v2605_v48 = vadd.f32 %v2571_v0, %v2396_v28  ;;  %v2565_v4 = vpop.permute.xlu1 %2564  ;;  %v2919_v23 = vmul.f32 1.442695, %v10166_v32  ;;  %v10186_v29 = vsub.f32 %v10184_v62, %v10185_v38 }
 0x891   : > { %v2602_v56 = vadd.f32 %v2565_v4, %v2393_v15  ;;  %v2913_v28 = vmul.f32 1.442695, %v10169_v52  ;;  %v8950_v15 = vpop.eup %6378  ;;  %v3061_v4 = vld [vmem:[#allocation3 + $0x108] sm:$0xff] }
 0x892   : > { %2622 = vst.msk [vmem:[#allocation4 + $0x68] sm:$0xff] %vm2608_vm2, %v2605_v48  ;;  %6388 = vpow2.f32 %v2919_v23  ;;  %v2923_v39 = vmul.f32 1.442695, %v10186_v29  ;;  %v10187_v23 = vld [vmem:[#allocation91_spill] sm:$0xff] }
 0x893   : > { %2619 = vst.msk [vmem:[#allocation4 + $0x50] sm:$0xff] %vm2608_vm2, %v2602_v56  ;;  %v2575_v2 = vpop.permute.xlu0 %2574  ;;  %6390 = vpow2.f32 %v2913_v28  ;;  %v10189_v60 = vsub.f32 %v10187_v23, %v10188_v55  ;;  %v3074_v55 = vld [vmem:[#allocation3 + $0x170] sm:$0xff] }
 0x894   : > { %v2607_v16 = vadd.f32 %v2575_v2, %v2398_v20  ;;  %v2569_v43 = vpop.permute.xlu1 %2568  ;;  %v10172_v20 = vld [vmem:[#allocation85_spill] sm:$0xff] }
 0x895   : > { %v2604_v14 = vadd.f32 %v2569_v43, %v2395_v26  ;;  %v10174_v21 = vsub.f32 %v10172_v20, %v10173_v25  ;;  %v10176_v43 = vld [vmem:[#allocation81_spill] sm:$0xff]  ;;  %v2917_v52 = vmul.f32 1.442695, %v10189_v60 }
 0x896   : > { %2624 = vst.msk [vmem:[#allocation4 + $0x78] sm:$0xff] %vm2608_vm2, %v2607_v16  ;;  %v10175_v16 = vld [vmem:[#allocation78_spill] sm:$0xff] }
 0x897   : > { %2621 = vst.msk [vmem:[#allocation4 + $0x60] sm:$0xff] %vm2608_vm2, %v2604_v14  ;;  %v2915_v26 = vmul.f32 1.442695, %v10174_v21  ;;  %v10177_v14 = vsub.f32 %v10175_v16, %v10176_v43  ;;  %v10190_v43 = vld [vmem:[#allocation95_spill] sm:$0xff] }
 0x898   : > { %v2573_v3 = vpop.permute.xlu1 %2572 }
 0x899   : > { %v2606_v13 = vadd.f32 %v2573_v3, %v2397_v7  ;;  %v2909_v19 = vmul.f32 1.442695, %v10177_v14  ;;  %v3077_v3 = vmul.f32 %v8950_v15, %v3061_v4  ;;  %6392 = vpow2.f32 %v2915_v26  ;;  %v3067_v26 = vld [vmem:[#allocation3 + $0x138] sm:$0xff]  ;;  %v10191_v14 = vld [vmem:[#allocation97_spill] sm:$0xff] }
 0x89b   : > { %2623 = vst.msk [vmem:[#allocation4 + $0x70] sm:$0xff] %vm2608_vm2, %v2606_v13  ;;  %v8968_v13 = vpop.eup %6380  ;;  %6394 = vpow2.f32 %v2909_v19  ;;  %v10192_v19 = vsub.f32 %v10190_v43, %v10191_v14 }
 0x89c   : > { %v8970_v24 = vpop.eup %6382  ;;  %v3082_v45 = vmul.f32 %v8968_v13, %v3066_v9  ;;  %6396 = vpow2.f32 %v2927_v12  ;;  %v9011_v12 = vld [vmem:[%s7241_s18] ss:$0 sm:$0xff] }
 0x89d   : > { %v8980_v63 = vpop.eup %6384  ;;  %v3076_v57 = vmul.f32 %v8970_v24, %v3060_v33  ;;  %6398 = vpow2.f32 %v2921_v42 }
 0x89e   : > { %v8983_v50 = vpop.eup %6386  ;;  %v3080_v28 = vmul.f32 %v8980_v63, %v3064_v59  ;;  %6400 = vpow2.f32 %v2923_v39  ;;  %v10193_v59 = vld [vmem:[#allocation98_spill] sm:$0xff] }
 0x89f   : > { %v3079_v4 = vmul.f32 %v8983_v50, %v3063_v22  ;;  %6402 = vpow2.f32 %v2917_v52 }
 0x8ad   : > { %v8907_v58 = vpop.f32.mrb[36].mxu1 }
 0x8ae   : > { %v8912_v11 = vpop.f32.mrb[37].mxu1 }
 0x8af   : > { %v8914_v40 = vpop.f32.mrb[38].mxu1 }
 0x8b0   : > { %v8916_v51 = vpop.f32.mrb[39].mxu1 }
 0x8b5   : > { %v8921_v1 = vpop.f32.mrb[40].mxu1 }
 0x8b6   : > { %v8926_v44 = vpop.f32.mrb[41].mxu1 }
 0x8b7   : > { %v8931_v6 = vpop.f32.mrb[42].mxu1 }
 0x8b8   : > { %v8933_v18 = vpop.f32.mrb[43].mxu1 }
 0x8bf   : > { %v8952_v0 = vpop.f32.mrb[44].mxu1 }
 0x8c0   : > { %10170 = vst [vmem:[#allocation44_spill] sm:$0xff] %v8952_v0  ;;  %v3097_v48 = vpop.xlane.xlu0 %3096  ;;  %v8954_v34 = vpop.f32.mrb[45].mxu1  ;;  %v9220_v0 = vld [vmem:[#allocation2 + $0x1c8] sm:$0xff] }
 0x8c1   : > { %10171 = vst [vmem:[#allocation45_spill] sm:$0xff] %v8954_v34  ;;  %v3126_v56 = vadd.f32 %v3097_v48, %v3078_v35  ;;  %v8959_v2 = vpop.f32.mrb[46].mxu1  ;;  %v8993_v35 = vpop.eup %6388 }
 0x8c2   : > { %v8965_v7 = vpop.f32.mrb[47].mxu1  ;;  %v8997_v20 = vpop.eup %6390 }
 0x8c3   : > { %3142 = vst.msk [vmem:[#allocation3 + $0x110] sm:$0xff] %vm691_vm0, %v3126_v56  ;;  %v3070_v56 = vld [vmem:[#allocation3 + $0x150] sm:$0xff]  ;;  %v9004_v9 = vpop.eup %6392  ;;  %v3083_v31 = vmul.f32 %v8997_v20, %v3067_v26 }
 0x8c4   : > { %v3095_v54 = vpop.xlane.xlu0 %3094  ;;  %v9008_v5 = vpop.eup %6394  ;;  %v3084_v29 = vmul.f32 %v9004_v9, %v3068_v36  ;;  %v3069_v36 = vld [vmem:[#allocation3 + $0x148] sm:$0xff] }
 0x8c5   : > { %v3125_v27 = vadd.f32 %v3095_v54, %v3077_v3  ;;  %v2929_v3 = vmul.f32 1.442695, %v10192_v19  ;;  %v3086_v54 = vmul.f32 %v8993_v35, %v3070_v56  ;;  %v9025_v39 = vpop.eup %6396  ;;  %v3072_v19 = vld [vmem:[#allocation3 + $0x160] sm:$0xff] }
 0x8c6   : > { %v9029_v60 = vpop.eup %6398 }
 0x8c7   : > { %3141 = vst.msk [vmem:[#allocation3 + $0x108] sm:$0xff] %vm691_vm0, %v3125_v27  ;;  %6404 = vpow2.f32 %v2929_v3  ;;  %v9041_v26 = vpop.eup %6400 }
 0x8c8   : > { %v3105_v17 = vpop.xlane.xlu0 %3104  ;;  %v9045_v3 = vpop.eup %6402 }
 0x8c9   : > { %v3130_v49 = vadd.f32 %v3105_v17, %v3082_v45  ;;  %v3065_v45 = vld [vmem:[#allocation3 + $0x128] sm:$0xff] }
 0x8ca   : > { %v3093_v53 = vpop.xlane.xlu1 %3092  ;;  %v3081_v23 = vmul.f32 %v9008_v5, %v3065_v45 }
 0x8cb   : > { %v3124_v32 = vadd.f32 %v3093_v53, %v3076_v57  ;;  %3146 = vst.msk [vmem:[#allocation3 + $0x130] sm:$0xff] %vm691_vm0, %v3130_v49  ;;  %v10194_v49 = vld [vmem:[#allocation99_spill] sm:$0xff] }
 0x8cc   : > { %v3101_v48 = vpop.xlane.xlu0 %3100  ;;  %v10195_v53 = vsub.f32 %v10193_v59, %v10194_v49  ;;  %v3085_v59 = vmul.f32 %v9045_v3, %v3069_v36 }
 0x8cd   : > { %3140 = vst.msk [vmem:[#allocation3 + $0x100] sm:$0xff] %vm691_vm0, %v3124_v32  ;;  %v3128_v25 = vadd.f32 %v3101_v48, %v3080_v28 }
 0x8ce   : > { %v3099_v21 = vpop.xlane.xlu1 %3098  ;;  %v2925_v22 = vmul.f32 1.442695, %v10195_v53 }
 0x8cf   : > { %v3127_v16 = vadd.f32 %v3099_v21, %v3079_v4  ;;  %3144 = vst.msk [vmem:[#allocation3 + $0x120] sm:$0xff] %vm691_vm0, %v3128_v25  ;;  %v6031_v27 = vpop.f32.mrb[48].mxu1  ;;  %v3071_v4 = vld [vmem:[#allocation3 + $0x158] sm:$0xff]  ;;  %v3090_v21 = vmul.f32 %v9025_v39, %v3074_v55 }
 0x8d0   : > { %v3113_v33 = vpop.xlane.xlu0 %3112  ;;  %v9014_v30 = vadd.f32 %v9011_v12, %v6031_v27  ;;  %v3624_v47 = vpop.f32.mrb[49].mxu1  ;;  %6406 = vpow2.f32 %v2925_v22  ;;  %v3087_v14 = vmul.f32 %v9029_v60, %v3071_v4 }
 0x8d1   : > { %3143 = vst.msk [vmem:[#allocation3 + $0x118] sm:$0xff] %vm691_vm0, %v3127_v16  ;;  %v3134_v46 = vadd.f32 %v3113_v33, %v3086_v54  ;;  %v6032_v17 = vpop.f32.mrb[50].mxu1  ;;  %v9032_v52 = vadd.f32 %v9011_v12, %v3624_v47  ;;  %v9059_v49 = vpop.eup %6404 }
 0x8d2   : > { %v3107_v42 = vpop.xlane.xlu1 %3106  ;;  %v9020_v62 = vadd.f32 %v9011_v12, %v6032_v17  ;;  %3708 = vmax.xlane.f32.xlu0 %v9014_v30  ;;  %v3627_v38 = vpop.f32.mrb[51].mxu1  ;;  %v3088_v17 = vmul.f32 %v9041_v26, %v3072_v19 }
 0x8d3   : > { %v3131_v57 = vadd.f32 %v3107_v42, %v3083_v31  ;;  %3150 = vst.msk [vmem:[#allocation3 + $0x150] sm:$0xff] %vm691_vm0, %v3134_v46  ;;  %v9036_v25 = vadd.f32 %v9011_v12, %v3627_v38 }
 0x8d4   : > { %v3109_v32 = vpop.xlane.xlu0 %3108  ;;  %3710 = vmax.xlane.f32.xlu1 %v9020_v62 }
 0x8d5   : > { %3147 = vst.msk [vmem:[#allocation3 + $0x138] sm:$0xff] %vm691_vm0, %v3131_v57  ;;  %v3132_v28 = vadd.f32 %v3109_v32, %v3084_v29  ;;  %v3075_v29 = vld [vmem:[#allocation3 + $0x178] sm:$0xff] }
 0x8d6   : > { %v3103_v48 = vpop.xlane.xlu1 %3102  ;;  %3704 = vmax.xlane.f32.xlu0 %v9032_v52 }
 0x8d7   : > { %v3129_v56 = vadd.f32 %v3103_v48, %v3081_v23  ;;  %3148 = vst.msk [vmem:[#allocation3 + $0x140] sm:$0xff] %vm691_vm0, %v3132_v28  ;;  %v6035_v16 = vpop.f32.mrb[52].mxu1  ;;  %v3091_v28 = vmul.f32 %v9059_v49, %v3075_v29  ;;  %v6514_v29 = vld [vmem:[%s7249_s17] sm:$0xff]  }
 0x8d8   : > { %v3121_v43 = vpop.xlane.xlu0 %3120  ;;  %v9048_v54 = vadd.f32 %v9011_v12, %v6035_v16  ;;  %3706 = vmax.xlane.f32.xlu1 %v9036_v25  ;;  %v3640_v27 = vpop.f32.mrb[53].mxu1  ;;  %v3073_v16 = vld [vmem:[#allocation3 + $0x168] sm:$0xff] }
 0x8d9   : > { %3145 = vst.msk [vmem:[#allocation3 + $0x128] sm:$0xff] %vm691_vm0, %v3129_v56  ;;  %v3138_v33 = vadd.f32 %v3121_v43, %v3090_v21  ;;  %v6036_v47 = vpop.f32.mrb[54].mxu1  ;;  %v9062_v53 = vadd.f32 %v9011_v12, %v3640_v27 }
 0x8da   : > { %10196 = vst [vmem:[#allocation46_spill] sm:$0xff] %v9048_v54  ;;  %v3115_v31 = vpop.xlane.xlu1 %3114  ;;  %v9052_v42 = vadd.f32 %v9011_v12, %v6036_v47  ;;  %3716 = vmax.xlane.f32.xlu0 %v9048_v54  ;;  %v3643_v45 = vpop.f32.mrb[55].mxu1 }
 0x8db   : > { %v3135_v46 = vadd.f32 %v3115_v31, %v3087_v14  ;;  %3154 = vst.msk [vmem:[#allocation3 + $0x170] sm:$0xff] %vm691_vm0, %v3138_v33  ;;  %v9066_v23 = vadd.f32 %v9011_v12, %v3643_v45  ;;  %v9072_v48 = vpop.eup %6406 }
 0x8dc   : > { %10197 = vst [vmem:[#allocation48_spill] sm:$0xff] %v9052_v42  ;;  %v3117_v57 = vpop.xlane.xlu0 %3116  ;;  %3718 = vmax.xlane.f32.xlu1 %v9052_v42  ;;  %v3089_v33 = vmul.f32 %v9072_v48, %v3073_v16  ;;  %v6518_v16 = vld [vmem:[%s7249_s17 + $0x18] sm:$0xff]  }
 0x8dd   : > { %3151 = vst.msk [vmem:[#allocation3 + $0x158] sm:$0xff] %vm691_vm0, %v3135_v46  ;;  %v3136_v22 = vadd.f32 %v3117_v57, %v3088_v17 }
 0x8de   : > { %v3111_v38 = vpop.xlane.xlu1 %3110  ;;  %3712 = vmax.xlane.f32.xlu0 %v9062_v53 }
 0x8df   : > { %v3133_v32 = vadd.f32 %v3111_v38, %v3085_v59  ;;  %3152 = vst.msk [vmem:[#allocation3 + $0x160] sm:$0xff] %vm691_vm0, %v3136_v22  ;;  %v6039_v55 = vpop.f32.mrb[56].mxu1 }
 0x8e0   : > { %v9075_v4 = vadd.f32 %v9011_v12, %v6039_v55  ;;  %3714 = vmax.xlane.f32.xlu1 %v9066_v23  ;;  %v3656_v56 = vpop.f32.mrb[57].mxu1  ;;  %v6516_v55 = vld [vmem:[%s7249_s17 + $0x10] sm:$0xff]  }
 0x8e1   : > { %3149 = vst.msk [vmem:[#allocation3 + $0x148] sm:$0xff] %vm691_vm0, %v3133_v32  ;;  %v6040_v43 = vpop.f32.mrb[58].mxu1  ;;  %v9085_v31 = vadd.f32 %v9011_v12, %v3656_v56  ;;  %v6515_v32 = vld [vmem:[%s7249_s17 + $0x8] sm:$0xff]  }
 0x8e2   : > { %10198 = vst [vmem:[#allocation47_spill] sm:$0xff] %v9075_v4  ;;  %v3123_v21 = vpop.xlane.xlu1 %3122  ;;  %v9079_v19 = vadd.f32 %v9011_v12, %v6040_v43  ;;  %3724 = vmax.xlane.f32.xlu0 %v9075_v4  ;;  %v3659_v27 = vpop.f32.mrb[59].mxu1  ;;  %v9123_v43 = vld [vmem:[#allocation2 + $0x190] sm:$0xff]  ;;  %v9200_v4 = vld [vmem:[#allocation2 + $0x1d8] sm:$0xff] }
 0x8e3   : > { %v3139_v14 = vadd.f32 %v3123_v21, %v3091_v28  ;;  %10200 = vst [vmem:[#allocation55_spill] sm:$0xff] %v9085_v31  ;;  %v9089_v46 = vadd.f32 %v9011_v12, %v3659_v27  ;;  %v6517_v28 = vld [vmem:[%s7249_s17 + $0x20] sm:$0xff]   ;;  %v9125_v27 = vld [vmem:[#allocation2 + $0x198] sm:$0xff] }
 0x8e4   : > { %10199 = vst [vmem:[#allocation49_spill] sm:$0xff] %v9079_v19  ;;  %3726 = vmax.xlane.f32.xlu1 %v9079_v19 }
 0x8e5   : > { %3155 = vst.msk [vmem:[#allocation3 + $0x178] sm:$0xff] %vm691_vm0, %v3139_v14  ;;  %10201 = vst [vmem:[#allocation57_spill] sm:$0xff] %v9089_v46 }
 0x8e6   : > { %v3119_v36 = vpop.xlane.xlu1 %3118  ;;  %3720 = vmax.xlane.f32.xlu0 %v9085_v31 }
 0x8e7   : > { %v3137_v47 = vadd.f32 %v3119_v36, %v3089_v33  ;;  %v6043_v45 = vpop.f32.mrb[60].mxu1 }
 0x8e8   : > { %v9094_v17 = vadd.f32 %v9011_v12, %v6043_v45  ;;  %3722 = vmax.xlane.f32.xlu1 %v9089_v46  ;;  %v3672_v57 = vpop.f32.mrb[61].mxu1  ;;  %v9210_v46 = vld [vmem:[#allocation2 + $0x1c0] sm:$0xff] }
 0x8e9   : > { %3153 = vst.msk [vmem:[#allocation3 + $0x168] sm:$0xff] %vm691_vm0, %v3137_v47  ;;  %v6044_v59 = vpop.f32.mrb[62].mxu1  ;;  %v9099_v22 = vadd.f32 %v9011_v12, %v3672_v57  ;;  %v9130_v47 = vld [vmem:[#allocation2 + $0x180] sm:$0xff]  ;;  %10210 = vst [vmem:[#allocation59_spill] sm:$0xff] %v9210_v46 }
 0x8ea   : > { %10202 = vst [vmem:[#allocation51_spill] sm:$0xff] %v9094_v17  ;;  %3732 = vmax.xlane.f32.xlu0 %v9094_v17  ;;  %v3675_v38 = vpop.f32.mrb[63].mxu1  ;;  %v9112_v56 = vadd.f32 %v9011_v12, %v6044_v59  ;;  %v9140_v59 = vld [vmem:[#allocation2 + $0x188] sm:$0xff] }
 0x8eb   : > { %10203 = vst [vmem:[#allocation53_spill] sm:$0xff] %v9099_v22  ;;  %v9116_v21 = vadd.f32 %v9011_v12, %v3675_v38  ;;  %v9170_v38 = vld [vmem:[#allocation2 + $0x1a0] sm:$0xff] }
 0x8ec   : > { %10204 = vst [vmem:[#allocation54_spill] sm:$0xff] %v9112_v56 }
 0x8ed   : > { %10205 = vst [vmem:[#allocation56_spill] sm:$0xff] %v9116_v21 }
 0x8ee   : > { %3728 = vmax.xlane.f32.xlu0 %v9099_v22  ;;  %v9190_v22 = vld [vmem:[#allocation2 + $0x1d0] sm:$0xff] }
 0x8ef   : > { %10208 = vst [vmem:[#allocation63_spill] sm:$0xff] %v9190_v22 }
 0x8f9   : > { %4145 = vrot.lane.b32.xlu1 %v6514_v29, %s6744_s19 }
 0x8fd   : > { %4147 = vrot.lane.b32.xlu1 %v6515_v32, %s6744_s19 }
 0x904   : > { %3174 = vperm.xlu0 %6190, %v8970_v24   ;;  %v6519_v24 = vld [vmem:[%s7249_s17 + $0x28] sm:$0xff]  }
 0x908   : > { %4149 = vrot.lane.b32.xlu0 %v6516_v55, %s6744_s19  ;;  %v9150_v55 = vld [vmem:[#allocation2 + $0x1b0] sm:$0xff] }
 0x909   : > { %10206 = vst [vmem:[#allocation50_spill] sm:$0xff] %v9150_v55 }
 0x90c   : > { %4153 = vrot.lane.b32.xlu0 %v6517_v28, %s6744_s19 }
 0x921   : > { %3734 = vmax.xlane.f32.xlu1 %v9112_v56  ;;  %v9180_v56 = vld [vmem:[#allocation2 + $0x1a8] sm:$0xff] }
 0x925   : > { %3730 = vmax.xlane.f32.xlu1 %v9116_v21 }
 0x936   : > { %4151 = vrot.lane.b32.xlu1 %v6518_v16, %s6744_s19 }
 0x93a   : > { %4155 = vrot.lane.b32.xlu1 %v6519_v24, %s6744_s19 }
 0x95f   : > { %v3709_v14 = vpop.xlane.xlu0 %3708 }
 0x960   : > { %v9128_v33 = vmax.f32 %v9123_v43, %v3709_v14  ;;  %v9160_v14 = vld [vmem:[#allocation2 + $0x1b8] sm:$0xff] }
 0x961   : > { %v3711_v36 = vpop.xlane.xlu1 %3710 }
 0x962   : > { %4365 = vst.msk [vmem:[#allocation2 + $0x190] sm:$0xff] %vm691_vm0, %v9128_v33  ;;  %v9137_v45 = vmax.f32 %v9125_v27, %v3711_v36  ;;  %3812 = vperm.xlu0 %6190, %v9128_v33  }
 0x963   : > { %v3705_v57 = vpop.xlane.xlu0 %3704 }
 0x964   : > { %4366 = vst.msk [vmem:[#allocation2 + $0x198] sm:$0xff] %vm691_vm0, %v9137_v45  ;;  %v9147_v29 = vmax.f32 %v9130_v47, %v3705_v57  ;;  %3817 = vperm.xlu1 %6191, %v9137_v45  }
 0x965   : > { %v3707_v32 = vpop.xlane.xlu1 %3706 }
 0x966   : > { %4363 = vst.msk [vmem:[#allocation2 + $0x180] sm:$0xff] %vm691_vm0, %v9147_v29  ;;  %v9157_v16 = vmax.f32 %v9140_v59, %v3707_v32  ;;  %3802 = vperm.xlu0 %6190, %v9147_v29  }
 0x967   : > { %v3717_v24 = vpop.xlane.xlu0 %3716 }
 0x968   : > { %4364 = vst.msk [vmem:[#allocation2 + $0x188] sm:$0xff] %vm691_vm0, %v9157_v16  ;;  %v9167_v57 = vmax.f32 %v9150_v55, %v3717_v24  ;;  %3807 = vperm.xlu1 %6191, %v9157_v16   ;;  %v6521_v55 = vld [vmem:[%s7249_s17 + $0x38] sm:$0xff]  }
 0x969   : > { %v3719_v12 = vpop.xlane.xlu1 %3718 }
 0x96a   : > { %10207 = vst [vmem:[#allocation52_spill] sm:$0xff] %v9167_v57  ;;  %4369 = vst.msk [vmem:[#allocation2 + $0x1b0] sm:$0xff] %vm691_vm0, %v9167_v57  ;;  %v9177_v28 = vmax.f32 %v9160_v14, %v3719_v12  ;;  %3832 = vperm.xlu0 %6190, %v9167_v57  }
 0x96b   : > { %v3713_v36 = vpop.xlane.xlu0 %3712 }
 0x96c   : > { %4370 = vst.msk [vmem:[#allocation2 + $0x1b8] sm:$0xff] %vm691_vm0, %v9177_v28  ;;  %v9187_v21 = vmax.f32 %v9170_v38, %v3713_v36  ;;  %3837 = vperm.xlu1 %6191, %v9177_v28  }
 0x96d   : > { %v3715_v32 = vpop.xlane.xlu1 %3714 }
 0x96e   : > { %4367 = vst.msk [vmem:[#allocation2 + $0x1a0] sm:$0xff] %vm691_vm0, %v9187_v21  ;;  %v9197_v17 = vmax.f32 %v9180_v56, %v3715_v32  ;;  %3822 = vperm.xlu0 %6190, %v9187_v21  }
 0x96f   : > { %v3725_v24 = vpop.xlane.xlu0 %3724 }
 0x970   : > { %4368 = vst.msk [vmem:[#allocation2 + $0x1a8] sm:$0xff] %vm691_vm0, %v9197_v17  ;;  %v9207_v19 = vmax.f32 %v9190_v22, %v3725_v24  ;;  %3827 = vperm.xlu1 %6191, %v9197_v17  }
 0x971   : > { %v3727_v12 = vpop.xlane.xlu1 %3726 }
 0x972   : > { %10209 = vst [vmem:[#allocation65_spill] sm:$0xff] %v9207_v19  ;;  %4373 = vst.msk [vmem:[#allocation2 + $0x1d0] sm:$0xff] %vm691_vm0, %v9207_v19  ;;  %v9217_v31 = vmax.f32 %v9200_v4, %v3727_v12  ;;  %3852 = vperm.xlu0 %6190, %v9207_v19   ;;  %v9230_v12 = vld [vmem:[#allocation2 + $0x1f0] sm:$0xff] }
 0x973   : > { %v3721_v36 = vpop.xlane.xlu0 %3720 }
 0x974   : > { %4374 = vst.msk [vmem:[#allocation2 + $0x1d8] sm:$0xff] %vm691_vm0, %v9217_v31  ;;  %v9227_v54 = vmax.f32 %v9210_v46, %v3721_v36  ;;  %3857 = vperm.xlu1 %6191, %v9217_v31   ;;  %v9248_v46 = vld [vmem:[#allocation2 + $0x1e0] sm:$0xff] }
 0x975   : > { %v3723_v32 = vpop.xlane.xlu1 %3722 }
 0x976   : > { %10211 = vst [vmem:[#allocation61_spill] sm:$0xff] %v9227_v54  ;;  %4371 = vst.msk [vmem:[#allocation2 + $0x1c0] sm:$0xff] %vm691_vm0, %v9227_v54  ;;  %v9237_v24 = vmax.f32 %v9220_v0, %v3723_v32  ;;  %3842 = vperm.xlu0 %6190, %v9227_v54   ;;  %v6520_v54 = vld [vmem:[%s7249_s17 + $0x30] sm:$0xff]  }
 0x977   : > { %v3733_v36 = vpop.xlane.xlu0 %3732 }
 0x978   : > { %4372 = vst.msk [vmem:[#allocation2 + $0x1c8] sm:$0xff] %vm691_vm0, %v9237_v24  ;;  %v9245_v57 = vmax.f32 %v9230_v12, %v3733_v36  ;;  %3847 = vperm.xlu1 %6191, %v9237_v24  }
 0x979   : > { %v4146_v19 = vpop.permute.xlu1 %4145 }
 0x97a   : > { %v3766_v32 = vsub.f32 %v9230_v12, %v9245_v57  ;;  %4377 = vst.msk [vmem:[#allocation2 + $0x1f0] sm:$0xff] %vm691_vm0, %v9245_v57  ;;  %6045 = vmatprep.subr.bf16.mxu0 %v4146_v19  ;;  %4157 = vrot.lane.b32.xlu0 %v6520_v54, %s6744_s19  ;;  %v10238_v12 = vld [vmem:[#allocation51_spill] sm:$0xff] }
 0x97b   : > { %6046 = vmatpush3.bf16.msra.mxu0 %v4146_v19  ;;  %v3729_v22 = vpop.xlane.xlu0 %3728 }
 0x97c   : > { %v9257_v36 = vmax.f32 %v9248_v46, %v3729_v22  ;;  %4159 = vrot.lane.b32.xlu1 %v6521_v55, %s6744_s19 }
 0x97d   : > { %v4148_v42 = vpop.permute.xlu1 %4147 }
 0x97e   : > { %v3764_v34 = vsub.f32 %v9248_v46, %v9257_v36  ;;  %4375 = vst.msk [vmem:[#allocation2 + $0x1e0] sm:$0xff] %vm691_vm0, %v9257_v36  ;;  %6047 = vmatprep.subr.bf16.mxu0 %v4148_v42  ;;  %3862 = vperm.xlu0 %6190, %v9257_v36  }
 0x97f   : > { %6048 = vmatpush3.bf16.msra.mxu0 %v4148_v42 }
 0x982   : > { %3872 = vperm.xlu0 %6190, %v9245_v57   ;;  %v3792_v57 = vmul.f32 1.442695, %v3764_v34 }
 0x983   : > { %v9267_v54 = vpop.permute.xlu0 %3174 }
 0x986   : > { %3179 = vperm.xlu0 %6190, %v8950_v15   ;;  %v3703_v15 = vld [vmem:[#allocation2 + $0x1f8] sm:$0xff] }
 0x987   : > { %v4150_v19 = vpop.permute.xlu0 %4149 }
 0x988   : > { %6049 = vmatprep.subr.bf16.mxu0 %v4150_v19 }
 0x989   : > { %6050 = vmatpush3.bf16.msra.mxu0 %v4150_v19 }
 0x98a   : > { %3189 = vperm.xlu0 %6190, %v8983_v50  }
 0x98b   : > { %v4154_v42 = vpop.permute.xlu0 %4153 }
 0x98e   : > { %3199 = vperm.xlu0 %6190, %v9008_v5   ;;  %v3701_v5 = vld [vmem:[#allocation2 + $0x1e8] sm:$0xff] }
 0x992   : > { %3209 = vperm.xlu0 %6190, %v8997_v20  }
 0x996   : > { %3219 = vperm.xlu0 %6190, %v9045_v3  }
 0x99a   : > { %3229 = vperm.xlu0 %6190, %v9029_v60  }
 0x99e   : > { %3239 = vperm.xlu0 %6190, %v9072_v48  }
 0x9a2   : > { %3249 = vperm.xlu0 %6190, %v9059_v49  }
 0x9a6   : > { %3415 = vrot.lane.b32.xlu0 %v8879_v61, %s6743_s16  ;;  %v10212_v61 = vsub.f32 %v9130_v47, %v9147_v29 }
 0x9aa   : > { %3419 = vrot.lane.b32.xlu0 %v8877_v41, %s6743_s16 }
 0x9ae   : > { %v3735_v50 = vpop.xlane.xlu1 %3734  ;;  %3423 = vrot.lane.b32.xlu0 %v8916_v51, %s6743_s16  ;;  %v3768_v51 = vmul.f32 1.442695, %v10212_v61 }
 0x9af   : > { %v3751_v20 = vmax.f32 %v3703_v15, %v3735_v50 }
 0x9b0   : > { %6408 = vpow2.f32 %v3768_v51  ;;  %v10222_v51 = vld [vmem:[#allocation48_spill] sm:$0xff] }
 0x9b1   : > { %4378 = vst.msk [vmem:[#allocation2 + $0x1f8] sm:$0xff] %vm691_vm0, %v3751_v20  ;;  %v3767_v47 = vsub.f32 %v3703_v15, %v3751_v20 }
 0x9b2   : > { %v3731_v60 = vpop.xlane.xlu1 %3730  ;;  %3427 = vrot.lane.b32.xlu0 %v8914_v40, %s6743_s16  ;;  %v10213_v40 = vsub.f32 %v9125_v27, %v9137_v45 }
 0x9b3   : > { %v3749_v3 = vmax.f32 %v3701_v5, %v3731_v60 }
 0x9b4   : > { %v3774_v49 = vmul.f32 1.442695, %v10213_v40  ;;  %v10224_v40 = vld [vmem:[#allocation52_spill] sm:$0xff] }
 0x9b5   : > { %4376 = vst.msk [vmem:[#allocation2 + $0x1e8] sm:$0xff] %vm691_vm0, %v3749_v3  ;;  %3867 = vperm.xlu1 %6191, %v3749_v3  }
 0x9b6   : > { %3431 = vrot.lane.b32.xlu0 %v8933_v18, %s6743_s16  ;;  %v4152_v41 = vpop.permute.xlu1 %4151  ;;  %6410 = vpow2.f32 %v3774_v49  ;;  %v10214_v18 = vsub.f32 %v9180_v56, %v9197_v17 }
 0x9b7   : > { %6051 = vmatprep.subr.bf16.mxu0 %v4152_v41 }
 0x9b8   : > { %6052 = vmatpush3.bf16.msra.mxu0 %v4152_v41  ;;  %v3778_v22 = vmul.f32 1.442695, %v10214_v18 }
 0x9b9   : > { %3877 = vperm.xlu1 %6191, %v3751_v20   ;;  %6053 = vmatprep.subr.bf16.mxu0 %v4154_v42 }
 0x9ba   : > { %3435 = vrot.lane.b32.xlu0 %v8931_v6, %s6743_s16  ;;  %v4156_v48 = vpop.permute.xlu1 %4155  ;;  %v10215_v6 = vsub.f32 %v9160_v14, %v9177_v28  ;;  %6412 = vpow2.f32 %v3778_v22  ;;  %v10227_v22 = vld [vmem:[#allocation44_spill] sm:$0xff] }
 0x9bc   : > { %6054 = vmatpush3.bf16.msra.mxu0 %v4154_v42  ;;  %v3782_v27 = vmul.f32 1.442695, %v10215_v6 }
 0x9bd   : > { %3184 = vperm.xlu1 %6191, %v8941_v10   ;;  %6055 = vmatprep.subr.bf16.mxu0 %v4156_v48  ;;  %v9309_v10 = vpop.eup %6408 }
 0x9be   : > { %3439 = vrot.lane.b32.xlu0 %v8965_v7, %s6743_s16  ;;  %6414 = vpow2.f32 %v3782_v27  ;;  %v10216_v7 = vsub.f32 %v9200_v4, %v9217_v31  ;;  %v3798_v4 = vmul.f32 1.442695, %v3767_v47  ;;  %v3765_v31 = vsub.f32 %v3701_v5, %v3749_v3  ;;  %v10231_v47 = vld [vmem:[#allocation55_spill] sm:$0xff] }
 0x9c0   : > { %6056 = vmatpush3.bf16.msra.mxu0 %v4156_v48  ;;  %v3790_v17 = vmul.f32 1.442695, %v10216_v7  ;;  %v10226_v48 = vld [vmem:[#allocation46_spill] sm:$0xff]  ;;  %v10228_v7 = vld [vmem:[#allocation63_spill] sm:$0xff] }
 0x9c1   : > { %3194 = vperm.xlu1 %6191, %v8980_v63   ;;  %v9316_v63 = vpop.eup %6410 }
 0x9c2   : > { %3443 = vrot.lane.b32.xlu0 %v8959_v2, %s6743_s16  ;;  %6416 = vpow2.f32 %v3790_v17  ;;  %v10217_v2 = vsub.f32 %v9220_v0, %v9237_v24  ;;  %v10229_v17 = vld [vmem:[#allocation65_spill] sm:$0xff] }
 0x9c4   : > { %v3786_v56 = vmul.f32 1.442695, %v10217_v2  ;;  %v10230_v2 = vsub.f32 %v10228_v7, %v10229_v17  ;;  %v10239_v7 = vld [vmem:[#allocation53_spill] sm:$0xff] }
 0x9c5   : > { %3204 = vperm.xlu1 %6191, %v8968_v13   ;;  %v9323_v13 = vpop.eup %6412 }
 0x9c6   : > { %4043 = vperm.xlu0 %6190, %v9309_v10   ;;  %6418 = vpow2.f32 %v3786_v56  ;;  %v3788_v56 = vmul.f32 1.442695, %v10230_v2 }
 0x9c7   : > { %6420 = vpow2.f32 %v3798_v4 }
 0x9c8   : > { %v9327_v45 = vpop.eup %6414 }
 0x9c9   : > { %3214 = vperm.xlu1 %6191, %v9004_v9   ;;  %v3794_v9 = vmul.f32 1.442695, %v3765_v31 }
 0x9ca   : > { %4058 = vperm.xlu0 %6190, %v9316_v63  }
 0x9cb   : > { %6422 = vpow2.f32 %v3794_v9 }
 0x9cc   : > { %v9331_v0 = vpop.eup %6416 }
 0x9cd   : > { %3224 = vperm.xlu1 %6191, %v8993_v35  }
 0x9ce   : > { %4068 = vperm.xlu0 %6190, %v9323_v13  }
 0x9d0   : > { %v9335_v35 = vpop.eup %6418 }
 0x9d1   : > { %3234 = vperm.xlu1 %6191, %v9041_v26   ;;  %v9340_v29 = vpop.eup %6420 }
 0x9d2   : > { %4078 = vperm.xlu0 %6190, %v9327_v45  }
 0x9d5   : > { %3244 = vperm.xlu1 %6191, %v9025_v39   ;;  %v9345_v26 = vpop.eup %6422 }
 0x9d6   : > { %4098 = vperm.xlu0 %6190, %v9331_v0  }
 0x9d9   : > { %3413 = vrot.lane.b32.xlu1 %v8873_v8, %s6743_s16 }
 0x9da   : > { %4088 = vperm.xlu0 %6190, %v9335_v35  }
 0x9dd   : > { %3417 = vrot.lane.b32.xlu1 %v8871_v37, %s6743_s16 }
 0x9de   : > { %4118 = vperm.xlu0 %6190, %v9340_v29  }
 0x9e1   : > { %3421 = vrot.lane.b32.xlu1 %v8912_v11, %s6743_s16  ;;  %v3813_v39 = vpop.permute.xlu0 %3812  ;;  %v10218_v11 = vsub.f32 %v9140_v59, %v9157_v16  ;;  %v10220_v59 = vsub.f32 %v9170_v38, %v9187_v21 }
 0x9e2   : > { %4108 = vperm.xlu0 %6190, %v9345_v26  }
 0x9e3   : > { %v3818_v55 = vpop.permute.xlu1 %3817  ;;  %v3770_v15 = vmul.f32 1.442695, %v10218_v11  ;;  %v3776_v16 = vmul.f32 1.442695, %v10220_v59 }
 0x9e4   : > { %v3883_v20 = vsub.f32 %v9020_v62, %v3818_v55 }
 0x9e5   : > { %3425 = vrot.lane.b32.xlu1 %v8907_v58, %s6743_s16  ;;  %v3803_v8 = vpop.permute.xlu0 %3802 }
 0x9e6   : > { %v3880_v28 = vsub.f32 %v9032_v52, %v3803_v8  ;;  %v10219_v52 = vsub.f32 %v9123_v43, %v9128_v33  ;;  %v3902_v60 = vmul.f32 1.442695, %v3883_v20  ;;  %v10221_v33 = vld [vmem:[#allocation45_spill] sm:$0xff] }
 0x9e7   : > { %v3808_v14 = vpop.permute.xlu1 %3807  ;;  %v10232_v8 = vld [vmem:[#allocation57_spill] sm:$0xff] }
 0x9e8   : > { %v3896_v24 = vmul.f32 1.442695, %v3880_v28  ;;  %v3881_v37 = vsub.f32 %v9036_v25, %v3808_v14  ;;  %v3772_v5 = vmul.f32 1.442695, %v10219_v52  ;;  %v3882_v25 = vsub.f32 %v9014_v30, %v3813_v39 }
 0x9e9   : > { %3429 = vrot.lane.b32.xlu1 %v8926_v44, %s6743_s16  ;;  %v3833_v19 = vpop.permute.xlu0 %3832 }
 0x9ea   : > { %v3898_v50 = vmul.f32 1.442695, %v3881_v37  ;;  %6424 = vpow2.f32 %v3896_v24  ;;  %v3900_v43 = vmul.f32 1.442695, %v3882_v25  ;;  %v3886_v18 = vsub.f32 %v10226_v48, %v3833_v19 }
 0x9eb   : > { %v3838_v58 = vpop.permute.xlu1 %3837 }
 0x9ec   : > { %6426 = vpow2.f32 %v3898_v50  ;;  %v3887_v42 = vsub.f32 %v10222_v51, %v3838_v58  ;;  %v3908_v14 = vmul.f32 1.442695, %v3886_v18 }
 0x9ed   : > { %3433 = vrot.lane.b32.xlu1 %v8921_v1, %s6743_s16  ;;  %v3823_v44 = vpop.permute.xlu0 %3822  ;;  %6428 = vpow2.f32 %v3770_v15  ;;  %v10233_v15 = vld [vmem:[#allocation49_spill] sm:$0xff] }
 0x9ee   : > { %v3884_v62 = vsub.f32 %v9062_v53, %v3823_v44  ;;  %6430 = vpow2.f32 %v3772_v5  ;;  %v10223_v53 = vld [vmem:[#allocation50_spill] sm:$0xff]  ;;  %v3910_v31 = vmul.f32 1.442695, %v3887_v42  ;;  %v10234_v5 = vld [vmem:[#allocation47_spill] sm:$0xff]  ;;  %v3796_v42 = vmul.f32 1.442695, %v3766_v32 }
 0x9ef   : > { %v3828_v3 = vpop.permute.xlu1 %3827  ;;  %6432 = vpow2.f32 %v3776_v16  ;;  %v10225_v49 = vsub.f32 %v10223_v53, %v10224_v40  ;;  %v10235_v16 = vld [vmem:[#allocation59_spill] sm:$0xff] }
 0x9f0   : > { %v3885_v41 = vsub.f32 %v9066_v23, %v3828_v3  ;;  %v3904_v1 = vmul.f32 1.442695, %v3884_v62  ;;  %6434 = vpow2.f32 %v3902_v60  ;;  %v10236_v62 = vld [vmem:[#allocation61_spill] sm:$0xff] }
 0x9f1   : > { %3437 = vrot.lane.b32.xlu1 %v10221_v33, %s6743_s16  ;;  %v3853_v30 = vpop.permute.xlu0 %3852  ;;  %v3780_v23 = vmul.f32 1.442695, %v10225_v49  ;;  %v10237_v60 = vsub.f32 %v10235_v16, %v10236_v62 }
 0x9f2   : > { %v3906_v61 = vmul.f32 1.442695, %v3885_v41  ;;  %v3890_v25 = vsub.f32 %v10234_v5, %v3853_v30 }
 0x9f3   : > { %v3858_v21 = vpop.permute.xlu1 %3857  ;;  %v3784_v3 = vmul.f32 1.442695, %v10237_v60  ;;  %v3161_v60 = vld [vmem:[#allocation4 + $0x28] sm:$0xff] }
 0x9f4   : > { %6436 = vpow2.f32 %v3906_v61  ;;  %v9374_v38 = vpop.eup %6424  ;;  %v3891_v50 = vsub.f32 %v10233_v15, %v3858_v21  ;;  %v3916_v61 = vmul.f32 1.442695, %v3890_v25  ;;  %v3157_v15 = vld [vmem:[#allocation4 + $0x8] sm:$0xff]  ;;  %v3159_v25 = vld [vmem:[#allocation4 + $0x18] sm:$0xff] }
 0x9f5   : > { %6438 = vpow2.f32 %v3900_v43  ;;  %3441 = vrot.lane.b32.xlu1 %v10227_v22, %s6743_s16  ;;  %v3843_v6 = vpop.permute.xlu0 %3842 }
 0x9f6   : > { %v6427_v27 = vpop.eup %6426  ;;  %6440 = vpow2.f32 %v3904_v1  ;;  %v3888_v4 = vsub.f32 %v10231_v47, %v3843_v6  ;;  %v3918_v43 = vmul.f32 1.442695, %v3891_v50 }
 0x9f7   : > { %v3848_v9 = vpop.permute.xlu1 %3847  ;;  %v4137_v39 = vpack.c.bf16 %v6427_v27, %v9374_v38  ;;  %v9387_v55 = vpop.eup %6428  ;;  %6442 = vpow2.f32 %v3780_v23 }
 0x9f8   : > { %v3889_v28 = vsub.f32 %v10232_v8, %v3848_v9  ;;  %6444 = vpow2.f32 %v3788_v56  ;;  %v3912_v37 = vmul.f32 1.442695, %v3888_v4  ;;  %v9391_v11 = vpop.eup %6430 }
 0x9f9   : > { %4048 = vperm.xlu1 %6191, %v9387_v55   ;;  %6061 = vmatprep.mubr.bf16.mxu0 %v4137_v39  ;;  %v4158_v24 = vpop.permute.xlu0 %4157  ;;  %6446 = vpow2.f32 %v3910_v31  ;;  %v9394_v58 = vpop.eup %6432 }
 0x9fa   : > { %v3914_v19 = vmul.f32 1.442695, %v3889_v28  ;;  %6057 = vmatprep.subr.bf16.mxu0 %v4158_v24  ;;  %v9396_v52 = vpop.eup %6434 }
 0x9fb   : > { %6058 = vmatpush3.bf16.msra.mxu0 %v4158_v24  ;;  %v4160_v20 = vpop.permute.xlu1 %4159 }
 0x9fc   : > { %6448 = vpow2.f32 %v3914_v19  ;;  %6059 = vmatprep.subr.bf16.mxu0 %v4160_v20 }
 0x9fd   : > { %6450 = vpow2.f32 %v3908_v14  ;;  %4053 = vperm.xlu1 %6191, %v9391_v11   ;;  %v3863_v44 = vpop.permute.xlu0 %3862 }
 0x9fe   : > { %v9400_v59 = vpop.eup %6436  ;;  %6452 = vpow2.f32 %v3912_v37  ;;  %v3892_v17 = vsub.f32 %v10239_v7, %v3863_v44  ;;  %v10241_v7 = vld [vmem:[#allocation54_spill] sm:$0xff] }
 0x9ff   : > { %v6439_v41 = vpop.eup %6438  ;;  %6060 = vmatpush3.bf16.msra.mxu0 %v4160_v20  ;;  %6454 = vpow2.f32 %v3784_v3 }
 0xa00   : > { %v6441_v33 = vpop.eup %6440  ;;  %v4138_v1 = vpack.c.bf16 %v9396_v52, %v6439_v41  ;;  %6456 = vpow2.f32 %v3918_v43  ;;  %v3920_v56 = vmul.f32 1.442695, %v3892_v17 }
 0xa01   : > { %4063 = vperm.xlu1 %6191, %v9394_v58   ;;  %3965 = vadd.xlane.f32.xlu0 %v6439_v41  ;;  %v3873_v30 = vpop.permute.xlu0 %3872  ;;  %v4139_v51 = vpack.c.bf16 %v9400_v59, %v6441_v33  ;;  %v9411_v21 = vpop.eup %6442  ;;  %6458 = vpow2.f32 %v3916_v61 }
 0xa02   : > { %6062 = vmatmul.mubr.bf16.vlgmr.msra.gmra.mrb[48].mxu0 %v4138_v1  ;;  %v9413_v53 = vpop.eup %6444  ;;  %6460 = vpow2.f32 %v3796_v42  ;;  %v3894_v32 = vsub.f32 %v10238_v12, %v3873_v30 }
 0xa03   : > { %6065 = vmatprep.mubr.bf16.mxu0 %v4139_v51  ;;  %v9415_v40 = vpop.eup %6446  ;;  %6462 = vpow2.f32 %v3792_v57  ;;  %v3165_v51 = vld [vmem:[#allocation4 + $0x48] sm:$0xff]  ;;  %v10240_v57 = vld [vmem:[#allocation56_spill] sm:$0xff] }
 0xa04   : > { %v3924_v2 = vmul.f32 1.442695, %v3894_v32 }
 0xa05   : > { %4073 = vperm.xlu1 %6191, %v9411_v21   ;;  %3963 = vadd.xlane.f32.xlu0 %v6427_v27  ;;  %v3180_v49 = vpop.permute.xlu0 %3179 }
 0xa06   : > { %v9418_v23 = vpop.eup %6448  ;;  %6464 = vpow2.f32 %v3924_v2  ;;  %v3253_v50 = vmul.f32 %v3180_v49, %v3157_v15  ;;  %v3171_v15 = vld [vmem:[#allocation4 + $0x78] sm:$0xff] }
 0xa07   : > { %v6451_v48 = vpop.eup %6450  ;;  %6466 = vpow2.f32 %v3920_v56  ;;  %v3169_v56 = vld [vmem:[#allocation4 + $0x68] sm:$0xff] }
 0xa08   : > { %v6453_v18 = vpop.eup %6452  ;;  %v4140_v22 = vpack.c.bf16 %v9415_v40, %v6451_v48 }
 0xa09   : > { %4093 = vperm.xlu1 %6191, %v9413_v53   ;;  %3973 = vadd.xlane.f32.xlu0 %v6451_v48  ;;  %v3190_v6 = vpop.permute.xlu0 %3189  ;;  %v4141_v27 = vpack.c.bf16 %v9418_v23, %v6453_v18  ;;  %v9428_v46 = vpop.eup %6454 }
 0xa0a   : > { %6066 = vmatmul.mubr.bf16.gmra.mrb[52].mxu0 %v4140_v22  ;;  %v9430_v34 = vpop.eup %6456  ;;  %v3255_v44 = vmul.f32 %v3190_v6, %v3159_v25 }
 0xa0b   : > { %6069 = vmatprep.mubr.bf16.mxu0 %v4141_v27  ;;  %v6459_v47 = vpop.eup %6458 }
 0xa0c   : > { %v9433_v4 = vpop.eup %6460  ;;  %v4142_v31 = vpack.c.bf16 %v9430_v34, %v6459_v47 }
 0xa0d   : > { %4083 = vperm.xlu1 %6191, %v9428_v46   ;;  %3969 = vadd.xlane.f32.xlu0 %v6441_v33  ;;  %v3200_v36 = vpop.permute.xlu0 %3199  ;;  %v9437_v39 = vpop.eup %6462  ;;  %v3163_v33 = vld [vmem:[#allocation4 + $0x38] sm:$0xff] }
 0xa0e   : > { %v3257_v3 = vmul.f32 %v3200_v36, %v3161_v60 }
 0xa10   : > { %v9440_v28 = vpop.eup %6464 }
 0xa11   : > { %4113 = vperm.xlu1 %6191, %v9433_v4   ;;  %3981 = vadd.xlane.f32.xlu0 %v6459_v47  ;;  %v3210_v9 = vpop.permute.xlu0 %3209  ;;  %v6467_v24 = vpop.eup %6466 }
 0xa12   : > { %6070 = vmatmul.mubr.bf16.gmra.mrb[56].mxu0 %v4142_v31  ;;  %v3259_v1 = vmul.f32 %v3210_v9, %v3163_v33 }
 0xa15   : > { %4103 = vperm.xlu1 %6191, %v9437_v39   ;;  %3977 = vadd.xlane.f32.xlu0 %v6453_v18  ;;  %v3220_v8 = vpop.permute.xlu0 %3219  ;;  %v3167_v18 = vld [vmem:[#allocation4 + $0x58] sm:$0xff] }
 0xa16   : > { %v3261_v42 = vmul.f32 %v3220_v8, %v3165_v51 }
 0xa19   : > { %3989 = vadd.xlane.f32.xlu0 %v9440_v28  ;;  %v3230_v14 = vpop.permute.xlu0 %3229 }
 0xa1a   : > { %v3263_v6 = vmul.f32 %v3230_v14, %v3167_v18 }
 0xa1d   : > { %3985 = vadd.xlane.f32.xlu0 %v6467_v24  ;;  %v3240_v37 = vpop.permute.xlu0 %3239 }
 0xa1e   : > { %v3265_v31 = vmul.f32 %v3240_v37, %v3169_v56 }
 0xa21   : > { %v3250_v19 = vpop.permute.xlu0 %3249 }
 0xa25   : > { %v3416_v20 = vpop.permute.xlu0 %3415 }
 0xa26   : > { %v3462_v5 = vadd.f32 %v3416_v20, %v3253_v50  ;;  %v3267_v50 = vmul.f32 %v3250_v19, %v3171_v15 }
 0xa28   : > { %3479 = vst.msk [vmem:[#allocation4 + $0x8] sm:$0xff] %vm3477_vm3, %v3462_v5 }
 0xa29   : > { %v3420_v16 = vpop.permute.xlu0 %3419 }
 0xa2a   : > { %v3464_v62 = vadd.f32 %v3420_v16, %v3255_v44 }
 0xa2c   : > { %3481 = vst.msk [vmem:[#allocation4 + $0x18] sm:$0xff] %vm3477_vm3, %v3464_v62 }
 0xa2d   : > { %v3424_v41 = vpop.permute.xlu0 %3423 }
 0xa2e   : > { %v3466_v43 = vadd.f32 %v3424_v41, %v3257_v3  ;;  %v3156_v3 = vld [vmem:[#allocation4] sm:$0xff] }
 0xa30   : > { %3483 = vst.msk [vmem:[#allocation4 + $0x28] sm:$0xff] %vm3477_vm3, %v3466_v43  ;;  %v3158_v43 = vld [vmem:[#allocation4 + $0x10] sm:$0xff] }
 0xa31   : > { %v3428_v61 = vpop.permute.xlu0 %3427 }
 0xa32   : > { %v3468_v30 = vadd.f32 %v3428_v61, %v3259_v1 }
 0xa34   : > { %3485 = vst.msk [vmem:[#allocation4 + $0x38] sm:$0xff] %vm3477_vm3, %v3468_v30  ;;  %v3868_v49 = vpop.permute.xlu1 %3867 }
 0xa35   : > { %v3893_v12 = vsub.f32 %v10240_v57, %v3868_v49  ;;  %v3432_v32 = vpop.permute.xlu0 %3431 }
 0xa36   : > { %v3470_v48 = vadd.f32 %v3432_v32, %v3261_v42  ;;  %v3162_v42 = vld [vmem:[#allocation4 + $0x30] sm:$0xff] }
 0xa37   : > { %v3922_v22 = vmul.f32 1.442695, %v3893_v12  ;;  %v3164_v12 = vld [vmem:[#allocation4 + $0x40] sm:$0xff] }
 0xa38   : > { %3487 = vst.msk [vmem:[#allocation4 + $0x48] sm:$0xff] %vm3477_vm3, %v3470_v48  ;;  %v3878_v27 = vpop.permute.xlu1 %3877 }
 0xa39   : > { %6468 = vpow2.f32 %v3922_v22  ;;  %v3895_v17 = vsub.f32 %v10241_v7, %v3878_v27  ;;  %3961 = vadd.xlane.f32.xlu1 %v9374_v38  ;;  %v3436_v2 = vpop.permute.xlu0 %3435 }
 0xa3a   : > { %v3472_v36 = vadd.f32 %v3436_v2, %v3263_v6  ;;  %v3166_v6 = vld [vmem:[#allocation4 + $0x50] sm:$0xff] }
 0xa3b   : > { %v3926_v47 = vmul.f32 1.442695, %v3895_v17 }
 0xa3c   : > { %3489 = vst.msk [vmem:[#allocation4 + $0x58] sm:$0xff] %vm3477_vm3, %v3472_v36  ;;  %v3185_v9 = vpop.permute.xlu1 %3184  ;;  %v3168_v36 = vld [vmem:[#allocation4 + $0x60] sm:$0xff] }
 0xa3d   : > { %6470 = vpow2.f32 %v3926_v47  ;;  %3967 = vadd.xlane.f32.xlu1 %v9396_v52  ;;  %v3440_v8 = vpop.permute.xlu0 %3439  ;;  %v3254_v33 = vmul.f32 %v3185_v9, %v3158_v43 }
 0xa3e   : > { %v3474_v14 = vadd.f32 %v3440_v8, %v3265_v31  ;;  %v3170_v8 = vld [vmem:[#allocation4 + $0x70] sm:$0xff] }
 0xa40   : > { %3491 = vst.msk [vmem:[#allocation4 + $0x68] sm:$0xff] %vm3477_vm3, %v3474_v14  ;;  %v3195_v20 = vpop.permute.xlu1 %3194 }
 0xa41   : > { %3975 = vadd.xlane.f32.xlu1 %v9415_v40  ;;  %v3444_v38 = vpop.permute.xlu0 %3443 }
 0xa42   : > { %v3476_v5 = vadd.f32 %v3444_v38, %v3267_v50 }
 0xa43   : > { %v6469_v25 = vpop.eup %6468 }
 0xa44   : > { %3493 = vst.msk [vmem:[#allocation4 + $0x78] sm:$0xff] %vm3477_vm3, %v3476_v5  ;;  %v3205_v37 = vpop.permute.xlu1 %3204  ;;  %v4143_v44 = vpack.c.bf16 %v6469_v25, %v6467_v24  ;;  %v3252_v24 = vmul.f32 %v9267_v54, %v3156_v3 }
 0xa45   : > { %3971 = vadd.xlane.f32.xlu1 %v9400_v59  ;;  %v3258_v49 = vmul.f32 %v3205_v37, %v3162_v42  ;;  %v3931_v37 = vld [vmem:[#allocation3 + $0x190] sm:$0xff] }
 0xa46   : > { %6073 = vmatprep.mubr.bf16.mxu0 %v4143_v44  ;;  %v3947_v44 = vmul.f32 %v9391_v11, %v3931_v37 }
 0xa47   : > { %v6471_v52 = vpop.eup %6470 }
 0xa48   : > { %v3215_v16 = vpop.permute.xlu1 %3214  ;;  %v4144_v62 = vpack.c.bf16 %v6471_v52, %v9440_v28 }
 0xa49   : > { %3983 = vadd.xlane.f32.xlu1 %v9430_v34  ;;  %v3160_v34 = vld [vmem:[#allocation4 + $0x20] sm:$0xff]  ;;  %v3260_v48 = vmul.f32 %v3215_v16, %v3164_v12  ;;  %v3930_v16 = vld [vmem:[#allocation3 + $0x188] sm:$0xff] }
 0xa4a   : > { %6074 = vmatmul.mubr.bf16.gmra.mrb[60].mxu0 %v4144_v62  ;;  %v3256_v61 = vmul.f32 %v3195_v20, %v3160_v34 }
 0xa4c   : > { %v3225_v19 = vpop.permute.xlu1 %3224 }
 0xa4d   : > { %3979 = vadd.xlane.f32.xlu1 %v9418_v23  ;;  %v9463_v23 = vpop.permute.xlu0 %4043  ;;  %v3262_v27 = vmul.f32 %v3225_v19, %v3166_v6  ;;  %v3946_v19 = vmul.f32 %v9387_v55, %v3930_v16  ;;  %v3934_v16 = vld [vmem:[#allocation3 + $0x1a8] sm:$0xff] }
 0xa50   : > { %v3235_v40 = vpop.permute.xlu1 %3234 }
 0xa51   : > { %3991 = vadd.xlane.f32.xlu1 %v6471_v52  ;;  %v9466_v32 = vpop.permute.xlu0 %4058  ;;  %v3264_v56 = vmul.f32 %v3235_v40, %v3168_v36 }
 0xa54   : > { %v3245_v60 = vpop.permute.xlu1 %3244 }
 0xa55   : > { %3987 = vadd.xlane.f32.xlu1 %v6469_v25  ;;  %v9470_v7 = vpop.permute.xlu0 %4068  ;;  %v3266_v14 = vmul.f32 %v3245_v60, %v3170_v8  ;;  %v3935_v60 = vld [vmem:[#allocation3 + $0x1b0] sm:$0xff]  ;;  %v3932_v8 = vld [vmem:[#allocation3 + $0x198] sm:$0xff] }
 0xa58   : > { %v3414_v41 = vpop.permute.xlu1 %3413 }
 0xa59   : > { %v3461_v59 = vadd.f32 %v3414_v41, %v3252_v24  ;;  %v9473_v9 = vpop.permute.xlu0 %4078  ;;  %v3951_v24 = vmul.f32 %v9411_v21, %v3935_v60  ;;  %v3937_v21 = vld [vmem:[#allocation3 + $0x1c0] sm:$0xff] }
 0xa5a   : > { %v3953_v42 = vmul.f32 %v9428_v46, %v3937_v21 }
 0xa5b   : > { %3478 = vst.msk [vmem:[#allocation4] sm:$0xff] %vm3477_vm3, %v3461_v59  ;;  %v3933_v59 = vld [vmem:[#allocation3 + $0x1a0] sm:$0xff] }
 0xa5c   : > { %v3418_v28 = vpop.permute.xlu1 %3417  ;;  %v3949_v11 = vmul.f32 %v9394_v58, %v3933_v59 }
 0xa5d   : > { %v3463_v1 = vadd.f32 %v3418_v28, %v3254_v33  ;;  %v9477_v20 = vpop.permute.xlu0 %4098 }
 0xa5f   : > { %3480 = vst.msk [vmem:[#allocation4 + $0x10] sm:$0xff] %vm3477_vm3, %v3463_v1  ;;  %v3939_v1 = vld [vmem:[#allocation3 + $0x1d0] sm:$0xff] }
 0xa60   : > { %v3422_v30 = vpop.permute.xlu1 %3421  ;;  %v3955_v55 = vmul.f32 %v9413_v53, %v3939_v1  ;;  %v3941_v53 = vld [vmem:[#allocation3 + $0x1e0] sm:$0xff]  ;;  %v3944_v1 = vld [vmem:[#allocation3 + $0x1f8] sm:$0xff] }
 0xa61   : > { %v3465_v51 = vadd.f32 %v3422_v30, %v3256_v61  ;;  %v9479_v38 = vpop.permute.xlu0 %4088 }
 0xa63   : > { %3482 = vst.msk [vmem:[#allocation4 + $0x20] sm:$0xff] %vm3477_vm3, %v3465_v51 }
 0xa64   : > { %v3426_v54 = vpop.permute.xlu1 %3425 }
 0xa65   : > { %v3467_v57 = vadd.f32 %v3426_v54, %v3258_v49  ;;  %v9481_v5 = vpop.permute.xlu0 %4118  ;;  %v3943_v54 = vld [vmem:[#allocation3 + $0x1f0] sm:$0xff] }
 0xa66   : > { %v3959_v12 = vmul.f32 %v9433_v4, %v3943_v54 }
 0xa67   : > { %3484 = vst.msk [vmem:[#allocation4 + $0x30] sm:$0xff] %vm3477_vm3, %v3467_v57 }
 0xa68   : > { %v3430_v18 = vpop.permute.xlu1 %3429 }
 0xa69   : > { %v3469_v22 = vadd.f32 %v3430_v18, %v3260_v48  ;;  %v9483_v25 = vpop.permute.xlu0 %4108 }
 0xa6b   : > { %3486 = vst.msk [vmem:[#allocation4 + $0x40] sm:$0xff] %vm3477_vm3, %v3469_v22  ;;  %v3957_v22 = vmul.f32 %v9437_v39, %v3941_v53 }
 0xa6c   : > { %v3434_v17 = vpop.permute.xlu1 %3433 }
 0xa6d   : > { %v3471_v2 = vadd.f32 %v3434_v17, %v3262_v27 }
 0xa6f   : > { %3488 = vst.msk [vmem:[#allocation4 + $0x50] sm:$0xff] %vm3477_vm3, %v3471_v2 }
 0xa70   : > { %v3438_v47 = vpop.permute.xlu1 %3437 }
 0xa71   : > { %v3473_v31 = vadd.f32 %v3438_v47, %v3264_v56  ;;  %v3929_v56 = vld [vmem:[#allocation3 + $0x180] sm:$0xff] }
 0xa72   : > { %v3945_v47 = vmul.f32 %v9309_v10, %v3929_v56  ;;  %v3950_v10 = vmul.f32 %v9323_v13, %v3934_v16  ;;  %v4027_v56 = vld [vmem:[#allocation4 + $0x10] sm:$0xff] }
 0xa73   : > { %3490 = vst.msk [vmem:[#allocation4 + $0x60] sm:$0xff] %vm3477_vm3, %v3473_v31 }
 0xa74   : > { %v3442_v15 = vpop.permute.xlu1 %3441 }
 0xa75   : > { %v3475_v50 = vadd.f32 %v3442_v15, %v3266_v14  ;;  %v3948_v14 = vmul.f32 %v9316_v63, %v3932_v8 }
 0xa77   : > { %3492 = vst.msk [vmem:[#allocation4 + $0x70] sm:$0xff] %vm3477_vm3, %v3475_v50  ;;  %v3936_v50 = vld [vmem:[#allocation3 + $0x1b8] sm:$0xff] }
 0xa78   : > { %v9490_v33 = vpop.permute.xlu1 %4048 }
 0xa7c   : > { %v9496_v61 = vpop.permute.xlu1 %4053 }
 0xa80   : > { %v9500_v58 = vpop.permute.xlu1 %4063 }
 0xa84   : > { %v9506_v6 = vpop.permute.xlu1 %4073 }
 0xa88   : > { %v9509_v17 = vpop.permute.xlu1 %4093 }
 0xa8c   : > { %v9511_v2 = vpop.permute.xlu1 %4083 }
 0xa8e   : > { %v3966_v52 = vpop.xlane.xlu0 %3965 }
 0xa8f   : > { %v3995_v62 = vadd.f32 %v3966_v52, %v3947_v44  ;;  %v3952_v44 = vmul.f32 %v9327_v45, %v3936_v50  ;;  %v3938_v45 = vld [vmem:[#allocation3 + $0x1c8] sm:$0xff] }
 0xa90   : > { %v9513_v36 = vpop.permute.xlu1 %4113  ;;  %v3954_v13 = vmul.f32 %v9335_v35, %v3938_v45 }
 0xa91   : > { %4011 = vst.msk [vmem:[#allocation3 + $0x190] sm:$0xff] %vm691_vm0, %v3995_v62 }
 0xa92   : > { %v3964_v40 = vpop.xlane.xlu0 %3963 }
 0xa93   : > { %v3994_v3 = vadd.f32 %v3964_v40, %v3946_v19  ;;  %v3940_v40 = vld [vmem:[#allocation3 + $0x1d8] sm:$0xff] }
 0xa94   : > { %v9515_v4 = vpop.permute.xlu1 %4103 }
 0xa95   : > { %4010 = vst.msk [vmem:[#allocation3 + $0x188] sm:$0xff] %vm691_vm0, %v3994_v3  ;;  %v3956_v3 = vmul.f32 %v9331_v0, %v3940_v40 }
 0xa96   : > { %v3974_v41 = vpop.xlane.xlu0 %3973 }
 0xa97   : > { %v3999_v43 = vadd.f32 %v3974_v41, %v3951_v24 }
 0xa99   : > { %4015 = vst.msk [vmem:[#allocation3 + $0x1b0] sm:$0xff] %vm691_vm0, %v3999_v43 }
 0xa9a   : > { %v3970_v28 = vpop.xlane.xlu0 %3969 }
 0xa9b   : > { %v3997_v34 = vadd.f32 %v3970_v28, %v3949_v11 }
 0xa9d   : > { %4013 = vst.msk [vmem:[#allocation3 + $0x1a0] sm:$0xff] %vm691_vm0, %v3997_v34 }
 0xa9e   : > { %v3982_v30 = vpop.xlane.xlu0 %3981 }
 0xa9f   : > { %v4003_v51 = vadd.f32 %v3982_v30, %v3955_v55  ;;  %v3960_v55 = vmul.f32 %v9340_v29, %v3944_v1 }
 0xaa1   : > { %4019 = vst.msk [vmem:[#allocation3 + $0x1d0] sm:$0xff] %vm691_vm0, %v4003_v51  ;;  %v3942_v51 = vld [vmem:[#allocation3 + $0x1e8] sm:$0xff] }
 0xaa2   : > { %v3978_v49 = vpop.xlane.xlu0 %3977  ;;  %v3958_v54 = vmul.f32 %v9345_v26, %v3942_v51 }
 0xaa3   : > { %v4001_v57 = vadd.f32 %v3978_v49, %v3953_v42 }
 0xaa5   : > { %4017 = vst.msk [vmem:[#allocation3 + $0x1c0] sm:$0xff] %vm691_vm0, %v4001_v57 }
 0xaa6   : > { %v3990_v48 = vpop.xlane.xlu0 %3989 }
 0xaa7   : > { %v4007_v18 = vadd.f32 %v3990_v48, %v3959_v12 }
 0xaa9   : > { %4023 = vst.msk [vmem:[#allocation3 + $0x1f0] sm:$0xff] %vm691_vm0, %v4007_v18 }
 0xaaa   : > { %v3986_v27 = vpop.xlane.xlu0 %3985 }
 0xaab   : > { %v4005_v46 = vadd.f32 %v3986_v27, %v3957_v22 }
 0xaad   : > { %4021 = vst.msk [vmem:[#allocation3 + $0x1e0] sm:$0xff] %vm691_vm0, %v4005_v46 }
 0xac6   : > { %v3962_v31 = vpop.xlane.xlu1 %3961 }
 0xac7   : > { %v3993_v39 = vadd.f32 %v3962_v31, %v3945_v47  ;;  %v4123_v47 = vmul.f32 %v9496_v61, %v4027_v56  ;;  %v4028_v31 = vld [vmem:[#allocation4 + $0x18] sm:$0xff] }
 0xac9   : > { %4009 = vst.msk [vmem:[#allocation3 + $0x180] sm:$0xff] %vm691_vm0, %v3993_v39  ;;  %v4025_v39 = vld [vmem:[#allocation4] sm:$0xff] }
 0xaca   : > { %v3968_v15 = vpop.xlane.xlu1 %3967 }
 0xacb   : > { %v3996_v37 = vadd.f32 %v3968_v15, %v3948_v14  ;;  %v4124_v14 = vmul.f32 %v9466_v32, %v4028_v31 }
 0xacd   : > { %4012 = vst.msk [vmem:[#allocation3 + $0x198] sm:$0xff] %vm691_vm0, %v3996_v37 }
 0xace   : > { %v3976_v52 = vpop.xlane.xlu1 %3975 }
 0xacf   : > { %v4000_v62 = vadd.f32 %v3976_v52, %v3952_v44  ;;  %v4121_v44 = vmul.f32 %v9463_v23, %v4025_v39  ;;  %v4026_v52 = vld [vmem:[#allocation4 + $0x8] sm:$0xff] }
 0xad1   : > { %4016 = vst.msk [vmem:[#allocation3 + $0x1b8] sm:$0xff] %vm691_vm0, %v4000_v62  ;;  %v4122_v62 = vmul.f32 %v9490_v33, %v4026_v52 }
 0xad2   : > { %v3972_v19 = vpop.xlane.xlu1 %3971 }
 0xad3   : > { %v3998_v60 = vadd.f32 %v3972_v19, %v3950_v10  ;;  %v4031_v10 = vld [vmem:[#allocation4 + $0x30] sm:$0xff] }
 0xad4   : > { %v4127_v40 = vmul.f32 %v9506_v6, %v4031_v10 }
 0xad5   : > { %4014 = vst.msk [vmem:[#allocation3 + $0x1a8] sm:$0xff] %vm691_vm0, %v3998_v60  ;;  %v6063_v63 = vpop.f32.mrb[48].mxu0  ;;  %v4032_v60 = vld [vmem:[#allocation4 + $0x38] sm:$0xff] }
 0xad6   : > { %v3984_v24 = vpop.xlane.xlu1 %3983  ;;  %4286 = vrot.lane.b32.xlu1 %v6063_v63, %s6742_s28  ;;  %v4203_v41 = vpop.f32.mrb[49].mxu0 }
 0xad7   : > { %v4004_v59 = vadd.f32 %v3984_v24, %v3956_v3  ;;  %v6064_v43 = vpop.f32.mrb[50].mxu0  ;;  %v4128_v3 = vmul.f32 %v9473_v9, %v4032_v60  ;;  %v4029_v24 = vld [vmem:[#allocation4 + $0x20] sm:$0xff] }
 0xad8   : > { %v4206_v11 = vpop.f32.mrb[51].mxu0  ;;  %4288 = vrot.lane.b32.xlu0 %v6064_v43, %s6742_s28  ;;  %v4125_v33 = vmul.f32 %v9500_v58, %v4029_v24 }
 0xad9   : > { %4020 = vst.msk [vmem:[#allocation3 + $0x1d8] sm:$0xff] %vm691_vm0, %v4004_v59  ;;  %v4030_v59 = vld [vmem:[#allocation4 + $0x28] sm:$0xff] }
 0xada   : > { %v3980_v28 = vpop.xlane.xlu1 %3979  ;;  %4282 = vrot.lane.b32.xlu1 %v4203_v41, %s6742_s28  ;;  %v4126_v6 = vmul.f32 %v9470_v7, %v4030_v59 }
 0xadb   : > { %v4002_v34 = vadd.f32 %v3980_v28, %v3954_v13  ;;  %v4035_v13 = vld [vmem:[#allocation4 + $0x50] sm:$0xff] }
 0xadc   : > { %4284 = vrot.lane.b32.xlu0 %v4206_v11, %s6742_s28  ;;  %v4131_v9 = vmul.f32 %v9509_v17, %v4035_v13 }
 0xadd   : > { %4018 = vst.msk [vmem:[#allocation3 + $0x1c8] sm:$0xff] %vm691_vm0, %v4002_v34  ;;  %v6067_v0 = vpop.f32.mrb[52].mxu0  ;;  %v4036_v34 = vld [vmem:[#allocation4 + $0x58] sm:$0xff] }
 0xade   : > { %v3992_v30 = vpop.xlane.xlu1 %3991  ;;  %4294 = vrot.lane.b32.xlu1 %v6067_v0, %s6742_s28  ;;  %v4219_v21 = vpop.f32.mrb[53].mxu0  ;;  %v4132_v58 = vmul.f32 %v9477_v20, %v4036_v34 }
 0xadf   : > { %v4008_v42 = vadd.f32 %v3992_v30, %v3960_v55  ;;  %v6068_v49 = vpop.f32.mrb[54].mxu0  ;;  %v4033_v30 = vld [vmem:[#allocation4 + $0x40] sm:$0xff] }
 0xae0   : > { %v4222_v35 = vpop.f32.mrb[55].mxu0  ;;  %4296 = vrot.lane.b32.xlu0 %v6068_v49, %s6742_s28  ;;  %v4129_v7 = vmul.f32 %v9511_v2, %v4033_v30  ;;  %v4038_v2 = vld [vmem:[#allocation4 + $0x68] sm:$0xff] }
 0xae1   : > { %4024 = vst.msk [vmem:[#allocation3 + $0x1f8] sm:$0xff] %vm691_vm0, %v4008_v42  ;;  %v4034_v42 = vld [vmem:[#allocation4 + $0x48] sm:$0xff] }
 0xae2   : > { %v3988_v57 = vpop.xlane.xlu1 %3987  ;;  %4290 = vrot.lane.b32.xlu1 %v4219_v21, %s6742_s28  ;;  %v4130_v17 = vmul.f32 %v9479_v38, %v4034_v42 }
 0xae3   : > { %v4006_v12 = vadd.f32 %v3988_v57, %v3958_v54  ;;  %v4037_v57 = vld [vmem:[#allocation4 + $0x60] sm:$0xff] }
 0xae4   : > { %4292 = vrot.lane.b32.xlu0 %v4222_v35, %s6742_s28 }
 0xae5   : > { %4022 = vst.msk [vmem:[#allocation3 + $0x1e8] sm:$0xff] %vm691_vm0, %v4006_v12  ;;  %v6071_v29 = vpop.f32.mrb[56].mxu0  ;;  %v4133_v12 = vmul.f32 %v9515_v4, %v4037_v57 }
 0xae6   : > { %4302 = vrot.lane.b32.xlu1 %v6071_v29, %s6742_s28  ;;  %v4235_v48 = vpop.f32.mrb[57].mxu0 }
 0xae7   : > { %v6072_v53 = vpop.f32.mrb[58].mxu0 }
 0xae8   : > { %v4238_v18 = vpop.f32.mrb[59].mxu0  ;;  %4304 = vrot.lane.b32.xlu0 %v6072_v53, %s6742_s28 }
 0xaea   : > { %4298 = vrot.lane.b32.xlu1 %v4235_v48, %s6742_s28  ;;  %v4134_v48 = vmul.f32 %v9483_v25, %v4038_v2 }
 0xaec   : > { %4300 = vrot.lane.b32.xlu0 %v4238_v18, %s6742_s28  ;;  %v4039_v18 = vld [vmem:[#allocation4 + $0x70] sm:$0xff] }
 0xaed   : > { %v4135_v38 = vmul.f32 %v9513_v36, %v4039_v18 }
 0xb1d   : > { %v6075_v26 = vpop.f32.mrb[60].mxu0 }
 0xb1e   : > { %v4251_v22 = vpop.f32.mrb[61].mxu0 }
 0xb1f   : > { %4306 = vrot.lane.b32.xlu1 %v4251_v22, %s6742_s28  ;;  %v6076_v27 = vpop.f32.mrb[62].mxu0 }
 0xb20   : > { %v4254_v46 = vpop.f32.mrb[63].mxu0 }
 0xb21   : > { %4308 = vrot.lane.b32.xlu0 %v4254_v46, %s6742_s28 }
 0xb23   : > { %4310 = vrot.lane.b32.xlu1 %v6075_v26, %s6742_s28 }
 0xb25   : > { %4312 = vrot.lane.b32.xlu0 %v6076_v27, %s6742_s28  ;;  %v4040_v27 = vld [vmem:[#allocation4 + $0x78] sm:$0xff] }
 0xb26   : > { %v4136_v56 = vmul.f32 %v9481_v5, %v4040_v27 }
 0xb48   : > { %v4287_v8 = vpop.permute.xlu1 %4286 }
 0xb49   : > { %v4332_v15 = vadd.f32 %v4287_v8, %v4123_v47 }
 0xb4a   : > { %v4289_v50 = vpop.permute.xlu0 %4288 }
 0xb4b   : > { %4349 = vst.msk [vmem:[#allocation4 + $0x10] sm:$0xff] %vm4346_vm4, %v4332_v15  ;;  %v4333_v37 = vadd.f32 %v4289_v50, %v4124_v14 }
 0xb4c   : > { %v4283_v16 = vpop.permute.xlu1 %4282 }
 0xb4d   : > { %4350 = vst.msk [vmem:[#allocation4 + $0x18] sm:$0xff] %vm4346_vm4, %v4333_v37  ;;  %v4330_v61 = vadd.f32 %v4283_v16, %v4121_v44 }
 0xb4e   : > { %v4285_v19 = vpop.permute.xlu0 %4284 }
 0xb4f   : > { %4347 = vst.msk [vmem:[#allocation4] sm:$0xff] %vm4346_vm4, %v4330_v61  ;;  %v4331_v32 = vadd.f32 %v4285_v19, %v4122_v62 }
 0xb50   : > { %v4295_v63 = vpop.permute.xlu1 %4294 }
 0xb51   : > { %4348 = vst.msk [vmem:[#allocation4 + $0x8] sm:$0xff] %vm4346_vm4, %v4331_v32  ;;  %v4336_v23 = vadd.f32 %v4295_v63, %v4127_v40 }
 0xb52   : > { %v4297_v41 = vpop.permute.xlu0 %4296 }
 0xb53   : > { %4353 = vst.msk [vmem:[#allocation4 + $0x30] sm:$0xff] %vm4346_vm4, %v4336_v23  ;;  %v4337_v45 = vadd.f32 %v4297_v41, %v4128_v3 }
 0xb54   : > { %v4291_v43 = vpop.permute.xlu1 %4290 }
 0xb55   : > { %4354 = vst.msk [vmem:[#allocation4 + $0x38] sm:$0xff] %vm4346_vm4, %v4337_v45  ;;  %v4334_v11 = vadd.f32 %v4291_v43, %v4125_v33 }
 0xb56   : > { %v4293_v28 = vpop.permute.xlu0 %4292 }
 0xb57   : > { %4351 = vst.msk [vmem:[#allocation4 + $0x20] sm:$0xff] %vm4346_vm4, %v4334_v11  ;;  %v4335_v1 = vadd.f32 %v4293_v28, %v4126_v6 }
 0xb58   : > { %v4303_v0 = vpop.permute.xlu1 %4302 }
 0xb59   : > { %4352 = vst.msk [vmem:[#allocation4 + $0x28] sm:$0xff] %vm4346_vm4, %v4335_v1  ;;  %v4340_v55 = vadd.f32 %v4303_v0, %v4131_v9 }
 0xb5a   : > { %v4305_v21 = vpop.permute.xlu0 %4304 }
 0xb5b   : > { %4357 = vst.msk [vmem:[#allocation4 + $0x50] sm:$0xff] %vm4346_vm4, %v4340_v55  ;;  %v4341_v51 = vadd.f32 %v4305_v21, %v4132_v58 }
 0xb5c   : > { %v4299_v49 = vpop.permute.xlu1 %4298 }
 0xb5d   : > { %4358 = vst.msk [vmem:[#allocation4 + $0x58] sm:$0xff] %vm4346_vm4, %v4341_v51  ;;  %v4338_v35 = vadd.f32 %v4299_v49, %v4129_v7 }
 0xb5e   : > { %v4301_v54 = vpop.permute.xlu0 %4300 }
 0xb5f   : > { %4355 = vst.msk [vmem:[#allocation4 + $0x40] sm:$0xff] %vm4346_vm4, %v4338_v35  ;;  %v4339_v20 = vadd.f32 %v4301_v54, %v4130_v17 }
 0xb61   : > { %4356 = vst.msk [vmem:[#allocation4 + $0x48] sm:$0xff] %vm4346_vm4, %v4339_v20 }
 0xb91   : > { %v4307_v29 = vpop.permute.xlu1 %4306 }
 0xb92   : > { %v4342_v53 = vadd.f32 %v4307_v29, %v4133_v12 }
 0xb93   : > { %v4309_v26 = vpop.permute.xlu0 %4308 }
 0xb94   : > { %4359 = vst.msk [vmem:[#allocation4 + $0x60] sm:$0xff] %vm4346_vm4, %v4342_v53  ;;  %v4343_v22 = vadd.f32 %v4309_v26, %v4134_v48 }
 0xb95   : > { %v4311_v46 = vpop.permute.xlu1 %4310 }
 0xb96   : > { %4360 = vst.msk [vmem:[#allocation4 + $0x68] sm:$0xff] %vm4346_vm4, %v4343_v22  ;;  %v4344_v47 = vadd.f32 %v4311_v46, %v4135_v38 }
 0xb97   : > { %v4313_v4 = vpop.permute.xlu0 %4312 }
 0xb98   : > { %4361 = vst.msk [vmem:[#allocation4 + $0x70] sm:$0xff] %vm4346_vm4, %v4344_v47  ;;  %v4345_v31 = vadd.f32 %v4313_v4, %v4136_v56 }
 0xb9a   : > { %4362 = vst.msk [vmem:[#allocation4 + $0x78] sm:$0xff] %vm4346_vm4, %v4345_v31 }
 0xb9b PF: > { %v4384_v25 = vld [vmem:[#allocation3 + $0x10] sm:$0xff]  ;;  %v4382_v8 = vld [vmem:[#allocation3] sm:$0xff]  ;;  %v4385_v36 = vld [vmem:[#allocation3 + $0x18] sm:$0xff]  ;;  %v6745_v39 = vmov 0   ;;  %vm4590_vm5 = vcmask 257024   ;;  %vm4816_vm6 = vcmask 519424  }
 0xb9c   : > { %6523 = vset.pattern.permute.xlu1 %v6745_v39  ;;  %6522 = vset.pattern.permute.xlu0 %v6745_v39  ;;  %6524 = vrcp.f32 %v4384_v25  ;;  %v4383_v14 = vld [vmem:[#allocation3 + $0x8] sm:$0xff]  ;;  %v4386_v15 = vld [vmem:[#allocation3 + $0x20] sm:$0xff]  ;;  %v4389_v50 = vld [vmem:[#allocation3 + $0x38] sm:$0xff]  ;;  %vm5042_vm7 = vcmask 781824   ;;  %vm5268_vm8 = vcmask 1044224  }
 0xb9d   : > { %6526 = vrcp.f32 %v4382_v8  ;;  %v4387_v5 = vld [vmem:[#allocation3 + $0x28] sm:$0xff]  ;;  %v4388_v37 = vld [vmem:[#allocation3 + $0x30] sm:$0xff]  ;;  %v4390_v61 = vld [vmem:[#allocation3 + $0x40] sm:$0xff] }
 0xb9e   : > { %6528 = vrcp.f32 %v4385_v36  ;;  %v4391_v16 = vld [vmem:[#allocation3 + $0x48] sm:$0xff]  ;;  %v4393_v19 = vld [vmem:[#allocation3 + $0x58] sm:$0xff]  ;;  %v4392_v32 = vld [vmem:[#allocation3 + $0x50] sm:$0xff] }
 0xb9f   : > { %6530 = vrcp.f32 %v4383_v14  ;;  %v4395_v63 = vld [vmem:[#allocation3 + $0x68] sm:$0xff]  ;;  %v4394_v23 = vld [vmem:[#allocation3 + $0x60] sm:$0xff]  ;;  %v4397_v41 = vld [vmem:[#allocation3 + $0x78] sm:$0xff] }
 0xba0   : > { %6532 = vrcp.f32 %v4387_v5  ;;  %v4396_v45 = vld [vmem:[#allocation3 + $0x70] sm:$0xff]  ;;  %v4609_v43 = vld [vmem:[#allocation3 + $0x88] sm:$0xff]  ;;  %v4608_v11 = vld [vmem:[#allocation3 + $0x80] sm:$0xff] }
 0xba1   : > { %6534 = vrcp.f32 %v4386_v15  ;;  %v4611_v28 = vld [vmem:[#allocation3 + $0x98] sm:$0xff]  ;;  %v4610_v1 = vld [vmem:[#allocation3 + $0x90] sm:$0xff]  ;;  %v4613_v0 = vld [vmem:[#allocation3 + $0xa8] sm:$0xff] }
 0xba2   : > { %6536 = vrcp.f32 %v4389_v50  ;;  %v4612_v55 = vld [vmem:[#allocation3 + $0xa0] sm:$0xff]  ;;  %v4615_v21 = vld [vmem:[#allocation3 + $0xb8] sm:$0xff]  ;;  %v4614_v51 = vld [vmem:[#allocation3 + $0xb0] sm:$0xff] }
 0xba3   : > { %6538 = vrcp.f32 %v4388_v37  ;;  %v4617_v49 = vld [vmem:[#allocation3 + $0xc8] sm:$0xff]  ;;  %v4616_v35 = vld [vmem:[#allocation3 + $0xc0] sm:$0xff]  ;;  %v4619_v20 = vld [vmem:[#allocation3 + $0xd8] sm:$0xff] }
 0xba4   : > { %6540 = vrcp.f32 %v4391_v16  ;;  %v4618_v12 = vld [vmem:[#allocation3 + $0xd0] sm:$0xff]  ;;  %v4621_v29 = vld [vmem:[#allocation3 + $0xe8] sm:$0xff]  ;;  %v4620_v53 = vld [vmem:[#allocation3 + $0xe0] sm:$0xff] }
 0xba5   : > { %6542 = vrcp.f32 %v4390_v61  ;;  %v4623_v26 = vld [vmem:[#allocation3 + $0xf8] sm:$0xff]  ;;  %v4622_v22 = vld [vmem:[#allocation3 + $0xf0] sm:$0xff]  ;;  %v4835_v46 = vld [vmem:[#allocation3 + $0x108] sm:$0xff] }
 0xba6   : > { %v6525_v44 = vpop.eup %6524  ;;  %6544 = vrcp.f32 %v4393_v19  ;;  %v4834_v47 = vld [vmem:[#allocation3 + $0x100] sm:$0xff]  ;;  %v4837_v31 = vld [vmem:[#allocation3 + $0x118] sm:$0xff]  ;;  %v4836_v8 = vld [vmem:[#allocation3 + $0x110] sm:$0xff] }
 0xba7   : > { %v6527_v52 = vpop.eup %6526  ;;  %4442 = vperm.xlu1 %6523, %v6525_v44   ;;  %6546 = vrcp.f32 %v4392_v32  ;;  %v4839_v39 = vld [vmem:[#allocation3 + $0x128] sm:$0xff]  ;;  %v4838_v5 = vld [vmem:[#allocation3 + $0x120] sm:$0xff]  ;;  %v4841_v50 = vld [vmem:[#allocation3 + $0x138] sm:$0xff] }
 0xba8   : > { %v6529_v62 = vpop.eup %6528  ;;  %4432 = vperm.xlu0 %6522, %v6527_v52   ;;  %6548 = vrcp.f32 %v4395_v63  ;;  %v4840_v44 = vld [vmem:[#allocation3 + $0x130] sm:$0xff]  ;;  %v4843_v16 = vld [vmem:[#allocation3 + $0x148] sm:$0xff]  ;;  %v4842_v61 = vld [vmem:[#allocation3 + $0x140] sm:$0xff] }
 0xba9   : > { %v6531_v10 = vpop.eup %6530  ;;  %6550 = vrcp.f32 %v4394_v23  ;;  %v4845_v19 = vld [vmem:[#allocation3 + $0x158] sm:$0xff]  ;;  %v4844_v32 = vld [vmem:[#allocation3 + $0x150] sm:$0xff]  ;;  %v4847_v63 = vld [vmem:[#allocation3 + $0x168] sm:$0xff] }
 0xbaa   : > { %v6533_v40 = vpop.eup %6532  ;;  %6552 = vrcp.f32 %v4397_v41  ;;  %v4846_v23 = vld [vmem:[#allocation3 + $0x160] sm:$0xff]  ;;  %v4849_v41 = vld [vmem:[#allocation3 + $0x178] sm:$0xff] }
 0xbab   : > { %4447 = vperm.xlu1 %6523, %v6529_v62   ;;  %v6535_v60 = vpop.eup %6534  ;;  %6554 = vrcp.f32 %v4396_v45  ;;  %v4848_v45 = vld [vmem:[#allocation3 + $0x170] sm:$0xff] }
 0xbac   : > { %4437 = vperm.xlu0 %6522, %v6531_v10   ;;  %v6537_v3 = vpop.eup %6536  ;;  %6556 = vrcp.f32 %v4609_v43  ;;  %v5061_v43 = vld [vmem:[#allocation3 + $0x188] sm:$0xff] }
 0xbad   : > { %v6539_v24 = vpop.eup %6538  ;;  %6558 = vrcp.f32 %v4608_v11  ;;  %v5060_v11 = vld [vmem:[#allocation3 + $0x180] sm:$0xff] }
 0xbae   : > { %v6541_v33 = vpop.eup %6540  ;;  %6560 = vrcp.f32 %v4611_v28  ;;  %v5063_v28 = vld [vmem:[#allocation3 + $0x198] sm:$0xff] }
 0xbaf   : > { %4457 = vperm.xlu1 %6523, %v6533_v40   ;;  %v6543_v59 = vpop.eup %6542  ;;  %6562 = vrcp.f32 %v4610_v1  ;;  %v5062_v1 = vld [vmem:[#allocation3 + $0x190] sm:$0xff] }
 0xbb0   : > { %4452 = vperm.xlu0 %6522, %v6535_v60   ;;  %v6545_v6 = vpop.eup %6544  ;;  %6564 = vrcp.f32 %v4613_v0  ;;  %v5065_v0 = vld [vmem:[#allocation3 + $0x1a8] sm:$0xff] }
 0xbb1   : > { %v6547_v13 = vpop.eup %6546  ;;  %6566 = vrcp.f32 %v4612_v55  ;;  %v5064_v55 = vld [vmem:[#allocation3 + $0x1a0] sm:$0xff] }
 0xbb2   : > { %v6549_v9 = vpop.eup %6548  ;;  %6568 = vrcp.f32 %v4615_v21  ;;  %v5067_v21 = vld [vmem:[#allocation3 + $0x1b8] sm:$0xff] }
 0xbb3   : > { %4467 = vperm.xlu1 %6523, %v6537_v3   ;;  %v6551_v34 = vpop.eup %6550  ;;  %6570 = vrcp.f32 %v4614_v51  ;;  %v5066_v51 = vld [vmem:[#allocation3 + $0x1b0] sm:$0xff] }
 0xbb4   : > { %4462 = vperm.xlu0 %6522, %v6539_v24   ;;  %v6553_v58 = vpop.eup %6552  ;;  %6572 = vrcp.f32 %v4617_v49  ;;  %v5069_v49 = vld [vmem:[#allocation3 + $0x1c8] sm:$0xff] }
 0xbb5   : > { %v6555_v30 = vpop.eup %6554  ;;  %6574 = vrcp.f32 %v4616_v35  ;;  %v5068_v35 = vld [vmem:[#allocation3 + $0x1c0] sm:$0xff] }
 0xbb6   : > { %v6557_v7 = vpop.eup %6556  ;;  %6576 = vrcp.f32 %v4619_v20  ;;  %v5071_v20 = vld [vmem:[#allocation3 + $0x1d8] sm:$0xff] }
 0xbb7   : > { %4477 = vperm.xlu1 %6523, %v6541_v33   ;;  %v6559_v42 = vpop.eup %6558  ;;  %6578 = vrcp.f32 %v4618_v12  ;;  %v5070_v12 = vld [vmem:[#allocation3 + $0x1d0] sm:$0xff] }
 0xbb8   : > { %4472 = vperm.xlu0 %6522, %v6543_v59   ;;  %v6561_v17 = vpop.eup %6560  ;;  %6580 = vrcp.f32 %v4621_v29  ;;  %v5073_v29 = vld [vmem:[#allocation3 + $0x1e8] sm:$0xff] }
 0xbb9   : > { %v6563_v54 = vpop.eup %6562  ;;  %6582 = vrcp.f32 %v4620_v53  ;;  %v5072_v53 = vld [vmem:[#allocation3 + $0x1e0] sm:$0xff] }
 0xbba   : > { %v6565_v57 = vpop.eup %6564  ;;  %6584 = vrcp.f32 %v4623_v26  ;;  %v5075_v26 = vld [vmem:[#allocation3 + $0x1f8] sm:$0xff] }
 0xbbb   : > { %4487 = vperm.xlu1 %6523, %v6545_v6   ;;  %v6567_v2 = vpop.eup %6566  ;;  %6586 = vrcp.f32 %v4622_v22  ;;  %v5074_v22 = vld [vmem:[#allocation3 + $0x1f0] sm:$0xff] }
 0xbbc   : > { %4482 = vperm.xlu0 %6522, %v6547_v13   ;;  %v6569_v48 = vpop.eup %6568  ;;  %6588 = vrcp.f32 %v4835_v46 }
 0xbbd   : > { %v6571_v18 = vpop.eup %6570  ;;  %6590 = vrcp.f32 %v4834_v47 }
 0xbbe   : > { %v6573_v38 = vpop.eup %6572  ;;  %6592 = vrcp.f32 %v4837_v31 }
 0xbbf   : > { %4497 = vperm.xlu1 %6523, %v6549_v9   ;;  %v6575_v27 = vpop.eup %6574  ;;  %6594 = vrcp.f32 %v4836_v8  ;;  %v9581_v8 = vld [vmem:[#allocation4 + $0x10] sm:$0xff] }
 0xbc0   : > { %4492 = vperm.xlu0 %6522, %v6551_v34   ;;  %v6577_v56 = vpop.eup %6576  ;;  %6596 = vrcp.f32 %v4839_v39 }
 0xbc1   : > { %v6579_v4 = vpop.eup %6578  ;;  %6598 = vrcp.f32 %v4838_v5 }
 0xbc2   : > { %v6581_v25 = vpop.eup %6580  ;;  %6600 = vrcp.f32 %v4841_v50  ;;  %v9587_v50 = vld [vmem:[#allocation4 + $0x18] sm:$0xff] }
 0xbc3   : > { %4507 = vperm.xlu1 %6523, %v6553_v58   ;;  %v6583_v36 = vpop.eup %6582  ;;  %6602 = vrcp.f32 %v4840_v44  ;;  %v9589_v44 = vld [vmem:[#allocation4 + $0x8] sm:$0xff] }
 0xbc4   : > { %4502 = vperm.xlu0 %6522, %v6555_v30   ;;  %v6585_v14 = vpop.eup %6584  ;;  %6604 = vrcp.f32 %v4843_v16 }
 0xbc5   : > { %v6587_v15 = vpop.eup %6586  ;;  %6606 = vrcp.f32 %v4842_v61 }
 0xbc6   : > { %v6589_v37 = vpop.eup %6588  ;;  %6608 = vrcp.f32 %v4845_v19  ;;  %v9597_v19 = vld [vmem:[#allocation4 + $0x28] sm:$0xff] }
 0xbc7   : > { %4663 = vperm.xlu1 %6523, %v6557_v7   ;;  %v6591_v52 = vpop.eup %6590  ;;  %6610 = vrcp.f32 %v4844_v32  ;;  %v9599_v32 = vld [vmem:[#allocation4 + $0x20] sm:$0xff] }
 0xbc8   : > { %4658 = vperm.xlu0 %6522, %v6559_v42   ;;  %v6593_v62 = vpop.eup %6592  ;;  %6612 = vrcp.f32 %v4847_v63 }
 0xbc9   : > { %v6595_v10 = vpop.eup %6594  ;;  %6614 = vrcp.f32 %v4846_v23 }
 0xbca   : > { %v6597_v40 = vpop.eup %6596  ;;  %6616 = vrcp.f32 %v4849_v41  ;;  %v9607_v41 = vld [vmem:[#allocation4 + $0x38] sm:$0xff] }
 0xbcb   : > { %4673 = vperm.xlu1 %6523, %v6561_v17   ;;  %v6599_v60 = vpop.eup %6598  ;;  %6618 = vrcp.f32 %v4848_v45  ;;  %v9609_v45 = vld [vmem:[#allocation4 + $0x30] sm:$0xff] }
 0xbcc   : > { %4668 = vperm.xlu0 %6522, %v6563_v54   ;;  %v6601_v3 = vpop.eup %6600  ;;  %6620 = vrcp.f32 %v5061_v43 }
 0xbcd   : > { %v6603_v24 = vpop.eup %6602  ;;  %6622 = vrcp.f32 %v5060_v11 }
 0xbce   : > { %v6605_v33 = vpop.eup %6604  ;;  %6624 = vrcp.f32 %v5063_v28  ;;  %v9617_v28 = vld [vmem:[#allocation4 + $0x48] sm:$0xff] }
 0xbcf   : > { %4683 = vperm.xlu1 %6523, %v6565_v57   ;;  %v6607_v59 = vpop.eup %6606  ;;  %6626 = vrcp.f32 %v5062_v1  ;;  %v9619_v1 = vld [vmem:[#allocation4 + $0x40] sm:$0xff] }
 0xbd0   : > { %4678 = vperm.xlu0 %6522, %v6567_v2   ;;  %v6609_v6 = vpop.eup %6608  ;;  %6628 = vrcp.f32 %v5065_v0 }
 0xbd1   : > { %v6611_v13 = vpop.eup %6610  ;;  %6630 = vrcp.f32 %v5064_v55 }
 0xbd2   : > { %v6613_v9 = vpop.eup %6612  ;;  %6632 = vrcp.f32 %v5067_v21  ;;  %v9627_v21 = vld [vmem:[#allocation4 + $0x58] sm:$0xff] }
 0xbd3   : > { %4693 = vperm.xlu1 %6523, %v6569_v48   ;;  %v6615_v34 = vpop.eup %6614  ;;  %6634 = vrcp.f32 %v5066_v51  ;;  %v9629_v51 = vld [vmem:[#allocation4 + $0x50] sm:$0xff] }
 0xbd4   : > { %4688 = vperm.xlu0 %6522, %v6571_v18   ;;  %v6617_v58 = vpop.eup %6616  ;;  %6636 = vrcp.f32 %v5069_v49 }
 0xbd5   : > { %v6619_v30 = vpop.eup %6618  ;;  %6638 = vrcp.f32 %v5068_v35 }
 0xbd6   : > { %v6621_v7 = vpop.eup %6620  ;;  %6640 = vrcp.f32 %v5071_v20  ;;  %v9637_v20 = vld [vmem:[#allocation4 + $0x68] sm:$0xff] }
 0xbd7   : > { %4703 = vperm.xlu1 %6523, %v6573_v38   ;;  %v6623_v42 = vpop.eup %6622  ;;  %6642 = vrcp.f32 %v5070_v12  ;;  %v9639_v12 = vld [vmem:[#allocation4 + $0x60] sm:$0xff] }
 0xbd8   : > { %4698 = vperm.xlu0 %6522, %v6575_v27   ;;  %v6625_v17 = vpop.eup %6624  ;;  %6644 = vrcp.f32 %v5073_v29 }
 0xbd9   : > { %v6627_v54 = vpop.eup %6626  ;;  %6646 = vrcp.f32 %v5072_v53 }
 0xbda   : > { %v6629_v57 = vpop.eup %6628  ;;  %6648 = vrcp.f32 %v5075_v26  ;;  %v9647_v26 = vld [vmem:[#allocation4 + $0x78] sm:$0xff] }
 0xbdb   : > { %4713 = vperm.xlu1 %6523, %v6577_v56   ;;  %v6631_v2 = vpop.eup %6630  ;;  %6650 = vrcp.f32 %v5074_v22  ;;  %v9649_v22 = vld [vmem:[#allocation4 + $0x70] sm:$0xff] }
 0xbdc   : > { %4708 = vperm.xlu0 %6522, %v6579_v4   ;;  %v6633_v48 = vpop.eup %6632 }
 0xbdd   : > { %v6635_v18 = vpop.eup %6634 }
 0xbde   : > { %v6637_v38 = vpop.eup %6636 }
 0xbdf   : > { %4723 = vperm.xlu1 %6523, %v6581_v25   ;;  %v6639_v27 = vpop.eup %6638 }
 0xbe0   : > { %4718 = vperm.xlu0 %6522, %v6583_v36   ;;  %v6641_v46 = vpop.eup %6640  ;;  %v9583_v36 = vld [vmem:[#allocation4] sm:$0xff] }
 0xbe1   : > { %v6643_v56 = vpop.eup %6642 }
 0xbe2   : > { %v6645_v47 = vpop.eup %6644 }
 0xbe3   : > { %4733 = vperm.xlu1 %6523, %v6585_v14   ;;  %v6647_v4 = vpop.eup %6646 }
 0xbe4   : > { %4728 = vperm.xlu0 %6522, %v6587_v15   ;;  %v6649_v31 = vpop.eup %6648 }
 0xbe5   : > { %v6651_v25 = vpop.eup %6650 }
 0xbe7   : > { %4889 = vperm.xlu1 %6523, %v6589_v37  }
 0xbe8   : > { %4884 = vperm.xlu0 %6522, %v6591_v52  }
 0xbeb   : > { %4899 = vperm.xlu1 %6523, %v6593_v62  }
 0xbec   : > { %4894 = vperm.xlu0 %6522, %v6595_v10  }
 0xbef   : > { %4909 = vperm.xlu1 %6523, %v6597_v40  }
 0xbf0   : > { %4904 = vperm.xlu0 %6522, %v6599_v60  }
 0xbf3   : > { %4919 = vperm.xlu1 %6523, %v6601_v3  }
 0xbf4   : > { %4914 = vperm.xlu0 %6522, %v6603_v24  }
 0xbf7   : > { %4929 = vperm.xlu1 %6523, %v6605_v33  }
 0xbf8   : > { %4924 = vperm.xlu0 %6522, %v6607_v59  }
 0xbfb   : > { %4939 = vperm.xlu1 %6523, %v6609_v6  }
 0xbfc   : > { %4934 = vperm.xlu0 %6522, %v6611_v13  }
 0xbff   : > { %4949 = vperm.xlu1 %6523, %v6613_v9  }
 0xc00   : > { %4944 = vperm.xlu0 %6522, %v6615_v34  }
 0xc03   : > { %4959 = vperm.xlu1 %6523, %v6617_v58  }
 0xc04   : > { %4954 = vperm.xlu0 %6522, %v6619_v30  }
 0xc07   : > { %5115 = vperm.xlu1 %6523, %v6621_v7  }
 0xc08   : > { %5110 = vperm.xlu0 %6522, %v6623_v42  }
 0xc0b   : > { %5125 = vperm.xlu1 %6523, %v6625_v17  }
 0xc0c   : > { %5120 = vperm.xlu0 %6522, %v6627_v54  }
 0xc0f   : > { %5135 = vperm.xlu1 %6523, %v6629_v57  }
 0xc10   : > { %5130 = vperm.xlu0 %6522, %v6631_v2  }
 0xc13   : > { %5145 = vperm.xlu1 %6523, %v6633_v48  }
 0xc14   : > { %5140 = vperm.xlu0 %6522, %v6635_v18  }
 0xc17   : > { %5155 = vperm.xlu1 %6523, %v6637_v38  }
 0xc18   : > { %5150 = vperm.xlu0 %6522, %v6639_v27  }
 0xc1b   : > { %5165 = vperm.xlu1 %6523, %v6641_v46  }
 0xc1c   : > { %5160 = vperm.xlu0 %6522, %v6643_v56  }
 0xc1f   : > { %5175 = vperm.xlu1 %6523, %v6645_v47  }
 0xc20   : > { %5170 = vperm.xlu0 %6522, %v6647_v4  }
 0xc23   : > { %5185 = vperm.xlu1 %6523, %v6649_v31  }
 0xc24   : > { %5180 = vperm.xlu0 %6522, %v6651_v25  }
 0xc26   : > { %v4443_v39 = vpop.permute.xlu1 %4442 }
 0xc27   : > { %v4512_v14 = vmul.f32 %v4443_v39, %v9581_v8  ;;  %v4433_v5 = vpop.permute.xlu0 %4432 }
 0xc28   : > { %v4510_v15 = vmul.f32 %v4433_v5, %v9583_v36 }
 0xc29   : > { %v5631_v37 = vpack.c.bf16 %v4512_v14, %v4512_v14 }
 0xc2a   : > { %v5629_v52 = vpack.c.bf16 %v4510_v15, %v4510_v15  ;;  %v4448_v16 = vpop.permute.xlu1 %4447 }
 0xc2b   : > { %4593 = vst.msk [vmem:[%s7236_s12 + $0x8] sm:$0xf] %vm4590_vm5, %v5631_v37  ;;  %v4513_v62 = vmul.f32 %v4448_v16, %v9587_v50  ;;  %v4438_v61 = vpop.permute.xlu0 %4437 }
 0xc2c   : > { %4591 = vst.msk [vmem:[%s7236_s12] sm:$0xf] %vm4590_vm5, %v5629_v52  ;;  %v4511_v10 = vmul.f32 %v4438_v61, %v9589_v44 }
 0xc2d   : > { %v5632_v40 = vpack.c.bf16 %v4513_v62, %v4513_v62 }
 0xc2e   : > { %v5630_v60 = vpack.c.bf16 %v4511_v10, %v4511_v10  ;;  %v4458_v63 = vpop.permute.xlu1 %4457 }
 0xc2f   : > { %4594 = vst.msk [vmem:[%s7236_s12 + $0xc] sm:$0xf] %vm4590_vm5, %v5632_v40  ;;  %v4515_v3 = vmul.f32 %v4458_v63, %v9597_v19  ;;  %v4453_v23 = vpop.permute.xlu0 %4452 }
 0xc30   : > { %4592 = vst.msk [vmem:[%s7236_s12 + $0x4] sm:$0xf] %vm4590_vm5, %v5630_v60  ;;  %v4514_v24 = vmul.f32 %v4453_v23, %v9599_v32 }
 0xc31   : > { %v5634_v33 = vpack.c.bf16 %v4515_v3, %v4515_v3 }
 0xc32   : > { %v5633_v59 = vpack.c.bf16 %v4514_v24, %v4514_v24  ;;  %v4468_v43 = vpop.permute.xlu1 %4467 }
 0xc33   : > { %4596 = vst.msk [vmem:[%s7236_s12 + $0x14] sm:$0xf] %vm4590_vm5, %v5634_v33  ;;  %v4517_v6 = vmul.f32 %v4468_v43, %v9607_v41  ;;  %v4463_v11 = vpop.permute.xlu0 %4462 }
 0xc34   : > { %4595 = vst.msk [vmem:[%s7236_s12 + $0x10] sm:$0xf] %vm4590_vm5, %v5633_v59  ;;  %v4516_v13 = vmul.f32 %v4463_v11, %v9609_v45 }
 0xc35   : > { %v5636_v9 = vpack.c.bf16 %v4517_v6, %v4517_v6 }
 0xc36   : > { %v5635_v34 = vpack.c.bf16 %v4516_v13, %v4516_v13  ;;  %v4478_v0 = vpop.permute.xlu1 %4477 }
 0xc37   : > { %4598 = vst.msk [vmem:[%s7236_s12 + $0x1c] sm:$0xf] %vm4590_vm5, %v5636_v9  ;;  %v4519_v58 = vmul.f32 %v4478_v0, %v9617_v28  ;;  %v4473_v55 = vpop.permute.xlu0 %4472 }
 0xc38   : > { %4597 = vst.msk [vmem:[%s7236_s12 + $0x18] sm:$0xf] %vm4590_vm5, %v5635_v34  ;;  %v4518_v30 = vmul.f32 %v4473_v55, %v9619_v1 }
 0xc39   : > { %v5638_v7 = vpack.c.bf16 %v4519_v58, %v4519_v58 }
 0xc3a   : > { %v5637_v42 = vpack.c.bf16 %v4518_v30, %v4518_v30  ;;  %v4488_v49 = vpop.permute.xlu1 %4487 }
 0xc3b   : > { %4600 = vst.msk [vmem:[%s7236_s12 + $0x24] sm:$0xf] %vm4590_vm5, %v5638_v7  ;;  %v4521_v17 = vmul.f32 %v4488_v49, %v9627_v21  ;;  %v4483_v35 = vpop.permute.xlu0 %4482 }
 0xc3c   : > { %4599 = vst.msk [vmem:[%s7236_s12 + $0x20] sm:$0xf] %vm4590_vm5, %v5637_v42  ;;  %v4520_v54 = vmul.f32 %v4483_v35, %v9629_v51 }
 0xc3d   : > { %v5640_v57 = vpack.c.bf16 %v4521_v17, %v4521_v17 }
 0xc3e   : > { %v5639_v2 = vpack.c.bf16 %v4520_v54, %v4520_v54  ;;  %v4498_v29 = vpop.permute.xlu1 %4497 }
 0xc3f   : > { %4602 = vst.msk [vmem:[%s7236_s12 + $0x2c] sm:$0xf] %vm4590_vm5, %v5640_v57  ;;  %v4523_v48 = vmul.f32 %v4498_v29, %v9637_v20  ;;  %v4493_v53 = vpop.permute.xlu0 %4492 }
 0xc40   : > { %4601 = vst.msk [vmem:[%s7236_s12 + $0x28] sm:$0xf] %vm4590_vm5, %v5639_v2  ;;  %v4522_v18 = vmul.f32 %v4493_v53, %v9639_v12 }
 0xc41   : > { %v5642_v38 = vpack.c.bf16 %v4523_v48, %v4523_v48 }
 0xc42   : > { %v5641_v27 = vpack.c.bf16 %v4522_v18, %v4522_v18  ;;  %v4508_v46 = vpop.permute.xlu1 %4507 }
 0xc43   : > { %4604 = vst.msk [vmem:[%s7236_s12 + $0x34] sm:$0xf] %vm4590_vm5, %v5642_v38  ;;  %v4525_v56 = vmul.f32 %v4508_v46, %v9647_v26  ;;  %v4503_v47 = vpop.permute.xlu0 %4502 }
 0xc44   : > { %4603 = vst.msk [vmem:[%s7236_s12 + $0x30] sm:$0xf] %vm4590_vm5, %v5641_v27  ;;  %v4524_v4 = vmul.f32 %v4503_v47, %v9649_v22 }
 0xc45   : > { %v5644_v31 = vpack.c.bf16 %v4525_v56, %v4525_v56 }
 0xc46   : > { %v5643_v25 = vpack.c.bf16 %v4524_v4, %v4524_v4  ;;  %v4664_v39 = vpop.permute.xlu1 %4663 }
 0xc47   : > { %4606 = vst.msk [vmem:[%s7236_s12 + $0x3c] sm:$0xf] %vm4590_vm5, %v5644_v31  ;;  %v4737_v14 = vmul.f32 %v4664_v39, %v9589_v44  ;;  %v4659_v5 = vpop.permute.xlu0 %4658 }
 0xc48   : > { %4605 = vst.msk [vmem:[%s7236_s12 + $0x38] sm:$0xf] %vm4590_vm5, %v5643_v25  ;;  %v4736_v15 = vmul.f32 %v4659_v5, %v9583_v36 }
 0xc49   : > { %v5646_v37 = vpack.c.bf16 %v4737_v14, %v4737_v14 }
 0xc4a   : > { %v5645_v52 = vpack.c.bf16 %v4736_v15, %v4736_v15  ;;  %v4674_v16 = vpop.permute.xlu1 %4673 }
 0xc4b   : > { %4818 = vst.msk [vmem:[%s7236_s12 + $0x4] sm:$0xf] %vm4816_vm6, %v5646_v37  ;;  %v4739_v62 = vmul.f32 %v4674_v16, %v9587_v50  ;;  %v4669_v61 = vpop.permute.xlu0 %4668 }
 0xc4c   : > { %4817 = vst.msk [vmem:[%s7236_s12] sm:$0xf] %vm4816_vm6, %v5645_v52  ;;  %v4738_v10 = vmul.f32 %v4669_v61, %v9581_v8 }
 0xc4d   : > { %v5648_v40 = vpack.c.bf16 %v4739_v62, %v4739_v62 }
 0xc4e   : > { %v5647_v60 = vpack.c.bf16 %v4738_v10, %v4738_v10  ;;  %v4684_v63 = vpop.permute.xlu1 %4683 }
 0xc4f   : > { %4820 = vst.msk [vmem:[%s7236_s12 + $0xc] sm:$0xf] %vm4816_vm6, %v5648_v40  ;;  %v4741_v3 = vmul.f32 %v4684_v63, %v9597_v19  ;;  %v4679_v23 = vpop.permute.xlu0 %4678 }
 0xc50   : > { %4819 = vst.msk [vmem:[%s7236_s12 + $0x8] sm:$0xf] %vm4816_vm6, %v5647_v60  ;;  %v4740_v24 = vmul.f32 %v4679_v23, %v9599_v32 }
 0xc51   : > { %v5650_v33 = vpack.c.bf16 %v4741_v3, %v4741_v3 }
 0xc52   : > { %v5649_v59 = vpack.c.bf16 %v4740_v24, %v4740_v24  ;;  %v4694_v43 = vpop.permute.xlu1 %4693 }
 0xc53   : > { %4822 = vst.msk [vmem:[%s7236_s12 + $0x14] sm:$0xf] %vm4816_vm6, %v5650_v33  ;;  %v4743_v6 = vmul.f32 %v4694_v43, %v9607_v41  ;;  %v4689_v11 = vpop.permute.xlu0 %4688 }
 0xc54   : > { %4821 = vst.msk [vmem:[%s7236_s12 + $0x10] sm:$0xf] %vm4816_vm6, %v5649_v59  ;;  %v4742_v13 = vmul.f32 %v4689_v11, %v9609_v45 }
 0xc55   : > { %v5652_v9 = vpack.c.bf16 %v4743_v6, %v4743_v6 }
 0xc56   : > { %v5651_v34 = vpack.c.bf16 %v4742_v13, %v4742_v13  ;;  %v4704_v0 = vpop.permute.xlu1 %4703 }
 0xc57   : > { %4824 = vst.msk [vmem:[%s7236_s12 + $0x1c] sm:$0xf] %vm4816_vm6, %v5652_v9  ;;  %v4745_v58 = vmul.f32 %v4704_v0, %v9617_v28  ;;  %v4699_v55 = vpop.permute.xlu0 %4698 }
 0xc58   : > { %4823 = vst.msk [vmem:[%s7236_s12 + $0x18] sm:$0xf] %vm4816_vm6, %v5651_v34  ;;  %v4744_v30 = vmul.f32 %v4699_v55, %v9619_v1 }
 0xc59   : > { %v5654_v7 = vpack.c.bf16 %v4745_v58, %v4745_v58 }
 0xc5a   : > { %v5653_v42 = vpack.c.bf16 %v4744_v30, %v4744_v30  ;;  %v4714_v49 = vpop.permute.xlu1 %4713 }
 0xc5b   : > { %4826 = vst.msk [vmem:[%s7236_s12 + $0x24] sm:$0xf] %vm4816_vm6, %v5654_v7  ;;  %v4747_v17 = vmul.f32 %v4714_v49, %v9627_v21  ;;  %v4709_v35 = vpop.permute.xlu0 %4708 }
 0xc5c   : > { %4825 = vst.msk [vmem:[%s7236_s12 + $0x20] sm:$0xf] %vm4816_vm6, %v5653_v42  ;;  %v4746_v54 = vmul.f32 %v4709_v35, %v9629_v51 }
 0xc5d   : > { %v5656_v57 = vpack.c.bf16 %v4747_v17, %v4747_v17 }
 0xc5e   : > { %v5655_v2 = vpack.c.bf16 %v4746_v54, %v4746_v54  ;;  %v4724_v29 = vpop.permute.xlu1 %4723 }
 0xc5f   : > { %4828 = vst.msk [vmem:[%s7236_s12 + $0x2c] sm:$0xf] %vm4816_vm6, %v5656_v57  ;;  %v4749_v48 = vmul.f32 %v4724_v29, %v9637_v20  ;;  %v4719_v53 = vpop.permute.xlu0 %4718 }
 0xc60   : > { %4827 = vst.msk [vmem:[%s7236_s12 + $0x28] sm:$0xf] %vm4816_vm6, %v5655_v2  ;;  %v4748_v18 = vmul.f32 %v4719_v53, %v9639_v12 }
 0xc61   : > { %v5658_v38 = vpack.c.bf16 %v4749_v48, %v4749_v48 }
 0xc62   : > { %v5657_v27 = vpack.c.bf16 %v4748_v18, %v4748_v18  ;;  %v4734_v46 = vpop.permute.xlu1 %4733 }
 0xc63   : > { %4830 = vst.msk [vmem:[%s7236_s12 + $0x34] sm:$0xf] %vm4816_vm6, %v5658_v38  ;;  %v4751_v56 = vmul.f32 %v4734_v46, %v9647_v26  ;;  %v4729_v47 = vpop.permute.xlu0 %4728 }
 0xc64   : > { %4829 = vst.msk [vmem:[%s7236_s12 + $0x30] sm:$0xf] %vm4816_vm6, %v5657_v27  ;;  %v4750_v4 = vmul.f32 %v4729_v47, %v9649_v22 }
 0xc65   : > { %v5660_v31 = vpack.c.bf16 %v4751_v56, %v4751_v56 }
 0xc66   : > { %v5659_v25 = vpack.c.bf16 %v4750_v4, %v4750_v4  ;;  %v4890_v39 = vpop.permute.xlu1 %4889 }
 0xc67   : > { %4832 = vst.msk [vmem:[%s7236_s12 + $0x3c] sm:$0xf] %vm4816_vm6, %v5660_v31  ;;  %v4963_v14 = vmul.f32 %v4890_v39, %v9589_v44  ;;  %v4885_v5 = vpop.permute.xlu0 %4884 }
 0xc68   : > { %4831 = vst.msk [vmem:[%s7236_s12 + $0x38] sm:$0xf] %vm4816_vm6, %v5659_v25  ;;  %v4962_v15 = vmul.f32 %v4885_v5, %v9583_v36 }
 0xc69   : > { %v5662_v37 = vpack.c.bf16 %v4963_v14, %v4963_v14 }
 0xc6a   : > { %v5661_v52 = vpack.c.bf16 %v4962_v15, %v4962_v15  ;;  %v4900_v16 = vpop.permute.xlu1 %4899 }
 0xc6b   : > { %5044 = vst.msk [vmem:[%s7236_s12 + $0x4] sm:$0xf] %vm5042_vm7, %v5662_v37  ;;  %v4965_v62 = vmul.f32 %v4900_v16, %v9587_v50  ;;  %v4895_v61 = vpop.permute.xlu0 %4894 }
 0xc6c   : > { %5043 = vst.msk [vmem:[%s7236_s12] sm:$0xf] %vm5042_vm7, %v5661_v52  ;;  %v4964_v10 = vmul.f32 %v4895_v61, %v9581_v8 }
 0xc6d   : > { %v5664_v40 = vpack.c.bf16 %v4965_v62, %v4965_v62 }
 0xc6e   : > { %v5663_v60 = vpack.c.bf16 %v4964_v10, %v4964_v10  ;;  %v4910_v63 = vpop.permute.xlu1 %4909 }
 0xc6f   : > { %5046 = vst.msk [vmem:[%s7236_s12 + $0xc] sm:$0xf] %vm5042_vm7, %v5664_v40  ;;  %v4967_v3 = vmul.f32 %v4910_v63, %v9597_v19  ;;  %v4905_v23 = vpop.permute.xlu0 %4904 }
 0xc70   : > { %5045 = vst.msk [vmem:[%s7236_s12 + $0x8] sm:$0xf] %vm5042_vm7, %v5663_v60  ;;  %v4966_v24 = vmul.f32 %v4905_v23, %v9599_v32 }
 0xc71   : > { %v5666_v33 = vpack.c.bf16 %v4967_v3, %v4967_v3 }
 0xc72   : > { %v5665_v59 = vpack.c.bf16 %v4966_v24, %v4966_v24  ;;  %v4920_v43 = vpop.permute.xlu1 %4919 }
 0xc73   : > { %5048 = vst.msk [vmem:[%s7236_s12 + $0x14] sm:$0xf] %vm5042_vm7, %v5666_v33  ;;  %v4969_v6 = vmul.f32 %v4920_v43, %v9607_v41  ;;  %v4915_v11 = vpop.permute.xlu0 %4914 }
 0xc74   : > { %5047 = vst.msk [vmem:[%s7236_s12 + $0x10] sm:$0xf] %vm5042_vm7, %v5665_v59  ;;  %v4968_v13 = vmul.f32 %v4915_v11, %v9609_v45 }
 0xc75   : > { %v5668_v9 = vpack.c.bf16 %v4969_v6, %v4969_v6 }
 0xc76   : > { %v5667_v34 = vpack.c.bf16 %v4968_v13, %v4968_v13  ;;  %v4930_v0 = vpop.permute.xlu1 %4929 }
 0xc77   : > { %5050 = vst.msk [vmem:[%s7236_s12 + $0x1c] sm:$0xf] %vm5042_vm7, %v5668_v9  ;;  %v4971_v58 = vmul.f32 %v4930_v0, %v9617_v28  ;;  %v4925_v55 = vpop.permute.xlu0 %4924 }
 0xc78   : > { %5049 = vst.msk [vmem:[%s7236_s12 + $0x18] sm:$0xf] %vm5042_vm7, %v5667_v34  ;;  %v4970_v30 = vmul.f32 %v4925_v55, %v9619_v1 }
 0xc79   : > { %v5670_v7 = vpack.c.bf16 %v4971_v58, %v4971_v58 }
 0xc7a   : > { %v5669_v42 = vpack.c.bf16 %v4970_v30, %v4970_v30  ;;  %v4940_v49 = vpop.permute.xlu1 %4939 }
 0xc7b   : > { %5052 = vst.msk [vmem:[%s7236_s12 + $0x24] sm:$0xf] %vm5042_vm7, %v5670_v7  ;;  %v4973_v17 = vmul.f32 %v4940_v49, %v9627_v21  ;;  %v4935_v35 = vpop.permute.xlu0 %4934 }
 0xc7c   : > { %5051 = vst.msk [vmem:[%s7236_s12 + $0x20] sm:$0xf] %vm5042_vm7, %v5669_v42  ;;  %v4972_v54 = vmul.f32 %v4935_v35, %v9629_v51 }
 0xc7d   : > { %v5672_v57 = vpack.c.bf16 %v4973_v17, %v4973_v17 }
 0xc7e   : > { %v5671_v2 = vpack.c.bf16 %v4972_v54, %v4972_v54  ;;  %v4950_v29 = vpop.permute.xlu1 %4949 }
 0xc7f   : > { %5054 = vst.msk [vmem:[%s7236_s12 + $0x2c] sm:$0xf] %vm5042_vm7, %v5672_v57  ;;  %v4975_v48 = vmul.f32 %v4950_v29, %v9637_v20  ;;  %v4945_v53 = vpop.permute.xlu0 %4944 }
 0xc80   : > { %5053 = vst.msk [vmem:[%s7236_s12 + $0x28] sm:$0xf] %vm5042_vm7, %v5671_v2  ;;  %v4974_v18 = vmul.f32 %v4945_v53, %v9639_v12 }
 0xc81   : > { %v5674_v38 = vpack.c.bf16 %v4975_v48, %v4975_v48 }
 0xc82   : > { %v5673_v27 = vpack.c.bf16 %v4974_v18, %v4974_v18  ;;  %v4960_v46 = vpop.permute.xlu1 %4959 }
 0xc83   : > { %5056 = vst.msk [vmem:[%s7236_s12 + $0x34] sm:$0xf] %vm5042_vm7, %v5674_v38  ;;  %v4977_v56 = vmul.f32 %v4960_v46, %v9647_v26  ;;  %v4955_v47 = vpop.permute.xlu0 %4954 }
 0xc84   : > { %5055 = vst.msk [vmem:[%s7236_s12 + $0x30] sm:$0xf] %vm5042_vm7, %v5673_v27  ;;  %v4976_v4 = vmul.f32 %v4955_v47, %v9649_v22 }
 0xc85   : > { %v5676_v31 = vpack.c.bf16 %v4977_v56, %v4977_v56 }
 0xc86   : > { %v5675_v25 = vpack.c.bf16 %v4976_v4, %v4976_v4  ;;  %v5116_v39 = vpop.permute.xlu1 %5115 }
 0xc87   : > { %5058 = vst.msk [vmem:[%s7236_s12 + $0x3c] sm:$0xf] %vm5042_vm7, %v5676_v31  ;;  %v5189_v14 = vmul.f32 %v5116_v39, %v9589_v44  ;;  %v5111_v5 = vpop.permute.xlu0 %5110 }
 0xc88   : > { %5057 = vst.msk [vmem:[%s7236_s12 + $0x38] sm:$0xf] %vm5042_vm7, %v5675_v25  ;;  %v5188_v15 = vmul.f32 %v5111_v5, %v9583_v36 }
 0xc89   : > { %v5678_v37 = vpack.c.bf16 %v5189_v14, %v5189_v14 }
 0xc8a   : > { %v5677_v52 = vpack.c.bf16 %v5188_v15, %v5188_v15  ;;  %v5126_v16 = vpop.permute.xlu1 %5125 }
 0xc8b   : > { %5270 = vst.msk [vmem:[%s7236_s12 + $0x4] sm:$0xf] %vm5268_vm8, %v5678_v37  ;;  %v5191_v62 = vmul.f32 %v5126_v16, %v9587_v50  ;;  %v5121_v61 = vpop.permute.xlu0 %5120 }
 0xc8c   : > { %5269 = vst.msk [vmem:[%s7236_s12] sm:$0xf] %vm5268_vm8, %v5677_v52  ;;  %v5190_v44 = vmul.f32 %v5121_v61, %v9581_v8 }
 0xc8d   : > { %v5680_v10 = vpack.c.bf16 %v5191_v62, %v5191_v62 }
 0xc8e   : > { %v5679_v40 = vpack.c.bf16 %v5190_v44, %v5190_v44  ;;  %v5136_v60 = vpop.permute.xlu1 %5135 }
 0xc8f   : > { %5272 = vst.msk [vmem:[%s7236_s12 + $0xc] sm:$0xf] %vm5268_vm8, %v5680_v10  ;;  %v5193_v36 = vmul.f32 %v5136_v60, %v9597_v19  ;;  %v5131_v63 = vpop.permute.xlu0 %5130 }
 0xc90   : > { %5271 = vst.msk [vmem:[%s7236_s12 + $0x8] sm:$0xf] %vm5268_vm8, %v5679_v40  ;;  %v5192_v50 = vmul.f32 %v5131_v63, %v9599_v32 }
 0xc91   : > { %v5682_v3 = vpack.c.bf16 %v5193_v36, %v5193_v36 }
 0xc92   : > { %v5681_v23 = vpack.c.bf16 %v5192_v50, %v5192_v50  ;;  %v5146_v24 = vpop.permute.xlu1 %5145 }
 0xc93   : > { %5274 = vst.msk [vmem:[%s7236_s12 + $0x14] sm:$0xf] %vm5268_vm8, %v5682_v3  ;;  %v5195_v8 = vmul.f32 %v5146_v24, %v9607_v41  ;;  %v5141_v33 = vpop.permute.xlu0 %5140 }
 0xc94   : > { %5273 = vst.msk [vmem:[%s7236_s12 + $0x10] sm:$0xf] %vm5268_vm8, %v5681_v23  ;;  %v5194_v19 = vmul.f32 %v5141_v33, %v9609_v45 }
 0xc95   : > { %v5684_v59 = vpack.c.bf16 %v5195_v8, %v5195_v8 }
 0xc96   : > { %v5683_v43 = vpack.c.bf16 %v5194_v19, %v5194_v19  ;;  %v5156_v6 = vpop.permute.xlu1 %5155 }
 0xc97   : > { %5276 = vst.msk [vmem:[%s7236_s12 + $0x1c] sm:$0xf] %vm5268_vm8, %v5684_v59  ;;  %v5197_v32 = vmul.f32 %v5156_v6, %v9617_v28  ;;  %v5151_v11 = vpop.permute.xlu0 %5150 }
 0xc98   : > { %5275 = vst.msk [vmem:[%s7236_s12 + $0x18] sm:$0xf] %vm5268_vm8, %v5683_v43  ;;  %v5196_v41 = vmul.f32 %v5151_v11, %v9619_v1 }
 0xc99   : > { %v5686_v13 = vpack.c.bf16 %v5197_v32, %v5197_v32 }
 0xc9a   : > { %v5685_v9 = vpack.c.bf16 %v5196_v41, %v5196_v41  ;;  %v5166_v34 = vpop.permute.xlu1 %5165 }
 0xc9b   : > { %5278 = vst.msk [vmem:[%s7236_s12 + $0x24] sm:$0xf] %vm5268_vm8, %v5686_v13  ;;  %v5199_v45 = vmul.f32 %v5166_v34, %v9627_v21  ;;  %v5161_v0 = vpop.permute.xlu0 %5160 }
 0xc9c   : > { %5277 = vst.msk [vmem:[%s7236_s12 + $0x20] sm:$0xf] %vm5268_vm8, %v5685_v9  ;;  %v5198_v28 = vmul.f32 %v5161_v0, %v9629_v51 }
 0xc9d   : > { %v5688_v58 = vpack.c.bf16 %v5199_v45, %v5199_v45 }
 0xc9e   : > { %v5687_v55 = vpack.c.bf16 %v5198_v28, %v5198_v28  ;;  %v5176_v30 = vpop.permute.xlu1 %5175 }
 0xc9f   : > { %5280 = vst.msk [vmem:[%s7236_s12 + $0x2c] sm:$0xf] %vm5268_vm8, %v5688_v58  ;;  %v5201_v1 = vmul.f32 %v5176_v30, %v9637_v20  ;;  %v5171_v7 = vpop.permute.xlu0 %5170 }
 0xca0   : > { %5279 = vst.msk [vmem:[%s7236_s12 + $0x28] sm:$0xf] %vm5268_vm8, %v5687_v55  ;;  %v5200_v21 = vmul.f32 %v5171_v7, %v9639_v12 }
 0xca1   : > { %v5690_v42 = vpack.c.bf16 %v5201_v1, %v5201_v1 }
 0xca2   : > { %v5689_v49 = vpack.c.bf16 %v5200_v21, %v5200_v21  ;;  %v5186_v17 = vpop.permute.xlu1 %5185 }
 0xca3   : > { %5282 = vst.msk [vmem:[%s7236_s12 + $0x34] sm:$0xf] %vm5268_vm8, %v5690_v42  ;;  %v5203_v51 = vmul.f32 %v5186_v17, %v9647_v26  ;;  %v5181_v35 = vpop.permute.xlu0 %5180 }
 0xca4   : > { %5281 = vst.msk [vmem:[%s7236_s12 + $0x30] sm:$0xf] %vm5268_vm8, %v5689_v49  ;;  %v5202_v54 = vmul.f32 %v5181_v35, %v9649_v22 }
 0xca5   : > { %v5692_v57 = vpack.c.bf16 %v5203_v51, %v5203_v51 }
 0xca6   : > { %v5691_v2 = vpack.c.bf16 %v5202_v54, %v5202_v54 }
 0xca7   : > { %5284 = vst.msk [vmem:[%s7236_s12 + $0x3c] sm:$0xf] %vm5268_vm8, %v5692_v57 }
 0xca8   : > { %5283 = vst.msk [vmem:[%s7236_s12 + $0x38] sm:$0xf] %vm5268_vm8, %v5691_v2 }
 0xca9 PF: > { %s21_s30 = sadd.s32 1, %s6736_s30   ;;  %s10242_s6 = sld [smem:[#allocation12_spill]] }
 0xcaa   : > { %p18_p2 = scmp.ge.s32.totalorder %s21_s30, 4   ;;  %s10243_s9 = sld [smem:[#allocation11_spill]] }
 0xcab   : > { %s10244_s23 = smov %s6708_s24  ;;  %s10245_s24 = smov %s6868_s14 }
 0xcac   : > { %s10246_s25 = smov %s6716_s0  ;;  %s10247_s0 = smov %s6864_s8 }
 0xcad   : > { %s10248_s26 = smov %s6724_s27  ;;  %s10250_s28 = smov %s6732_s29 }
 0xcae   :  { %20 = sbr.rel (!%p18_p2) target bundleno = 20 (0x14), region = 234 }
 0xcaf   : > { %s10249_s27 = smov %s10242_s6 }
 0xcb0   : > { %s10251_s29 = smov %s10243_s9 }

</bundles_post_ra>
